<compile_context>
chip_gen: v7x
topology: tpu7x:2x2x1
jax: 0.10.0
libtpu: 0.0.40
codegen_flags: <defaults>
</compile_context>

<pallas_src>
import functools

import numpy as np

import jax
import jax.numpy as jnp
from jax.experimental import pallas as pl
from jax.experimental.pallas import tpu as pltpu

# ----------------------- synthetic configuration ---------------------------
XQUANTIZE = 16
YQUANTIZE = 16
FILTER_NUM = [4, 8, 16]          # [Cin, conv1_out, conv2_out]
KERNEL_SIZE = [3, 3]
STRIDES = [1, 1]
PADDING = [1, 1]
MAX_POOL_SIZE = [2, 2]
FC_LAYERS = [32, 10]
LAYER_DESCRIPTION = ['conv', 'pool', 'conv', 'pool', 'linear', 'linear_last']

LANE = 128                       # TPU lane width; channels / features pad to this


def compute_dim_sizes():
    """Mirror of ConvNet.compute_dim_sizes()."""
    x_dim, y_dim = XQUANTIZE, YQUANTIZE
    conv_idx = 0
    pool_idx = 0
    for action in LAYER_DESCRIPTION:
        if 'conv' in action:
            x_dim = int((x_dim - (KERNEL_SIZE[conv_idx] - STRIDES[conv_idx])
                         + 2 * PADDING[conv_idx]) / STRIDES[conv_idx])
            y_dim = int((y_dim - (KERNEL_SIZE[conv_idx] - STRIDES[conv_idx])
                         + 2 * PADDING[conv_idx]) / STRIDES[conv_idx])
            conv_idx += 1
        elif 'pool' in action:
            x_dim = int(x_dim / MAX_POOL_SIZE[pool_idx])
            y_dim = int(y_dim / MAX_POOL_SIZE[pool_idx])
            pool_idx += 1
    return x_dim, y_dim


# ------------------------------ small helpers -------------------------------
def _pick_rh(bt, ho, wo, target_rows=512):
    """Conv output rows per matmul chunk so M = bt*rh*wo ~ 512 and rh | ho."""
    rh = max(1, min(ho, max(1, target_rows // max(1, bt * wo))))
    while ho % rh:
        rh -= 1
    return rh


# ------------------------------ fused kernel --------------------------------
def _convnet_kernel(x_ref, w1_ref, b1_ref, w2_ref, b2_ref,
                    wf1_ref, bf1_ref, wf2_ref, bf2_ref,
                    out_ref,
                    act1_ref, pad2_ref, act2_ref, feat_ref,
                    *, k1, k2, p2):
    """Bt batch elements end-to-end, entirely in VMEM.

    x_ref   : (Bt, Hin+2p, Win+2p, 128) zero-padded NHWC input, bf16
    w*_ref  : conv weights per tap (k*k, 128, 128) bf16; fc weights flat bf16
    act*_ref: conv outputs flattened row-major to (Bt, H*W, 128), f32
    pad2_ref: zero-padded conv2 input (Bt, Hq1+2p, Wq1+2p, 128), bf16
    feat_ref: pooled features, lane-major (Bt, Hq2*Wq2*128), bf16
    """
    f32 = jnp.float32
    bf16 = jnp.bfloat16
    bt = x_ref.shape[0]

    def conv_relu(src_ref, w_ref, b_ref, dst_ref, ksize):
        # Stride-1 conv as a sum of ksize*ksize shifted (M,128)@(128,128)
        # bf16 matmuls with f32 accumulation; batch folded into M.
        # acc starts from the first tap's dot; bias read hoisted out of the
        # chunk loop; bias-add + ReLU done on the f32 accumulator.
        _, hp, wp, _ = src_ref.shape
        ho, wo = hp - ksize + 1, wp - ksize + 1
        rh = _pick_rh(bt, ho, wo)
        bias = b_ref[...]                                   # (1, 128) f32
        for r0 in range(0, ho, rh):
            acc = None
            for i in range(ksize):
                for j in range(ksize):
                    # TODO(synk): if the Mosaic dump shows sublane-realignment
                    # copies for the j=1,2 slices, load one (rh, wp, 128) band
                    # per vertical tap and derive the shifts with pltpu.roll.
                    patch = src_ref[:, r0 + i:r0 + i + rh, j:j + wo, :]
                    lhs = patch.reshape(bt * rh * wo, LANE)
                    d = jnp.dot(lhs, w_ref[i * ksize + j],
                                preferred_element_type=f32)
                    acc = d if acc is None else acc + d
            rows = jnp.maximum(acc + bias, 0.0)              # f32
            dst_ref[:, r0 * wo:(r0 + rh) * wo, :] = rows.reshape(bt, rh * wo, LANE)

    def pool2x2(src_ref, hp, wo, wq):
        # 2x2 max pool of output row-pair hp: 4 stride-2 sublane loads +
        # 3 elementwise f32 maxes (VPU).  No selector matmuls.
        base = 2 * hp * wo
        a = src_ref[:, pl.ds(base, wq, stride=2), :]
        b = src_ref[:, pl.ds(base + 1, wq, stride=2), :]
        c = src_ref[:, pl.ds(base + wo, wq, stride=2), :]
        d = src_ref[:, pl.ds(base + wo + 1, wq, stride=2), :]
        return jnp.maximum(jnp.maximum(a, b), jnp.maximum(c, d))  # (bt, wq, 128)

    ho1 = x_ref.shape[1] - k1 + 1
    wo1 = x_ref.shape[2] - k1 + 1
    hq1, wq1 = ho1 // 2, wo1 // 2
    ho2 = pad2_ref.shape[1] - k2 + 1
    wo2 = pad2_ref.shape[2] - k2 + 1
    hq2, wq2 = ho2 // 2, wo2 // 2

    # ---- conv block 1 (Conv2d + ReLU; default-init eval BatchNorm == id) ---
    conv_relu(x_ref, w1_ref, b1_ref, act1_ref, k1)

    # ---- maxpool 2x2, written into the zero-padded conv2 input -------------
    # Full per-step zero kept on purpose: the padded W columns share sublane
    # tiles with the interior, so border-only zeroing needs the same number of
    # masked stores; these ~(hq1+2)*bt stores sit on the non-binding vst slot.
    pad2_ref[...] = jnp.zeros(pad2_ref.shape, bf16)
    for hp in range(hq1):
        wrow = pool2x2(act1_ref, hp, wo1, wq1)               # (bt, wq1, 128) f32
        pad2_ref[:, p2 + hp, p2:p2 + wq1, :] = wrow.astype(bf16)

    # ---- conv block 2 -------------------------------------------------------
    conv_relu(pad2_ref, w2_ref, b2_ref, act2_ref, k2)

    # ---- maxpool 2x2 -> lane-major feature vector (bt, hq2*wq2*128) ---------
    for hp in range(hq2):
        wrow = pool2x2(act2_ref, hp, wo2, wq2).astype(bf16)  # (bt, wq2, 128)
        for wq in range(wq2):
            p = hp * wq2 + wq
            feat_ref[:, p * LANE:(p + 1) * LANE] = wrow[:, wq, :]

    # ---- fc1 (+ReLU) as ONE (bt, K=hq2*wq2*128) matmul, then fc2 ------------
    h1 = jnp.dot(feat_ref[...], wf1_ref[...], preferred_element_type=f32)
    h1 = jnp.maximum(h1 + bf1_ref[...], 0.0).astype(bf16)
    out = jnp.dot(h1, wf2_ref[...], preferred_element_type=f32) + bf2_ref[...]
    out_ref[...] = out.astype(out_ref.dtype)


# ------------------------------ forward wrapper ------------------------------
def convnet_forward(x_nchw, packed):
    """ConvNet.forward as a single fused pallas_call.  Returns (N, FC_LAYERS[-1])."""
    n, cin, hin, win = x_nchw.shape
    k1, k2 = KERNEL_SIZE
    s1, s2 = STRIDES
    p1, p2 = PADDING
    assert (s1, s2) == (1, 1) and MAX_POOL_SIZE == [2, 2] and cin <= LANE
    # TODO(synk): generalize the in-kernel tap slicing to strides != 1 and pool sizes != 2.
    assert n <= 8 or n % 8 == 0, "batch tile must equal n (n<=8) or be 8"
    bt = n if n <= 8 else 8                                  # batch tile per grid step

    ho1 = (hin + 2 * p1 - k1) // s1 + 1
    wo1 = (win + 2 * p1 - k1) // s1 + 1
    hq1, wq1 = ho1 // 2, wo1 // 2
    ho2 = (hq1 + 2 * p2 - k2) // s2 + 1
    wo2 = (wq1 + 2 * p2 - k2) // s2 + 1
    hq2, wq2 = ho2 // 2, wo2 // 2
    assert ho1 % 2 == 0 and wo1 % 2 == 0 and ho2 % 2 == 0 and wo2 % 2 == 0
    assert packed['wf1'].shape[0] == hq2 * wq2 * LANE

    # Wrapper glue on the hot path: NCHW->NHWC, spatial + 128-lane channel pad,
    # bf16 cast (one fused XLA pass, 81 KB/image in bf16).  The lane-padded
    # layout keeps every in-kernel tap slice/reshape a pure row renumbering;
    # the padded DMA is hidden by the BlockSpec pipeline, whereas the in-kernel
    # splat alternative (review item 4) would spend un-hidden vector stores.
    x = jnp.transpose(x_nchw, (0, 2, 3, 1))
    x = jnp.pad(x, ((0, 0), (p1, p1), (p1, p1), (0, LANE - cin))).astype(jnp.bfloat16)

    kernel = functools.partial(_convnet_kernel, k1=k1, k2=k2, p2=p2)
    out = pl.pallas_call(
        kernel,
        out_shape=jax.ShapeDtypeStruct((n, LANE), jnp.float32),
        grid=(n // bt,),
        in_specs=[
            pl.BlockSpec((bt, hin + 2 * p1, win + 2 * p1, LANE),
                         lambda g: (g, 0, 0, 0)),                       # x (batch tile)
            pl.BlockSpec((k1 * k1, LANE, LANE), lambda g: (0, 0, 0)),   # w1
            pl.BlockSpec((1, LANE), lambda g: (0, 0)),                  # b1
            pl.BlockSpec((k2 * k2, LANE, LANE), lambda g: (0, 0, 0)),   # w2
            pl.BlockSpec((1, LANE), lambda g: (0, 0)),                  # b2
            pl.BlockSpec((hq2 * wq2 * LANE, LANE), lambda g: (0, 0)),   # wf1 (flat)
            pl.BlockSpec((1, LANE), lambda g: (0, 0)),                  # bf1
            pl.BlockSpec((LANE, LANE), lambda g: (0, 0)),               # wf2
            pl.BlockSpec((1, LANE), lambda g: (0, 0)),                  # bf2
        ],
        out_specs=pl.BlockSpec((bt, LANE), lambda g: (g, 0)),
        scratch_shapes=[
            pltpu.VMEM((bt, ho1 * wo1, LANE), jnp.float32),                     # conv1 out
            pltpu.VMEM((bt, hq1 + 2 * p2, wq1 + 2 * p2, LANE), jnp.bfloat16),   # padded conv2 in
            pltpu.VMEM((bt, ho2 * wo2, LANE), jnp.float32),                     # conv2 out
            pltpu.VMEM((bt, hq2 * wq2 * LANE), jnp.bfloat16),                   # pooled features
        ],
        # TODO(synk): on v7x, switch the batch axis to pltpu.CORE_PARALLEL (or
        # pl.core_map) once batch/grid > 1 so the two TensorCores split it.
        compiler_params=pltpu.CompilerParams(
            dimension_semantics=("parallel",)),
    )(x, packed['w1'], packed['b1'], packed['w2'], packed['b2'],
      packed['wf1'], packed['bf1'], packed['wf2'], packed['bf2'])
    return out[:, :FC_LAYERS[-1]]


# ------------------------------ parameter packing ----------------------------
def pack_params(params):
    """One-time repack of torch-layout params into lane-dense bf16 kernel layouts."""
    assert len(params['conv']) == 2 and len(params['fc']) == 2, \
        "kernel is specialized to the 2-conv / 2-fc LAYER_DESCRIPTION"
    # TODO(synk): generalize packing/kernel to arbitrary LAYER_DESCRIPTION depths.
    assert STRIDES == [1, 1] and MAX_POOL_SIZE == [2, 2]
    packed = {}
    for li, (w, b) in enumerate(params['conv'], start=1):
        cout, cin, kh, kw = w.shape
        assert cin <= LANE and cout <= LANE
        wt = jnp.transpose(w, (2, 3, 1, 0)).reshape(kh * kw, cin, cout)
        packed[f'w{li}'] = (jnp.zeros((kh * kw, LANE, LANE), jnp.float32)
                            .at[:, :cin, :cout].set(wt)).astype(jnp.bfloat16)
        packed[f'b{li}'] = jnp.zeros((1, LANE), jnp.float32).at[0, :cout].set(b)

    # fc1: fold the torch NCHW flatten (c, h, w ordering) into a flat
    # (positions*128, 128) matrix matching the kernel's lane-major feature
    # layout (position-major blocks of 128 padded channels).
    hd, wd = compute_dim_sizes()
    c_last = FILTER_NUM[-1]
    w, b = params['fc'][0]
    out_f, in_f = w.shape
    assert in_f == c_last * hd * wd and out_f <= LANE
    wr = w.reshape(out_f, c_last, hd, wd)
    wr = jnp.transpose(wr, (2, 3, 1, 0)).reshape(hd * wd, c_last, out_f)
    wf1 = (jnp.zeros((hd * wd, LANE, LANE), jnp.float32)
           .at[:, :c_last, :out_f].set(wr)).reshape(hd * wd * LANE, LANE)
    packed['wf1'] = wf1.astype(jnp.bfloat16)
    packed['bf1'] = jnp.zeros((1, LANE), jnp.float32).at[0, :out_f].set(b)

    # fc2: pre-transposed to (in, out), zero-padded to 128x128.
    w, b = params['fc'][1]
    out_f, in_f = w.shape
    assert in_f <= LANE and out_f <= LANE
    packed['wf2'] = (jnp.zeros((LANE, LANE), jnp.float32)
                     .at[:in_f, :out_f].set(w.T)).astype(jnp.bfloat16)
    packed['bf2'] = jnp.zeros((1, LANE), jnp.float32).at[0, :out_f].set(b)
    return packed


# ------------------------------ parameter init -------------------------------
def init_params(key):
    """Torch-layout parameters (Conv2d: (out,in,kh,kw); Linear: (out,in))."""
    params = {'conv': [], 'fc': []}
    for ci in range(len(FILTER_NUM) - 1):
        key, k1, k2 = jax.random.split(key, 3)
        cin, cout, ks = FILTER_NUM[ci], FILTER_NUM[ci + 1], KERNEL_SIZE[ci]
        w = jax.random.normal(k1, (cout, cin, ks, ks), jnp.float32) * 0.1
        b = jax.random.normal(k2, (cout,), jnp.float32) * 0.01
        params['conv'].append((w, b))
    x_dim, y_dim = compute_dim_sizes()
    in_f = x_dim * y_dim * FILTER_NUM[-1]
    for out_f in FC_LAYERS:
        key, k1, k2 = jax.random.split(key, 3)
        w = jax.random.normal(k1, (out_f, in_f), jnp.float32) * 0.1
        b = jax.random.normal(k2, (out_f,), jnp.float32) * 0.01
        params['fc'].append((w, b))
        in_f = out_f
    return params


# --------------------------- pure-JAX reference ------------------------------
def reference_forward(x_nchw, params):
    """Pure-JAX (f32) mirror of ConvNet.forward, used only to validate the kernel."""
    hi = jax.lax.Precision.HIGHEST
    x = x_nchw
    conv_idx = pool_idx = fc_idx = 0
    for action in LAYER_DESCRIPTION:
        if 'conv' in action:
            w, b = params['conv'][conv_idx]
            s, p = STRIDES[conv_idx], PADDING[conv_idx]
            x = jax.lax.conv_general_dilated(
                x, w, window_strides=(s, s), padding=[(p, p), (p, p)],
                dimension_numbers=('NCHW', 'OIHW', 'NCHW'), precision=hi)
            x = jax.nn.relu(x + b[None, :, None, None])
            conv_idx += 1
        elif 'pool' in action:
            ps = MAX_POOL_SIZE[pool_idx]
            n, c, h, w_ = x.shape
            x = x.reshape(n, c, h // ps, ps, w_ // ps, ps).max(axis=(3, 5))
            pool_idx += 1
        elif 'linear' in action:
            if fc_idx == 0:
                x = x.reshape(x.shape[0], -1)     # torch x.view(N, -1) on NCHW
            w, b = params['fc'][fc_idx]
            x = jnp.dot(x, w.T, precision=hi) + b
            if 'last' not in action:
                x = jax.nn.relu(x)
            fc_idx += 1
    return x


if __name__ == "__main__":
    key = jax.random.PRNGKey(0)
    key, kx = jax.random.split(key)
    x = jax.random.normal(kx, (2, FILTER_NUM[0], XQUANTIZE, YQUANTIZE),
                          jnp.float32)                   # NCHW, like torch
    params = init_params(key)
    packed = pack_params(params)                         # one-time repack

    fwd = jax.jit(convnet_forward)
    out = fwd(x, packed)
    jax.block_until_ready(out)
    assert out.shape == (2, FC_LAYERS[-1]), out.shape

    # Validate the fused bf16-storage / f32-accumulate kernel against a pure
    # f32 JAX mirror of the torch module.
    ref = reference_forward(x, params)
    np.testing.assert_allclose(np.asarray(out), np.asarray(ref),
                               rtol=2e-2, atol=2e-2)
    print("KERNEL_OK")
</pallas_src>

<mosaic_0001>
module attributes {stable_mosaic.version = 11 : i64} {
  func.func @_convnet_kernel(%arg0: i32, %arg1: memref<2x18x18x128xbf16, #tpu.memory_space<vmem>>, %arg2: memref<9x128x128xbf16, #tpu.memory_space<vmem>>, %arg3: memref<1x128xf32, #tpu.memory_space<vmem>>, %arg4: memref<9x128x128xbf16, #tpu.memory_space<vmem>>, %arg5: memref<1x128xf32, #tpu.memory_space<vmem>>, %arg6: memref<2048x128xbf16, #tpu.memory_space<vmem>>, %arg7: memref<1x128xf32, #tpu.memory_space<vmem>>, %arg8: memref<128x128xbf16, #tpu.memory_space<vmem>>, %arg9: memref<1x128xf32, #tpu.memory_space<vmem>>, %arg10: memref<2x128xf32, #tpu.memory_space<vmem>>, %arg11: memref<2x256x128xf32, #tpu.memory_space<vmem>>, %arg12: memref<2x10x10x128xbf16, #tpu.memory_space<vmem>>, %arg13: memref<2x64x128xf32, #tpu.memory_space<vmem>>, %arg14: memref<2x2048xbf16, #tpu.memory_space<vmem>>) attributes {dimension_semantics = [#tpu.dimension_semantics<parallel>], iteration_bounds = array<i64: 1>, scalar_prefetch = 0 : i64, scratch_operands = 4 : i64, tpu.core_type = #tpu.core_type<tc>, window_params = [{transform_indices = @transform_0, window_bounds = array<i64: 2, 18, 18, 128>}, {pipeline_mode = #tpu.pipeline_mode<synchronous>, transform_indices = @transform_1, window_bounds = array<i64: 9, 128, 128>}, {pipeline_mode = #tpu.pipeline_mode<synchronous>, transform_indices = @transform_2, window_bounds = array<i64: 1, 128>}, {pipeline_mode = #tpu.pipeline_mode<synchronous>, transform_indices = @transform_3, window_bounds = array<i64: 9, 128, 128>}, {pipeline_mode = #tpu.pipeline_mode<synchronous>, transform_indices = @transform_4, window_bounds = array<i64: 1, 128>}, {pipeline_mode = #tpu.pipeline_mode<synchronous>, transform_indices = @transform_5, window_bounds = array<i64: 2048, 128>}, {pipeline_mode = #tpu.pipeline_mode<synchronous>, transform_indices = @transform_6, window_bounds = array<i64: 1, 128>}, {pipeline_mode = #tpu.pipeline_mode<synchronous>, transform_indices = @transform_7, window_bounds = array<i64: 128, 128>}, {pipeline_mode = #tpu.pipeline_mode<synchronous>, transform_indices = @transform_8, window_bounds = array<i64: 1, 128>}, {transform_indices = @transform_9, window_bounds = array<i64: 2, 128>}]} {
    %c0 = arith.constant 0 : index
    %c0_0 = arith.constant 0 : index
    %0 = vector.load %arg3[%c0, %c0_0] : memref<1x128xf32, #tpu.memory_space<vmem>>, vector<1x128xf32>
    %c0_1 = arith.constant 0 : index
    %c0_2 = arith.constant 0 : index
    %c0_3 = arith.constant 0 : index
    %c0_4 = arith.constant 0 : index
    %1 = vector.load %arg1[%c0_1, %c0_2, %c0_3, %c0_4] : memref<2x18x18x128xbf16, #tpu.memory_space<vmem>>, vector<2x16x16x128xbf16>
    %2 = vector.shape_cast %1 : vector<2x16x16x128xbf16> to vector<512x128xbf16>
    %c0_5 = arith.constant 0 : index
    %c0_6 = arith.constant 0 : index
    %c0_7 = arith.constant 0 : index
    %3 = vector.load %arg2[%c0_5, %c0_6, %c0_7] : memref<9x128x128xbf16, #tpu.memory_space<vmem>>, vector<1x128x128xbf16>
    %4 = vector.shape_cast %3 : vector<1x128x128xbf16> to vector<128x128xbf16>
    %cst = arith.constant dense<0.000000e+00> : vector<512x128xf32>
    %5 = tpu.matmul %2, %4, %cst {dimension_numbers = #tpu.dot_dimension_numbers<[1], [0], [0], [1], [0, 0, 1, 1], [], []>} : vector<512x128xbf16>, vector<128x128xbf16>, vector<512x128xf32> -> vector<512x128xf32>
    %c0_8 = arith.constant 0 : index
    %c0_9 = arith.constant 0 : index
    %c1 = arith.constant 1 : index
    %c0_10 = arith.constant 0 : index
    %6 = vector.load %arg1[%c0_8, %c0_9, %c1, %c0_10] : memref<2x18x18x128xbf16, #tpu.memory_space<vmem>>, vector<2x16x16x128xbf16>
    %7 = vector.shape_cast %6 : vector<2x16x16x128xbf16> to vector<512x128xbf16>
    %c1_11 = arith.constant 1 : index
    %c0_12 = arith.constant 0 : index
    %c0_13 = arith.constant 0 : index
    %8 = vector.load %arg2[%c1_11, %c0_12, %c0_13] : memref<9x128x128xbf16, #tpu.memory_space<vmem>>, vector<1x128x128xbf16>
    %9 = vector.shape_cast %8 : vector<1x128x128xbf16> to vector<128x128xbf16>
    %cst_14 = arith.constant dense<0.000000e+00> : vector<512x128xf32>
    %10 = tpu.matmul %7, %9, %cst_14 {dimension_numbers = #tpu.dot_dimension_numbers<[1], [0], [0], [1], [0, 0, 1, 1], [], []>} : vector<512x128xbf16>, vector<128x128xbf16>, vector<512x128xf32> -> vector<512x128xf32>
    %11 = arith.addf %5, %10 : vector<512x128xf32>
    %c0_15 = arith.constant 0 : index
    %c0_16 = arith.constant 0 : index
    %c2 = arith.constant 2 : index
    %c0_17 = arith.constant 0 : index
    %12 = vector.load %arg1[%c0_15, %c0_16, %c2, %c0_17] : memref<2x18x18x128xbf16, #tpu.memory_space<vmem>>, vector<2x16x16x128xbf16>
    %13 = vector.shape_cast %12 : vector<2x16x16x128xbf16> to vector<512x128xbf16>
    %c2_18 = arith.constant 2 : index
    %c0_19 = arith.constant 0 : index
    %c0_20 = arith.constant 0 : index
    %14 = vector.load %arg2[%c2_18, %c0_19, %c0_20] : memref<9x128x128xbf16, #tpu.memory_space<vmem>>, vector<1x128x128xbf16>
    %15 = vector.shape_cast %14 : vector<1x128x128xbf16> to vector<128x128xbf16>
    %cst_21 = arith.constant dense<0.000000e+00> : vector<512x128xf32>
    %16 = tpu.matmul %13, %15, %cst_21 {dimension_numbers = #tpu.dot_dimension_numbers<[1], [0], [0], [1], [0, 0, 1, 1], [], []>} : vector<512x128xbf16>, vector<128x128xbf16>, vector<512x128xf32> -> vector<512x128xf32>
    %17 = arith.addf %11, %16 : vector<512x128xf32>
    %c0_22 = arith.constant 0 : index
    %c1_23 = arith.constant 1 : index
    %c0_24 = arith.constant 0 : index
    %c0_25 = arith.constant 0 : index
    %18 = vector.load %arg1[%c0_22, %c1_23, %c0_24, %c0_25] : memref<2x18x18x128xbf16, #tpu.memory_space<vmem>>, vector<2x16x16x128xbf16>
    %19 = vector.shape_cast %18 : vector<2x16x16x128xbf16> to vector<512x128xbf16>
    %c3 = arith.constant 3 : index
    %c0_26 = arith.constant 0 : index
    %c0_27 = arith.constant 0 : index
    %20 = vector.load %arg2[%c3, %c0_26, %c0_27] : memref<9x128x128xbf16, #tpu.memory_space<vmem>>, vector<1x128x128xbf16>
    %21 = vector.shape_cast %20 : vector<1x128x128xbf16> to vector<128x128xbf16>
    %cst_28 = arith.constant dense<0.000000e+00> : vector<512x128xf32>
    %22 = tpu.matmul %19, %21, %cst_28 {dimension_numbers = #tpu.dot_dimension_numbers<[1], [0], [0], [1], [0, 0, 1, 1], [], []>} : vector<512x128xbf16>, vector<128x128xbf16>, vector<512x128xf32> -> vector<512x128xf32>
    %23 = arith.addf %17, %22 : vector<512x128xf32>
    %c0_29 = arith.constant 0 : index
    %c1_30 = arith.constant 1 : index
    %c1_31 = arith.constant 1 : index
    %c0_32 = arith.constant 0 : index
    %24 = vector.load %arg1[%c0_29, %c1_30, %c1_31, %c0_32] : memref<2x18x18x128xbf16, #tpu.memory_space<vmem>>, vector<2x16x16x128xbf16>
    %25 = vector.shape_cast %24 : vector<2x16x16x128xbf16> to vector<512x128xbf16>
    %c4 = arith.constant 4 : index
    %c0_33 = arith.constant 0 : index
    %c0_34 = arith.constant 0 : index
    %26 = vector.load %arg2[%c4, %c0_33, %c0_34] : memref<9x128x128xbf16, #tpu.memory_space<vmem>>, vector<1x128x128xbf16>
    %27 = vector.shape_cast %26 : vector<1x128x128xbf16> to vector<128x128xbf16>
    %cst_35 = arith.constant dense<0.000000e+00> : vector<512x128xf32>
    %28 = tpu.matmul %25, %27, %cst_35 {dimension_numbers = #tpu.dot_dimension_numbers<[1], [0], [0], [1], [0, 0, 1, 1], [], []>} : vector<512x128xbf16>, vector<128x128xbf16>, vector<512x128xf32> -> vector<512x128xf32>
    %29 = arith.addf %23, %28 : vector<512x128xf32>
    %c0_36 = arith.constant 0 : index
    %c1_37 = arith.constant 1 : index
    %c2_38 = arith.constant 2 : index
    %c0_39 = arith.constant 0 : index
    %30 = vector.load %arg1[%c0_36, %c1_37, %c2_38, %c0_39] : memref<2x18x18x128xbf16, #tpu.memory_space<vmem>>, vector<2x16x16x128xbf16>
    %31 = vector.shape_cast %30 : vector<2x16x16x128xbf16> to vector<512x128xbf16>
    %c5 = arith.constant 5 : index
    %c0_40 = arith.constant 0 : index
    %c0_41 = arith.constant 0 : index
    %32 = vector.load %arg2[%c5, %c0_40, %c0_41] : memref<9x128x128xbf16, #tpu.memory_space<vmem>>, vector<1x128x128xbf16>
    %33 = vector.shape_cast %32 : vector<1x128x128xbf16> to vector<128x128xbf16>
    %cst_42 = arith.constant dense<0.000000e+00> : vector<512x128xf32>
    %34 = tpu.matmul %31, %33, %cst_42 {dimension_numbers = #tpu.dot_dimension_numbers<[1], [0], [0], [1], [0, 0, 1, 1], [], []>} : vector<512x128xbf16>, vector<128x128xbf16>, vector<512x128xf32> -> vector<512x128xf32>
    %35 = arith.addf %29, %34 : vector<512x128xf32>
    %c0_43 = arith.constant 0 : index
    %c2_44 = arith.constant 2 : index
    %c0_45 = arith.constant 0 : index
    %c0_46 = arith.constant 0 : index
    %36 = vector.load %arg1[%c0_43, %c2_44, %c0_45, %c0_46] : memref<2x18x18x128xbf16, #tpu.memory_space<vmem>>, vector<2x16x16x128xbf16>
    %37 = vector.shape_cast %36 : vector<2x16x16x128xbf16> to vector<512x128xbf16>
    %c6 = arith.constant 6 : index
    %c0_47 = arith.constant 0 : index
    %c0_48 = arith.constant 0 : index
    %38 = vector.load %arg2[%c6, %c0_47, %c0_48] : memref<9x128x128xbf16, #tpu.memory_space<vmem>>, vector<1x128x128xbf16>
    %39 = vector.shape_cast %38 : vector<1x128x128xbf16> to vector<128x128xbf16>
    %cst_49 = arith.constant dense<0.000000e+00> : vector<512x128xf32>
    %40 = tpu.matmul %37, %39, %cst_49 {dimension_numbers = #tpu.dot_dimension_numbers<[1], [0], [0], [1], [0, 0, 1, 1], [], []>} : vector<512x128xbf16>, vector<128x128xbf16>, vector<512x128xf32> -> vector<512x128xf32>
    %41 = arith.addf %35, %40 : vector<512x128xf32>
    %c0_50 = arith.constant 0 : index
    %c2_51 = arith.constant 2 : index
    %c1_52 = arith.constant 1 : index
    %c0_53 = arith.constant 0 : index
    %42 = vector.load %arg1[%c0_50, %c2_51, %c1_52, %c0_53] : memref<2x18x18x128xbf16, #tpu.memory_space<vmem>>, vector<2x16x16x128xbf16>
    %43 = vector.shape_cast %42 : vector<2x16x16x128xbf16> to vector<512x128xbf16>
    %c7 = arith.constant 7 : index
    %c0_54 = arith.constant 0 : index
    %c0_55 = arith.constant 0 : index
    %44 = vector.load %arg2[%c7, %c0_54, %c0_55] : memref<9x128x128xbf16, #tpu.memory_space<vmem>>, vector<1x128x128xbf16>
    %45 = vector.shape_cast %44 : vector<1x128x128xbf16> to vector<128x128xbf16>
    %cst_56 = arith.constant dense<0.000000e+00> : vector<512x128xf32>
    %46 = tpu.matmul %43, %45, %cst_56 {dimension_numbers = #tpu.dot_dimension_numbers<[1], [0], [0], [1], [0, 0, 1, 1], [], []>} : vector<512x128xbf16>, vector<128x128xbf16>, vector<512x128xf32> -> vector<512x128xf32>
    %47 = arith.addf %41, %46 : vector<512x128xf32>
    %c0_57 = arith.constant 0 : index
    %c2_58 = arith.constant 2 : index
    %c2_59 = arith.constant 2 : index
    %c0_60 = arith.constant 0 : index
    %48 = vector.load %arg1[%c0_57, %c2_58, %c2_59, %c0_60] : memref<2x18x18x128xbf16, #tpu.memory_space<vmem>>, vector<2x16x16x128xbf16>
    %49 = vector.shape_cast %48 : vector<2x16x16x128xbf16> to vector<512x128xbf16>
    %c8 = arith.constant 8 : index
    %c0_61 = arith.constant 0 : index
    %c0_62 = arith.constant 0 : index
    %50 = vector.load %arg2[%c8, %c0_61, %c0_62] : memref<9x128x128xbf16, #tpu.memory_space<vmem>>, vector<1x128x128xbf16>
    %51 = vector.shape_cast %50 : vector<1x128x128xbf16> to vector<128x128xbf16>
    %cst_63 = arith.constant dense<0.000000e+00> : vector<512x128xf32>
    %52 = tpu.matmul %49, %51, %cst_63 {dimension_numbers = #tpu.dot_dimension_numbers<[1], [0], [0], [1], [0, 0, 1, 1], [], []>} : vector<512x128xbf16>, vector<128x128xbf16>, vector<512x128xf32> -> vector<512x128xf32>
    %53 = arith.addf %47, %52 : vector<512x128xf32>
    %54 = vector.broadcast %0 : vector<1x128xf32> to vector<512x128xf32>
    %55 = arith.addf %53, %54 : vector<512x128xf32>
    %cst_64 = arith.constant 0.000000e+00 : f32
    %56 = vector.broadcast %cst_64 : f32 to vector<512x128xf32>
    %57 = arith.maximumf %55, %56 : vector<512x128xf32>
    %58 = vector.shape_cast %57 : vector<512x128xf32> to vector<2x256x128xf32>
    %c0_65 = arith.constant 0 : index
    %c0_66 = arith.constant 0 : index
    %c0_67 = arith.constant 0 : index
    %59 = vector.load %arg11[%c0_65, %c0_66, %c0_67] : memref<2x256x128xf32, #tpu.memory_space<vmem>>, vector<2x256x128xf32>
    tpu.vector_store %arg11[%c0_65, %c0_66, %c0_67], %58 {strides = array<i32>} : memref<2x256x128xf32, #tpu.memory_space<vmem>>, vector<2x256x128xf32>,
    %cst_68 = arith.constant 0.000000e+00 : bf16
    %60 = vector.broadcast %cst_68 : bf16 to vector<2x10x10x128xbf16>
    %c0_69 = arith.constant 0 : index
    %c0_70 = arith.constant 0 : index
    %c0_71 = arith.constant 0 : index
    %c0_72 = arith.constant 0 : index
    %61 = vector.load %arg12[%c0_69, %c0_70, %c0_71, %c0_72] : memref<2x10x10x128xbf16, #tpu.memory_space<vmem>>, vector<2x10x10x128xbf16>
    tpu.vector_store %arg12[%c0_69, %c0_70, %c0_71, %c0_72], %60 {strides = array<i32>} : memref<2x10x10x128xbf16, #tpu.memory_space<vmem>>, vector<2x10x10x128xbf16>,
    %c0_73 = arith.constant 0 : index
    %c0_74 = arith.constant 0 : index
    %c0_75 = arith.constant 0 : index
    %62 = tpu.strided_load %arg11[%c0_73, %c0_74, %c0_75] {strides = array<i32: 1, 2, 1>} : memref<2x256x128xf32, #tpu.memory_space<vmem>>, vector<2x8x128xf32>
    %c0_76 = arith.constant 0 : index
    %c1_77 = arith.constant 1 : index
    %c0_78 = arith.constant 0 : index
    %63 = tpu.strided_load %arg11[%c0_76, %c1_77, %c0_78] {strides = array<i32: 1, 2, 1>} : memref<2x256x128xf32, #tpu.memory_space<vmem>>, vector<2x8x128xf32>
    %c0_79 = arith.constant 0 : index
    %c16 = arith.constant 16 : index
    %c0_80 = arith.constant 0 : index
    %64 = tpu.strided_load %arg11[%c0_79, %c16, %c0_80] {strides = array<i32: 1, 2, 1>} : memref<2x256x128xf32, #tpu.memory_space<vmem>>, vector<2x8x128xf32>
    %c0_81 = arith.constant 0 : index
    %c17 = arith.constant 17 : index
    %c0_82 = arith.constant 0 : index
    %65 = tpu.strided_load %arg11[%c0_81, %c17, %c0_82] {strides = array<i32: 1, 2, 1>} : memref<2x256x128xf32, #tpu.memory_space<vmem>>, vector<2x8x128xf32>
    %66 = arith.maximumf %62, %63 : vector<2x8x128xf32>
    %67 = arith.maximumf %64, %65 : vector<2x8x128xf32>
    %68 = arith.maximumf %66, %67 : vector<2x8x128xf32>
    %69 = arith.truncf %68 : vector<2x8x128xf32> to vector<2x8x128xbf16>
    %c0_83 = arith.constant 0 : index
    %c1_84 = arith.constant 1 : index
    %c1_85 = arith.constant 1 : index
    %c0_86 = arith.constant 0 : index
    %70 = vector.load %arg12[%c0_83, %c1_84, %c1_85, %c0_86] : memref<2x10x10x128xbf16, #tpu.memory_space<vmem>>, vector<2x1x8x128xbf16>
    %71 = vector.shape_cast %70 : vector<2x1x8x128xbf16> to vector<2x8x128xbf16>
    %72 = vector.shape_cast %69 : vector<2x8x128xbf16> to vector<2x1x8x128xbf16>
    tpu.vector_store %arg12[%c0_83, %c1_84, %c1_85, %c0_86], %72 {strides = array<i32>} : memref<2x10x10x128xbf16, #tpu.memory_space<vmem>>, vector<2x1x8x128xbf16>,
    %c0_87 = arith.constant 0 : index
    %c32 = arith.constant 32 : index
    %c0_88 = arith.constant 0 : index
    %73 = tpu.strided_load %arg11[%c0_87, %c32, %c0_88] {strides = array<i32: 1, 2, 1>} : memref<2x256x128xf32, #tpu.memory_space<vmem>>, vector<2x8x128xf32>
    %c0_89 = arith.constant 0 : index
    %c33 = arith.constant 33 : index
    %c0_90 = arith.constant 0 : index
    %74 = tpu.strided_load %arg11[%c0_89, %c33, %c0_90] {strides = array<i32: 1, 2, 1>} : memref<2x256x128xf32, #tpu.memory_space<vmem>>, vector<2x8x128xf32>
    %c0_91 = arith.constant 0 : index
    %c48 = arith.constant 48 : index
    %c0_92 = arith.constant 0 : index
    %75 = tpu.strided_load %arg11[%c0_91, %c48, %c0_92] {strides = array<i32: 1, 2, 1>} : memref<2x256x128xf32, #tpu.memory_space<vmem>>, vector<2x8x128xf32>
    %c0_93 = arith.constant 0 : index
    %c49 = arith.constant 49 : index
    %c0_94 = arith.constant 0 : index
    %76 = tpu.strided_load %arg11[%c0_93, %c49, %c0_94] {strides = array<i32: 1, 2, 1>} : memref<2x256x128xf32, #tpu.memory_space<vmem>>, vector<2x8x128xf32>
    %77 = arith.maximumf %73, %74 : vector<2x8x128xf32>
    %78 = arith.maximumf %75, %76 : vector<2x8x128xf32>
    %79 = arith.maximumf %77, %78 : vector<2x8x128xf32>
    %80 = arith.truncf %79 : vector<2x8x128xf32> to vector<2x8x128xbf16>
    %c0_95 = arith.constant 0 : index
    %c2_96 = arith.constant 2 : index
    %c1_97 = arith.constant 1 : index
    %c0_98 = arith.constant 0 : index
    %81 = vector.load %arg12[%c0_95, %c2_96, %c1_97, %c0_98] : memref<2x10x10x128xbf16, #tpu.memory_space<vmem>>, vector<2x1x8x128xbf16>
    %82 = vector.shape_cast %81 : vector<2x1x8x128xbf16> to vector<2x8x128xbf16>
    %83 = vector.shape_cast %80 : vector<2x8x128xbf16> to vector<2x1x8x128xbf16>
    tpu.vector_store %arg12[%c0_95, %c2_96, %c1_97, %c0_98], %83 {strides = array<i32>} : memref<2x10x10x128xbf16, #tpu.memory_space<vmem>>, vector<2x1x8x128xbf16>,
    %c0_99 = arith.constant 0 : index
    %c64 = arith.constant 64 : index
    %c0_100 = arith.constant 0 : index
    %84 = tpu.strided_load %arg11[%c0_99, %c64, %c0_100] {strides = array<i32: 1, 2, 1>} : memref<2x256x128xf32, #tpu.memory_space<vmem>>, vector<2x8x128xf32>
    %c0_101 = arith.constant 0 : index
    %c65 = arith.constant 65 : index
    %c0_102 = arith.constant 0 : index
    %85 = tpu.strided_load %arg11[%c0_101, %c65, %c0_102] {strides = array<i32: 1, 2, 1>} : memref<2x256x128xf32, #tpu.memory_space<vmem>>, vector<2x8x128xf32>
    %c0_103 = arith.constant 0 : index
    %c80 = arith.constant 80 : index
    %c0_104 = arith.constant 0 : index
    %86 = tpu.strided_load %arg11[%c0_103, %c80, %c0_104] {strides = array<i32: 1, 2, 1>} : memref<2x256x128xf32, #tpu.memory_space<vmem>>, vector<2x8x128xf32>
    %c0_105 = arith.constant 0 : index
    %c81 = arith.constant 81 : index
    %c0_106 = arith.constant 0 : index
    %87 = tpu.strided_load %arg11[%c0_105, %c81, %c0_106] {strides = array<i32: 1, 2, 1>} : memref<2x256x128xf32, #tpu.memory_space<vmem>>, vector<2x8x128xf32>
    %88 = arith.maximumf %84, %85 : vector<2x8x128xf32>
    %89 = arith.maximumf %86, %87 : vector<2x8x128xf32>
    %90 = arith.maximumf %88, %89 : vector<2x8x128xf32>
    %91 = arith.truncf %90 : vector<2x8x128xf32> to vector<2x8x128xbf16>
    %c0_107 = arith.constant 0 : index
    %c3_108 = arith.constant 3 : index
    %c1_109 = arith.constant 1 : index
    %c0_110 = arith.constant 0 : index
    %92 = vector.load %arg12[%c0_107, %c3_108, %c1_109, %c0_110] : memref<2x10x10x128xbf16, #tpu.memory_space<vmem>>, vector<2x1x8x128xbf16>
    %93 = vector.shape_cast %92 : vector<2x1x8x128xbf16> to vector<2x8x128xbf16>
    %94 = vector.shape_cast %91 : vector<2x8x128xbf16> to vector<2x1x8x128xbf16>
    tpu.vector_store %arg12[%c0_107, %c3_108, %c1_109, %c0_110], %94 {strides = array<i32>} : memref<2x10x10x128xbf16, #tpu.memory_space<vmem>>, vector<2x1x8x128xbf16>,
    %c0_111 = arith.constant 0 : index
    %c96 = arith.constant 96 : index
    %c0_112 = arith.constant 0 : index
    %95 = tpu.strided_load %arg11[%c0_111, %c96, %c0_112] {strides = array<i32: 1, 2, 1>} : memref<2x256x128xf32, #tpu.memory_space<vmem>>, vector<2x8x128xf32>
    %c0_113 = arith.constant 0 : index
    %c97 = arith.constant 97 : index
    %c0_114 = arith.constant 0 : index
    %96 = tpu.strided_load %arg11[%c0_113, %c97, %c0_114] {strides = array<i32: 1, 2, 1>} : memref<2x256x128xf32, #tpu.memory_space<vmem>>, vector<2x8x128xf32>
    %c0_115 = arith.constant 0 : index
    %c112 = arith.constant 112 : index
    %c0_116 = arith.constant 0 : index
    %97 = tpu.strided_load %arg11[%c0_115, %c112, %c0_116] {strides = array<i32: 1, 2, 1>} : memref<2x256x128xf32, #tpu.memory_space<vmem>>, vector<2x8x128xf32>
    %c0_117 = arith.constant 0 : index
    %c113 = arith.constant 113 : index
    %c0_118 = arith.constant 0 : index
    %98 = tpu.strided_load %arg11[%c0_117, %c113, %c0_118] {strides = array<i32: 1, 2, 1>} : memref<2x256x128xf32, #tpu.memory_space<vmem>>, vector<2x8x128xf32>
    %99 = arith.maximumf %95, %96 : vector<2x8x128xf32>
    %100 = arith.maximumf %97, %98 : vector<2x8x128xf32>
    %101 = arith.maximumf %99, %100 : vector<2x8x128xf32>
    %102 = arith.truncf %101 : vector<2x8x128xf32> to vector<2x8x128xbf16>
    %c0_119 = arith.constant 0 : index
    %c4_120 = arith.constant 4 : index
    %c1_121 = arith.constant 1 : index
    %c0_122 = arith.constant 0 : index
    %103 = vector.load %arg12[%c0_119, %c4_120, %c1_121, %c0_122] : memref<2x10x10x128xbf16, #tpu.memory_space<vmem>>, vector<2x1x8x128xbf16>
    %104 = vector.shape_cast %103 : vector<2x1x8x128xbf16> to vector<2x8x128xbf16>
    %105 = vector.shape_cast %102 : vector<2x8x128xbf16> to vector<2x1x8x128xbf16>
    tpu.vector_store %arg12[%c0_119, %c4_120, %c1_121, %c0_122], %105 {strides = array<i32>} : memref<2x10x10x128xbf16, #tpu.memory_space<vmem>>, vector<2x1x8x128xbf16>,
    %c0_123 = arith.constant 0 : index
    %c128 = arith.constant 128 : index
    %c0_124 = arith.constant 0 : index
    %106 = tpu.strided_load %arg11[%c0_123, %c128, %c0_124] {strides = array<i32: 1, 2, 1>} : memref<2x256x128xf32, #tpu.memory_space<vmem>>, vector<2x8x128xf32>
    %c0_125 = arith.constant 0 : index
    %c129 = arith.constant 129 : index
    %c0_126 = arith.constant 0 : index
    %107 = tpu.strided_load %arg11[%c0_125, %c129, %c0_126] {strides = array<i32: 1, 2, 1>} : memref<2x256x128xf32, #tpu.memory_space<vmem>>, vector<2x8x128xf32>
    %c0_127 = arith.constant 0 : index
    %c144 = arith.constant 144 : index
    %c0_128 = arith.constant 0 : index
    %108 = tpu.strided_load %arg11[%c0_127, %c144, %c0_128] {strides = array<i32: 1, 2, 1>} : memref<2x256x128xf32, #tpu.memory_space<vmem>>, vector<2x8x128xf32>
    %c0_129 = arith.constant 0 : index
    %c145 = arith.constant 145 : index
    %c0_130 = arith.constant 0 : index
    %109 = tpu.strided_load %arg11[%c0_129, %c145, %c0_130] {strides = array<i32: 1, 2, 1>} : memref<2x256x128xf32, #tpu.memory_space<vmem>>, vector<2x8x128xf32>
    %110 = arith.maximumf %106, %107 : vector<2x8x128xf32>
    %111 = arith.maximumf %108, %109 : vector<2x8x128xf32>
    %112 = arith.maximumf %110, %111 : vector<2x8x128xf32>
    %113 = arith.truncf %112 : vector<2x8x128xf32> to vector<2x8x128xbf16>
    %c0_131 = arith.constant 0 : index
    %c5_132 = arith.constant 5 : index
    %c1_133 = arith.constant 1 : index
    %c0_134 = arith.constant 0 : index
    %114 = vector.load %arg12[%c0_131, %c5_132, %c1_133, %c0_134] : memref<2x10x10x128xbf16, #tpu.memory_space<vmem>>, vector<2x1x8x128xbf16>
    %115 = vector.shape_cast %114 : vector<2x1x8x128xbf16> to vector<2x8x128xbf16>
    %116 = vector.shape_cast %113 : vector<2x8x128xbf16> to vector<2x1x8x128xbf16>
    tpu.vector_store %arg12[%c0_131, %c5_132, %c1_133, %c0_134], %116 {strides = array<i32>} : memref<2x10x10x128xbf16, #tpu.memory_space<vmem>>, vector<2x1x8x128xbf16>,
    %c0_135 = arith.constant 0 : index
    %c160 = arith.constant 160 : index
    %c0_136 = arith.constant 0 : index
    %117 = tpu.strided_load %arg11[%c0_135, %c160, %c0_136] {strides = array<i32: 1, 2, 1>} : memref<2x256x128xf32, #tpu.memory_space<vmem>>, vector<2x8x128xf32>
    %c0_137 = arith.constant 0 : index
    %c161 = arith.constant 161 : index
    %c0_138 = arith.constant 0 : index
    %118 = tpu.strided_load %arg11[%c0_137, %c161, %c0_138] {strides = array<i32: 1, 2, 1>} : memref<2x256x128xf32, #tpu.memory_space<vmem>>, vector<2x8x128xf32>
    %c0_139 = arith.constant 0 : index
    %c176 = arith.constant 176 : index
    %c0_140 = arith.constant 0 : index
    %119 = tpu.strided_load %arg11[%c0_139, %c176, %c0_140] {strides = array<i32: 1, 2, 1>} : memref<2x256x128xf32, #tpu.memory_space<vmem>>, vector<2x8x128xf32>
    %c0_141 = arith.constant 0 : index
    %c177 = arith.constant 177 : index
    %c0_142 = arith.constant 0 : index
    %120 = tpu.strided_load %arg11[%c0_141, %c177, %c0_142] {strides = array<i32: 1, 2, 1>} : memref<2x256x128xf32, #tpu.memory_space<vmem>>, vector<2x8x128xf32>
    %121 = arith.maximumf %117, %118 : vector<2x8x128xf32>
    %122 = arith.maximumf %119, %120 : vector<2x8x128xf32>
    %123 = arith.maximumf %121, %122 : vector<2x8x128xf32>
    %124 = arith.truncf %123 : vector<2x8x128xf32> to vector<2x8x128xbf16>
    %c0_143 = arith.constant 0 : index
    %c6_144 = arith.constant 6 : index
    %c1_145 = arith.constant 1 : index
    %c0_146 = arith.constant 0 : index
    %125 = vector.load %arg12[%c0_143, %c6_144, %c1_145, %c0_146] : memref<2x10x10x128xbf16, #tpu.memory_space<vmem>>, vector<2x1x8x128xbf16>
    %126 = vector.shape_cast %125 : vector<2x1x8x128xbf16> to vector<2x8x128xbf16>
    %127 = vector.shape_cast %124 : vector<2x8x128xbf16> to vector<2x1x8x128xbf16>
    tpu.vector_store %arg12[%c0_143, %c6_144, %c1_145, %c0_146], %127 {strides = array<i32>} : memref<2x10x10x128xbf16, #tpu.memory_space<vmem>>, vector<2x1x8x128xbf16>,
    %c0_147 = arith.constant 0 : index
    %c192 = arith.constant 192 : index
    %c0_148 = arith.constant 0 : index
    %128 = tpu.strided_load %arg11[%c0_147, %c192, %c0_148] {strides = array<i32: 1, 2, 1>} : memref<2x256x128xf32, #tpu.memory_space<vmem>>, vector<2x8x128xf32>
    %c0_149 = arith.constant 0 : index
    %c193 = arith.constant 193 : index
    %c0_150 = arith.constant 0 : index
    %129 = tpu.strided_load %arg11[%c0_149, %c193, %c0_150] {strides = array<i32: 1, 2, 1>} : memref<2x256x128xf32, #tpu.memory_space<vmem>>, vector<2x8x128xf32>
    %c0_151 = arith.constant 0 : index
    %c208 = arith.constant 208 : index
    %c0_152 = arith.constant 0 : index
    %130 = tpu.strided_load %arg11[%c0_151, %c208, %c0_152] {strides = array<i32: 1, 2, 1>} : memref<2x256x128xf32, #tpu.memory_space<vmem>>, vector<2x8x128xf32>
    %c0_153 = arith.constant 0 : index
    %c209 = arith.constant 209 : index
    %c0_154 = arith.constant 0 : index
    %131 = tpu.strided_load %arg11[%c0_153, %c209, %c0_154] {strides = array<i32: 1, 2, 1>} : memref<2x256x128xf32, #tpu.memory_space<vmem>>, vector<2x8x128xf32>
    %132 = arith.maximumf %128, %129 : vector<2x8x128xf32>
    %133 = arith.maximumf %130, %131 : vector<2x8x128xf32>
    %134 = arith.maximumf %132, %133 : vector<2x8x128xf32>
    %135 = arith.truncf %134 : vector<2x8x128xf32> to vector<2x8x128xbf16>
    %c0_155 = arith.constant 0 : index
    %c7_156 = arith.constant 7 : index
    %c1_157 = arith.constant 1 : index
    %c0_158 = arith.constant 0 : index
    %136 = vector.load %arg12[%c0_155, %c7_156, %c1_157, %c0_158] : memref<2x10x10x128xbf16, #tpu.memory_space<vmem>>, vector<2x1x8x128xbf16>
    %137 = vector.shape_cast %136 : vector<2x1x8x128xbf16> to vector<2x8x128xbf16>
    %138 = vector.shape_cast %135 : vector<2x8x128xbf16> to vector<2x1x8x128xbf16>
    tpu.vector_store %arg12[%c0_155, %c7_156, %c1_157, %c0_158], %138 {strides = array<i32>} : memref<2x10x10x128xbf16, #tpu.memory_space<vmem>>, vector<2x1x8x128xbf16>,
    %c0_159 = arith.constant 0 : index
    %c224 = arith.constant 224 : index
    %c0_160 = arith.constant 0 : index
    %139 = tpu.strided_load %arg11[%c0_159, %c224, %c0_160] {strides = array<i32: 1, 2, 1>} : memref<2x256x128xf32, #tpu.memory_space<vmem>>, vector<2x8x128xf32>
    %c0_161 = arith.constant 0 : index
    %c225 = arith.constant 225 : index
    %c0_162 = arith.constant 0 : index
    %140 = tpu.strided_load %arg11[%c0_161, %c225, %c0_162] {strides = array<i32: 1, 2, 1>} : memref<2x256x128xf32, #tpu.memory_space<vmem>>, vector<2x8x128xf32>
    %c0_163 = arith.constant 0 : index
    %c240 = arith.constant 240 : index
    %c0_164 = arith.constant 0 : index
    %141 = tpu.strided_load %arg11[%c0_163, %c240, %c0_164] {strides = array<i32: 1, 2, 1>} : memref<2x256x128xf32, #tpu.memory_space<vmem>>, vector<2x8x128xf32>
    %c0_165 = arith.constant 0 : index
    %c241 = arith.constant 241 : index
    %c0_166 = arith.constant 0 : index
    %142 = tpu.strided_load %arg11[%c0_165, %c241, %c0_166] {strides = array<i32: 1, 2, 1>} : memref<2x256x128xf32, #tpu.memory_space<vmem>>, vector<2x8x128xf32>
    %143 = arith.maximumf %139, %140 : vector<2x8x128xf32>
    %144 = arith.maximumf %141, %142 : vector<2x8x128xf32>
    %145 = arith.maximumf %143, %144 : vector<2x8x128xf32>
    %146 = arith.truncf %145 : vector<2x8x128xf32> to vector<2x8x128xbf16>
    %c0_167 = arith.constant 0 : index
    %c8_168 = arith.constant 8 : index
    %c1_169 = arith.constant 1 : index
    %c0_170 = arith.constant 0 : index
    %147 = vector.load %arg12[%c0_167, %c8_168, %c1_169, %c0_170] : memref<2x10x10x128xbf16, #tpu.memory_space<vmem>>, vector<2x1x8x128xbf16>
    %148 = vector.shape_cast %147 : vector<2x1x8x128xbf16> to vector<2x8x128xbf16>
    %149 = vector.shape_cast %146 : vector<2x8x128xbf16> to vector<2x1x8x128xbf16>
    tpu.vector_store %arg12[%c0_167, %c8_168, %c1_169, %c0_170], %149 {strides = array<i32>} : memref<2x10x10x128xbf16, #tpu.memory_space<vmem>>, vector<2x1x8x128xbf16>,
    %c0_171 = arith.constant 0 : index
    %c0_172 = arith.constant 0 : index
    %150 = vector.load %arg5[%c0_171, %c0_172] : memref<1x128xf32, #tpu.memory_space<vmem>>, vector<1x128xf32>
    %c0_173 = arith.constant 0 : index
    %c0_174 = arith.constant 0 : index
    %c0_175 = arith.constant 0 : index
    %c0_176 = arith.constant 0 : index
    %151 = vector.load %arg12[%c0_173, %c0_174, %c0_175, %c0_176] : memref<2x10x10x128xbf16, #tpu.memory_space<vmem>>, vector<2x8x8x128xbf16>
    %152 = vector.shape_cast %151 : vector<2x8x8x128xbf16> to vector<128x128xbf16>
    %c0_177 = arith.constant 0 : index
    %c0_178 = arith.constant 0 : index
    %c0_179 = arith.constant 0 : index
    %153 = vector.load %arg4[%c0_177, %c0_178, %c0_179] : memref<9x128x128xbf16, #tpu.memory_space<vmem>>, vector<1x128x128xbf16>
    %154 = vector.shape_cast %153 : vector<1x128x128xbf16> to vector<128x128xbf16>
    %cst_180 = arith.constant dense<0.000000e+00> : vector<128x128xf32>
    %155 = tpu.matmul %152, %154, %cst_180 {dimension_numbers = #tpu.dot_dimension_numbers<[1], [0], [0], [1], [0, 0, 1, 1], [], []>} : vector<128x128xbf16>, vector<128x128xbf16>, vector<128x128xf32> -> vector<128x128xf32>
    %c0_181 = arith.constant 0 : index
    %c0_182 = arith.constant 0 : index
    %c1_183 = arith.constant 1 : index
    %c0_184 = arith.constant 0 : index
    %156 = vector.load %arg12[%c0_181, %c0_182, %c1_183, %c0_184] : memref<2x10x10x128xbf16, #tpu.memory_space<vmem>>, vector<2x8x8x128xbf16>
    %157 = vector.shape_cast %156 : vector<2x8x8x128xbf16> to vector<128x128xbf16>
    %c1_185 = arith.constant 1 : index
    %c0_186 = arith.constant 0 : index
    %c0_187 = arith.constant 0 : index
    %158 = vector.load %arg4[%c1_185, %c0_186, %c0_187] : memref<9x128x128xbf16, #tpu.memory_space<vmem>>, vector<1x128x128xbf16>
    %159 = vector.shape_cast %158 : vector<1x128x128xbf16> to vector<128x128xbf16>
    %cst_188 = arith.constant dense<0.000000e+00> : vector<128x128xf32>
    %160 = tpu.matmul %157, %159, %cst_188 {dimension_numbers = #tpu.dot_dimension_numbers<[1], [0], [0], [1], [0, 0, 1, 1], [], []>} : vector<128x128xbf16>, vector<128x128xbf16>, vector<128x128xf32> -> vector<128x128xf32>
    %161 = arith.addf %155, %160 : vector<128x128xf32>
    %c0_189 = arith.constant 0 : index
    %c0_190 = arith.constant 0 : index
    %c2_191 = arith.constant 2 : index
    %c0_192 = arith.constant 0 : index
    %162 = vector.load %arg12[%c0_189, %c0_190, %c2_191, %c0_192] : memref<2x10x10x128xbf16, #tpu.memory_space<vmem>>, vector<2x8x8x128xbf16>
    %163 = vector.shape_cast %162 : vector<2x8x8x128xbf16> to vector<128x128xbf16>
    %c2_193 = arith.constant 2 : index
    %c0_194 = arith.constant 0 : index
    %c0_195 = arith.constant 0 : index
    %164 = vector.load %arg4[%c2_193, %c0_194, %c0_195] : memref<9x128x128xbf16, #tpu.memory_space<vmem>>, vector<1x128x128xbf16>
    %165 = vector.shape_cast %164 : vector<1x128x128xbf16> to vector<128x128xbf16>
    %cst_196 = arith.constant dense<0.000000e+00> : vector<128x128xf32>
    %166 = tpu.matmul %163, %165, %cst_196 {dimension_numbers = #tpu.dot_dimension_numbers<[1], [0], [0], [1], [0, 0, 1, 1], [], []>} : vector<128x128xbf16>, vector<128x128xbf16>, vector<128x128xf32> -> vector<128x128xf32>
    %167 = arith.addf %161, %166 : vector<128x128xf32>
    %c0_197 = arith.constant 0 : index
    %c1_198 = arith.constant 1 : index
    %c0_199 = arith.constant 0 : index
    %c0_200 = arith.constant 0 : index
    %168 = vector.load %arg12[%c0_197, %c1_198, %c0_199, %c0_200] : memref<2x10x10x128xbf16, #tpu.memory_space<vmem>>, vector<2x8x8x128xbf16>
    %169 = vector.shape_cast %168 : vector<2x8x8x128xbf16> to vector<128x128xbf16>
    %c3_201 = arith.constant 3 : index
    %c0_202 = arith.constant 0 : index
    %c0_203 = arith.constant 0 : index
    %170 = vector.load %arg4[%c3_201, %c0_202, %c0_203] : memref<9x128x128xbf16, #tpu.memory_space<vmem>>, vector<1x128x128xbf16>
    %171 = vector.shape_cast %170 : vector<1x128x128xbf16> to vector<128x128xbf16>
    %cst_204 = arith.constant dense<0.000000e+00> : vector<128x128xf32>
    %172 = tpu.matmul %169, %171, %cst_204 {dimension_numbers = #tpu.dot_dimension_numbers<[1], [0], [0], [1], [0, 0, 1, 1], [], []>} : vector<128x128xbf16>, vector<128x128xbf16>, vector<128x128xf32> -> vector<128x128xf32>
    %173 = arith.addf %167, %172 : vector<128x128xf32>
    %c0_205 = arith.constant 0 : index
    %c1_206 = arith.constant 1 : index
    %c1_207 = arith.constant 1 : index
    %c0_208 = arith.constant 0 : index
    %174 = vector.load %arg12[%c0_205, %c1_206, %c1_207, %c0_208] : memref<2x10x10x128xbf16, #tpu.memory_space<vmem>>, vector<2x8x8x128xbf16>
    %175 = vector.shape_cast %174 : vector<2x8x8x128xbf16> to vector<128x128xbf16>
    %c4_209 = arith.constant 4 : index
    %c0_210 = arith.constant 0 : index
    %c0_211 = arith.constant 0 : index
    %176 = vector.load %arg4[%c4_209, %c0_210, %c0_211] : memref<9x128x128xbf16, #tpu.memory_space<vmem>>, vector<1x128x128xbf16>
    %177 = vector.shape_cast %176 : vector<1x128x128xbf16> to vector<128x128xbf16>
    %cst_212 = arith.constant dense<0.000000e+00> : vector<128x128xf32>
    %178 = tpu.matmul %175, %177, %cst_212 {dimension_numbers = #tpu.dot_dimension_numbers<[1], [0], [0], [1], [0, 0, 1, 1], [], []>} : vector<128x128xbf16>, vector<128x128xbf16>, vector<128x128xf32> -> vector<128x128xf32>
    %179 = arith.addf %173, %178 : vector<128x128xf32>
    %c0_213 = arith.constant 0 : index
    %c1_214 = arith.constant 1 : index
    %c2_215 = arith.constant 2 : index
    %c0_216 = arith.constant 0 : index
    %180 = vector.load %arg12[%c0_213, %c1_214, %c2_215, %c0_216] : memref<2x10x10x128xbf16, #tpu.memory_space<vmem>>, vector<2x8x8x128xbf16>
    %181 = vector.shape_cast %180 : vector<2x8x8x128xbf16> to vector<128x128xbf16>
    %c5_217 = arith.constant 5 : index
    %c0_218 = arith.constant 0 : index
    %c0_219 = arith.constant 0 : index
    %182 = vector.load %arg4[%c5_217, %c0_218, %c0_219] : memref<9x128x128xbf16, #tpu.memory_space<vmem>>, vector<1x128x128xbf16>
    %183 = vector.shape_cast %182 : vector<1x128x128xbf16> to vector<128x128xbf16>
    %cst_220 = arith.constant dense<0.000000e+00> : vector<128x128xf32>
    %184 = tpu.matmul %181, %183, %cst_220 {dimension_numbers = #tpu.dot_dimension_numbers<[1], [0], [0], [1], [0, 0, 1, 1], [], []>} : vector<128x128xbf16>, vector<128x128xbf16>, vector<128x128xf32> -> vector<128x128xf32>
    %185 = arith.addf %179, %184 : vector<128x128xf32>
    %c0_221 = arith.constant 0 : index
    %c2_222 = arith.constant 2 : index
    %c0_223 = arith.constant 0 : index
    %c0_224 = arith.constant 0 : index
    %186 = vector.load %arg12[%c0_221, %c2_222, %c0_223, %c0_224] : memref<2x10x10x128xbf16, #tpu.memory_space<vmem>>, vector<2x8x8x128xbf16>
    %187 = vector.shape_cast %186 : vector<2x8x8x128xbf16> to vector<128x128xbf16>
    %c6_225 = arith.constant 6 : index
    %c0_226 = arith.constant 0 : index
    %c0_227 = arith.constant 0 : index
    %188 = vector.load %arg4[%c6_225, %c0_226, %c0_227] : memref<9x128x128xbf16, #tpu.memory_space<vmem>>, vector<1x128x128xbf16>
    %189 = vector.shape_cast %188 : vector<1x128x128xbf16> to vector<128x128xbf16>
    %cst_228 = arith.constant dense<0.000000e+00> : vector<128x128xf32>
    %190 = tpu.matmul %187, %189, %cst_228 {dimension_numbers = #tpu.dot_dimension_numbers<[1], [0], [0], [1], [0, 0, 1, 1], [], []>} : vector<128x128xbf16>, vector<128x128xbf16>, vector<128x128xf32> -> vector<128x128xf32>
    %191 = arith.addf %185, %190 : vector<128x128xf32>
    %c0_229 = arith.constant 0 : index
    %c2_230 = arith.constant 2 : index
    %c1_231 = arith.constant 1 : index
    %c0_232 = arith.constant 0 : index
    %192 = vector.load %arg12[%c0_229, %c2_230, %c1_231, %c0_232] : memref<2x10x10x128xbf16, #tpu.memory_space<vmem>>, vector<2x8x8x128xbf16>
    %193 = vector.shape_cast %192 : vector<2x8x8x128xbf16> to vector<128x128xbf16>
    %c7_233 = arith.constant 7 : index
    %c0_234 = arith.constant 0 : index
    %c0_235 = arith.constant 0 : index
    %194 = vector.load %arg4[%c7_233, %c0_234, %c0_235] : memref<9x128x128xbf16, #tpu.memory_space<vmem>>, vector<1x128x128xbf16>
    %195 = vector.shape_cast %194 : vector<1x128x128xbf16> to vector<128x128xbf16>
    %cst_236 = arith.constant dense<0.000000e+00> : vector<128x128xf32>
    %196 = tpu.matmul %193, %195, %cst_236 {dimension_numbers = #tpu.dot_dimension_numbers<[1], [0], [0], [1], [0, 0, 1, 1], [], []>} : vector<128x128xbf16>, vector<128x128xbf16>, vector<128x128xf32> -> vector<128x128xf32>
    %197 = arith.addf %191, %196 : vector<128x128xf32>
    %c0_237 = arith.constant 0 : index
    %c2_238 = arith.constant 2 : index
    %c2_239 = arith.constant 2 : index
    %c0_240 = arith.constant 0 : index
    %198 = vector.load %arg12[%c0_237, %c2_238, %c2_239, %c0_240] : memref<2x10x10x128xbf16, #tpu.memory_space<vmem>>, vector<2x8x8x128xbf16>
    %199 = vector.shape_cast %198 : vector<2x8x8x128xbf16> to vector<128x128xbf16>
    %c8_241 = arith.constant 8 : index
    %c0_242 = arith.constant 0 : index
    %c0_243 = arith.constant 0 : index
    %200 = vector.load %arg4[%c8_241, %c0_242, %c0_243] : memref<9x128x128xbf16, #tpu.memory_space<vmem>>, vector<1x128x128xbf16>
    %201 = vector.shape_cast %200 : vector<1x128x128xbf16> to vector<128x128xbf16>
    %cst_244 = arith.constant dense<0.000000e+00> : vector<128x128xf32>
    %202 = tpu.matmul %199, %201, %cst_244 {dimension_numbers = #tpu.dot_dimension_numbers<[1], [0], [0], [1], [0, 0, 1, 1], [], []>} : vector<128x128xbf16>, vector<128x128xbf16>, vector<128x128xf32> -> vector<128x128xf32>
    %203 = arith.addf %197, %202 : vector<128x128xf32>
    %204 = vector.broadcast %150 : vector<1x128xf32> to vector<128x128xf32>
    %205 = arith.addf %203, %204 : vector<128x128xf32>
    %cst_245 = arith.constant 0.000000e+00 : f32
    %206 = vector.broadcast %cst_245 : f32 to vector<128x128xf32>
    %207 = arith.maximumf %205, %206 : vector<128x128xf32>
    %208 = vector.shape_cast %207 : vector<128x128xf32> to vector<2x64x128xf32>
    %c0_246 = arith.constant 0 : index
    %c0_247 = arith.constant 0 : index
    %c0_248 = arith.constant 0 : index
    %209 = vector.load %arg13[%c0_246, %c0_247, %c0_248] : memref<2x64x128xf32, #tpu.memory_space<vmem>>, vector<2x64x128xf32>
    tpu.vector_store %arg13[%c0_246, %c0_247, %c0_248], %208 {strides = array<i32>} : memref<2x64x128xf32, #tpu.memory_space<vmem>>, vector<2x64x128xf32>,
    %c0_249 = arith.constant 0 : index
    %c0_250 = arith.constant 0 : index
    %c0_251 = arith.constant 0 : index
    %210 = tpu.strided_load %arg13[%c0_249, %c0_250, %c0_251] {strides = array<i32: 1, 2, 1>} : memref<2x64x128xf32, #tpu.memory_space<vmem>>, vector<2x4x128xf32>
    %c0_252 = arith.constant 0 : index
    %c1_253 = arith.constant 1 : index
    %c0_254 = arith.constant 0 : index
    %211 = tpu.strided_load %arg13[%c0_252, %c1_253, %c0_254] {strides = array<i32: 1, 2, 1>} : memref<2x64x128xf32, #tpu.memory_space<vmem>>, vector<2x4x128xf32>
    %c0_255 = arith.constant 0 : index
    %c8_256 = arith.constant 8 : index
    %c0_257 = arith.constant 0 : index
    %212 = tpu.strided_load %arg13[%c0_255, %c8_256, %c0_257] {strides = array<i32: 1, 2, 1>} : memref<2x64x128xf32, #tpu.memory_space<vmem>>, vector<2x4x128xf32>
    %c0_258 = arith.constant 0 : index
    %c9 = arith.constant 9 : index
    %c0_259 = arith.constant 0 : index
    %213 = tpu.strided_load %arg13[%c0_258, %c9, %c0_259] {strides = array<i32: 1, 2, 1>} : memref<2x64x128xf32, #tpu.memory_space<vmem>>, vector<2x4x128xf32>
    %214 = arith.maximumf %210, %211 : vector<2x4x128xf32>
    %215 = arith.maximumf %212, %213 : vector<2x4x128xf32>
    %216 = arith.maximumf %214, %215 : vector<2x4x128xf32>
    %217 = arith.truncf %216 : vector<2x4x128xf32> to vector<2x4x128xbf16>
    %218 = vector.extract_strided_slice %217 {offsets = [0, 0, 0], sizes = [2, 1, 128], strides = [1, 1, 1]} : vector<2x4x128xbf16> to vector<2x1x128xbf16>
    %219 = vector.shape_cast %218 : vector<2x1x128xbf16> to vector<2x128xbf16>
    %c0_260 = arith.constant 0 : index
    %c0_261 = arith.constant 0 : index
    %220 = vector.load %arg14[%c0_260, %c0_261] : memref<2x2048xbf16, #tpu.memory_space<vmem>>, vector<2x128xbf16>
    tpu.vector_store %arg14[%c0_260, %c0_261], %219 {strides = array<i32>} : memref<2x2048xbf16, #tpu.memory_space<vmem>>, vector<2x128xbf16>,
    %221 = vector.extract_strided_slice %217 {offsets = [0, 1, 0], sizes = [2, 1, 128], strides = [1, 1, 1]} : vector<2x4x128xbf16> to vector<2x1x128xbf16>
    %222 = vector.shape_cast %221 : vector<2x1x128xbf16> to vector<2x128xbf16>
    %c0_262 = arith.constant 0 : index
    %c128_263 = arith.constant 128 : index
    %223 = vector.load %arg14[%c0_262, %c128_263] : memref<2x2048xbf16, #tpu.memory_space<vmem>>, vector<2x128xbf16>
    tpu.vector_store %arg14[%c0_262, %c128_263], %222 {strides = array<i32>} : memref<2x2048xbf16, #tpu.memory_space<vmem>>, vector<2x128xbf16>,
    %224 = vector.extract_strided_slice %217 {offsets = [0, 2, 0], sizes = [2, 1, 128], strides = [1, 1, 1]} : vector<2x4x128xbf16> to vector<2x1x128xbf16>
    %225 = vector.shape_cast %224 : vector<2x1x128xbf16> to vector<2x128xbf16>
    %c0_264 = arith.constant 0 : index
    %c256 = arith.constant 256 : index
    %226 = vector.load %arg14[%c0_264, %c256] : memref<2x2048xbf16, #tpu.memory_space<vmem>>, vector<2x128xbf16>
    tpu.vector_store %arg14[%c0_264, %c256], %225 {strides = array<i32>} : memref<2x2048xbf16, #tpu.memory_space<vmem>>, vector<2x128xbf16>,
    %227 = vector.extract_strided_slice %217 {offsets = [0, 3, 0], sizes = [2, 1, 128], strides = [1, 1, 1]} : vector<2x4x128xbf16> to vector<2x1x128xbf16>
    %228 = vector.shape_cast %227 : vector<2x1x128xbf16> to vector<2x128xbf16>
    %c0_265 = arith.constant 0 : index
    %c384 = arith.constant 384 : index
    %229 = vector.load %arg14[%c0_265, %c384] : memref<2x2048xbf16, #tpu.memory_space<vmem>>, vector<2x128xbf16>
    tpu.vector_store %arg14[%c0_265, %c384], %228 {strides = array<i32>} : memref<2x2048xbf16, #tpu.memory_space<vmem>>, vector<2x128xbf16>,
    %c0_266 = arith.constant 0 : index
    %c16_267 = arith.constant 16 : index
    %c0_268 = arith.constant 0 : index
    %230 = tpu.strided_load %arg13[%c0_266, %c16_267, %c0_268] {strides = array<i32: 1, 2, 1>} : memref<2x64x128xf32, #tpu.memory_space<vmem>>, vector<2x4x128xf32>
    %c0_269 = arith.constant 0 : index
    %c17_270 = arith.constant 17 : index
    %c0_271 = arith.constant 0 : index
    %231 = tpu.strided_load %arg13[%c0_269, %c17_270, %c0_271] {strides = array<i32: 1, 2, 1>} : memref<2x64x128xf32, #tpu.memory_space<vmem>>, vector<2x4x128xf32>
    %c0_272 = arith.constant 0 : index
    %c24 = arith.constant 24 : index
    %c0_273 = arith.constant 0 : index
    %232 = tpu.strided_load %arg13[%c0_272, %c24, %c0_273] {strides = array<i32: 1, 2, 1>} : memref<2x64x128xf32, #tpu.memory_space<vmem>>, vector<2x4x128xf32>
    %c0_274 = arith.constant 0 : index
    %c25 = arith.constant 25 : index
    %c0_275 = arith.constant 0 : index
    %233 = tpu.strided_load %arg13[%c0_274, %c25, %c0_275] {strides = array<i32: 1, 2, 1>} : memref<2x64x128xf32, #tpu.memory_space<vmem>>, vector<2x4x128xf32>
    %234 = arith.maximumf %230, %231 : vector<2x4x128xf32>
    %235 = arith.maximumf %232, %233 : vector<2x4x128xf32>
    %236 = arith.maximumf %234, %235 : vector<2x4x128xf32>
    %237 = arith.truncf %236 : vector<2x4x128xf32> to vector<2x4x128xbf16>
    %238 = vector.extract_strided_slice %237 {offsets = [0, 0, 0], sizes = [2, 1, 128], strides = [1, 1, 1]} : vector<2x4x128xbf16> to vector<2x1x128xbf16>
    %239 = vector.shape_cast %238 : vector<2x1x128xbf16> to vector<2x128xbf16>
    %c0_276 = arith.constant 0 : index
    %c512 = arith.constant 512 : index
    %240 = vector.load %arg14[%c0_276, %c512] : memref<2x2048xbf16, #tpu.memory_space<vmem>>, vector<2x128xbf16>
    tpu.vector_store %arg14[%c0_276, %c512], %239 {strides = array<i32>} : memref<2x2048xbf16, #tpu.memory_space<vmem>>, vector<2x128xbf16>,
    %241 = vector.extract_strided_slice %237 {offsets = [0, 1, 0], sizes = [2, 1, 128], strides = [1, 1, 1]} : vector<2x4x128xbf16> to vector<2x1x128xbf16>
    %242 = vector.shape_cast %241 : vector<2x1x128xbf16> to vector<2x128xbf16>
    %c0_277 = arith.constant 0 : index
    %c640 = arith.constant 640 : index
    %243 = vector.load %arg14[%c0_277, %c640] : memref<2x2048xbf16, #tpu.memory_space<vmem>>, vector<2x128xbf16>
    tpu.vector_store %arg14[%c0_277, %c640], %242 {strides = array<i32>} : memref<2x2048xbf16, #tpu.memory_space<vmem>>, vector<2x128xbf16>,
    %244 = vector.extract_strided_slice %237 {offsets = [0, 2, 0], sizes = [2, 1, 128], strides = [1, 1, 1]} : vector<2x4x128xbf16> to vector<2x1x128xbf16>
    %245 = vector.shape_cast %244 : vector<2x1x128xbf16> to vector<2x128xbf16>
    %c0_278 = arith.constant 0 : index
    %c768 = arith.constant 768 : index
    %246 = vector.load %arg14[%c0_278, %c768] : memref<2x2048xbf16, #tpu.memory_space<vmem>>, vector<2x128xbf16>
    tpu.vector_store %arg14[%c0_278, %c768], %245 {strides = array<i32>} : memref<2x2048xbf16, #tpu.memory_space<vmem>>, vector<2x128xbf16>,
    %247 = vector.extract_strided_slice %237 {offsets = [0, 3, 0], sizes = [2, 1, 128], strides = [1, 1, 1]} : vector<2x4x128xbf16> to vector<2x1x128xbf16>
    %248 = vector.shape_cast %247 : vector<2x1x128xbf16> to vector<2x128xbf16>
    %c0_279 = arith.constant 0 : index
    %c896 = arith.constant 896 : index
    %249 = vector.load %arg14[%c0_279, %c896] : memref<2x2048xbf16, #tpu.memory_space<vmem>>, vector<2x128xbf16>
    tpu.vector_store %arg14[%c0_279, %c896], %248 {strides = array<i32>} : memref<2x2048xbf16, #tpu.memory_space<vmem>>, vector<2x128xbf16>,
    %c0_280 = arith.constant 0 : index
    %c32_281 = arith.constant 32 : index
    %c0_282 = arith.constant 0 : index
    %250 = tpu.strided_load %arg13[%c0_280, %c32_281, %c0_282] {strides = array<i32: 1, 2, 1>} : memref<2x64x128xf32, #tpu.memory_space<vmem>>, vector<2x4x128xf32>
    %c0_283 = arith.constant 0 : index
    %c33_284 = arith.constant 33 : index
    %c0_285 = arith.constant 0 : index
    %251 = tpu.strided_load %arg13[%c0_283, %c33_284, %c0_285] {strides = array<i32: 1, 2, 1>} : memref<2x64x128xf32, #tpu.memory_space<vmem>>, vector<2x4x128xf32>
    %c0_286 = arith.constant 0 : index
    %c40 = arith.constant 40 : index
    %c0_287 = arith.constant 0 : index
    %252 = tpu.strided_load %arg13[%c0_286, %c40, %c0_287] {strides = array<i32: 1, 2, 1>} : memref<2x64x128xf32, #tpu.memory_space<vmem>>, vector<2x4x128xf32>
    %c0_288 = arith.constant 0 : index
    %c41 = arith.constant 41 : index
    %c0_289 = arith.constant 0 : index
    %253 = tpu.strided_load %arg13[%c0_288, %c41, %c0_289] {strides = array<i32: 1, 2, 1>} : memref<2x64x128xf32, #tpu.memory_space<vmem>>, vector<2x4x128xf32>
    %254 = arith.maximumf %250, %251 : vector<2x4x128xf32>
    %255 = arith.maximumf %252, %253 : vector<2x4x128xf32>
    %256 = arith.maximumf %254, %255 : vector<2x4x128xf32>
    %257 = arith.truncf %256 : vector<2x4x128xf32> to vector<2x4x128xbf16>
    %258 = vector.extract_strided_slice %257 {offsets = [0, 0, 0], sizes = [2, 1, 128], strides = [1, 1, 1]} : vector<2x4x128xbf16> to vector<2x1x128xbf16>
    %259 = vector.shape_cast %258 : vector<2x1x128xbf16> to vector<2x128xbf16>
    %c0_290 = arith.constant 0 : index
    %c1024 = arith.constant 1024 : index
    %260 = vector.load %arg14[%c0_290, %c1024] : memref<2x2048xbf16, #tpu.memory_space<vmem>>, vector<2x128xbf16>
    tpu.vector_store %arg14[%c0_290, %c1024], %259 {strides = array<i32>} : memref<2x2048xbf16, #tpu.memory_space<vmem>>, vector<2x128xbf16>,
    %261 = vector.extract_strided_slice %257 {offsets = [0, 1, 0], sizes = [2, 1, 128], strides = [1, 1, 1]} : vector<2x4x128xbf16> to vector<2x1x128xbf16>
    %262 = vector.shape_cast %261 : vector<2x1x128xbf16> to vector<2x128xbf16>
    %c0_291 = arith.constant 0 : index
    %c1152 = arith.constant 1152 : index
    %263 = vector.load %arg14[%c0_291, %c1152] : memref<2x2048xbf16, #tpu.memory_space<vmem>>, vector<2x128xbf16>
    tpu.vector_store %arg14[%c0_291, %c1152], %262 {strides = array<i32>} : memref<2x2048xbf16, #tpu.memory_space<vmem>>, vector<2x128xbf16>,
    %264 = vector.extract_strided_slice %257 {offsets = [0, 2, 0], sizes = [2, 1, 128], strides = [1, 1, 1]} : vector<2x4x128xbf16> to vector<2x1x128xbf16>
    %265 = vector.shape_cast %264 : vector<2x1x128xbf16> to vector<2x128xbf16>
    %c0_292 = arith.constant 0 : index
    %c1280 = arith.constant 1280 : index
    %266 = vector.load %arg14[%c0_292, %c1280] : memref<2x2048xbf16, #tpu.memory_space<vmem>>, vector<2x128xbf16>
    tpu.vector_store %arg14[%c0_292, %c1280], %265 {strides = array<i32>} : memref<2x2048xbf16, #tpu.memory_space<vmem>>, vector<2x128xbf16>,
    %267 = vector.extract_strided_slice %257 {offsets = [0, 3, 0], sizes = [2, 1, 128], strides = [1, 1, 1]} : vector<2x4x128xbf16> to vector<2x1x128xbf16>
    %268 = vector.shape_cast %267 : vector<2x1x128xbf16> to vector<2x128xbf16>
    %c0_293 = arith.constant 0 : index
    %c1408 = arith.constant 1408 : index
    %269 = vector.load %arg14[%c0_293, %c1408] : memref<2x2048xbf16, #tpu.memory_space<vmem>>, vector<2x128xbf16>
    tpu.vector_store %arg14[%c0_293, %c1408], %268 {strides = array<i32>} : memref<2x2048xbf16, #tpu.memory_space<vmem>>, vector<2x128xbf16>,
    %c0_294 = arith.constant 0 : index
    %c48_295 = arith.constant 48 : index
    %c0_296 = arith.constant 0 : index
    %270 = tpu.strided_load %arg13[%c0_294, %c48_295, %c0_296] {strides = array<i32: 1, 2, 1>} : memref<2x64x128xf32, #tpu.memory_space<vmem>>, vector<2x4x128xf32>
    %c0_297 = arith.constant 0 : index
    %c49_298 = arith.constant 49 : index
    %c0_299 = arith.constant 0 : index
    %271 = tpu.strided_load %arg13[%c0_297, %c49_298, %c0_299] {strides = array<i32: 1, 2, 1>} : memref<2x64x128xf32, #tpu.memory_space<vmem>>, vector<2x4x128xf32>
    %c0_300 = arith.constant 0 : index
    %c56 = arith.constant 56 : index
    %c0_301 = arith.constant 0 : index
    %272 = tpu.strided_load %arg13[%c0_300, %c56, %c0_301] {strides = array<i32: 1, 2, 1>} : memref<2x64x128xf32, #tpu.memory_space<vmem>>, vector<2x4x128xf32>
    %c0_302 = arith.constant 0 : index
    %c57 = arith.constant 57 : index
    %c0_303 = arith.constant 0 : index
    %273 = tpu.strided_load %arg13[%c0_302, %c57, %c0_303] {strides = array<i32: 1, 2, 1>} : memref<2x64x128xf32, #tpu.memory_space<vmem>>, vector<2x4x128xf32>
    %274 = arith.maximumf %270, %271 : vector<2x4x128xf32>
    %275 = arith.maximumf %272, %273 : vector<2x4x128xf32>
    %276 = arith.maximumf %274, %275 : vector<2x4x128xf32>
    %277 = arith.truncf %276 : vector<2x4x128xf32> to vector<2x4x128xbf16>
    %278 = vector.extract_strided_slice %277 {offsets = [0, 0, 0], sizes = [2, 1, 128], strides = [1, 1, 1]} : vector<2x4x128xbf16> to vector<2x1x128xbf16>
    %279 = vector.shape_cast %278 : vector<2x1x128xbf16> to vector<2x128xbf16>
    %c0_304 = arith.constant 0 : index
    %c1536 = arith.constant 1536 : index
    %280 = vector.load %arg14[%c0_304, %c1536] : memref<2x2048xbf16, #tpu.memory_space<vmem>>, vector<2x128xbf16>
    tpu.vector_store %arg14[%c0_304, %c1536], %279 {strides = array<i32>} : memref<2x2048xbf16, #tpu.memory_space<vmem>>, vector<2x128xbf16>,
    %281 = vector.extract_strided_slice %277 {offsets = [0, 1, 0], sizes = [2, 1, 128], strides = [1, 1, 1]} : vector<2x4x128xbf16> to vector<2x1x128xbf16>
    %282 = vector.shape_cast %281 : vector<2x1x128xbf16> to vector<2x128xbf16>
    %c0_305 = arith.constant 0 : index
    %c1664 = arith.constant 1664 : index
    %283 = vector.load %arg14[%c0_305, %c1664] : memref<2x2048xbf16, #tpu.memory_space<vmem>>, vector<2x128xbf16>
    tpu.vector_store %arg14[%c0_305, %c1664], %282 {strides = array<i32>} : memref<2x2048xbf16, #tpu.memory_space<vmem>>, vector<2x128xbf16>,
    %284 = vector.extract_strided_slice %277 {offsets = [0, 2, 0], sizes = [2, 1, 128], strides = [1, 1, 1]} : vector<2x4x128xbf16> to vector<2x1x128xbf16>
    %285 = vector.shape_cast %284 : vector<2x1x128xbf16> to vector<2x128xbf16>
    %c0_306 = arith.constant 0 : index
    %c1792 = arith.constant 1792 : index
    %286 = vector.load %arg14[%c0_306, %c1792] : memref<2x2048xbf16, #tpu.memory_space<vmem>>, vector<2x128xbf16>
    tpu.vector_store %arg14[%c0_306, %c1792], %285 {strides = array<i32>} : memref<2x2048xbf16, #tpu.memory_space<vmem>>, vector<2x128xbf16>,
    %287 = vector.extract_strided_slice %277 {offsets = [0, 3, 0], sizes = [2, 1, 128], strides = [1, 1, 1]} : vector<2x4x128xbf16> to vector<2x1x128xbf16>
    %288 = vector.shape_cast %287 : vector<2x1x128xbf16> to vector<2x128xbf16>
    %c0_307 = arith.constant 0 : index
    %c1920 = arith.constant 1920 : index
    %289 = vector.load %arg14[%c0_307, %c1920] : memref<2x2048xbf16, #tpu.memory_space<vmem>>, vector<2x128xbf16>
    tpu.vector_store %arg14[%c0_307, %c1920], %288 {strides = array<i32>} : memref<2x2048xbf16, #tpu.memory_space<vmem>>, vector<2x128xbf16>,
    %c0_308 = arith.constant 0 : index
    %c0_309 = arith.constant 0 : index
    %290 = vector.load %arg14[%c0_308, %c0_309] : memref<2x2048xbf16, #tpu.memory_space<vmem>>, vector<2x2048xbf16>
    %c0_310 = arith.constant 0 : index
    %c0_311 = arith.constant 0 : index
    %291 = vector.load %arg6[%c0_310, %c0_311] : memref<2048x128xbf16, #tpu.memory_space<vmem>>, vector<2048x128xbf16>
    %cst_312 = arith.constant dense<0.000000e+00> : vector<2x128xf32>
    %292 = tpu.matmul %290, %291, %cst_312 {dimension_numbers = #tpu.dot_dimension_numbers<[1], [0], [0], [1], [0, 0, 1, 1], [], []>} : vector<2x2048xbf16>, vector<2048x128xbf16>, vector<2x128xf32> -> vector<2x128xf32>
    %c0_313 = arith.constant 0 : index
    %c0_314 = arith.constant 0 : index
    %293 = vector.load %arg7[%c0_313, %c0_314] : memref<1x128xf32, #tpu.memory_space<vmem>>, vector<1x128xf32>
    %294 = vector.broadcast %293 : vector<1x128xf32> to vector<2x128xf32>
    %295 = arith.addf %292, %294 : vector<2x128xf32>
    %cst_315 = arith.constant 0.000000e+00 : f32
    %296 = vector.broadcast %cst_315 : f32 to vector<2x128xf32>
    %297 = arith.maximumf %295, %296 : vector<2x128xf32>
    %298 = arith.truncf %297 : vector<2x128xf32> to vector<2x128xbf16>
    %c0_316 = arith.constant 0 : index
    %c0_317 = arith.constant 0 : index
    %299 = vector.load %arg8[%c0_316, %c0_317] : memref<128x128xbf16, #tpu.memory_space<vmem>>, vector<128x128xbf16>
    %cst_318 = arith.constant dense<0.000000e+00> : vector<2x128xf32>
    %300 = tpu.matmul %298, %299, %cst_318 {dimension_numbers = #tpu.dot_dimension_numbers<[1], [0], [0], [1], [0, 0, 1, 1], [], []>} : vector<2x128xbf16>, vector<128x128xbf16>, vector<2x128xf32> -> vector<2x128xf32>
    %c0_319 = arith.constant 0 : index
    %c0_320 = arith.constant 0 : index
    %301 = vector.load %arg9[%c0_319, %c0_320] : memref<1x128xf32, #tpu.memory_space<vmem>>, vector<1x128xf32>
    %302 = vector.broadcast %301 : vector<1x128xf32> to vector<2x128xf32>
    %303 = arith.addf %300, %302 : vector<2x128xf32>
    %c0_321 = arith.constant 0 : index
    %c0_322 = arith.constant 0 : index
    %304 = vector.load %arg10[%c0_321, %c0_322] : memref<2x128xf32, #tpu.memory_space<vmem>>, vector<2x128xf32>
    tpu.vector_store %arg10[%c0_321, %c0_322], %303 {strides = array<i32>} : memref<2x128xf32, #tpu.memory_space<vmem>>, vector<2x128xf32>,
    return
  }
  func.func @transform_0(%arg0: i32) -> (i32, i32, i32, i32) {
    %c0_i32 = arith.constant 0 : i32
    %c0_i32_0 = arith.constant 0 : i32
    %c0_i32_1 = arith.constant 0 : i32
    %c0_i32_2 = arith.constant 0 : i32
    return %arg0, %c0_i32, %c0_i32_0, %c0_i32_1 : i32, i32, i32, i32
  }
  func.func @transform_1(%arg0: i32) -> (i32, i32, i32) {
    %c0_i32 = arith.constant 0 : i32
    %c0_i32_0 = arith.constant 0 : i32
    %c0_i32_1 = arith.constant 0 : i32
    %c0_i32_2 = arith.constant 0 : i32
    return %c0_i32, %c0_i32_0, %c0_i32_1 : i32, i32, i32
  }
  func.func @transform_2(%arg0: i32) -> (i32, i32) {
    %c0_i32 = arith.constant 0 : i32
    %c0_i32_0 = arith.constant 0 : i32
    %c0_i32_1 = arith.constant 0 : i32
    return %c0_i32, %c0_i32_0 : i32, i32
  }
  func.func @transform_3(%arg0: i32) -> (i32, i32, i32) {
    %c0_i32 = arith.constant 0 : i32
    %c0_i32_0 = arith.constant 0 : i32
    %c0_i32_1 = arith.constant 0 : i32
    %c0_i32_2 = arith.constant 0 : i32
    return %c0_i32, %c0_i32_0, %c0_i32_1 : i32, i32, i32
  }
  func.func @transform_4(%arg0: i32) -> (i32, i32) {
    %c0_i32 = arith.constant 0 : i32
    %c0_i32_0 = arith.constant 0 : i32
    %c0_i32_1 = arith.constant 0 : i32
    return %c0_i32, %c0_i32_0 : i32, i32
  }
  func.func @transform_5(%arg0: i32) -> (i32, i32) {
    %c0_i32 = arith.constant 0 : i32
    %c0_i32_0 = arith.constant 0 : i32
    %c0_i32_1 = arith.constant 0 : i32
    return %c0_i32, %c0_i32_0 : i32, i32
  }
  func.func @transform_6(%arg0: i32) -> (i32, i32) {
    %c0_i32 = arith.constant 0 : i32
    %c0_i32_0 = arith.constant 0 : i32
    %c0_i32_1 = arith.constant 0 : i32
    return %c0_i32, %c0_i32_0 : i32, i32
  }
  func.func @transform_7(%arg0: i32) -> (i32, i32) {
    %c0_i32 = arith.constant 0 : i32
    %c0_i32_0 = arith.constant 0 : i32
    %c0_i32_1 = arith.constant 0 : i32
    return %c0_i32, %c0_i32_0 : i32, i32
  }
  func.func @transform_8(%arg0: i32) -> (i32, i32) {
    %c0_i32 = arith.constant 0 : i32
    %c0_i32_0 = arith.constant 0 : i32
    %c0_i32_1 = arith.constant 0 : i32
    return %c0_i32, %c0_i32_0 : i32, i32
  }
  func.func @transform_9(%arg0: i32) -> (i32, i32) {
    %c0_i32 = arith.constant 0 : i32
    %c0_i32_0 = arith.constant 0 : i32
    return %arg0, %c0_i32 : i32, i32
  }
}

</mosaic_0001>

<bundles_post_ra>
// kernel: convnet_forward.1
= control target key start
LH: loop header
LB: loop body
LE: loop exit
PB: predicated region body
PF: predicated region fallthrough
CT: control target
= control target key end

     0   :  { %14 = vsyncpa [#allocation7], 0  ;;  %s25365_s0 = inlined_call_operand.vmem [shape: bf16[2,18,18,128], index: 0, kind: input, shape index: {}]   ;;  %s25366_s1 = inlined_call_operand.hbm [shape: bf16[9,128,128], index: 1, kind: input, shape index: {}]   ;;  %s25367_s2 = inlined_call_operand.vmem [shape: f32[1,128], index: 2, kind: input, shape index: {}]   ;;  %s25368_s3 = inlined_call_operand.hbm [shape: bf16[9,128,128], index: 3, kind: input, shape index: {}]   ;;  %s25369_s4 = inlined_call_operand.vmem [shape: f32[1,128], index: 4, kind: input, shape index: {}]   ;;  %s25370_s5 = inlined_call_operand.vmem [shape: bf16[2048,128], index: 5, kind: input, shape index: {}]   ;;  %s25371_s6 = inlined_call_operand.vmem [shape: f32[1,128], index: 6, kind: input, shape index: {}]   ;;  %s25372_s7 = inlined_call_operand.vmem [shape: bf16[128,128], index: 7, kind: input, shape index: {}]   ;;  %s25373_s8 = inlined_call_operand.vmem [shape: f32[1,128], index: 8, kind: input, shape index: {}]   ;;  %s25374_s9 = inlined_call_operand.hbm [shape: f32[2,128], index: 9, kind: output, shape index: {}]  }
   0x1   :  { %15 = vsyncpa [#allocation10], 0 }
   0x2   :  { %16 = vsyncpa [#allocation8], 0  ;;  %s19374_s30 = smov [#allocation6]   ;;  %s19302_s13 = scalar_lea.hbm %s25366_s1, 9216 }
   0x3   :  { %s24_s10 = sshll.u32 %s19374_s30, 4  ;;  %p19303_p0 = scmp.ne.s32.totalorder %s25366_s1, %s19302_s13  ;;  %s25_s10 = int_to_ptr.vmem [resolvable:$true] %s24_s10 }
   0x4   :  { %p19306_p1 = scmp.lt.u32.totalorder %s19302_s13, %s25366_s1 }
   0x6   :  { %p19308_p2 = pnand %p19306_p1, %p19303_p0 }
   0x8   :  { %19311 = shalt.err (!%p19308_p2)
}
   0x9   :  { %s19312_s18 = scalar_lea.vmem %s25_s10, 9216  ;;  %p19317_p4 = scmp.lt.s32.totalorder %s25_s10, %s25_s10 }
   0xa   :  { %p19313_p3 = scmp.ne.s32.totalorder %s25_s10, %s19312_s18  ;;  %p19318_p5 = scmp.lt.s32.totalorder %s19312_s18, %s19312_s18 }
   0xc   :  { %p19319_p6 = por %p19318_p5, %p19317_p4 }
   0xe   :  { %p19320_p7 = pnand %p19319_p6, %p19313_p3 }
  0x10   :  { %19323 = shalt.err (!%p19320_p7)
}
  0x11   :  { %s19375_s19 = smov 64   ;;  %s19376_s20 = smov 4  }
  0x12   :  { %30 = dma.hbm_to_vmem [thread:$0]  %s25366_s1, 9216, %s25_s10, [#allocation7], %s19375_s19, %s19375_s19, %s19376_s20  }
  0x13   :  { %s19377_s23 = smov [#allocation9]   ;;  %s19324_s27 = scalar_lea.hbm %s25368_s3, 9216 }
  0x14   :  { %s38_s24 = sshll.u32 %s19377_s23, 4  ;;  %p19325_p8 = scmp.ne.s32.totalorder %s25368_s3, %s19324_s27  ;;  %s39_s24 = int_to_ptr.vmem [resolvable:$true] %s38_s24 }
  0x15   :  { %p19328_p9 = scmp.lt.u32.totalorder %s19324_s27, %s25368_s3 }
  0x17   :  { %p19330_p10 = pnand %p19328_p9, %p19325_p8 }
  0x19   :  { %19333 = shalt.err (!%p19330_p10)
}
  0x1a   :  { %s19334_s12 = scalar_lea.vmem %s39_s24, 9216  ;;  %p19339_p12 = scmp.lt.s32.totalorder %s39_s24, %s39_s24 }
  0x1b   :  { %p19335_p11 = scmp.ne.s32.totalorder %s39_s24, %s19334_s12  ;;  %p19340_p13 = scmp.lt.s32.totalorder %s19334_s12, %s19334_s12 }
  0x1d   :  { %p19341_p0 = por %p19340_p13, %p19339_p12 }
  0x1f   :  { %p19342_p1 = pnand %p19341_p0, %p19335_p11 }
  0x21   :  { %19345 = shalt.err (!%p19342_p1)
}
  0x22   :  { %44 = dma.hbm_to_vmem [thread:$0]  %s25368_s3, 9216, %s39_s24, [#allocation10], %s19375_s19, %s19375_s19, %s19376_s20  }
  0x23   :  { %19368 = dma.done.wait [#allocation7], 9216  }
  0x24   :  { %19369 = vsyncadd [#allocation7], 4294958080 }
  0x25   :  { %19370 = dma.done.wait [#allocation10], 9216  }
  0x26   :  { %19371 = vsyncadd [#allocation10], 4294958080  ;;  %v18661_v0 = vld [vmem:[#allocation6 + $0x80] sm:$0xff]   ;;  %v18662_v1 = vld [vmem:[#allocation6 + $0x88] sm:$0xff]   ;;  %vm2053_vm0 = vcmask 1042432   ;;  %vm2054_vm1 = vcmask 1046532  }
  0x27   :  { %17127 = vmatprep.subr.bf16.mxu0 %v18661_v0  ;;  %v18663_v2 = vld [vmem:[#allocation6 + $0x90] sm:$0xff]   ;;  %vm19458_vm2 = vmor %vm2053_vm0, %vm2054_vm1  ;;  %v25411_v3 = vmov 0  ;;  %v18664_v4 = vld [vmem:[#allocation6 + $0x98] sm:$0xff]   ;;  %vm175_vm3 = vsmask.f32 3328  ;;  %vm9080_vm6 = vcmask 1043456  }
  0x28   :  { %17128 = vmatpush3.bf16.msra.mxu0 %v18661_v0  ;;  %v25412_v3 = vsel %vm19458_vm2, 4294967295, %v25411_v3  ;;  %v64_v5 = vld [vmem:[%s25365_s0 + $0x4] sm:$0xf]  ;;  %v143_v6 = vld [vmem:[%s25365_s0 + $0x8] sm:$0x1]  ;;  %v18665_v13 = vld [vmem:[#allocation6 + $0xa0] sm:$0xff]  }
  0x29   :  { %17129 = vmatprep.subr.bf16.mxu0 %v18662_v1  ;;  %25413 = vst [vmem:[#allocation15_spill] sm:$0xff] %v25412_v3  ;;  %v1957_v7 = vld [vmem:[%s25365_s0] sm:$0xe]  ;;  %v2058_v9 = vrot.slane %v64_v5, 5  ;;  %v2061_v10 = vrot.slane %v143_v6, 5  ;;  %v18666_v16 = vld [vmem:[#allocation6 + $0xa8] sm:$0xff]  }
  0x2a   :  { %v15138_v8 = vrot.slane %v1957_v7, 9  ;;  %v66_v17 = vld [vmem:[%s25365_s0 + $0x10] sm:$0xf]  ;;  %v68_v18 = vld [vmem:[%s25365_s0 + $0x1c] sm:$0xf]  ;;  %v18667_v21 = vld [vmem:[#allocation6 + $0xb0] sm:$0xff]  }
  0x2b   :  { %v2060_v12 = vrot.slane %v2058_v9, 4  ;;  %v144_v19 = vld [vmem:[%s25365_s0 + $0x14] sm:$0x1]  ;;  %v2065_v20 = vrot.slane %v66_v17, 5  ;;  %v1958_v22 = vld [vmem:[%s25365_s0 + $0xc] sm:$0xe] }
  0x2c   :  { %17130 = vmatpush3.bf16.msra.mxu0 %v18662_v1  ;;  %v2059_v11 = vsel %vm19458_vm2, %v15138_v8, %v2058_v9  ;;  %v2072_v23 = vrot.slane %v68_v18, 5  ;;  %v145_v24 = vld [vmem:[%s25365_s0 + $0x20] sm:$0x1]  ;;  %v1959_v25 = vld [vmem:[%s25365_s0 + $0x18] sm:$0xe]  ;;  %v15139_v26 = vrot.slane %v1958_v22, 9 }
  0x2d   :  { %17131 = vmatprep.subr.bf16.mxu0 %v18663_v2  ;;  %v2062_v14 = vsel %vm19458_vm2, %v2060_v12, %v2061_v10  ;;  %v2067_v27 = vrot.slane %v2065_v20, 4  ;;  %v2068_v28 = vrot.slane %v144_v19, 5  ;;  %v18668_v29 = vld [vmem:[#allocation6 + $0xb8] sm:$0xff]   ;;  %v15140_v30 = vrot.slane %v1959_v25, 9  ;;  %v72_v34 = vld [vmem:[%s25365_s0 + $0x34] sm:$0xf] }
  0x2e   :  { %v15170_v15 = vcombine.low %v2059_v11, %v2062_v14  ;;  %v2074_v31 = vrot.slane %v2072_v23, 4  ;;  %v2075_v32 = vrot.slane %v145_v24, 5  ;;  %v70_v33 = vld [vmem:[%s25365_s0 + $0x28] sm:$0xf]  ;;  %v2066_v35 = vsel %vm19458_vm2, %v15139_v26, %v2065_v20  ;;  %v146_v37 = vld [vmem:[%s25365_s0 + $0x2c] sm:$0x1] }
  0x2f   :  { %v2069_v36 = vsel %vm19458_vm2, %v2067_v27, %v2068_v28  ;;  %v1960_v38 = vld [vmem:[%s25365_s0 + $0x24] sm:$0xe]  ;;  %v2079_v39 = vrot.slane %v70_v33, 5  ;;  %v18669_v40 = vld [vmem:[#allocation6 + $0xc0] sm:$0xff]   ;;  %v2073_v41 = vsel %vm19458_vm2, %v15140_v30, %v2072_v23  ;;  %v147_v43 = vld [vmem:[%s25365_s0 + $0x38] sm:$0x1] }
  0x30   :  { %17132 = vmatpush3.bf16.msra.mxu0 %v18663_v2  ;;  %17143 = vmatprep.mubr.bf16.mxu0 %v15170_v15  ;;  %v2076_v42 = vsel %vm19458_vm2, %v2074_v31, %v2075_v32  ;;  %v1961_v44 = vld [vmem:[%s25365_s0 + $0x30] sm:$0xe]  ;;  %v2086_v45 = vrot.slane %v72_v34, 5  ;;  %v74_v46 = vld [vmem:[%s25365_s0 + $0x40] sm:$0xf]  ;;  %v15171_v47 = vcombine.low %v2066_v35, %v2069_v36  ;;  %v15141_v48 = vrot.slane %v1960_v38, 9 }
  0x31   :  { %17133 = vmatprep.subr.bf16.mxu0 %v18664_v4  ;;  %v2082_v49 = vrot.slane %v146_v37, 5  ;;  %v15172_v50 = vcombine.low %v2073_v41, %v2076_v42  ;;  %v2081_v51 = vrot.slane %v2079_v39, 4  ;;  %v18670_v52 = vld [vmem:[#allocation6 + $0xc8] sm:$0xff]   ;;  %v15142_v53 = vrot.slane %v1961_v44, 9  ;;  %v148_v56 = vld [vmem:[%s25365_s0 + $0x44] sm:$0x1] }
  0x32   :  { %v2089_v54 = vrot.slane %v147_v43, 5  ;;  %v2088_v55 = vrot.slane %v2086_v45, 4  ;;  %v1962_v57 = vld [vmem:[%s25365_s0 + $0x3c] sm:$0xe]  ;;  %v2093_v58 = vrot.slane %v74_v46, 5  ;;  %v2080_v62 = vsel %vm19458_vm2, %v15141_v48, %v2079_v39  ;;  %v18671_v2 = vld [vmem:[#allocation6 + $0xd0] sm:$0xff]  }
  0x33   :  { %v76_v59 = vld [vmem:[%s25365_s0 + $0x4c] sm:$0xf]  ;;  %v1963_v60 = vld [vmem:[%s25365_s0 + $0x48] sm:$0xe]  ;;  %v19537_v61 = vld [vmem:[%s25365_s0 + $0x58] sm:$0xf]  ;;  %v2083_v63 = vsel %vm19458_vm2, %v2081_v51, %v2082_v49 }
  0x34   :  { %17134 = vmatpush3.bf16.msra.mxu0 %v18664_v4  ;;  %v15143_v0 = vrot.slane %v1962_v57, 9  ;;  %v2096_v1 = vrot.slane %v148_v56, 5  ;;  %v2087_v4 = vsel %vm19458_vm2, %v15142_v53, %v2086_v45  ;;  %v2090_v5 = vsel %vm19458_vm2, %v2088_v55, %v2089_v54  ;;  %v149_v7 = vld [vmem:[%s25365_s0 + $0x50] sm:$0x1]  ;;  %v19553_v9 = vld [vmem:[%s25365_s0 + $0x64] sm:$0xf] }
  0x35   :  { %17135 = vmatprep.subr.bf16.mxu0 %v18665_v13  ;;  %v2095_v6 = vrot.slane %v2093_v58, 4  ;;  %v2100_v8 = vrot.slane %v76_v59, 5  ;;  %v15144_v10 = vrot.slane %v1963_v60, 9  ;;  %v19558_v11 = vld [vmem:[%s25365_s0 + $0x5c] sm:$0x1]  ;;  %v2107_v12 = vrot.slane %v19537_v61, 5 }
  0x36   :  { %v15173_v14 = vcombine.low %v2080_v62, %v2083_v63  ;;  %v19569_v15 = vld [vmem:[%s25365_s0 + $0x54] sm:$0xe]  ;;  %v18672_v17 = vld [vmem:[#allocation6 + $0xd8] sm:$0xff]   ;;  %v19579_v18 = vld [vmem:[%s25365_s0 + $0x7c] sm:$0xf]  ;;  %v15174_v19 = vcombine.low %v2087_v4, %v2090_v5  ;;  %v2103_v20 = vrot.slane %v149_v7, 5  ;;  %v2094_v31 = vsel %vm19458_vm2, %v15143_v0, %v2093_v58 }
  0x37   :  { %v2114_v22 = vrot.slane %v19553_v9, 5  ;;  %v19590_v23 = vld [vmem:[%s25365_s0 + $0x74] sm:$0x1]  ;;  %v2102_v24 = vrot.slane %v2100_v8, 4  ;;  %v15145_v26 = vrot.slane %v19569_v15, 9  ;;  %v2109_v27 = vrot.slane %v2107_v12, 4 }
  0x38   :  { %17136 = vmatpush3.bf16.msra.mxu0 %v18665_v13  ;;  %v19564_v13 = vld [vmem:[%s25365_s0 + $0x70] sm:$0xf]  ;;  %v2110_v28 = vrot.slane %v19558_v11, 5  ;;  %v2128_v30 = vrot.slane %v19579_v18, 5  ;;  %v2097_v32 = vsel %vm19458_vm2, %v2095_v6, %v2096_v1  ;;  %v19610_v33 = vld [vmem:[%s25365_s0 + $0x80] sm:$0x1]  ;;  %v2101_v41 = vsel %vm19458_vm2, %v15144_v10, %v2100_v8 }
  0x39   :  { %17137 = vmatprep.subr.bf16.mxu0 %v18666_v16  ;;  %v2121_v25 = vrot.slane %v19564_v13, 5  ;;  %v19615_v34 = vld [vmem:[%s25365_s0 + $0x78] sm:$0xe]  ;;  %v19620_v35 = vld [vmem:[%s25365_s0 + $0x88] sm:$0xf]  ;;  %v2116_v37 = vrot.slane %v2114_v22, 4  ;;  %v2104_v42 = vsel %vm19458_vm2, %v2102_v24, %v2103_v20  ;;  %v2108_v6 = vsel %vm19458_vm2, %v15145_v26, %v2107_v12 }
  0x3a   :  { %v2124_v39 = vrot.slane %v19590_v23, 5  ;;  %v19637_v45 = vld [vmem:[%s25365_s0 + $0x84] sm:$0xe]  ;;  %v19642_v46 = vld [vmem:[%s25365_s0 + $0x94] sm:$0xf]  ;;  %v19647_v48 = vrot.slane %v2128_v30, 4  ;;  %v15176_v55 = vcombine.low %v2101_v41, %v2104_v42  ;;  %v2111_v7 = vsel %vm19458_vm2, %v2109_v27, %v2110_v28 }
  0x3b   :  { %v19632_v44 = vrot.slane %v2121_v25, 4  ;;  %v2131_v49 = vrot.slane %v19610_v33, 5  ;;  %v2135_v51 = vrot.slane %v19620_v35, 5  ;;  %v19659_v53 = vld [vmem:[%s25365_s0 + $0xa0] sm:$0xf]  ;;  %v18674_v54 = vld [vmem:[#allocation6 + $0xe8] sm:$0xff]   ;;  %v15177_v24 = vcombine.low %v2108_v6, %v2111_v7 }
  0x3c   :  { %17138 = vmatpush3.bf16.msra.mxu0 %v18666_v16  ;;  %v19574_v16 = vld [vmem:[%s25365_s0 + $0x68] sm:$0x1]  ;;  %v15149_v56 = vrot.slane %v19637_v45, 9  ;;  %v19665_v57 = vld [vmem:[%s25365_s0 + $0x98] sm:$0x1]  ;;  %v2142_v59 = vrot.slane %v19642_v46, 5 }
  0x3d   :  { %17139 = vmatprep.subr.bf16.mxu0 %v18667_v21  ;;  %v2117_v38 = vrot.slane %v19574_v16, 5  ;;  %v19670_v58 = vld [vmem:[%s25365_s0 + $0x90] sm:$0xe]  ;;  %v19676_v60 = vld [vmem:[%s25365_s0 + $0xac] sm:$0xf]  ;;  %v2137_v8 = vrot.slane %v2135_v51, 4  ;;  %v2132_v13 = vsel %vm19458_vm2, %v19647_v48, %v2131_v49 }
  0x3e   :  { %v19681_v62 = vld [vmem:[%s25365_s0 + $0xa4] sm:$0x1]  ;;  %v19686_v63 = vld [vmem:[%s25365_s0 + $0x9c] sm:$0xe]  ;;  %v19691_v0 = vld [vmem:[%s25365_s0 + $0xb8] sm:$0xf] }
  0x3f   :  { %v19698_v4 = vld [vmem:[%s25365_s0 + $0xb0] sm:$0x1]  ;;  %v19703_v5 = vld [vmem:[%s25365_s0 + $0xa8] sm:$0xe]  ;;  %v2156_v9 = vrot.slane %v19676_v60, 5  ;;  %v18675_v11 = vld [vmem:[#allocation6 + $0xf0] sm:$0xff]   ;;  %v2118_v12 = vsel %vm19458_vm2, %v2116_v37, %v2117_v38 }
  0x40   :  { %17140 = vmatpush3.bf16.msra.mxu0 %v18667_v21  ;;  %v19584_v21 = vld [vmem:[%s25365_s0 + $0x60] sm:$0xe]  ;;  %v19717_v10 = vld [vmem:[%s25365_s0 + $0xbc] sm:$0x1]  ;;  %v19727_v15 = vld [vmem:[%s25365_s0 + $0xb4] sm:$0xe] }
  0x41   :  { %17141 = vmatprep.subr.bf16.mxu0 %v18668_v29  ;;  %v15146_v36 = vrot.slane %v19584_v21, 9  ;;  %v2163_v16 = vrot.slane %v19691_v0, 5  ;;  %v15151_v20 = vrot.slane %v19686_v63, 9  ;;  %v2152_v21 = vrot.slane %v19681_v62, 5  ;;  %v19746_v28 = vld [vmem:[%s25365_s0 + $0xe0] sm:$0x1] }
  0x42   :  { %v2159_v27 = vrot.slane %v19698_v4, 5  ;;  %v15153_v37 = vrot.slane %v19727_v15, 9  ;;  %v2166_v38 = vrot.slane %v19717_v10, 5  ;;  %v98_v18 = vld [vmem:[%s25365_s0 + $0xe8] sm:$0xf]  ;;  %vm9086_vm9 = vcmask 1040384  }
  0x43   :  { %v2115_v61 = vsel %vm19458_vm2, %v15146_v36, %v2114_v22  ;;  %v19738_v22 = vld [vmem:[%s25365_s0 + $0xdc] sm:$0xf]  ;;  %v2158_v36 = vrot.slane %v2156_v9, 4  ;;  %v2165_v42 = vrot.slane %v2163_v16, 4  ;;  %v160_v35 = vld [vmem:[%s25365_s0 + $0xec] sm:$0x1] }
  0x44   :  { %17142 = vmatpush3.bf16.msra.mxu0 %v18668_v29  ;;  %v19600_v29 = vld [vmem:[%s25365_s0 + $0x6c] sm:$0xe]  ;;  %v15178_v41 = vcombine.low %v2115_v61, %v2118_v12  ;;  %v100_v46 = vld [vmem:[%s25365_s0 + $0xf4] sm:$0xf]  ;;  %v161_v48 = vld [vmem:[%s25365_s0 + $0xf8] sm:$0x1]  ;;  %v2164_v12 = vsel %vm19458_vm2, %v15153_v37, %v2163_v16 }
  0x45   :  { %17207 = vmatprep.subr.bf16.mxu0 %v18669_v40  ;;  %v15147_v43 = vrot.slane %v19600_v29, 9  ;;  %v2136_v29 = vsel %vm19458_vm2, %v15149_v56, %v2135_v51  ;;  %v1975_v49 = vld [vmem:[%s25365_s0 + $0xf0] sm:$0xe]  ;;  %v2180_v63 = vrot.slane %v160_v35, 5  ;;  %v2160_v4 = vsel %vm19458_vm2, %v2158_v36, %v2159_v27  ;;  %v1976_v10 = vld [vmem:[%s25365_s0 + $0xfc] sm:$0xe] }
  0x46   :  { %v2184_v6 = vrot.slane %v100_v46, 5  ;;  %v15156_v7 = vrot.slane %v1975_v49, 9  ;;  %v104_v60 = vld [vmem:[%s25365_s0 + $0x10c] sm:$0xf]  ;;  %v15157_v15 = vrot.slane %v1976_v10, 9  ;;  %vm12719_vm12 = vcmask 1041409  }
  0x47   :  { %17144 = vmatmul.mubr.bf16.vlgmr.msra.gmra.mrb[0].mxu0 %v15171_v47  ;;  %v15148_v47 = vrot.slane %v19615_v34, 9  ;;  %v163_v0 = vld [vmem:[%s25365_s0 + $0x110] sm:$0x1]  ;;  %v1977_v16 = vld [vmem:[%s25365_s0 + $0x108] sm:$0xe]  ;;  %vm19382_vm13 = vmmov 0  }
  0x48   :  { %17208 = vmatpush3.bf16.msra.mxu0 %v18669_v40  ;;  %17147 = vmatprep.mubr.bf16.mxu0 %v15172_v50  ;;  %v18673_v40 = vld [vmem:[#allocation6 + $0xe0] sm:$0xff]   ;;  %v19653_v50 = vld [vmem:[%s25365_s0 + $0x8c] sm:$0x1]  ;;  %v15317_v49 = vld [vmem:[%s25365_s0 + $0x18] sm:$0xf]  ;;  %s19383_s25 = smov [#allocation11]  }
  0x49   :  { %17209 = vmatprep.subr.bf16.mxu0 %v18670_v52  ;;  %v2138_v1 = vrot.slane %v19653_v50, 5  ;;  %v2170_v50 = vrot.slane %v19738_v22, 5  ;;  %v2129_v62 = vsel %vm19458_vm2, %v15148_v47, %v2128_v30  ;;  %v2177_v47 = vrot.slane %v98_v18, 5  ;;  %v15314_v46 = vld [vmem:[%s25365_s0 + $0xc] sm:$0xf]  ;;  %s15048_s26 = sshll.u32 %s19383_s25, 4  ;;  %s15049_s26 = int_to_ptr.vmem [resolvable:$true] %s15048_s26 }
  0x4a   :  { %vm176_vm4 = vsmask.f32 7440  ;;  %vm9081_vm7 = vsmask.f32 7938  ;;  %vm9087_vm8 = vsmask.f32 256  ;;  %p19351_p3 = scmp.lt.s32.totalorder %s15049_s26, %s15049_s26 }
  0x4b   :  { %v2139_v30 = vsel %vm19458_vm2, %v2137_v8, %v2138_v1  ;;  %v2172_v45 = vrot.slane %v2170_v50, 4  ;;  %vm20245_vm5 = vmor %vm175_vm3, %vm176_vm4  ;;  %s19346_s27 = scalar_lea.vmem %s15049_s26, 32 }
  0x4c   :  { %17210 = vmatpush3.bf16.msra.mxu0 %v18670_v52  ;;  %v15175_v52 = vcombine.low %v2094_v31, %v2097_v32  ;;  %v19751_v31 = vld [vmem:[%s25365_s0 + $0xd8] sm:$0xe]  ;;  %v15152_v32 = vrot.slane %v19703_v5, 9  ;;  %v2179_v5 = vrot.slane %v2177_v47, 4  ;;  %vm24056_vm10 = vmand %vm9080_vm6, %vm9081_vm7  ;;  %p19347_p2 = scmp.ne.s32.totalorder %s15049_s26, %s19346_s27  ;;  %p19352_p4 = scmp.lt.s32.totalorder %s19346_s27, %s19346_s27 }
  0x4d   :  { %17211 = vmatprep.subr.bf16.mxu0 %v18671_v2  ;;  %vm24063_vm11 = vmand %vm9086_vm9, %vm9087_vm8 }
  0x4e   :  { %v2157_v1 = vsel %vm19458_vm2, %v15152_v32, %v2156_v9  ;;  %v2201_v32 = vrot.slane %v163_v0, 5  ;;  %v2181_v37 = vsel %vm19458_vm2, %v2179_v5, %v2180_v63  ;;  %v3625_v5 = vshll.u32 %v15317_v49, 16  ;;  %p19353_p5 = por %p19352_p4, %p19351_p3 }
  0x4f   :  { %17148 = vmatmul.mubr.bf16.gmra.mrb[4].mxu0 %v15173_v14  ;;  %v15150_v14 = vrot.slane %v19670_v58, 9  ;;  %v2122_v58 = vsel %vm19458_vm2, %v15147_v43, %v2121_v25  ;;  %v15180_v25 = vcombine.low %v2129_v62, %v2132_v13  ;;  %v1974_v43 = vld [vmem:[%s25365_s0 + $0xe4] sm:$0xe]  ;;  %v15184_v9 = vcombine.low %v2157_v1, %v2160_v4 }
  0x50   :  { %17151 = vmatprep.mubr.bf16.mxu0 %v15174_v19  ;;  %17212 = vmatpush3.bf16.msra.mxu0 %v18671_v2  ;;  %v2149_v2 = vrot.slane %v19659_v53, 5  ;;  %v2145_v19 = vrot.slane %v19665_v57, 5  ;;  %v19763_v57 = vld [vmem:[#allocation6 + $0x100] sm:$0xff]   ;;  %v2187_v53 = vrot.slane %v161_v48, 5  ;;  %v3622_v4 = vshrl.u32 %v15317_v49, 16  ;;  %p19354_p6 = pnand %p19353_p5, %p19347_p2 }
  0x51   :  { %17213 = vmatprep.subr.bf16.mxu0 %v18672_v17  ;;  %v2143_v33 = vsel %vm19458_vm2, %v15150_v14, %v2142_v59  ;;  %v2167_v14 = vsel %vm19458_vm2, %v2165_v42, %v2166_v38  ;;  %v15315_v48 = vld [vmem:[%s25365_s0 + $0x10] sm:$0xf] }
  0x52   :  { %v2151_v26 = vrot.slane %v2149_v2, 4  ;;  %v2150_v51 = vsel %vm19458_vm2, %v15151_v20, %v2149_v2  ;;  %v102_v2 = vld [vmem:[%s25365_s0 + $0x100] sm:$0xf]  ;;  %v15185_v22 = vcombine.low %v2164_v12, %v2167_v14  ;;  %v3607_v63 = vshll.u32 %v15315_v48, 16 }
  0x53   :  { %v2191_v61 = vrot.slane %v102_v2, 5  ;;  %v3611_v1 = vshrl.u32 %v15315_v48, 16  ;;  %v18681_v2 = vld [vmem:[%s25365_s0 + $0x30] sm:$0xff]   ;;  %v3627_v12 = vrot.slane %v3625_v5, 5  ;;  %v15325_v48 = vld [vmem:[%s25365_s0 + $0x38] sm:$0x1] }
  0x54   :  { %17214 = vmatpush3.bf16.msra.mxu0 %v18672_v17  ;;  %v2144_v17 = vrot.slane %v2142_v59, 4  ;;  %v2153_v56 = vsel %vm19458_vm2, %v2151_v26, %v2152_v21  ;;  %v15155_v59 = vrot.slane %v1974_v43, 9  ;;  %v162_v21 = vld [vmem:[%s25365_s0 + $0x104] sm:$0x1]  ;;  %v18677_v43 = vld [vmem:[%s25365_s0 + $0xc] sm:$0xff]  }
  0x55   :  { %17215 = vmatprep.subr.bf16.mxu0 %v18673_v40  ;;  %v15183_v8 = vcombine.low %v2150_v51, %v2153_v56  ;;  %v2193_v27 = vrot.slane %v2191_v61, 4  ;;  %v2192_v62 = vsel %vm19458_vm2, %v15157_v15, %v2191_v61  ;;  %v15318_v51 = vld [vmem:[%s25365_s0 + $0x1c] sm:$0xf]  ;;  %v3598_v56 = vshrl.u32 %v15314_v46, 16 }
  0x56   :  { %v2146_v34 = vsel %vm19458_vm2, %v2144_v17, %v2145_v19  ;;  %v2198_v17 = vrot.slane %v104_v60, 5  ;;  %v2178_v36 = vsel %vm19458_vm2, %v15155_v59, %v2177_v47  ;;  %v18684_v47 = vld [vmem:[#allocation6 + $0x108] sm:$0xff]   ;;  %v3601_v59 = vshll.u32 %v15314_v46, 16  ;;  %v15330_v46 = vld [vmem:[%s25365_s0 + $0x4c] sm:$0xf] }
  0x57   :  { %17152 = vmatmul.mubr.bf16.gmra.mrb[8].mxu0 %v15175_v52  ;;  %v15154_v52 = vrot.slane %v19751_v31, 9  ;;  %v15158_v31 = vrot.slane %v1977_v16, 9  ;;  %v19914_v60 = vrot.slane %v3607_v63, 5  ;;  %v3624_v61 = vrot.slane %v3622_v4, 4  ;;  %v18686_v4 = vld [vmem:[%s25365_s0 + $0x60] sm:$0xff]  }
  0x58   :  { %17155 = vmatprep.mubr.bf16.mxu0 %v15176_v55  ;;  %17216 = vmatpush3.bf16.msra.mxu0 %v18673_v40  ;;  %v18676_v40 = vld [vmem:[#allocation6 + $0xf8] sm:$0xff]   ;;  %v2173_v55 = vrot.slane %v19746_v28, 5  ;;  %v2194_v28 = vrot.slane %v162_v21, 5  ;;  %v2200_v38 = vrot.slane %v2198_v17, 4  ;;  %v3603_v10 = vrot.slane %v3601_v59, 5  ;;  %v18699_v21 = vld [vmem:[#allocation6 + $0x120] sm:$0xff]  }
  0x59   :  { %17217 = vmatprep.subr.bf16.mxu0 %v18674_v54  ;;  %v2171_v19 = vsel %vm19458_vm2, %v15154_v52, %v2170_v50  ;;  %v164_v50 = vld [vmem:[%s25365_s0 + $0x11c] sm:$0x1]  ;;  %v15187_v52 = vcombine.low %v2178_v36, %v2181_v37  ;;  %v2199_v18 = vsel %vm19458_vm2, %v15158_v31, %v2198_v17  ;;  %v15316_v17 = vld [vmem:[%s25365_s0 + $0x14] sm:$0x1]  ;;  %v18683_v36 = vld [vmem:[%s25365_s0 + $0x48] sm:$0xff]  }
  0x5a   :  { %v2174_v20 = vsel %vm19458_vm2, %v2172_v45, %v2173_v55  ;;  %v1978_v55 = vld [vmem:[%s25365_s0 + $0x114] sm:$0xe]  ;;  %v2195_v13 = vsel %vm19458_vm2, %v2193_v27, %v2194_v28  ;;  %v18680_v45 = vld [vmem:[%s25365_s0 + $0x24] sm:$0xff]  }
  0x5b   :  { %v15186_v26 = vcombine.low %v2171_v19, %v2174_v20  ;;  %v15319_v19 = vld [vmem:[%s25365_s0 + $0x20] sm:$0x1]  ;;  %v15320_v20 = vld [vmem:[%s25365_s0 + $0x24] sm:$0xf]  ;;  %v18685_v37 = vld [vmem:[%s25365_s0 + $0x54] sm:$0xff]  }
  0x5c   :  { %17218 = vmatpush3.bf16.msra.mxu0 %v18674_v54  ;;  %v2125_v54 = vsel %vm19458_vm2, %v19632_v44, %v2124_v39  ;;  %v15181_v39 = vcombine.low %v2136_v29, %v2139_v30  ;;  %v15182_v44 = vcombine.low %v2143_v33, %v2146_v34  ;;  %v2202_v29 = vsel %vm19458_vm2, %v2200_v38, %v2201_v32 }
  0x5d   :  { %17219 = vmatprep.subr.bf16.mxu0 %v18675_v11  ;;  %v15179_v23 = vcombine.low %v2122_v58, %v2125_v54  ;;  %v2208_v54 = vrot.slane %v164_v50, 5  ;;  %v15189_v30 = vcombine.low %v2192_v62, %v2195_v13  ;;  %v15190_v33 = vcombine.low %v2199_v18, %v2202_v29  ;;  %v15324_v13 = vld [vmem:[%s25365_s0 + $0x34] sm:$0xf]  ;;  %v15322_v18 = vld [vmem:[%s25365_s0 + $0x2c] sm:$0x1] }
  0x5e   :  { %v3641_v28 = vshll.u32 %v15319_v19, 16  ;;  %v3646_v31 = vshrl.u32 %v15320_v20, 16  ;;  %v3649_v32 = vshll.u32 %v15320_v20, 16  ;;  %v3665_v5 = vshll.u32 %v15322_v18, 16  ;;  %v18688_v18 = vld [vmem:[%s25365_s0 + $0x78] sm:$0xff]  }
  0x5f   :  { %17156 = vmatmul.mubr.bf16.gmra.mrb[12].mxu0 %v15177_v24  ;;  %v106_v24 = vld [vmem:[%s25365_s0 + $0x118] sm:$0xf] }
  0x60   :  { %17159 = vmatprep.mubr.bf16.mxu0 %v15178_v41  ;;  %17220 = vmatpush3.bf16.msra.mxu0 %v18675_v11  ;;  %v2186_v11 = vrot.slane %v2184_v6, 4  ;;  %v2185_v41 = vsel %vm19458_vm2, %v15156_v7, %v2184_v6  ;;  %v3631_v6 = vshll.u32 %v15318_v51, 16  ;;  %v3635_v7 = vshrl.u32 %v15318_v51, 16 }
  0x61   :  { %17221 = vmatprep.subr.bf16.mxu0 %v18676_v40  ;;  %v19954_v62 = vrot.slane %v3641_v28, 5 }
  0x62   :  { %v2188_v42 = vsel %vm19458_vm2, %v2186_v11, %v2187_v53  ;;  %v18689_v53 = vld [vmem:[#allocation6 + $0x110] sm:$0xff]   ;;  %v18694_v11 = vld [vmem:[#allocation6 + $0x118] sm:$0xff]   ;;  %v19919_v14 = vrot.slane %v3631_v6, 5  ;;  %v3637_v15 = vrot.slane %v3635_v7, 4  ;;  %v3727_v7 = vshll.u32 %v15330_v46, 16 }
  0x63   :  { %v15188_v58 = vcombine.low %v2185_v41, %v2188_v42 }
  0x64   :  { %17222 = vmatpush3.bf16.msra.mxu0 %v18676_v40  ;;  %v2205_v40 = vrot.slane %v106_v24, 5  ;;  %v3617_v24 = vshll.u32 %v15316_v17, 16  ;;  %v3638_v27 = vor.u32 %v3637_v15, %v19919_v14  ;;  %v15328_v15 = vld [vmem:[%s25365_s0 + $0x44] sm:$0x1] }
  0x65   :  { %17287 = vmatprep.subr.bf16.mxu0 %v19763_v57 }
  0x67   :  { %17160 = vmatmul.mubr.bf16.gmra.mrb[16].mxu0 %v15179_v23  ;;  %v15159_v23 = vrot.slane %v1978_v55, 9  ;;  %v19948_v55 = vrot.slane %v3617_v24, 5  ;;  %v19996_v24 = vrot.slane %v3727_v7, 5 }
  0x68   :  { %17163 = vmatprep.mubr.bf16.mxu0 %v15180_v25  ;;  %v2207_v25 = vrot.slane %v2205_v40, 4 }
  0x69   :  { %v2206_v34 = vsel %vm19458_vm2, %v15159_v23, %v2205_v40  ;;  %v18704_v40 = vld [vmem:[#allocation6 + $0x128] sm:$0xff]   ;;  %v3648_v23 = vrot.slane %v3646_v31, 4 }
  0x6f   :  { %17164 = vmatmul.mubr.bf16.gmra.mrb[20].mxu0 %v15181_v39  ;;  %v2209_v39 = vsel %vm19458_vm2, %v2207_v25, %v2208_v54  ;;  %v19952_v54 = vrot.slane %v3638_v27, 4  ;;  %v3651_v25 = vrot.slane %v3649_v32, 5  ;;  %v15332_v27 = vld [vmem:[%s25365_s0 + $0x54] sm:$0xf]  ;;  %v15333_v32 = vld [vmem:[%s25365_s0 + $0x58] sm:$0xf] }
  0x70   :  { %17167 = vmatprep.mubr.bf16.mxu0 %v15182_v44  ;;  %v15191_v35 = vcombine.low %v2206_v34, %v2209_v39  ;;  %v18678_v44 = vld [vmem:[%s25365_s0 + $0x18] sm:$0xff]   ;;  %v18709_v34 = vld [vmem:[#allocation6 + $0x130] sm:$0xff]  }
  0x77   :  { %17168 = vmatmul.mubr.bf16.gmra.mrb[24].mxu0 %v15183_v8  ;;  %v3600_v8 = vrot.slane %v3598_v56, 4 }
  0x78   :  { %17171 = vmatprep.mubr.bf16.mxu0 %v15184_v9  ;;  %v3613_v9 = vrot.slane %v3611_v1, 4 }
  0x79   :  { %v3604_v0 = vor.u32 %v3603_v10, %v3600_v8  ;;  %v18714_v8 = vld [vmem:[#allocation6 + $0x138] sm:$0xff]  }
  0x7a   :  { %v3614_v16 = vor.u32 %v3613_v9, %v19914_v60 }
  0x7b   :  { %v19941_v41 = vrot.slane %v3604_v0, 4  ;;  %v15331_v0 = vld [vmem:[%s25365_s0 + $0x50] sm:$0x1] }
  0x7c   :  { %v19943_v42 = vrot.slane %v3614_v16, 4 }
  0x7f   :  { %17172 = vmatmul.mubr.bf16.gmra.mrb[28].mxu0 %v15185_v22  ;;  %v15321_v22 = vld [vmem:[%s25365_s0 + $0x28] sm:$0xf] }
  0x80   :  { %17175 = vmatprep.mubr.bf16.mxu0 %v15186_v26  ;;  %v3628_v26 = vor.u32 %v3627_v12, %v3624_v61  ;;  %v3655_v38 = vshll.u32 %v15321_v22, 16  ;;  %v3659_v50 = vshrl.u32 %v15321_v22, 16  ;;  %v3652_v61 = vor.u32 %v3651_v25, %v3648_v23 }
  0x81   :  { %v3737_v23 = vshll.u32 %v15331_v0, 16  ;;  %v3742_v25 = vshrl.u32 %v15332_v27, 16  ;;  %v15337_v0 = vld [vmem:[%s25365_s0 + $0x68] sm:$0x1] }
  0x82   :  { %v19962_v29 = vrot.slane %v3655_v38, 5  ;;  %v3661_v39 = vrot.slane %v3659_v50, 4  ;;  %v20007_v38 = vrot.slane %v3665_v5, 5  ;;  %v3713_v50 = vshll.u32 %v15328_v15, 16 }
  0x84   :  { %v3662_v12 = vor.u32 %v3661_v39, %v19962_v29  ;;  %v3751_v39 = vshll.u32 %v15333_v32, 16 }
  0x86   :  { %v20043_v7 = vrot.slane %v3751_v39, 5 }
  0x87   :  { %17176 = vmatmul.mubr.bf16.gmra.mrb[32].mxu0 %v15187_v52  ;;  %v15323_v52 = vld [vmem:[%s25365_s0 + $0x30] sm:$0xf] }
  0x88   :  { %17179 = vmatprep.mubr.bf16.mxu0 %v15188_v58  ;;  %v19950_v58 = vrot.slane %v3628_v26, 4 }
  0x8f   :  { %17180 = vmatmul.mubr.bf16.gmra.mrb[36].mxu0 %v15189_v30  ;;  %v3670_v30 = vshrl.u32 %v15323_v52, 16 }
  0x90   :  { %17183 = vmatprep.mubr.bf16.mxu0 %v15190_v33  ;;  %v15326_v33 = vld [vmem:[%s25365_s0 + $0x3c] sm:$0xf] }
  0x91   :  { %v3694_v49 = vshrl.u32 %v15326_v33, 16  ;;  %v3697_v51 = vshll.u32 %v15326_v33, 16  ;;  %v3672_v6 = vrot.slane %v3670_v30, 4 }
  0x93   :  { %v3696_v17 = vrot.slane %v3694_v49, 4  ;;  %v3699_v19 = vrot.slane %v3697_v51, 5  ;;  %v20030_v49 = vrot.slane %v3713_v50, 5  ;;  %v15334_v51 = vld [vmem:[%s25365_s0 + $0x5c] sm:$0x1] }
  0x97   :  { %17184 = vmatmul.mubr.bf16.gmra.mrb[40].mxu0 %v15191_v35  ;;  %v3673_v35 = vshll.u32 %v15323_v52, 16  ;;  %v20009_v52 = vrot.slane %v3662_v12, 4  ;;  %v18691_v12 = vld [vmem:[%s25365_s0 + $0x90] sm:$0xff]  }
  0x98   :  { %17223 = vmatprep.mubr.bf16.mxu0 %v18677_v43  ;;  %v15327_v43 = vld [vmem:[%s25365_s0 + $0x40] sm:$0xf] }
  0x99   :  { %v3703_v56 = vshll.u32 %v15327_v43, 16  ;;  %v3707_v59 = vshrl.u32 %v15327_v43, 16  ;;  %v3675_v10 = vrot.slane %v3673_v35, 5  ;;  %v15335_v35 = vld [vmem:[%s25365_s0 + $0x60] sm:$0xf]  ;;  %v18690_v43 = vld [vmem:[%s25365_s0 + $0x84] sm:$0xff]  }
  0x9b   :  { %v19991_v20 = vrot.slane %v3703_v56, 5  ;;  %v3676_v28 = vor.u32 %v3675_v10, %v3672_v6  ;;  %v15338_v10 = vld [vmem:[%s25365_s0 + $0x6c] sm:$0xf] }
  0x9f   :  { %17224 = vmatmul.mubr.bf16.vlgmr.msra.gmra.mrb[0].mxu0 %v18678_v44  ;;  %v15329_v44 = vld [vmem:[%s25365_s0 + $0x48] sm:$0xf] }
  0xa0   :  { %17288 = vmatpush3.bf16.msra.mxu0 %v19763_v57  ;;  %17227 = vmatprep.mubr.bf16.mxu0 %v18680_v45  ;;  %v18682_v57 = vld [vmem:[%s25365_s0 + $0x3c] sm:$0xff]   ;;  %v3679_v45 = vshll.u32 %v15324_v13, 16  ;;  %v3718_v63 = vshrl.u32 %v15329_v44, 16  ;;  %v3721_v1 = vshll.u32 %v15329_v44, 16  ;;  %v20022_v44 = vrot.slane %v3676_v28, 4 }
  0xa1   :  { %17289 = vmatprep.subr.bf16.mxu0 %v18684_v47  ;;  %v18692_v28 = vld [vmem:[%s25365_s0 + $0x9c] sm:$0xff]  }
  0xa2   :  { %v19985_v9 = vrot.slane %v3679_v45, 5  ;;  %v3720_v16 = vrot.slane %v3718_v63, 4  ;;  %v3723_v22 = vrot.slane %v3721_v1, 5  ;;  %v3744_v63 = vrot.slane %v3742_v25, 4 }
  0xa3   :  { %v3766_v1 = vshrl.u32 %v15335_v35, 16 }
  0xa4   :  { %17290 = vmatpush3.bf16.msra.mxu0 %v18684_v47  ;;  %v3683_v47 = vshrl.u32 %v15324_v13, 16  ;;  %v3724_v30 = vor.u32 %v3723_v22, %v3720_v16  ;;  %v3790_v16 = vshrl.u32 %v15338_v10, 16  ;;  %v3793_v22 = vshll.u32 %v15338_v10, 16  ;;  %v18693_v10 = vld [vmem:[%s25365_s0 + $0xa8] sm:$0xff]  }
  0xa5   :  { %17291 = vmatprep.subr.bf16.mxu0 %v18689_v53  ;;  %v3768_v15 = vrot.slane %v3766_v1, 4 }
  0xa6   :  { %v3792_v39 = vrot.slane %v3790_v16, 4 }
  0xa7   :  { %17228 = vmatmul.mubr.bf16.gmra.mrb[4].mxu0 %v18681_v2  ;;  %v18687_v2 = vld [vmem:[%s25365_s0 + $0x6c] sm:$0xff]  }
  0xa8   :  { %17231 = vmatprep.mubr.bf16.mxu0 %v18682_v57  ;;  %17292 = vmatpush3.bf16.msra.mxu0 %v18689_v53  ;;  %v3731_v53 = vshrl.u32 %v15330_v46, 16  ;;  %v3685_v57 = vrot.slane %v3683_v47, 4  ;;  %v3755_v46 = vshrl.u32 %v15333_v32, 16 }
  0xa9   :  { %17293 = vmatprep.subr.bf16.mxu0 %v18694_v11 }
  0xaa   :  { %v3733_v26 = vrot.slane %v3731_v53, 4  ;;  %v3686_v31 = vor.u32 %v3685_v57, %v19985_v9  ;;  %v15336_v53 = vld [vmem:[%s25365_s0 + $0x64] sm:$0xf]  ;;  %v15339_v57 = vld [vmem:[%s25365_s0 + $0x70] sm:$0xf] }
  0xac   :  { %17294 = vmatpush3.bf16.msra.mxu0 %v18694_v11  ;;  %v3689_v11 = vshll.u32 %v15325_v48, 16  ;;  %v3734_v33 = vor.u32 %v3733_v26, %v19996_v24  ;;  %v20024_v45 = vrot.slane %v3686_v31, 4  ;;  %v3799_v26 = vshll.u32 %v15339_v57, 16 }
  0xad   :  { %17295 = vmatprep.subr.bf16.mxu0 %v18699_v21 }
  0xae   :  { %v20026_v47 = vrot.slane %v3689_v11, 5  ;;  %v20041_v5 = vrot.slane %v3734_v33, 4  ;;  %v15341_v11 = vld [vmem:[%s25365_s0 + $0x78] sm:$0xf]  ;;  %v3785_v33 = vshll.u32 %v15337_v0, 16 }
  0xaf   :  { %17232 = vmatmul.mubr.bf16.gmra.mrb[8].mxu0 %v18683_v36  ;;  %v18717_v36 = vld [vmem:[#allocation6 + $0x140] sm:$0xff]   ;;  %v3814_v31 = vshrl.u32 %v15341_v11, 16  ;;  %v3817_v32 = vshll.u32 %v15341_v11, 16 }
  0xb0   :  { %17235 = vmatprep.mubr.bf16.mxu0 %v18685_v37  ;;  %17296 = vmatpush3.bf16.msra.mxu0 %v18699_v21  ;;  %v3709_v21 = vrot.slane %v3707_v59, 4  ;;  %v20005_v37 = vrot.slane %v3652_v61, 4  ;;  %v20037_v59 = vrot.slane %v3737_v23, 5  ;;  %v15342_v61 = vld [vmem:[%s25365_s0 + $0x7c] sm:$0xf]  ;;  %v20098_v0 = vrot.slane %v3785_v33, 5 }
  0xb1   :  { %17297 = vmatprep.subr.bf16.mxu0 %v18704_v40  ;;  %v15344_v23 = vld [vmem:[%s25365_s0 + $0x84] sm:$0xf] }
  0xb2   :  { %v3710_v13 = vor.u32 %v3709_v21, %v19991_v20  ;;  %v3779_v21 = vshrl.u32 %v15336_v53, 16  ;;  %v3838_v1 = vshrl.u32 %v15344_v23, 16 }
  0xb4   :  { %17298 = vmatpush3.bf16.msra.mxu0 %v18704_v40  ;;  %v3700_v40 = vor.u32 %v3699_v19, %v3696_v17  ;;  %v20035_v56 = vrot.slane %v3710_v13, 4  ;;  %v3769_v17 = vshll.u32 %v15335_v35, 16  ;;  %v3775_v19 = vshll.u32 %v15336_v53, 16 }
  0xb5   :  { %17299 = vmatprep.subr.bf16.mxu0 %v18709_v34  ;;  %v3795_v35 = vrot.slane %v3793_v22, 5 }
  0xb6   :  { %v20028_v48 = vrot.slane %v3700_v40, 4  ;;  %v3827_v40 = vshrl.u32 %v15342_v61, 16  ;;  %v3771_v25 = vrot.slane %v3769_v17, 5  ;;  %v15343_v17 = vld [vmem:[%s25365_s0 + $0x80] sm:$0x1] }
  0xb7   :  { %17236 = vmatmul.mubr.bf16.gmra.mrb[12].mxu0 %v18686_v4  ;;  %v20039_v4 = vrot.slane %v3724_v30, 4  ;;  %v3781_v30 = vrot.slane %v3779_v21, 4  ;;  %v3796_v16 = vor.u32 %v3795_v35, %v3792_v39 }
  0xb8   :  { %17239 = vmatprep.mubr.bf16.mxu0 %v18687_v2  ;;  %17300 = vmatpush3.bf16.msra.mxu0 %v18709_v34  ;;  %v3745_v34 = vshll.u32 %v15332_v27, 16  ;;  %v3757_v2 = vrot.slane %v3755_v46, 4  ;;  %v3803_v27 = vshrl.u32 %v15339_v57, 16 }
  0xb9   :  { %17301 = vmatprep.subr.bf16.mxu0 %v18714_v8  ;;  %v20118_v33 = vrot.slane %v3796_v16, 4  ;;  %v15349_v16 = vld [vmem:[%s25365_s0 + $0x98] sm:$0x1] }
  0xba   :  { %v3747_v6 = vrot.slane %v3745_v34, 5  ;;  %v3758_v13 = vor.u32 %v3757_v2, %v20043_v7  ;;  %v15340_v34 = vld [vmem:[%s25365_s0 + $0x74] sm:$0x1]  ;;  %v3805_v46 = vrot.slane %v3803_v27, 4  ;;  %v3829_v2 = vrot.slane %v3827_v40, 4 }
  0xbb   :  { %v3809_v22 = vshll.u32 %v15340_v34, 16  ;;  %v3833_v40 = vshll.u32 %v15343_v17, 16  ;;  %25417 = vst [vmem:[#allocation19_spill] sm:$0xff] %v20118_v33 }
  0xbc   :  { %17302 = vmatpush3.bf16.msra.mxu0 %v18714_v8  ;;  %v3761_v8 = vshll.u32 %v15334_v51, 16  ;;  %v3748_v50 = vor.u32 %v3747_v6, %v3744_v63  ;;  %v3816_v51 = vrot.slane %v3814_v31, 4  ;;  %v3819_v63 = vrot.slane %v3817_v32, 5 }
  0xbd   :  { %17367 = vmatprep.subr.bf16.mxu0 %v18717_v36  ;;  %v3823_v36 = vshll.u32 %v15342_v61, 16  ;;  %v3841_v6 = vshll.u32 %v15344_v23, 16  ;;  %v3772_v61 = vor.u32 %v3771_v25, %v3768_v15  ;;  %v20096_v21 = vrot.slane %v3758_v13, 4  ;;  %v15346_v15 = vld [vmem:[%s25365_s0 + $0x8c] sm:$0x1] }
  0xbe   :  { %v20085_v57 = vrot.slane %v3748_v50, 4  ;;  %v20087_v11 = vrot.slane %v3761_v8, 5  ;;  %v15345_v8 = vld [vmem:[%s25365_s0 + $0x88] sm:$0xf]  ;;  %v3820_v32 = vor.u32 %v3819_v63, %v3816_v51  ;;  %v15348_v50 = vld [vmem:[%s25365_s0 + $0x94] sm:$0xf] }
  0xbf   :  { %17240 = vmatmul.mubr.bf16.gmra.mrb[16].mxu0 %v18688_v18  ;;  %v20073_v18 = vrot.slane %v3775_v19, 5  ;;  %v20080_v53 = vrot.slane %v3823_v36, 5  ;;  %v18695_v19 = vld [vmem:[%s25365_s0 + $0xb4] sm:$0xff]   ;;  %v3843_v27 = vrot.slane %v3841_v6, 5  ;;  %v20114_v13 = vrot.slane %v3772_v61, 4 }
  0xc0   :  { %17243 = vmatprep.mubr.bf16.mxu0 %v18690_v43  ;;  %v20078_v43 = vrot.slane %v3799_v26, 5  ;;  %v3840_v26 = vrot.slane %v3838_v1, 4  ;;  %v3847_v25 = vshll.u32 %v15345_v8, 16  ;;  %v20120_v34 = vrot.slane %v3809_v22, 5  ;;  %v18696_v1 = vld [vmem:[%s25365_s0 + $0xc0] sm:$0xff]  }
  0xc1   :  { %25415 = vst [vmem:[#allocation17_spill] sm:$0xff] %v20080_v53  ;;  %v3830_v36 = vor.u32 %v3829_v2, %v20080_v53  ;;  %v3857_v39 = vshll.u32 %v15346_v15, 16  ;;  %v3871_v63 = vshll.u32 %v15348_v50, 16  ;;  %v20127_v2 = vrot.slane %v3820_v32, 4  ;;  %v15350_v22 = vld [vmem:[%s25365_s0 + $0x9c] sm:$0xf] }
  0xc2   :  { %25414 = vst [vmem:[#allocation16_spill] sm:$0xff] %v20078_v43  ;;  %v3806_v31 = vor.u32 %v3805_v46, %v20078_v43  ;;  %25418 = vst [vmem:[#allocation20_spill] sm:$0xff] %v20120_v34  ;;  %v3844_v46 = vor.u32 %v3843_v27, %v3840_v26  ;;  %v20136_v17 = vrot.slane %v3847_v25, 5  ;;  %v3875_v15 = vshrl.u32 %v15348_v50, 16  ;;  %v15351_v26 = vld [vmem:[%s25365_s0 + $0xa0] sm:$0xf] }
  0xc3   :  { %25420 = vst [vmem:[#allocation22_spill] sm:$0xff] %v20127_v2  ;;  %v20129_v61 = vrot.slane %v3830_v36, 4  ;;  %v15353_v27 = vld [vmem:[%s25365_s0 + $0xa8] sm:$0xf]  ;;  %v20154_v36 = vrot.slane %v3871_v63, 5  ;;  %v3886_v25 = vshrl.u32 %v15350_v22, 16 }
  0xc4   :  { %v20125_v6 = vrot.slane %v3806_v31, 4  ;;  %25423 = vst [vmem:[#allocation25_spill] sm:$0xff] %v20136_v17  ;;  %v3889_v50 = vshll.u32 %v15350_v22, 16  ;;  %v3899_v3 = vshrl.u32 %v15351_v26, 16 }
  0xc5   :  { %25421 = vst [vmem:[#allocation23_spill] sm:$0xff] %v20129_v61  ;;  %25426 = vst [vmem:[#allocation28_spill] sm:$0xff] %v20154_v36  ;;  %v3913_v61 = vshll.u32 %v15353_v27, 16  ;;  %v3888_v53 = vrot.slane %v3886_v25, 4 }
  0xc6   :  { %25419 = vst [vmem:[#allocation21_spill] sm:$0xff] %v20125_v6 }
  0xc7   :  { %17244 = vmatmul.mubr.bf16.gmra.mrb[20].mxu0 %v18691_v12  ;;  %v3782_v12 = vor.u32 %v3781_v30, %v20073_v18  ;;  %v3851_v30 = vshrl.u32 %v15345_v8, 16  ;;  %v20144_v8 = vrot.slane %v3857_v39, 5  ;;  %v3895_v39 = vshll.u32 %v15351_v26, 16  ;;  %v15352_v26 = vld [vmem:[%s25365_s0 + $0xa4] sm:$0x1] }
  0xc8   :  { %17247 = vmatprep.mubr.bf16.mxu0 %v18692_v28  ;;  %v15347_v28 = vld [vmem:[%s25365_s0 + $0x90] sm:$0xf]  ;;  %v3915_v6 = vrot.slane %v3913_v61, 5 }
  0xc9   :  { %v20116_v23 = vrot.slane %v3782_v12, 4  ;;  %v3862_v35 = vshrl.u32 %v15347_v28, 16  ;;  %v3865_v51 = vshll.u32 %v15347_v28, 16  ;;  %v18697_v12 = vld [vmem:[%s25365_s0 + $0xe4] sm:$0xff]   ;;  %25424 = vst [vmem:[#allocation26_spill] sm:$0xff] %v20144_v8  ;;  %v20152_v28 = vrot.slane %v3844_v46, 4 }
  0xca   :  { %v3910_v8 = vshrl.u32 %v15353_v27, 16  ;;  %v3877_v46 = vrot.slane %v3875_v15, 4  ;;  %v3891_v27 = vrot.slane %v3889_v50, 5  ;;  %v3901_v15 = vrot.slane %v3899_v3, 4 }
  0xcb   :  { %25416 = vst [vmem:[#allocation18_spill] sm:$0xff] %v20116_v23  ;;  %25425 = vst [vmem:[#allocation27_spill] sm:$0xff] %v20152_v28  ;;  %v3864_v31 = vrot.slane %v3862_v35, 4  ;;  %v3867_v32 = vrot.slane %v3865_v51, 5  ;;  %v3881_v35 = vshll.u32 %v15349_v16, 16  ;;  %v20172_v16 = vrot.slane %v3895_v39, 5 }
  0xcc   :  { %v15357_v28 = vld [vmem:[%s25365_s0 + $0xb8] sm:$0xf]  ;;  %v3905_v3 = vshll.u32 %v15352_v26, 16  ;;  %v3878_v33 = vor.u32 %v3877_v46, %v20154_v36 }
  0xcd   :  { %25427 = vst [vmem:[#allocation29_spill] sm:$0xff] %v20172_v16  ;;  %v3943_v25 = vshll.u32 %v15357_v28, 16  ;;  %v3947_v50 = vshrl.u32 %v15357_v28, 16  ;;  %v3868_v34 = vor.u32 %v3867_v32, %v3864_v31  ;;  %v15359_v28 = vld [vmem:[%s25365_s0 + $0xc0] sm:$0xf]  ;;  %v3902_v43 = vor.u32 %v3901_v15, %v20172_v16  ;;  %v18701_v15 = vld [vmem:[%s25365_s0 + $0x108] sm:$0xff]  }
  0xce   :  { %v20192_v26 = vrot.slane %v3881_v35, 5  ;;  %v15360_v32 = vld [vmem:[%s25365_s0 + $0xc4] sm:$0xf]  ;;  %v3961_v35 = vshll.u32 %v15359_v28, 16 }
  0xcf   :  { %17248 = vmatmul.mubr.bf16.gmra.mrb[24].mxu0 %v18693_v10  ;;  %v20131_v10 = vrot.slane %v3833_v40, 5  ;;  %v15354_v40 = vld [vmem:[%s25365_s0 + $0xac] sm:$0xf]  ;;  %v3949_v31 = vrot.slane %v3947_v50, 4  ;;  %v15363_v50 = vld [vmem:[%s25365_s0 + $0xe8] sm:$0xf] }
  0xd0   :  { %17251 = vmatprep.mubr.bf16.mxu0 %v18695_v19  ;;  %v3853_v19 = vrot.slane %v3851_v30, 4  ;;  %v15356_v30 = vld [vmem:[%s25365_s0 + $0xb4] sm:$0xf]  ;;  %v3919_v51 = vshll.u32 %v15354_v40, 16  ;;  %v3923_v63 = vshrl.u32 %v15354_v40, 16  ;;  %v3912_v40 = vrot.slane %v3910_v8, 4 }
  0xd1   :  { %25422 = vst [vmem:[#allocation24_spill] sm:$0xff] %v20131_v10  ;;  %v3934_v10 = vshrl.u32 %v15356_v30, 16  ;;  %v3937_v2 = vshll.u32 %v15356_v30, 16 }
  0xd2   :  { %v3854_v22 = vor.u32 %v3853_v19, %v20136_v17  ;;  %v20177_v19 = vrot.slane %v3919_v51, 5  ;;  %v3925_v30 = vrot.slane %v3923_v63, 4  ;;  %v18700_v17 = vld [vmem:[%s25365_s0 + $0xfc] sm:$0xff]   ;;  %v3892_v63 = vor.u32 %v3891_v27, %v3888_v53 }
  0xd3   :  { %v3936_v8 = vrot.slane %v3934_v10, 4  ;;  %v3939_v61 = vrot.slane %v3937_v2, 5  ;;  %v15358_v51 = vld [vmem:[%s25365_s0 + $0xbc] sm:$0x1]  ;;  %v3916_v23 = vor.u32 %v3915_v6, %v3912_v40  ;;  %v20195_v10 = vrot.slane %v3943_v25, 5 }
  0xd4   :  { %25428 = vst [vmem:[#allocation30_spill] sm:$0xff] %v20177_v19  ;;  %v20182_v39 = vrot.slane %v3854_v22, 4  ;;  %v3926_v2 = vor.u32 %v3925_v30, %v20177_v19  ;;  %v3953_v36 = vshll.u32 %v15358_v51, 16  ;;  %v3958_v53 = vshrl.u32 %v15359_v28, 16  ;;  %v15365_v51 = vld [vmem:[%s25365_s0 + $0xf0] sm:$0xf] }
  0xd5   :  { %25429 = vst [vmem:[#allocation31_spill] sm:$0xff] %v20195_v10  ;;  %v3940_v46 = vor.u32 %v3939_v61, %v3936_v8  ;;  %v20200_v27 = vrot.slane %v3868_v34, 4  ;;  %v20202_v6 = vrot.slane %v3878_v33, 4  ;;  %v20209_v40 = vrot.slane %v3892_v63, 4  ;;  %v15362_v33 = vld [vmem:[%s25365_s0 + $0xe4] sm:$0xf] }
  0xd6   :  { %v20213_v30 = vrot.slane %v3916_v23, 4  ;;  %v20217_v25 = vrot.slane %v3926_v2, 4  ;;  %v3967_v34 = vshll.u32 %v15360_v32, 16  ;;  %v3950_v23 = vor.u32 %v3949_v31, %v20195_v10 }
  0xd7   :  { %17252 = vmatmul.mubr.bf16.gmra.mrb[28].mxu0 %v18696_v1  ;;  %v18698_v1 = vld [vmem:[%s25365_s0 + $0xf0] sm:$0xff]   ;;  %25430 = vst [vmem:[#allocation32_spill] sm:$0xff] %v20202_v6  ;;  %25432 = vst [vmem:[#allocation34_spill] sm:$0xff] %v20209_v40  ;;  %v20231_v8 = vrot.slane %v3953_v36, 5  ;;  %v20233_v61 = vrot.slane %v3958_v53, 4  ;;  %v20238_v28 = vrot.slane %v3961_v35, 5 }
  0xd8   :  { %17255 = vmatprep.mubr.bf16.mxu0 %v18697_v12  ;;  %v15355_v12 = vld [vmem:[%s25365_s0 + $0xb0] sm:$0x1]  ;;  %25434 = vst [vmem:[#allocation36_spill] sm:$0xff] %v20213_v30  ;;  %25436 = vst [vmem:[#allocation38_spill] sm:$0xff] %v20217_v25  ;;  %v3971_v63 = vshrl.u32 %v15360_v32, 16  ;;  %v3982_v31 = vshrl.u32 %v15362_v33, 16 }
  0xd9   :  { %v3929_v22 = vshll.u32 %v15355_v12, 16  ;;  %v20211_v12 = vrot.slane %v3902_v43, 4  ;;  %v18702_v43 = vld [vmem:[%s25365_s0 + $0x114] sm:$0xff]   ;;  %25438 = vst [vmem:[#allocation40_spill] sm:$0xff] %v20231_v8  ;;  %v15361_v36 = vld [vmem:[%s25365_s0 + $0xc8] sm:$0x1] }
  0xda   :  { %v3991_v53 = vshll.u32 %v15363_v50, 16  ;;  %v3995_v35 = vshrl.u32 %v15363_v50, 16  ;;  %v4006_v32 = vshrl.u32 %v15365_v51, 16  ;;  %v4009_v8 = vshll.u32 %v15365_v51, 16  ;;  %v15369_v51 = vld [vmem:[%s25365_s0 + $0x100] sm:$0xf] }
  0xdb   :  { %25433 = vst [vmem:[#allocation35_spill] sm:$0xff] %v20211_v12  ;;  %v20255_v10 = vrot.slane %v3950_v23, 4  ;;  %v20257_v25 = vrot.slane %v3967_v34, 5  ;;  %v3973_v50 = vrot.slane %v3971_v63, 4  ;;  %v18705_v34 = vld [vmem:[%s25365_s0 + $0x12c] sm:$0xff]   ;;  %v3984_v23 = vrot.slane %v3982_v31, 4 }
  0xdc   :  { %v15364_v63 = vld [vmem:[%s25365_s0 + $0xec] sm:$0x1]  ;;  %v4008_v12 = vrot.slane %v4006_v32, 4  ;;  %v15367_v40 = vld [vmem:[%s25365_s0 + $0xf8] sm:$0x1]  ;;  %v4039_v31 = vshll.u32 %v15369_v51, 16 }
  0xdd   :  { %25441 = vst [vmem:[#allocation41_spill] sm:$0xff] %v20255_v10  ;;  %25442 = vst [vmem:[#allocation42_spill] sm:$0xff] %v20257_v25 }
  0xdf   :  { %17256 = vmatmul.mubr.bf16.gmra.mrb[32].mxu0 %v18698_v1  ;;  %v20204_v1 = vrot.slane %v3905_v3, 5  ;;  %v20228_v3 = vrot.slane %v3940_v46, 4  ;;  %v3985_v46 = vshll.u32 %v15362_v33, 16  ;;  %v3997_v33 = vrot.slane %v3995_v35, 4 }
  0xe0   :  { %17259 = vmatprep.mubr.bf16.mxu0 %v18700_v17  ;;  %v20215_v17 = vrot.slane %v3929_v22, 5  ;;  %v15366_v22 = vld [vmem:[%s25365_s0 + $0xf4] sm:$0xf]  ;;  %v3974_v35 = vor.u32 %v3973_v50, %v20257_v25  ;;  %v20308_v50 = vrot.slane %v4039_v31, 5 }
  0xe1   :  { %25431 = vst [vmem:[#allocation33_spill] sm:$0xff] %v20204_v1  ;;  %25437 = vst [vmem:[#allocation39_spill] sm:$0xff] %v20228_v3  ;;  %v15368_v3 = vld [vmem:[%s25365_s0 + $0xfc] sm:$0xf]  ;;  %v4019_v30 = vshrl.u32 %v15366_v22, 16  ;;  %v4011_v1 = vrot.slane %v4009_v8, 5  ;;  %v3644_v8 = vsel %vm20245_vm5, %v19952_v54, %v19954_v62 }
  0xe2   :  { %25435 = vst [vmem:[#allocation37_spill] sm:$0xff] %v20215_v17  ;;  %v4015_v17 = vshll.u32 %v15366_v22, 16  ;;  %v3987_v22 = vrot.slane %v3985_v46, 5  ;;  %v4030_v10 = vshrl.u32 %v15368_v3, 16  ;;  %v4033_v19 = vshll.u32 %v15368_v3, 16 }
  0xe3   :  { %v4021_v6 = vrot.slane %v4019_v30, 4  ;;  %v4043_v46 = vshrl.u32 %v15369_v51, 16  ;;  %v3620_v3 = vsel %vm20245_vm5, %v19943_v42, %v19948_v55  ;;  %v3964_v30 = vor.u32 %v20238_v28, %v20233_v61  ;;  %v15370_v61 = vld [vmem:[%s25365_s0 + $0x104] sm:$0x1] }
  0xe4   :  { %v20280_v16 = vrot.slane %v4015_v17, 5  ;;  %v15371_v17 = vld [vmem:[%s25365_s0 + $0x108] sm:$0xf]  ;;  %v4001_v42 = vshll.u32 %v15364_v63, 16  ;;  %v4032_v55 = vrot.slane %v4030_v10, 4  ;;  %v4035_v32 = vrot.slane %v4033_v19, 5 }
  0xe5   :  { %v4012_v62 = vor.u32 %v4011_v1, %v4008_v12  ;;  %v4025_v51 = vshll.u32 %v15367_v40, 16  ;;  %v4045_v19 = vrot.slane %v4043_v46, 4  ;;  %v4054_v10 = vshrl.u32 %v15371_v17, 16  ;;  %v18706_v1 = vld [vmem:[%s25365_s0 + $0x138] sm:$0xff]  }
  0xe6   :  { %25443 = vst [vmem:[#allocation43_spill] sm:$0xff] %v20280_v16  ;;  %v4022_v28 = vor.u32 %v4021_v6, %v20280_v16  ;;  %v4057_v25 = vshll.u32 %v15371_v17, 16  ;;  %v20315_v40 = vrot.slane %v3964_v30, 4  ;;  %v20317_v12 = vrot.slane %v3974_v35, 4  ;;  %v15373_v6 = vld [vmem:[%s25365_s0 + $0x110] sm:$0x1] }
  0xe7   :  { %17260 = vmatmul.mubr.bf16.gmra.mrb[36].mxu0 %v18701_v15  ;;  %v3977_v15 = vshll.u32 %v15361_v36, 16  ;;  %v20275_v36 = vrot.slane %v3991_v53, 5  ;;  %v3634_v53 = vsel %vm20245_vm5, %v19950_v58, %v19919_v14  ;;  %v15372_v14 = vld [vmem:[%s25365_s0 + $0x10c] sm:$0xf]  ;;  %v3988_v58 = vor.u32 %v3987_v22, %v3984_v23  ;;  %v15374_v30 = vld [vmem:[%s25365_s0 + $0x114] sm:$0xf] }
  0xe8   :  { %17263 = vmatprep.mubr.bf16.mxu0 %v18702_v43  ;;  %v18703_v43 = vld [vmem:[%s25365_s0 + $0x120] sm:$0xff]   ;;  %v4067_v23 = vshrl.u32 %v15372_v14, 16  ;;  %v20326_v31 = vrot.slane %v4001_v42, 5  ;;  %v20328_v46 = vrot.slane %v4012_v62, 4  ;;  %v20336_v35 = vrot.slane %v4022_v28, 4 }
  0xe9   :  { %v3998_v54 = vor.u32 %v3997_v33, %v20275_v36  ;;  %v20310_v63 = vrot.slane %v3977_v15, 5  ;;  %v4036_v33 = vor.u32 %v4035_v32, %v4032_v55  ;;  %v20322_v22 = vrot.slane %v3988_v58, 4  ;;  %v18707_v17 = vld [vmem:[%s25365_s0 + $0x144] sm:$0xff]   ;;  %v15375_v42 = vld [vmem:[%s25365_s0 + $0x118] sm:$0xf] }
  0xea   :  { %25444 = vst [vmem:[#allocation44_spill] sm:$0xff] %v20328_v46  ;;  %25445 = vst [vmem:[#allocation45_spill] sm:$0xff] %v20336_v35  ;;  %v20338_v55 = vrot.slane %v4025_v51, 5  ;;  %v4046_v32 = vor.u32 %v4045_v19, %v20308_v50  ;;  %v4059_v58 = vrot.slane %v4057_v25, 5  ;;  %v4069_v62 = vrot.slane %v4067_v23, 4 }
  0xeb   :  { %v20324_v15 = vrot.slane %v3998_v54, 4  ;;  %v20346_v46 = vrot.slane %v4036_v33, 4  ;;  %v4078_v28 = vshrl.u32 %v15374_v30, 16  ;;  %v4081_v35 = vshll.u32 %v15374_v30, 16  ;;  %v15377_v51 = vld [vmem:[%s25365_s0 + $0x120] sm:$0xf] }
  0xec   :  { %v15376_v19 = vld [vmem:[%s25365_s0 + $0x11c] sm:$0x1]  ;;  %v15378_v25 = vld [vmem:[%s25365_s0 + $0x124] sm:$0xf]  ;;  %v20366_v23 = vcombine.low %v3634_v53, %v3644_v8  ;;  %v4087_v33 = vshll.u32 %v15375_v42, 16  ;;  %v4102_v8 = vshrl.u32 %v15377_v51, 16 }
  0xed   :  { %25447 = vst [vmem:[#allocation47_spill] sm:$0xff] %v20346_v46  ;;  %v4097_v53 = vshll.u32 %v15376_v19, 16  ;;  %v15383_v46 = vld [vmem:[%s25365_s0 + $0x138] sm:$0xf] }
  0xef   :  { %17264 = vmatmul.mubr.bf16.gmra.mrb[40].mxu0 %v18703_v43  ;;  %v4063_v43 = vshll.u32 %v15372_v14, 16  ;;  %v4056_v14 = vrot.slane %v4054_v10, 4  ;;  %v25449_v10 = vsel %vm20245_vm5, %v19941_v41, %v19914_v60  ;;  %v15381_v60 = vld [vmem:[%s25365_s0 + $0x130] sm:$0xf]  ;;  %v4080_v41 = vrot.slane %v4078_v28, 4 }
  0xf0   :  { %17267 = vmatprep.mubr.bf16.mxu0 %v18705_v34  ;;  %v4049_v34 = vshll.u32 %v15370_v61, 16  ;;  %v4073_v61 = vshll.u32 %v15373_v6, 16  ;;  %v20371_v6 = vrot.slane %v4046_v32, 4  ;;  %v4111_v32 = vshll.u32 %v15378_v25, 16 }
  0xf1   :  { %v20344_v54 = vrot.slane %v4063_v43, 5  ;;  %v20364_v43 = vcombine.low %v25449_v10, %v3620_v3  ;;  %v4060_v30 = vor.u32 %v4059_v58, %v4056_v14  ;;  %v4083_v3 = vrot.slane %v4081_v35, 5  ;;  %v18710_v58 = vld [vmem:[%s25365_s0 + $0x15c] sm:$0xff]  }
  0xf2   :  { %v20348_v16 = vrot.slane %v4049_v34, 5  ;;  %v15380_v34 = vld [vmem:[%s25365_s0 + $0x12c] sm:$0xf]  ;;  %25450 = vst [vmem:[#allocation49_spill] sm:$0xff] %v20371_v6  ;;  %v4105_v10 = vshll.u32 %v15377_v51, 16  ;;  %v4115_v6 = vshrl.u32 %v15378_v25, 16  ;;  %v3658_v35 = vsel %vm20245_vm5, %v20005_v37, %v19962_v29 }
  0xf3   :  { %25446 = vst [vmem:[#allocation46_spill] sm:$0xff] %v20344_v54  ;;  %v4126_v14 = vshrl.u32 %v15380_v34, 16  ;;  %v4135_v28 = vshll.u32 %v15381_v60, 16  ;;  %v3668_v51 = vsel %vm20245_vm5, %v20009_v52, %v20007_v38  ;;  %v20395_v19 = vrot.slane %v4060_v30, 4  ;;  %v15379_v29 = vld [vmem:[%s25365_s0 + $0x128] sm:$0x1] }
  0xf4   :  { %25448 = vst [vmem:[#allocation48_spill] sm:$0xff] %v20348_v16  ;;  %v20374_v16 = vrot.slane %v4073_v61, 5  ;;  %v4107_v37 = vrot.slane %v4105_v10, 5  ;;  %v20409_v38 = vrot.slane %v4111_v32, 5  ;;  %v4117_v52 = vrot.slane %v4115_v6, 4 }
  0xf5   :  { %25453 = vst [vmem:[#allocation52_spill] sm:$0xff] %v20395_v19  ;;  %v4128_v30 = vrot.slane %v4126_v14, 4  ;;  %v3682_v6 = vsel %vm20245_vm5, %v20022_v44, %v19985_v9  ;;  %v3716_v10 = vsel %vm20245_vm5, %v20035_v56, %v20030_v49  ;;  %v15387_v32 = vld [vmem:[%s25365_s0 + $0x148] sm:$0xf]  ;;  %v15382_v9 = vld [vmem:[%s25365_s0 + $0x134] sm:$0x1] }
  0xf6   :  { %25451 = vst [vmem:[#allocation50_spill] sm:$0xff] %v20374_v16  ;;  %v4129_v16 = vshll.u32 %v15380_v34, 16  ;;  %v4139_v34 = vshrl.u32 %v15381_v60, 16  ;;  %25456 = vst [vmem:[#allocation55_spill] sm:$0xff] %v20409_v38  ;;  %v20414_v60 = vcombine.low %v3658_v35, %v3668_v51  ;;  %v4121_v35 = vshll.u32 %v15379_v29, 16 }
  0xf7   :  { %17268 = vmatmul.mubr.bf16.gmra.mrb[44].mxu0 %v18706_v1  ;;  %v4091_v1 = vshrl.u32 %v15375_v42, 16  ;;  %v18708_v42 = vld [vmem:[%s25365_s0 + $0x150] sm:$0xff]   ;;  %v4183_v51 = vshll.u32 %v15387_v32, 16  ;;  %v4145_v19 = vshll.u32 %v15382_v9, 16 }
  0xf8   :  { %17271 = vmatprep.mubr.bf16.mxu0 %v18707_v17  ;;  %v4070_v17 = vor.u32 %v4069_v62, %v20344_v54  ;;  %v20385_v62 = vrot.slane %v4087_v33, 5  ;;  %v4084_v54 = vor.u32 %v4083_v3, %v4080_v41  ;;  %v20399_v33 = vrot.slane %v4097_v53, 5 }
  0xf9   :  { %v4093_v61 = vrot.slane %v4091_v1, 4  ;;  %v20401_v1 = vrot.slane %v4102_v8, 4  ;;  %v4131_v3 = vrot.slane %v4129_v16, 5  ;;  %v20417_v53 = vrot.slane %v4135_v28, 5  ;;  %v15386_v8 = vld [vmem:[%s25365_s0 + $0x144] sm:$0xf] }
  0xfa   :  { %25452 = vst [vmem:[#allocation51_spill] sm:$0xff] %v20385_v62  ;;  %v20397_v25 = vrot.slane %v4070_v17, 4  ;;  %25455 = vst [vmem:[#allocation54_spill] sm:$0xff] %v20399_v33  ;;  %v15384_v17 = vld [vmem:[%s25365_s0 + $0x13c] sm:$0xf]  ;;  %v3706_v16 = vsel %vm20245_vm5, %v20028_v48, %v19991_v20  ;;  %v4141_v44 = vrot.slane %v4139_v34, 4 }
  0xfb   :  { %v4094_v41 = vor.u32 %v4093_v61, %v20385_v62  ;;  %25457 = vst [vmem:[#allocation56_spill] sm:$0xff] %v20417_v53  ;;  %v4159_v14 = vshll.u32 %v15384_v17, 16  ;;  %v18711_v20 = vld [vmem:[%s25365_s0 + $0x168] sm:$0xff]   ;;  %v18712_v48 = vld [vmem:[%s25365_s0 + $0x174] sm:$0xff]   ;;  %v20450_v49 = vrot.slane %v4084_v54, 4  ;;  %v4163_v56 = vshrl.u32 %v15384_v17, 16 }
  0xfc   :  { %25454 = vst [vmem:[#allocation53_spill] sm:$0xff] %v20397_v25  ;;  %v4177_v61 = vshll.u32 %v15386_v8, 16  ;;  %v4187_v34 = vshrl.u32 %v15387_v32, 16  ;;  %v4108_v33 = vor.u32 %v4107_v37, %v20401_v1  ;;  %v4118_v62 = vor.u32 %v4117_v52, %v20409_v38  ;;  %v15389_v54 = vld [vmem:[%s25365_s0 + $0x150] sm:$0xf] }
  0xfd   :  { %v20452_v28 = vrot.slane %v4094_v41, 4  ;;  %v4132_v25 = vor.u32 %v4131_v3, %v4128_v30  ;;  %v4142_v17 = vor.u32 %v4141_v44, %v20417_v53  ;;  %v15390_v32 = vld [vmem:[%s25365_s0 + $0x154] sm:$0xf]  ;;  %v4165_v1 = vrot.slane %v4163_v56, 4  ;;  %v15388_v52 = vld [vmem:[%s25365_s0 + $0x14c] sm:$0x1] }
  0xfe   :  { %v4179_v3 = vrot.slane %v4177_v61, 5  ;;  %v20471_v9 = vrot.slane %v4183_v51, 5  ;;  %v4189_v44 = vrot.slane %v4187_v34, 4  ;;  %v20475_v53 = vcombine.low %v3706_v16, %v3716_v10  ;;  %v18713_v56 = vld [vmem:[%s25365_s0 + $0x180] sm:$0xff]   ;;  %v15392_v10 = vld [vmem:[%s25365_s0 + $0x15c] sm:$0xf] }
  0xff   :  { %17272 = vmatmul.mubr.bf16.gmra.mrb[48].mxu0 %v18708_v42  ;;  %v3692_v42 = vsel %vm20245_vm5, %v20024_v45, %v20026_v47  ;;  %v4150_v45 = vshrl.u32 %v15383_v46, 16  ;;  %v4153_v47 = vshll.u32 %v15383_v46, 16  ;;  %v15385_v46 = vld [vmem:[%s25365_s0 + $0x140] sm:$0x1]  ;;  %v4207_v38 = vshll.u32 %v15390_v32, 16 }
 0x100   :  { %17275 = vmatprep.mubr.bf16.mxu0 %v18710_v58  ;;  %v4174_v58 = vshrl.u32 %v15386_v8, 16  ;;  %v20463_v8 = vrot.slane %v4159_v14, 5  ;;  %v4169_v37 = vshll.u32 %v15385_v46, 16  ;;  %v20473_v14 = vcombine.low %v3682_v6, %v3692_v42 }
 0x101   :  { %v4152_v41 = vrot.slane %v4150_v45, 4  ;;  %v4155_v29 = vrot.slane %v4153_v47, 5  ;;  %v4198_v45 = vshrl.u32 %v15389_v54, 16  ;;  %v4201_v47 = vshll.u32 %v15389_v54, 16  ;;  %v15391_v54 = vld [vmem:[%s25365_s0 + $0x158] sm:$0x1] }
 0x102   :  { %25458 = vst [vmem:[#allocation57_spill] sm:$0xff] %v20463_v8  ;;  %v4176_v30 = vrot.slane %v4174_v58, 4  ;;  %v20480_v46 = vrot.slane %v4108_v33, 4  ;;  %v20482_v58 = vrot.slane %v4118_v62, 4  ;;  %v20486_v61 = vrot.slane %v4132_v25, 4  ;;  %v18715_v25 = vld [vmem:[%s25365_s0 + $0x18c] sm:$0xff]  }
 0x103   :  { %v20488_v51 = vrot.slane %v4142_v17, 4  ;;  %v20490_v6 = vrot.slane %v4145_v19, 5  ;;  %v4156_v42 = vor.u32 %v4155_v29, %v4152_v41  ;;  %v4166_v16 = vor.u32 %v4165_v1, %v20463_v8  ;;  %v15393_v62 = vld [vmem:[%s25365_s0 + $0x160] sm:$0xf] }
 0x104   :  { %v20502_v33 = vrot.slane %v4169_v37, 5  ;;  %v4190_v19 = vor.u32 %v4189_v44, %v20471_v9  ;;  %v4193_v34 = vshll.u32 %v15388_v52, 16  ;;  %v4200_v17 = vrot.slane %v4198_v45, 4  ;;  %v15396_v44 = vld [vmem:[%s25365_s0 + $0x16c] sm:$0xf] }
 0x105   :  { %25459 = vst [vmem:[#allocation58_spill] sm:$0xff] %v20488_v51  ;;  %25460 = vst [vmem:[#allocation59_spill] sm:$0xff] %v20490_v6  ;;  %v4203_v41 = vrot.slane %v4201_v47, 5  ;;  %v20508_v29 = vrot.slane %v4207_v38, 5  ;;  %v4222_v1 = vshrl.u32 %v15392_v10, 16  ;;  %v4225_v8 = vshll.u32 %v15392_v10, 16 }
 0x106   :  { %v4231_v51 = vshll.u32 %v15393_v62, 16  ;;  %v4235_v6 = vshrl.u32 %v15393_v62, 16  ;;  %v3730_v37 = vsel %vm20245_vm5, %v20039_v4, %v19996_v24  ;;  %v3740_v52 = vsel %vm20245_vm5, %v20041_v5, %v20037_v59  ;;  %v18716_v5 = vld [vmem:[%s25365_s0 + $0x198] sm:$0xff]   ;;  %v15398_v10 = vld [vmem:[%s25365_s0 + $0x174] sm:$0xf] }
 0x107   :  { %17276 = vmatmul.mubr.bf16.gmra.mrb[52].mxu0 %v18711_v20  ;;  %v4211_v20 = vshrl.u32 %v15390_v32, 16  ;;  %25461 = vst [vmem:[#allocation60_spill] sm:$0xff] %v20508_v29  ;;  %v20520_v38 = vrot.slane %v4166_v16, 4  ;;  %v20530_v24 = vrot.slane %v4190_v19, 4  ;;  %v20532_v4 = vrot.slane %v4193_v34, 5 }
 0x108   :  { %17279 = vmatprep.mubr.bf16.mxu0 %v18712_v48  ;;  %v20484_v48 = vrot.slane %v4121_v35, 5  ;;  %v4180_v35 = vor.u32 %v4179_v3, %v4176_v30  ;;  %v20518_v30 = vrot.slane %v4156_v42, 4  ;;  %v15395_v3 = vld [vmem:[%s25365_s0 + $0x168] sm:$0xf]  ;;  %v4217_v59 = vshll.u32 %v15391_v54, 16 }
 0x109   :  { %v4213_v32 = vrot.slane %v4211_v20, 4  ;;  %25462 = vst [vmem:[#allocation61_spill] sm:$0xff] %v20530_v24  ;;  %25463 = vst [vmem:[#allocation62_spill] sm:$0xff] %v20532_v4  ;;  %v3754_v47 = vsel %vm20245_vm5, %v20085_v57, %v20043_v7  ;;  %v3764_v20 = vsel %vm20245_vm5, %v20096_v21, %v20087_v11  ;;  %v15394_v16 = vld [vmem:[%s25365_s0 + $0x164] sm:$0x1]  ;;  %v4224_v57 = vrot.slane %v4222_v1, 4 }
 0x10a   :  { %v20528_v45 = vrot.slane %v4180_v35, 4  ;;  %v15399_v7 = vld [vmem:[%s25365_s0 + $0x178] sm:$0xf]  ;;  %v4227_v62 = vrot.slane %v4225_v8, 5  ;;  %v4237_v11 = vrot.slane %v4235_v6, 4  ;;  %v4246_v21 = vshrl.u32 %v15395_v3, 16 }
 0x10b   :  { %v4214_v42 = vor.u32 %v4213_v32, %v20508_v29  ;;  %v4249_v35 = vshll.u32 %v15395_v3, 16  ;;  %v4255_v19 = vshll.u32 %v15396_v44, 16  ;;  %v4259_v34 = vshrl.u32 %v15396_v44, 16 }
 0x10c   :  { %v20557_v54 = vcombine.low %v3730_v37, %v3740_v52  ;;  %v4273_v32 = vshll.u32 %v15398_v10, 16  ;;  %v20563_v24 = vrot.slane %v4217_v59, 5  ;;  %v4279_v4 = vshll.u32 %v15399_v7, 16  ;;  %v15397_v37 = vld [vmem:[%s25365_s0 + $0x170] sm:$0x1] }
 0x10d   :  { %v4283_v1 = vshrl.u32 %v15399_v7, 16  ;;  %v20565_v8 = vrot.slane %v4214_v42, 4  ;;  %v4241_v3 = vshll.u32 %v15394_v16, 16  ;;  %v4248_v52 = vrot.slane %v4246_v21, 4  ;;  %v15401_v59 = vld [vmem:[%s25365_s0 + $0x180] sm:$0xf] }
 0x10e   :  { %25465 = vst [vmem:[#allocation64_spill] sm:$0xff] %v20563_v24  ;;  %v4251_v44 = vrot.slane %v4249_v35, 5  ;;  %v25468_v42 = vld [vmem:[#allocation18_spill] sm:$0xff]  ;;  %v15400_v16 = vld [vmem:[%s25365_s0 + $0x17c] sm:$0x1]  ;;  %v4275_v7 = vrot.slane %v4273_v32, 5 }
 0x10f   :  { %17280 = vmatmul.mubr.bf16.gmra.mrb[56].mxu0 %v18713_v56  ;;  %v4204_v56 = vor.u32 %v4203_v41, %v4200_v17  ;;  %v20559_v17 = vcombine.low %v3754_v47, %v3764_v20  ;;  %v4270_v41 = vshrl.u32 %v15398_v10, 16  ;;  %25466 = vst [vmem:[#allocation65_spill] sm:$0xff] %v20565_v8  ;;  %v20571_v47 = vrot.slane %v4255_v19, 5 }
 0x110   :  { %17283 = vmatprep.mubr.bf16.mxu0 %v18715_v25  ;;  %v20555_v25 = vrot.slane %v4231_v51, 5  ;;  %v4228_v51 = vor.u32 %v4227_v62, %v4224_v57  ;;  %v4261_v20 = vrot.slane %v4259_v34, 4  ;;  %v25469_v57 = vld [vmem:[#allocation16_spill] sm:$0xff]  ;;  %v25470_v62 = vld [vmem:[#allocation19_spill] sm:$0xff]  ;;  %v20599_v21 = vrot.slane %v4279_v4, 5 }
 0x111   :  { %v20561_v29 = vrot.slane %v4204_v56, 4  ;;  %25467 = vst [vmem:[#allocation66_spill] sm:$0xff] %v20571_v47  ;;  %v3778_v56 = vsel %vm20245_vm5, %v20114_v13, %v20073_v18  ;;  %v4272_v10 = vrot.slane %v4270_v41, 4  ;;  %v3802_v18 = vsel %vm20245_vm5, %v25470_v62, %v25469_v57  ;;  %v25471_v13 = vld [vmem:[#allocation20_spill] sm:$0xff]  ;;  %v20611_v57 = vld [vmem:[%s25365_s0 + $0x188] sm:$0x1] }
 0x112   :  { %25464 = vst [vmem:[#allocation63_spill] sm:$0xff] %v20555_v25  ;;  %v4238_v6 = vor.u32 %v4237_v11, %v20555_v25  ;;  %v25472_v11 = vld [vmem:[#allocation21_spill] sm:$0xff]  ;;  %25473 = vst [vmem:[#allocation18_spill] sm:$0xff] %v20599_v21  ;;  %v4285_v35 = vrot.slane %v4283_v1, 4  ;;  %v20601_v19 = vrot.slane %v4228_v51, 4  ;;  %v20605_v41 = vrot.slane %v4241_v3, 5 }
 0x113   :  { %v4265_v32 = vshll.u32 %v15397_v37, 16  ;;  %v4252_v25 = vor.u32 %v4251_v44, %v4248_v52  ;;  %v4262_v8 = vor.u32 %v4261_v20, %v20571_v47  ;;  %v4294_v62 = vshrl.u32 %v15401_v59, 16  ;;  %v25478_v1 = vld [vmem:[#allocation22_spill] sm:$0xff]  ;;  %v25479_v37 = vld [vmem:[#allocation24_spill] sm:$0xff]  ;;  %v25481_v44 = vld [vmem:[#allocation25_spill] sm:$0xff] }
 0x114   :  { %25474 = vst [vmem:[#allocation16_spill] sm:$0xff] %v20601_v19  ;;  %v20603_v34 = vrot.slane %v4238_v6, 4  ;;  %25476 = vst [vmem:[#allocation20_spill] sm:$0xff] %v20605_v41  ;;  %v4297_v4 = vshll.u32 %v15401_v59, 16  ;;  %v4276_v6 = vor.u32 %v4275_v7, %v4272_v10  ;;  %v4289_v3 = vshll.u32 %v15400_v16, 16  ;;  %v25482_v20 = vld [vmem:[#allocation27_spill] sm:$0xff] }
 0x115   :  { %v3850_v47 = vsel %vm20245_vm5, %v25482_v20, %v25481_v44  ;;  %v25483_v41 = vld [vmem:[#allocation26_spill] sm:$0xff]  ;;  %v25484_v7 = vld [vmem:[#allocation28_spill] sm:$0xff]  ;;  %v20649_v44 = vrot.slane %v4262_v8, 4  ;;  %v4296_v20 = vrot.slane %v4294_v62, 4 }
 0x116   :  { %25475 = vst [vmem:[#allocation19_spill] sm:$0xff] %v20603_v34  ;;  %v25480_v34 = vld [vmem:[#allocation23_spill] sm:$0xff]  ;;  %v3860_v59 = vsel %vm20245_vm5, %v20182_v39, %v25483_v41  ;;  %v15404_v16 = vld [vmem:[%s25365_s0 + $0x18c] sm:$0xf]  ;;  %v20644_v41 = vrot.slane %v4265_v32, 5  ;;  %v20654_v24 = vrot.slane %v4289_v3, 5 }
 0x117   :  { %17284 = vmatmul.mubr.bf16.gmra.mrb[60].mxu0 %v18716_v5  ;;  %v3788_v5 = vsel %vm20245_vm5, %v25468_v42, %v20098_v0  ;;  %v3812_v0 = vsel %vm20245_vm5, %v25472_v11, %v25471_v13  ;;  %v18718_v42 = vld [vmem:[#allocation6 + $0x148] sm:$0xff]   ;;  %v25477_v13 = vld [vmem:[#allocation17_spill] sm:$0xff]  ;;  %v3836_v52 = vsel %vm20245_vm5, %v25480_v34, %v25479_v37  ;;  %v15405_v10 = vld [vmem:[%s25365_s0 + $0x190] sm:$0xf]  ;;  %v3874_v34 = vsel %vm20245_vm5, %v20200_v27, %v25484_v7 }
 0x118   :  { %17303 = vmatprep.mubr.bf16.mxu0 %v20364_v43  ;;  %v15402_v43 = vld [vmem:[%s25365_s0 + $0x184] sm:$0xf]  ;;  %v3826_v51 = vsel %vm20245_vm5, %v25478_v1, %v25477_v13  ;;  %v4286_v13 = vor.u32 %v4285_v35, %v20599_v21  ;;  %v25485_v1 = vld [vmem:[#allocation32_spill] sm:$0xff]  ;;  %v20647_v37 = vrot.slane %v4252_v25, 4  ;;  %v4299_v21 = vrot.slane %v4297_v4, 5  ;;  %v19063_v19 = vld [vmem:[#allocation6 + $0x140] sm:$0xff]  }
 0x119   :  { %v4303_v11 = vshll.u32 %v15402_v43, 16  ;;  %v3884_v39 = vsel %vm20245_vm5, %v25485_v1, %v20192_v26  ;;  %v4307_v35 = vshrl.u32 %v15402_v43, 16  ;;  %v18719_v27 = vld [vmem:[#allocation6 + $0x150] sm:$0xff]   ;;  %v20652_v7 = vrot.slane %v4276_v6, 4 }
 0x11a   :  { %v4313_v43 = vshll.u32 %v20611_v57, 16  ;;  %v20661_v25 = vcombine.low %v3802_v18, %v3812_v0  ;;  %v20663_v8 = vrot.slane %v4286_v13, 4  ;;  %v4318_v32 = vshrl.u32 %v15404_v16, 16  ;;  %v18720_v57 = vld [vmem:[#allocation6 + $0x158] sm:$0xff]   ;;  %v25493_v13 = vld [vmem:[#allocation36_spill] sm:$0xff] }
 0x11b   :  { %v20656_v26 = vrot.slane %v4303_v11, 5  ;;  %v4327_v62 = vshll.u32 %v15405_v10, 16  ;;  %v4331_v4 = vshrl.u32 %v15405_v10, 16  ;;  %v20667_v6 = vcombine.low %v3826_v51, %v3836_v52  ;;  %v25488_v18 = vld [vmem:[#allocation29_spill] sm:$0xff]  ;;  %v25489_v0 = vld [vmem:[#allocation34_spill] sm:$0xff]  ;;  %v25491_v52 = vld [vmem:[#allocation35_spill] sm:$0xff] }
 0x11c   :  { %v20669_v3 = vcombine.low %v3850_v47, %v3860_v59  ;;  %v20671_v11 = vcombine.low %v3874_v34, %v3884_v39  ;;  %v4300_v1 = vor.u32 %v4299_v21, %v4296_v20  ;;  %v3898_v47 = vsel %vm20245_vm5, %v25489_v0, %v25488_v18  ;;  %v25490_v51 = vld [vmem:[#allocation33_spill] sm:$0xff]  ;;  %v25492_v59 = vld [vmem:[#allocation30_spill] sm:$0xff]  ;;  %v20702_v39 = vld [vmem:[%s25365_s0 + $0x19c] sm:$0xf] }
 0x11d   :  { %v3908_v21 = vsel %vm20245_vm5, %v25491_v52, %v25490_v51  ;;  %v25494_v10 = vld [vmem:[#allocation37_spill] sm:$0xff]  ;;  %v25495_v34 = vld [vmem:[#allocation38_spill] sm:$0xff]  ;;  %v25497_v20 = vld [vmem:[#allocation39_spill] sm:$0xff] }
 0x11e   :  { %25486 = vst [vmem:[#allocation21_spill] sm:$0xff] %v20669_v3  ;;  %25487 = vst [vmem:[#allocation17_spill] sm:$0xff] %v20671_v11  ;;  %v25498_v0 = vld [vmem:[#allocation40_spill] sm:$0xff]  ;;  %v25499_v51 = vld [vmem:[#allocation41_spill] sm:$0xff] }
 0x11f   :  { %17304 = vmatmul.mubr.bf16.vlgmr.msra.gmra.mrb[0].mxu0 %v20366_v23  ;;  %v20659_v23 = vcombine.low %v3778_v56, %v3788_v5  ;;  %v20676_v56 = vld [vmem:[%s25365_s0 + $0x194] sm:$0x1]  ;;  %v20681_v5 = vld [vmem:[%s25365_s0 + $0x198] sm:$0xf]  ;;  %v3956_v52 = vsel %vm20245_vm5, %v25499_v51, %v25498_v0 }
 0x120   :  { %17368 = vmatpush3.bf16.msra.mxu0 %v19063_v19  ;;  %17307 = vmatprep.mubr.bf16.mxu0 %v20414_v60  ;;  %v20665_v19 = vrot.slane %v4307_v35, 4  ;;  %v4321_v60 = vshll.u32 %v15404_v16, 16  ;;  %v3922_v16 = vsel %vm20245_vm5, %v25493_v13, %v25492_v59  ;;  %v25496_v35 = vld [vmem:[#allocation31_spill] sm:$0xff]  ;;  %v25500_v59 = vld [vmem:[#allocation42_spill] sm:$0xff]  ;;  %v25502_v0 = vld [vmem:[#allocation44_spill] sm:$0xff] }
 0x121   :  { %17369 = vmatprep.subr.bf16.mxu0 %v18718_v42  ;;  %v3946_v18 = vsel %vm20245_vm5, %v25497_v20, %v25496_v35  ;;  %v3970_v13 = vsel %vm20245_vm5, %v20315_v40, %v25500_v59  ;;  %v3994_v35 = vsel %vm20245_vm5, %v20322_v22, %v20275_v36  ;;  %v4004_v40 = vsel %vm20245_vm5, %v20324_v15, %v20326_v31  ;;  %v25501_v20 = vld [vmem:[#allocation43_spill] sm:$0xff] }
 0x122   :  { %v20742_v59 = vrot.slane %v4300_v1, 4  ;;  %v20744_v36 = vrot.slane %v4313_v43, 5  ;;  %v4320_v22 = vrot.slane %v4318_v32, 4  ;;  %v4323_v11 = vrot.slane %v4321_v60, 5  ;;  %v18726_v3 = vld [vmem:[#allocation6 + $0x40] sm:$0xff]  }
 0x123   :  { %v18721_v15 = vld [vmem:[#allocation6 + $0x160] sm:$0xff]   ;;  %v20747_v31 = vrot.slane %v4327_v62, 5  ;;  %v4345_v43 = vshll.u32 %v20681_v5, 16  ;;  %v4351_v32 = vshll.u32 %v20702_v39, 16  ;;  %16967 = vmatprep.subr.bf16.mxu1 %v18726_v3  ;;  %v4355_v60 = vshrl.u32 %v20702_v39, 16 }
 0x124   :  { %17370 = vmatpush3.bf16.msra.mxu0 %v18718_v42  ;;  %v3932_v42 = vsel %vm20245_vm5, %v25495_v34, %v25494_v10  ;;  %v3980_v10 = vsel %vm20245_vm5, %v20317_v12, %v20310_v63  ;;  %v20723_v34 = vld [vmem:[%s25365_s0 + $0x1a0] sm:$0x1]  ;;  %v4018_v63 = vsel %vm20245_vm5, %v25502_v0, %v25501_v20  ;;  %v25503_v12 = vld [vmem:[#allocation45_spill] sm:$0xff]  ;;  %v4333_v20 = vrot.slane %v4331_v4, 4  ;;  %16968 = vmatpush3.bf16.msra.mxu1 %v18726_v3 }
 0x125   :  { %17371 = vmatprep.subr.bf16.mxu0 %v18719_v27  ;;  %v4028_v51 = vsel %vm20245_vm5, %v25503_v12, %v20338_v55  ;;  %v4337_v0 = vshll.u32 %v20676_v56, 16  ;;  %v4342_v55 = vshrl.u32 %v20681_v5, 16  ;;  %v20751_v12 = vcombine.low %v3898_v47, %v3908_v21  ;;  %v18722_v5 = vld [vmem:[#allocation6 + $0x168] sm:$0xff]   ;;  %v20772_v21 = vld [vmem:[%s25365_s0 + $0xc] sm:$0xe] }
 0x126   :  { %v4361_v62 = vshll.u32 %v20723_v34, 16  ;;  %v20763_v4 = vcombine.low %v3970_v13, %v3980_v10  ;;  %v20765_v1 = vcombine.low %v3994_v35, %v4004_v40  ;;  %v20767_v56 = vcombine.low %v4018_v63, %v4028_v51  ;;  %v25505_v3 = vld [vmem:[#allocation48_spill] sm:$0xff]  ;;  %v25509_v10 = vld [vmem:[#allocation50_spill] sm:$0xff]  ;;  %v25511_v35 = vld [vmem:[#allocation51_spill] sm:$0xff] }
 0x127   :  { %17308 = vmatmul.mubr.bf16.gmra.mrb[4].mxu0 %v20473_v14  ;;  %v20753_v14 = vcombine.low %v3922_v16, %v3932_v42  ;;  %v4324_v47 = vor.u32 %v4323_v11, %v4320_v22  ;;  %v25506_v42 = vld [vmem:[#allocation49_spill] sm:$0xff]  ;;  %v4334_v13 = vor.u32 %v4333_v20, %v20747_v31  ;;  %v25512_v40 = vld [vmem:[#allocation54_spill] sm:$0xff]  ;;  %v25513_v51 = vld [vmem:[#allocation55_spill] sm:$0xff]  ;;  %v4124_v20 = vsel %vm20245_vm5, %v20482_v58, %v20484_v48 }
 0x128   :  { %17311 = vmatprep.mubr.bf16.mxu0 %v20475_v53  ;;  %17372 = vmatpush3.bf16.msra.mxu0 %v18719_v27  ;;  %v20757_v53 = vcombine.low %v3946_v18, %v3956_v52  ;;  %v4310_v27 = vor.u32 %v20665_v19, %v20656_v26  ;;  %v25504_v19 = vld [vmem:[#allocation47_spill] sm:$0xff]  ;;  %v4052_v39 = vsel %vm20245_vm5, %v25506_v42, %v25505_v3  ;;  %v25507_v18 = vld [vmem:[#allocation46_spill] sm:$0xff]  ;;  %v25508_v52 = vld [vmem:[#allocation52_spill] sm:$0xff]  ;;  %v4344_v58 = vrot.slane %v4342_v55, 4 }
 0x129   :  { %17373 = vmatprep.subr.bf16.mxu0 %v18720_v57  ;;  %v4042_v16 = vsel %vm20245_vm5, %v25504_v19, %v20308_v50  ;;  %v4066_v11 = vsel %vm20245_vm5, %v25508_v52, %v25507_v18  ;;  %v4090_v50 = vsel %vm20245_vm5, %v20450_v49, %v25511_v35  ;;  %v4100_v63 = vsel %vm20245_vm5, %v20452_v28, %v25512_v40  ;;  %v25514_v19 = vld [vmem:[#allocation56_spill] sm:$0xff]  ;;  %v25515_v3 = vld [vmem:[#allocation59_spill] sm:$0xff]  ;;  %v25516_v42 = vld [vmem:[#allocation58_spill] sm:$0xff] }
 0x12a   :  { %v4114_v22 = vsel %vm20245_vm5, %v20480_v46, %v25513_v51  ;;  %v4138_v49 = vsel %vm20245_vm5, %v20486_v61, %v25514_v19  ;;  %v4148_v28 = vsel %vm20245_vm5, %v25516_v42, %v25515_v3  ;;  %v20815_v18 = vrot.slane %v4310_v27, 4  ;;  %v18728_v52 = vld [vmem:[#allocation6 + $0x48] sm:$0xff]   ;;  %v18723_v61 = vld [vmem:[#allocation6 + $0x170] sm:$0xff]  }
 0x12b   :  { %v20818_v46 = vrot.slane %v4324_v47, 4  ;;  %v4347_v48 = vrot.slane %v4345_v43, 5  ;;  %v20823_v35 = vrot.slane %v4334_v13, 4  ;;  %v20825_v40 = vrot.slane %v4351_v32, 5  ;;  %16969 = vmatprep.subr.bf16.mxu1 %v18728_v52  ;;  %v20847_v32 = vld [vmem:[%s25365_s0 + $0x18] sm:$0xe] }
 0x12c   :  { %17374 = vmatpush3.bf16.msra.mxu0 %v18720_v57  ;;  %v25510_v57 = vld [vmem:[#allocation53_spill] sm:$0xff]  ;;  %v4357_v27 = vrot.slane %v4355_v60, 4  ;;  %v15482_v51 = vrot.slane %v20772_v21, 9  ;;  %v20828_v19 = vcombine.low %v4042_v16, %v4052_v39  ;;  %v20840_v55 = vcombine.low %v4090_v50, %v4100_v63  ;;  %v20852_v60 = vld [vmem:[%s25365_s0 + $0x1c] sm:$0xf]  ;;  %16970 = vmatpush3.bf16.msra.mxu1 %v18728_v52 }
 0x12d   :  { %17375 = vmatprep.subr.bf16.mxu0 %v18721_v15  ;;  %v4076_v34 = vsel %vm20245_vm5, %v25510_v57, %v25509_v10  ;;  %v20820_v10 = vrot.slane %v4337_v0, 5  ;;  %v18729_v57 = vld [vmem:[#allocation6 + $0x50] sm:$0xff]   ;;  %v20832_v0 = vrot.slane %v4361_v62, 5  ;;  %v20842_v43 = vcombine.low %v4114_v22, %v4124_v20  ;;  %v20858_v47 = vld [vmem:[%s25365_s0 + $0x28] sm:$0xf] }
 0x12e   :  { %v5048_v62 = vrot.slane %v20852_v60, 5  ;;  %v5055_v16 = vrot.slane %v20858_v47, 5  ;;  %v20861_v39 = vcombine.low %v4138_v49, %v4148_v28  ;;  %v18724_v50 = vld [vmem:[#allocation6 + $0x178] sm:$0xff]   ;;  %v4348_v63 = vor.u32 %v4347_v48, %v4344_v58  ;;  %16971 = vmatprep.subr.bf16.mxu1 %v18729_v57  ;;  %v25524_v52 = vld [vmem:[#allocation16_spill] sm:$0xff] }
 0x12f   :  { %17312 = vmatmul.mubr.bf16.gmra.mrb[8].mxu0 %v20557_v54  ;;  %v20830_v54 = vcombine.low %v4066_v11, %v4076_v34  ;;  %v25517_v11 = vld [vmem:[#allocation57_spill] sm:$0xff]  ;;  %v4172_v34 = vsel %vm20245_vm5, %v20520_v38, %v20502_v33  ;;  %v4186_v22 = vsel %vm20245_vm5, %v20528_v45, %v20471_v9  ;;  %v25518_v20 = vld [vmem:[#allocation62_spill] sm:$0xff]  ;;  %v4358_v33 = vor.u32 %v4357_v27, %v20825_v40  ;;  %v25523_v45 = vld [vmem:[#allocation63_spill] sm:$0xff] }
 0x130   :  { %17315 = vmatprep.mubr.bf16.mxu0 %v20559_v17  ;;  %17376 = vmatpush3.bf16.msra.mxu0 %v18721_v15  ;;  %v20837_v17 = vld [vmem:[%s25365_s0 + $0x10] sm:$0xf]  ;;  %v4162_v13 = vsel %vm20245_vm5, %v20518_v30, %v25517_v11  ;;  %v25519_v49 = vld [vmem:[#allocation61_spill] sm:$0xff]  ;;  %v25520_v30 = vld [vmem:[#allocation60_spill] sm:$0xff]  ;;  %v4234_v58 = vsel %vm20245_vm5, %v25524_v52, %v25523_v45 }
 0x131   :  { %17377 = vmatprep.subr.bf16.mxu0 %v18722_v5  ;;  %v5041_v15 = vrot.slane %v20837_v17, 5  ;;  %v4196_v3 = vsel %vm20245_vm5, %v25519_v49, %v25518_v20  ;;  %v4210_v42 = vsel %vm20245_vm5, %v20561_v29, %v25520_v30  ;;  %v20887_v38 = vld [vmem:[%s25365_s0 + $0x24] sm:$0xe]  ;;  %v25525_v48 = vld [vmem:[#allocation20_spill] sm:$0xff]  ;;  %v25526_v29 = vld [vmem:[#allocation19_spill] sm:$0xff]  ;;  %v4268_v49 = vsel %vm20245_vm5, %v20649_v44, %v20644_v41  ;;  %16972 = vmatpush3.bf16.msra.mxu1 %v18729_v57 }
 0x132   :  { %v25522_v28 = vld [vmem:[#allocation65_spill] sm:$0xff]  ;;  %v4244_v27 = vsel %vm20245_vm5, %v25526_v29, %v25525_v48  ;;  %v25527_v11 = vld [vmem:[#allocation66_spill] sm:$0xff]  ;;  %v19067_v45 = vld [vmem:[%s25365_s0 + $0x14] sm:$0x1]  ;;  %v20921_v41 = vrot.slane %v4348_v63, 4  ;;  %v20930_v57 = vrot.slane %v4358_v33, 4 }
 0x133   :  { %v4258_v20 = vsel %vm20245_vm5, %v20647_v37, %v25527_v11  ;;  %v25528_v30 = vld [vmem:[#allocation18_spill] sm:$0xff]  ;;  %v5044_v37 = vrot.slane %v19067_v45, 5  ;;  %v5043_v44 = vrot.slane %v5041_v15, 4  ;;  %v20940_v11 = vld [vmem:[%s25365_s0 + $0x34] sm:$0xf]  ;;  %v15484_v33 = vrot.slane %v20887_v38, 9 }
 0x134   :  { %17378 = vmatpush3.bf16.msra.mxu0 %v18722_v5  ;;  %v25521_v5 = vld [vmem:[#allocation64_spill] sm:$0xff]  ;;  %v18730_v52 = vld [vmem:[#allocation6 + $0x58] sm:$0xff]   ;;  %v18731_v48 = vld [vmem:[#allocation6 + $0x60] sm:$0xff]   ;;  %v5057_v45 = vrot.slane %v5055_v16, 4  ;;  %v21004_v17 = vcombine.low %v4258_v20, %v4268_v49 }
 0x135   :  { %v4220_v9 = vsel %vm20245_vm5, %v25522_v28, %v25521_v5  ;;  %17379 = vmatprep.subr.bf16.mxu0 %v18723_v61  ;;  %v4282_v5 = vsel %vm20245_vm5, %v20652_v7, %v25528_v30  ;;  %v4292_v28 = vsel %vm20245_vm5, %v20663_v8, %v20654_v24  ;;  %v15483_v7 = vrot.slane %v20847_v32, 9  ;;  %v19068_v24 = vld [vmem:[%s25365_s0 + $0x20] sm:$0x1]  ;;  %v18725_v63 = vld [vmem:[#allocation6 + $0x180] sm:$0xff]   ;;  %v19069_v29 = vld [vmem:[%s25365_s0 + $0x2c] sm:$0x1]  ;;  %16973 = vmatprep.subr.bf16.mxu1 %v18730_v52 }
 0x136   :  { %v5051_v8 = vrot.slane %v19068_v24, 5  ;;  %v5058_v32 = vrot.slane %v19069_v29, 5  ;;  %v5062_v30 = vrot.slane %v20940_v11, 5  ;;  %v20957_v24 = vld [vmem:[%s25365_s0 + $0x30] sm:$0xe]  ;;  %16974 = vmatpush3.bf16.msra.mxu1 %v18730_v52  ;;  %v21006_v21 = vcombine.low %v4282_v5, %v4292_v28  ;;  %v18733_v60 = vld [vmem:[#allocation6 + $0x68] sm:$0xff]  }
 0x137   :  { %17316 = vmatmul.mubr.bf16.gmra.mrb[12].mxu0 %v20659_v23  ;;  %v5050_v23 = vrot.slane %v5048_v62, 4  ;;  %v20976_v38 = vld [vmem:[%s25365_s0 + $0x4c] sm:$0xf]  ;;  %v20998_v52 = vld [vmem:[%s25365_s0 + $0x3c] sm:$0xe]  ;;  %16975 = vmatprep.subr.bf16.mxu1 %v18731_v48  ;;  %v18734_v5 = vld [vmem:[#allocation6 + $0x70] sm:$0xff]  }
 0x138   :  { %17319 = vmatprep.mubr.bf16.mxu0 %v20661_v25  ;;  %17380 = vmatpush3.bf16.msra.mxu0 %v18723_v61  ;;  %v4306_v25 = vsel %vm20245_vm5, %v20742_v59, %v20656_v26  ;;  %v4316_v61 = vsel %vm20245_vm5, %v20815_v18, %v20744_v36  ;;  %v4330_v26 = vsel %vm20245_vm5, %v20818_v46, %v20747_v31  ;;  %v20970_v36 = vld [vmem:[%s25365_s0 + $0x40] sm:$0xf]  ;;  %v25395_v29 = vrot.slane %v20976_v38, 5  ;;  %v19073_v20 = vld [vmem:[%s25365_s0 + $0x38] sm:$0x1] }
 0x139   :  { %17381 = vmatprep.subr.bf16.mxu0 %v18724_v50  ;;  %v4340_v59 = vsel %vm20245_vm5, %v20823_v35, %v20820_v10  ;;  %v20979_v31 = vcombine.low %v4162_v13, %v4172_v34  ;;  %v20981_v46 = vcombine.low %v4186_v22, %v4196_v3  ;;  %v20989_v35 = vsel %vm19458_vm2, %v15482_v51, %v5041_v15  ;;  %v21011_v51 = vld [vmem:[%s25365_s0 + $0x48] sm:$0xe]  ;;  %v19079_v11 = vld [vmem:[%s25365_s0 + $0x8] sm:$0x1] }
 0x13a   :  { %v20993_v18 = vsel %vm19458_vm2, %v5043_v44, %v5044_v37  ;;  %v21000_v13 = vcombine.low %v4210_v42, %v4220_v9  ;;  %v21002_v34 = vcombine.low %v4234_v58, %v4244_v27  ;;  %v21013_v15 = vcombine.low %v4306_v25, %v4316_v61  ;;  %16976 = vmatpush3.bf16.msra.mxu1 %v18731_v48  ;;  %v21065_v37 = vld [vmem:[%s25365_s0 + $0x50] sm:$0x1]  ;;  %v19076_v44 = vld [vmem:[%s25365_s0 + $0x4] sm:$0xf]  ;;  %v21086_v25 = vld [vmem:[%s25365_s0 + $0x58] sm:$0xf] }
 0x13b   :  { %v21015_v22 = vcombine.low %v4330_v26, %v4340_v59  ;;  %v4354_v3 = vsel %vm20245_vm5, %v20921_v41, %v20825_v40  ;;  %v21025_v42 = vsel %vm19458_vm2, %v15483_v7, %v5048_v62  ;;  %v21035_v58 = vsel %vm19458_vm2, %v5050_v23, %v5051_v8  ;;  %16977 = vmatprep.subr.bf16.mxu1 %v18733_v60  ;;  %v19078_v26 = vld [vmem:[%s25365_s0 + $0x10] sm:$0xf]  ;;  %v25532_v61 = vld [vmem:[#allocation17_spill] sm:$0xff] }
 0x13c   :  { %17382 = vmatpush3.bf16.msra.mxu0 %v18724_v50  ;;  %v4364_v50 = vsel %vm20245_vm5, %v20930_v57, %v20832_v0  ;;  %v15485_v40 = vrot.slane %v20957_v24, 9  ;;  %v21043_v62 = vsel %vm19458_vm2, %v15484_v33, %v5055_v16  ;;  %v21047_v0 = vsel %vm19458_vm2, %v5057_v45, %v5058_v32  ;;  %v21059_v16 = vld [vmem:[%s25365_s0 + $0x44] sm:$0x1]  ;;  %v65_v24 = vld [vmem:[%s25365_s0 + $0xc] sm:$0xf] }
 0x13d   :  { %17447 = vmatprep.subr.bf16.mxu0 %v18725_v63  ;;  %v5064_v27 = vrot.slane %v5062_v30, 4  ;;  %v5065_v49 = vrot.slane %v19073_v20, 5  ;;  %v15486_v47 = vrot.slane %v20998_v52, 9  ;;  %v188_v7 = vshll.u32 %v19076_v44, 16  ;;  %v63_v63 = vld [vmem:[%s25365_s0] sm:$0xf] }
 0x13e   :  { %v25531_v8 = vrot.slane %v20970_v36, 5  ;;  %v21078_v23 = vrot.slane %v25395_v29, 4  ;;  %v192_v32 = vshrl.u32 %v19076_v44, 16  ;;  %16978 = vmatpush3.bf16.msra.mxu1 %v18733_v60  ;;  %v179_v33 = vshrl.u32 %v63_v63, 16 }
 0x13f   :  { %17320 = vmatmul.mubr.bf16.gmra.mrb[16].mxu0 %v20667_v6  ;;  %v25530_v6 = vld [vmem:[#allocation21_spill] sm:$0xff]  ;;  %v182_v45 = vshll.u32 %v63_v63, 16  ;;  %v212_v59 = vshll.u32 %v19078_v26, 16  ;;  %v21095_v20 = vcombine.low %v4354_v3, %v4364_v50  ;;  %16979 = vmatprep.subr.bf16.mxu1 %v18734_v5  ;;  %v190_v44 = vrot.slane %v188_v7, 5  ;;  %v21110_v3 = vld [vmem:[%s25365_s0 + $0x54] sm:$0xe] }
 0x140   :  { %17323 = vmatprep.mubr.bf16.mxu0 %v25530_v6  ;;  %v21073_v48 = vrot.slane %v25531_v8, 4  ;;  %v194_v8 = vrot.slane %v192_v32, 4  ;;  %v21105_v63 = vsel %vm19458_vm2, %v15485_v40, %v5062_v30  ;;  %v181_v50 = vrot.slane %v179_v33, 4  ;;  %v18735_v30 = vld [vmem:[#allocation6 + $0x78] sm:$0xff]  }
 0x141   :  { %v184_v9 = vrot.slane %v182_v45, 5  ;;  %v21114_v7 = vsel %vm19458_vm2, %v5064_v27, %v5065_v49  ;;  %v198_v60 = vshll.u32 %v19079_v11, 16  ;;  %v203_v6 = vshrl.u32 %v65_v24, 16  ;;  %v19080_v27 = vld [vmem:[%s25365_s0 + $0x14] sm:$0x1] }
 0x142   :  { %v195_v32 = vor.u32 %v194_v8, %v190_v44  ;;  %16980 = vmatpush3.bf16.msra.mxu1 %v18734_v5  ;;  %v206_v41 = vshll.u32 %v65_v24, 16  ;;  %v214_v57 = vrot.slane %v212_v59, 5  ;;  %v216_v29 = vshrl.u32 %v19078_v26, 16  ;;  %v21127_v5 = vld [vmem:[%s25365_s0 + $0x5c] sm:$0x1] }
 0x143   :  { %v185_v40 = vor.u32 %v184_v9, %v181_v50  ;;  %v200_v45 = vrot.slane %v198_v60, 5  ;;  %v205_v28 = vrot.slane %v203_v6, 4  ;;  %v222_v49 = vshll.u32 %v19080_v27, 16  ;;  %16981 = vmatprep.subr.bf16.mxu1 %v18735_v30  ;;  %v21134_v6 = vld [vmem:[%s25365_s0 + $0x64] sm:$0xf] }
 0x144   :  { %v196_v33 = vrot.slane %v195_v32, 4  ;;  %v218_v26 = vrot.slane %v216_v29, 4  ;;  %v15488_v59 = vrot.slane %v21110_v3, 9  ;;  %v21140_v8 = vld [vmem:[%s25365_s0 + $0x68] sm:$0x1]  ;;  %v25534_v9 = vrot.slane %v21059_v16, 5 }
 0x145   :  { %v186_v24 = vrot.slane %v185_v40, 4  ;;  %v67_v29 = vld [vmem:[%s25365_s0 + $0x18] sm:$0xf]  ;;  %v21151_v50 = vld [vmem:[%s25365_s0 + $0x60] sm:$0xe]  ;;  %v224_v27 = vrot.slane %v222_v49, 5 }
 0x146   :  { %16982 = vmatpush3.bf16.msra.mxu1 %v18735_v30  ;;  %v219_v40 = vor.u32 %v218_v26, %v214_v57  ;;  %v69_v30 = vld [vmem:[%s25365_s0 + $0x24] sm:$0xf]  ;;  %v25537_v16 = vrot.slane %v21011_v51, 9 }
 0x147   :  { %17324 = vmatmul.mubr.bf16.gmra.mrb[20].mxu0 %v25532_v61  ;;  %v208_v61 = vrot.slane %v206_v41, 5  ;;  %v201_v41 = vsel %vm20245_vm5, %v196_v33, %v200_v45  ;;  %v191_v32 = vsel %vm20245_vm5, %v186_v24, %v190_v44  ;;  %v25533_v33 = vrot.slane %v20970_v36, 5 }
 0x148   :  { %17327 = vmatprep.mubr.bf16.mxu0 %v20751_v12  ;;  %v25396_v12 = vrot.slane %v21134_v6, 5  ;;  %v21170_v44 = vsel %vm19458_vm2, %v21073_v48, %v25534_v9  ;;  %v25535_v36 = vrot.slane %v21086_v25, 5  ;;  %v220_v24 = vrot.slane %v219_v40, 4 }
 0x149   :  { %v209_v11 = vor.u32 %v208_v61, %v205_v28  ;;  %v21163_v45 = vsel %vm19458_vm2, %v15486_v47, %v25533_v33  ;;  %v15058_v28 = vcombine.low %v191_v32, %v201_v41  ;;  %v227_v61 = vshrl.u32 %v67_v29, 16 }
 0x14a   :  { %v5085_v49 = vrot.slane %v25535_v36, 4  ;;  %v25536_v47 = vrot.slane %v20976_v38, 5  ;;  %v25538_v48 = vrot.slane %v21065_v37, 5  ;;  %v230_v32 = vshll.u32 %v67_v29, 16  ;;  %v15458_v37 = vld [vmem:[%s25365_s0 + $0x6c] sm:$0xe] }
 0x14b   :  { %v210_v52 = vrot.slane %v209_v11, 4  ;;  %16983 = vmatprep.mubr.bf16.mxu1 %v15058_v28  ;;  %v5092_v38 = vrot.slane %v25396_v12, 4  ;;  %v225_v11 = vsel %vm20245_vm5, %v220_v24, %v224_v27  ;;  %v229_v40 = vrot.slane %v227_v61, 4  ;;  %v19087_v24 = vld [vmem:[%s25365_s0 + $0x20] sm:$0x1] }
 0x14c   :  { %v21183_v26 = vsel %vm19458_vm2, %v25537_v16, %v25536_v47  ;;  %v21190_v9 = vsel %vm19458_vm2, %v21078_v23, %v25538_v48  ;;  %v19084_v23 = vld [vmem:[%s25365_s0 + $0x70] sm:$0xf]  ;;  %v232_v28 = vrot.slane %v230_v32, 5  ;;  %v246_v61 = vshll.u32 %v19087_v24, 16  ;;  %v19089_v24 = vld [vmem:[%s25365_s0 + $0x2c] sm:$0x1] }
 0x14d   :  { %v215_v51 = vsel %vm20245_vm5, %v210_v52, %v214_v57  ;;  %v5097_v29 = vrot.slane %v19084_v23, 5  ;;  %v19085_v57 = vld [vmem:[%s25365_s0 + $0x1c] sm:$0xf]  ;;  %v251_v47 = vshrl.u32 %v69_v30, 16  ;;  %v254_v32 = vshll.u32 %v69_v30, 16 }
 0x14e   :  { %v15059_v33 = vcombine.low %v215_v51, %v225_v11  ;;  %v236_v36 = vshll.u32 %v19085_v57, 16  ;;  %v240_v52 = vshrl.u32 %v19085_v57, 16  ;;  %v233_v16 = vor.u32 %v232_v28, %v229_v40  ;;  %v15459_v40 = vld [vmem:[%s25365_s0 + $0x78] sm:$0xe] }
 0x14f   :  { %17328 = vmatmul.mubr.bf16.gmra.mrb[24].mxu0 %v20753_v14  ;;  %v21213_v14 = vld [vmem:[%s25365_s0 + $0x74] sm:$0x1]  ;;  %v15490_v11 = vrot.slane %v15458_v37, 9  ;;  %v253_v60 = vrot.slane %v251_v47, 4  ;;  %v256_v41 = vrot.slane %v254_v32, 5  ;;  %v248_v37 = vrot.slane %v246_v61, 5 }
 0x150   :  { %17331 = vmatprep.mubr.bf16.mxu0 %v20757_v53  ;;  %16984 = vmatmul.mubr.bf16.vlgmr.msra.gmra.mrb[0].mxu1 %v15059_v33  ;;  %v238_v48 = vrot.slane %v236_v36, 5  ;;  %v19088_v53 = vld [vmem:[%s25365_s0 + $0x28] sm:$0xf]  ;;  %v242_v23 = vrot.slane %v240_v52, 4  ;;  %v234_v57 = vrot.slane %v233_v16, 4  ;;  %v270_v33 = vshll.u32 %v19089_v24, 16 }
 0x151   :  { %v260_v51 = vshll.u32 %v19088_v53, 16  ;;  %v264_v27 = vshrl.u32 %v19088_v53, 16  ;;  %v25539_v47 = vrot.slane %v21086_v25, 5  ;;  %v25540_v32 = vrot.slane %v21127_v5, 5  ;;  %v19090_v5 = vld [vmem:[%s25365_s0 + $0x7c] sm:$0xf] }
 0x152   :  { %v243_v28 = vor.u32 %v242_v23, %v238_v48  ;;  %v239_v25 = vsel %vm20245_vm5, %v234_v57, %v238_v48  ;;  %v272_v23 = vrot.slane %v270_v33, 5  ;;  %v15491_v48 = vrot.slane %v15459_v40, 9 }
 0x153   :  { %v262_v12 = vrot.slane %v260_v51, 5  ;;  %v266_v36 = vrot.slane %v264_v27, 4  ;;  %v21238_v16 = vsel %vm19458_vm2, %v15488_v59, %v25539_v47  ;;  %v21244_v53 = vsel %vm19458_vm2, %v5085_v49, %v25540_v32  ;;  %v71_v27 = vld [vmem:[%s25365_s0 + $0x30] sm:$0xf] }
 0x154   :  { %v257_v51 = vor.u32 %v256_v41, %v253_v60  ;;  %v244_v61 = vrot.slane %v243_v28, 4  ;;  %v5099_v59 = vrot.slane %v5097_v29, 4  ;;  %v5104_v49 = vrot.slane %v19090_v5, 5  ;;  %v19091_v60 = vld [vmem:[%s25365_s0 + $0x80] sm:$0x1] }
 0x155   :  { %v267_v3 = vor.u32 %v266_v36, %v262_v12  ;;  %v5107_v41 = vrot.slane %v19091_v60, 5  ;;  %v25541_v28 = vrot.slane %v21134_v6, 5  ;;  %v25542_v36 = vrot.slane %v21151_v50, 9  ;;  %v73_v6 = vld [vmem:[%s25365_s0 + $0x3c] sm:$0xf] }
 0x156   :  { %v258_v24 = vrot.slane %v257_v51, 4  ;;  %v249_v57 = vsel %vm20245_vm5, %v244_v61, %v248_v37  ;;  %v25543_v32 = vrot.slane %v21140_v8, 5  ;;  %v21282_v50 = vsel %vm19458_vm2, %v15490_v11, %v5097_v29  ;;  %v19093_v5 = vld [vmem:[%s25365_s0 + $0x38] sm:$0x1] }
 0x157   :  { %17332 = vmatmul.mubr.bf16.gmra.mrb[28].mxu0 %v20763_v4  ;;  %v268_v33 = vrot.slane %v267_v3, 4  ;;  %v275_v4 = vshrl.u32 %v71_v27, 16  ;;  %v21267_v47 = vsel %vm19458_vm2, %v25542_v36, %v25541_v28  ;;  %v278_v61 = vshll.u32 %v71_v27, 16 }
 0x158   :  { %17335 = vmatprep.mubr.bf16.mxu0 %v20765_v1  ;;  %v21273_v51 = vsel %vm19458_vm2, %v5092_v38, %v25543_v32  ;;  %v15060_v1 = vcombine.low %v239_v25, %v249_v57  ;;  %v263_v40 = vsel %vm20245_vm5, %v258_v24, %v262_v12  ;;  %v19092_v25 = vld [vmem:[%s25365_s0 + $0x34] sm:$0xf]  ;;  %v294_v60 = vshll.u32 %v19093_v5, 16  ;;  %v21325_v5 = vld [vmem:[%s25365_s0 + $0x8c] sm:$0x1] }
 0x159   :  { %v273_v37 = vsel %vm20245_vm5, %v268_v33, %v272_v23  ;;  %v277_v8 = vrot.slane %v275_v4, 4  ;;  %v284_v12 = vshll.u32 %v19092_v25, 16  ;;  %v288_v3 = vshrl.u32 %v19092_v25, 16  ;;  %v21305_v4 = vld [vmem:[%s25365_s0 + $0x84] sm:$0xe] }
 0x15a   :  { %16987 = vmatprep.mubr.bf16.mxu1 %v15060_v1  ;;  %v15061_v38 = vcombine.low %v263_v40, %v273_v37  ;;  %v5106_v29 = vrot.slane %v5104_v49, 4  ;;  %v280_v11 = vrot.slane %v278_v61, 5  ;;  %v299_v24 = vshrl.u32 %v73_v6, 16  ;;  %v19095_v37 = vld [vmem:[%s25365_s0 + $0x44] sm:$0x1] }
 0x15b   :  { %v302_v57 = vshll.u32 %v73_v6, 16  ;;  %v25544_v23 = vrot.slane %v21213_v14, 5  ;;  %v21300_v33 = vsel %vm19458_vm2, %v15491_v48, %v5104_v49  ;;  %v286_v28 = vrot.slane %v284_v12, 5  ;;  %v19094_v14 = vld [vmem:[%s25365_s0 + $0x40] sm:$0xf] }
 0x15c   :  { %16988 = vmatmul.mubr.bf16.gmra.mrb[4].mxu1 %v15061_v38  ;;  %v290_v36 = vrot.slane %v288_v3, 4  ;;  %v281_v32 = vor.u32 %v280_v11, %v277_v8  ;;  %v301_v1 = vrot.slane %v299_v24, 4  ;;  %v296_v48 = vrot.slane %v294_v60, 5  ;;  %v21318_v8 = vld [vmem:[%s25365_s0 + $0x88] sm:$0xf] }
 0x15d   :  { %v21296_v27 = vsel %vm19458_vm2, %v5099_v59, %v25544_v23  ;;  %v304_v40 = vrot.slane %v302_v57, 5  ;;  %v308_v59 = vshll.u32 %v19094_v14, 16  ;;  %v312_v6 = vshrl.u32 %v19094_v14, 16  ;;  %v21335_v57 = vld [vmem:[%s25365_s0 + $0x90] sm:$0xe] }
 0x15e   :  { %v291_v49 = vor.u32 %v290_v36, %v286_v28  ;;  %v318_v61 = vshll.u32 %v19095_v37, 16  ;;  %v5111_v38 = vrot.slane %v21318_v8, 5  ;;  %v282_v25 = vrot.slane %v281_v32, 4  ;;  %v21340_v23 = vld [vmem:[%s25365_s0 + $0x94] sm:$0xf] }
 0x15f   :  { %17336 = vmatmul.mubr.bf16.gmra.mrb[32].mxu0 %v20767_v56  ;;  %v305_v12 = vor.u32 %v304_v40, %v301_v1  ;;  %v310_v56 = vrot.slane %v308_v59, 5  ;;  %v314_v11 = vrot.slane %v312_v6, 4  ;;  %v21330_v24 = vsel %vm19458_vm2, %v5106_v29, %v5107_v41  ;;  %v75_v41 = vld [vmem:[%s25365_s0 + $0x48] sm:$0xf]  ;;  %v21351_v29 = vld [vmem:[%s25365_s0 + $0x98] sm:$0x1] }
 0x160   :  { %17339 = vmatprep.mubr.bf16.mxu0 %v20828_v19  ;;  %v292_v19 = vrot.slane %v291_v49, 4  ;;  %v25397_v36 = vrot.slane %v21340_v23, 5  ;;  %v287_v32 = vsel %vm20245_vm5, %v282_v25, %v286_v28  ;;  %v320_v49 = vrot.slane %v318_v61, 5  ;;  %v21365_v25 = vld [vmem:[%s25365_s0 + $0x9c] sm:$0xe] }
 0x161   :  { %v306_v1 = vrot.slane %v305_v12, 4  ;;  %v315_v59 = vor.u32 %v314_v11, %v310_v56  ;;  %v323_v6 = vshrl.u32 %v75_v41, 16  ;;  %v326_v28 = vshll.u32 %v75_v41, 16 }
 0x162   :  { %v297_v14 = vsel %vm20245_vm5, %v292_v19, %v296_v48  ;;  %v77_v48 = vld [vmem:[%s25365_s0 + $0x54] sm:$0xf]  ;;  %v5113_v19 = vrot.slane %v5111_v38, 4  ;;  %v15493_v61 = vrot.slane %v21335_v57, 9  ;;  %v5120_v41 = vrot.slane %v25397_v36, 4 }
 0x163   :  { %v15062_v12 = vcombine.low %v287_v32, %v297_v14  ;;  %v311_v11 = vsel %vm20245_vm5, %v306_v1, %v310_v56  ;;  %v316_v37 = vrot.slane %v315_v59, 4  ;;  %v19100_v32 = vld [vmem:[%s25365_s0 + $0x4c] sm:$0xf]  ;;  %v19101_v56 = vld [vmem:[%s25365_s0 + $0x50] sm:$0x1]  ;;  %v347_v59 = vshrl.u32 %v77_v48, 16 }
 0x164   :  { %v332_v14 = vshll.u32 %v19100_v32, 16  ;;  %v336_v52 = vshrl.u32 %v19100_v32, 16  ;;  %v342_v1 = vshll.u32 %v19101_v56, 16  ;;  %v325_v32 = vrot.slane %v323_v6, 4 }
 0x165   :  { %16991 = vmatprep.mubr.bf16.mxu1 %v15062_v12  ;;  %v321_v30 = vsel %vm20245_vm5, %v316_v37, %v320_v49  ;;  %v328_v40 = vrot.slane %v326_v28, 5  ;;  %v349_v3 = vrot.slane %v347_v59, 4  ;;  %v21393_v49 = vld [vmem:[%s25365_s0 + $0xa8] sm:$0xe]  ;;  %v350_v56 = vshll.u32 %v77_v48, 16 }
 0x166   :  { %v15063_v12 = vcombine.low %v311_v11, %v321_v30  ;;  %v334_v57 = vrot.slane %v332_v14, 5  ;;  %v338_v60 = vrot.slane %v336_v52, 4  ;;  %v21401_v28 = vld [vmem:[%s25365_s0 + $0xa0] sm:$0xf]  ;;  %v344_v14 = vrot.slane %v342_v1, 5 }
 0x167   :  { %17340 = vmatmul.mubr.bf16.gmra.mrb[36].mxu0 %v20830_v54  ;;  %v329_v37 = vor.u32 %v328_v40, %v325_v32  ;;  %v25399_v52 = vrot.slane %v21401_v28, 5  ;;  %v19104_v40 = vld [vmem:[%s25365_s0 + $0x5c] sm:$0x1] }
 0x168   :  { %17343 = vmatprep.mubr.bf16.mxu0 %v20840_v55  ;;  %16992 = vmatmul.mubr.bf16.gmra.mrb[8].mxu1 %v15063_v12  ;;  %v19102_v55 = vld [vmem:[%s25365_s0 + $0x58] sm:$0xf]  ;;  %v339_v11 = vor.u32 %v338_v60, %v334_v57  ;;  %v366_v48 = vshll.u32 %v19104_v40, 16  ;;  %v352_v12 = vrot.slane %v350_v56, 5  ;;  %v25546_v60 = vrot.slane %v21325_v5, 5 }
 0x169   :  { %v356_v30 = vshll.u32 %v19102_v55, 16  ;;  %v360_v6 = vshrl.u32 %v19102_v55, 16  ;;  %v330_v59 = vrot.slane %v329_v37, 4  ;;  %v25545_v55 = vrot.slane %v21305_v4, 9  ;;  %v21424_v37 = vld [vmem:[%s25365_s0 + $0xac] sm:$0xf] }
 0x16a   :  { %v21419_v1 = vsel %vm19458_vm2, %v5113_v19, %v25546_v60  ;;  %v25398_v56 = vrot.slane %v21424_v37, 5  ;;  %v340_v8 = vrot.slane %v339_v11, 4  ;;  %v79_v4 = vld [vmem:[%s25365_s0 + $0x60] sm:$0xf]  ;;  %v353_v5 = vor.u32 %v352_v12, %v349_v3  ;;  %v19106_v40 = vld [vmem:[%s25365_s0 + $0xa4] sm:$0x1] }
 0x16b   :  { %v358_v32 = vrot.slane %v356_v30, 5  ;;  %v362_v54 = vrot.slane %v360_v6, 4  ;;  %v21413_v36 = vsel %vm19458_vm2, %v25545_v55, %v5111_v38  ;;  %25547 = vst [vmem:[#allocation22_spill] sm:$0xff] %v21419_v1  ;;  %v335_v38 = vsel %vm20245_vm5, %v330_v59, %v334_v57  ;;  %v19107_v3 = vld [vmem:[%s25365_s0 + $0xb0] sm:$0x1] }
 0x16c   :  { %v368_v6 = vrot.slane %v366_v48, 5  ;;  %v5127_v19 = vrot.slane %v25399_v52, 4  ;;  %v5128_v11 = vrot.slane %v19106_v40, 5  ;;  %v15495_v55 = vrot.slane %v21393_v49, 9 }
 0x16d   :  { %v363_v30 = vor.u32 %v362_v54, %v358_v32  ;;  %v345_v60 = vsel %vm20245_vm5, %v340_v8, %v344_v14  ;;  %v354_v57 = vrot.slane %v353_v5, 4  ;;  %v25548_v12 = vrot.slane %v21340_v23, 5  ;;  %v81_v8 = vld [vmem:[%s25365_s0 + $0x6c] sm:$0xf] }
 0x16e   :  { %v15064_v54 = vcombine.low %v335_v38, %v345_v60  ;;  %v371_v14 = vshrl.u32 %v79_v4, 16  ;;  %v374_v23 = vshll.u32 %v79_v4, 16  ;;  %v25549_v40 = vrot.slane %v21351_v29, 5  ;;  %v21479_v4 = vld [vmem:[%s25365_s0 + $0xb8] sm:$0xf] }
 0x16f   :  { %17344 = vmatmul.mubr.bf16.gmra.mrb[40].mxu0 %v20842_v43  ;;  %v5135_v43 = vrot.slane %v19107_v3, 5  ;;  %v364_v48 = vrot.slane %v363_v30, 4  ;;  %v21451_v49 = vsel %vm19458_vm2, %v15493_v61, %v25548_v12  ;;  %v359_v38 = vsel %vm20245_vm5, %v354_v57, %v358_v32  ;;  %v19108_v61 = vld [vmem:[%s25365_s0 + $0x64] sm:$0xf]  ;;  %v21474_v32 = vld [vmem:[%s25365_s0 + $0xb4] sm:$0xe] }
 0x170   :  { %17347 = vmatprep.mubr.bf16.mxu0 %v20861_v39  ;;  %v5134_v39 = vrot.slane %v25398_v56, 4  ;;  %16995 = vmatprep.mubr.bf16.mxu1 %v15064_v54  ;;  %v380_v30 = vshll.u32 %v19108_v61, 16  ;;  %v21469_v60 = vsel %vm19458_vm2, %v5120_v41, %v25549_v40  ;;  %v373_v54 = vrot.slane %v371_v14, 4  ;;  %v19110_v41 = vld [vmem:[%s25365_s0 + $0x68] sm:$0x1] }
 0x171   :  { %v369_v5 = vsel %vm20245_vm5, %v364_v48, %v368_v6  ;;  %v384_v12 = vshrl.u32 %v19108_v61, 16  ;;  %v376_v29 = vrot.slane %v374_v23, 5  ;;  %v390_v48 = vshll.u32 %v19110_v41, 16  ;;  %v19111_v61 = vld [vmem:[%s25365_s0 + $0x70] sm:$0xf] }
 0x172   :  { %v15065_v3 = vcombine.low %v359_v38, %v369_v5  ;;  %v382_v57 = vrot.slane %v380_v30, 5  ;;  %v395_v38 = vshrl.u32 %v81_v8, 16  ;;  %v398_v5 = vshll.u32 %v81_v8, 16  ;;  %v19112_v23 = vld [vmem:[%s25365_s0 + $0x74] sm:$0x1] }
 0x173   :  { %v386_v14 = vrot.slane %v384_v12, 4  ;;  %v404_v40 = vshll.u32 %v19111_v61, 16  ;;  %v377_v59 = vor.u32 %v376_v29, %v373_v54  ;;  %v392_v56 = vrot.slane %v390_v48, 5 }
 0x174   :  { %16996 = vmatmul.mubr.bf16.gmra.mrb[12].mxu1 %v15065_v3  ;;  %v408_v52 = vshrl.u32 %v19111_v61, 16  ;;  %v414_v30 = vshll.u32 %v19112_v23, 16  ;;  %v397_v3 = vrot.slane %v395_v38, 4  ;;  %v400_v12 = vrot.slane %v398_v5, 5 }
 0x175   :  { %v387_v41 = vor.u32 %v386_v14, %v382_v57  ;;  %v406_v6 = vrot.slane %v404_v40, 5  ;;  %v25550_v8 = vrot.slane %v21401_v28, 5  ;;  %v25551_v1 = vrot.slane %v21365_v25, 9  ;;  %v21515_v25 = vld [vmem:[%s25365_s0 + $0xc0] sm:$0xe] }
 0x176   :  { %v21503_v29 = vsel %vm19458_vm2, %v5127_v19, %v5128_v11  ;;  %v378_v48 = vrot.slane %v377_v59, 4  ;;  %v25552_v14 = vrot.slane %v21424_v37, 5  ;;  %v19113_v19 = vld [vmem:[%s25365_s0 + $0xbc] sm:$0x1]  ;;  %v83_v59 = vld [vmem:[%s25365_s0 + $0x78] sm:$0xf] }
 0x177   :  { %17348 = vmatmul.mubr.bf16.gmra.mrb[44].mxu0 %v20979_v31  ;;  %v21499_v54 = vsel %vm19458_vm2, %v25551_v1, %v25550_v8  ;;  %v410_v31 = vrot.slane %v408_v52, 4  ;;  %v388_v28 = vrot.slane %v387_v41, 4  ;;  %v401_v1 = vor.u32 %v400_v12, %v397_v3 }
 0x178   :  { %17351 = vmatprep.mubr.bf16.mxu0 %v20981_v46  ;;  %v21509_v38 = vsel %vm19458_vm2, %v15495_v55, %v25552_v14  ;;  %v15496_v46 = vrot.slane %v21474_v32, 9  ;;  %v5142_v52 = vrot.slane %v19113_v19, 5  ;;  %v383_v37 = vsel %vm20245_vm5, %v378_v48, %v382_v57 }
 0x179   :  { %v411_v11 = vor.u32 %v410_v31, %v406_v6  ;;  %v416_v55 = vrot.slane %v414_v30, 5  ;;  %v21527_v32 = vsel %vm19458_vm2, %v5134_v39, %v5135_v43  ;;  %v25553_v5 = vrot.slane %v21479_v4, 5  ;;  %v19114_v30 = vld [vmem:[%s25365_s0 + $0xc4] sm:$0xf] }
 0x17a   :  { %v393_v40 = vsel %vm20245_vm5, %v388_v28, %v392_v56  ;;  %v402_v23 = vrot.slane %v401_v1, 4  ;;  %v5146_v41 = vrot.slane %v19114_v30, 5  ;;  %v85_v43 = vld [vmem:[%s25365_s0 + $0x84] sm:$0xf]  ;;  %v15497_v56 = vrot.slane %v21515_v25, 9 }
 0x17b   :  { %v5141_v61 = vrot.slane %v25553_v5, 4  ;;  %v15066_v3 = vcombine.low %v383_v37, %v393_v40  ;;  %v412_v12 = vrot.slane %v411_v11, 4  ;;  %v419_v48 = vshrl.u32 %v83_v59, 16  ;;  %v19115_v1 = vld [vmem:[%s25365_s0 + $0x7c] sm:$0xf] }
 0x17c   :  { %v407_v8 = vsel %vm20245_vm5, %v402_v23, %v406_v6  ;;  %v422_v28 = vshll.u32 %v83_v59, 16  ;;  %v428_v19 = vshll.u32 %v19115_v1, 16  ;;  %v19116_v6 = vld [vmem:[%s25365_s0 + $0xc8] sm:$0x1]  ;;  %v432_v5 = vshrl.u32 %v19115_v1, 16 }
 0x17d   :  { %16999 = vmatprep.mubr.bf16.mxu1 %v15066_v3  ;;  %v417_v14 = vsel %vm20245_vm5, %v412_v12, %v416_v55  ;;  %v5149_v25 = vrot.slane %v19116_v6, 5  ;;  %v421_v11 = vrot.slane %v419_v48, 4  ;;  %v5148_v40 = vrot.slane %v5146_v41, 4  ;;  %v19117_v23 = vld [vmem:[%s25365_s0 + $0x80] sm:$0x1] }
 0x17e   :  { %v15067_v37 = vcombine.low %v407_v8, %v417_v14  ;;  %v424_v55 = vrot.slane %v422_v28, 5  ;;  %v430_v59 = vrot.slane %v428_v19, 5  ;;  %v438_v30 = vshll.u32 %v19117_v23, 16  ;;  %v19118_v8 = vld [vmem:[%s25365_s0 + $0x88] sm:$0xf] }
 0x17f   :  { %17352 = vmatmul.mubr.bf16.gmra.mrb[48].mxu0 %v21000_v13  ;;  %v434_v13 = vrot.slane %v432_v5, 4  ;;  %v443_v3 = vshrl.u32 %v85_v43, 16  ;;  %v446_v12 = vshll.u32 %v85_v43, 16  ;;  %v452_v48 = vshll.u32 %v19118_v8, 16  ;;  %v19119_v19 = vld [vmem:[%s25365_s0 + $0x8c] sm:$0x1] }
 0x180   :  { %17355 = vmatprep.mubr.bf16.mxu0 %v21002_v34  ;;  %17000 = vmatmul.mubr.bf16.gmra.mrb[16].mxu1 %v15067_v37  ;;  %v15466_v34 = vld [vmem:[%s25365_s0 + $0xe4] sm:$0xe]  ;;  %v425_v14 = vor.u32 %v424_v55, %v421_v11  ;;  %v440_v28 = vrot.slane %v438_v30, 5  ;;  %v456_v1 = vshrl.u32 %v19118_v8, 16  ;;  %v462_v6 = vshll.u32 %v19119_v19, 16 }
 0x181   :  { %v21573_v43 = vld [vmem:[%s25365_s0 + $0xf0] sm:$0xe]  ;;  %v435_v37 = vor.u32 %v434_v13, %v430_v59  ;;  %v445_v5 = vrot.slane %v443_v3, 4  ;;  %v448_v23 = vrot.slane %v446_v12, 5  ;;  %v454_v31 = vrot.slane %v452_v48, 5 }
 0x182   :  { %v25554_v39 = vrot.slane %v21479_v4, 5  ;;  %v19120_v55 = vld [vmem:[%s25365_s0 + $0xe8] sm:$0xf]  ;;  %v426_v8 = vrot.slane %v425_v14, 4  ;;  %v458_v19 = vrot.slane %v456_v1, 4  ;;  %v21586_v57 = vsel %vm19458_vm2, %v5141_v61, %v5142_v52 }
 0x183   :  { %v5153_v30 = vrot.slane %v19120_v55, 5  ;;  %v21590_v13 = vsel %vm19458_vm2, %v15497_v56, %v5146_v41  ;;  %v436_v4 = vrot.slane %v435_v37, 4  ;;  %v449_v3 = vor.u32 %v448_v23, %v445_v5  ;;  %v21605_v41 = vld [vmem:[%s25365_s0 + $0xec] sm:$0x1]  ;;  %v19122_v37 = vld [vmem:[%s25365_s0 + $0xf4] sm:$0xf] }
 0x184   :  { %v21579_v11 = vsel %vm19458_vm2, %v15496_v46, %v25554_v39  ;;  %v87_v46 = vld [vmem:[%s25365_s0 + $0x90] sm:$0xf]  ;;  %v21597_v39 = vsel %vm19458_vm2, %v5148_v40, %v5149_v25  ;;  %v431_v12 = vsel %vm20245_vm5, %v426_v8, %v430_v59  ;;  %v459_v48 = vor.u32 %v458_v19, %v454_v31  ;;  %v19123_v19 = vld [vmem:[%s25365_s0 + $0x94] sm:$0xf] }
 0x185   :  { %25555 = vst [vmem:[#allocation24_spill] sm:$0xff] %v21597_v39  ;;  %v464_v52 = vrot.slane %v462_v6, 5  ;;  %v15498_v61 = vrot.slane %v15466_v34, 9  ;;  %v441_v14 = vsel %vm20245_vm5, %v436_v4, %v440_v28  ;;  %v450_v25 = vrot.slane %v449_v3, 4  ;;  %v91_v39 = vld [vmem:[%s25365_s0 + $0xa8] sm:$0xf] }
 0x186   :  { %v5155_v40 = vrot.slane %v5153_v30, 4  ;;  %v15068_v1 = vcombine.low %v431_v12, %v441_v14  ;;  %v460_v6 = vrot.slane %v459_v48, 4  ;;  %v5160_v28 = vrot.slane %v19122_v37, 5  ;;  %v15468_v14 = vld [vmem:[%s25365_s0 + $0xfc] sm:$0xe] }
 0x187   :  { %17356 = vmatmul.mubr.bf16.gmra.mrb[52].mxu0 %v21004_v17  ;;  %v89_v17 = vld [vmem:[%s25365_s0 + $0x9c] sm:$0xf]  ;;  %v467_v5 = vshrl.u32 %v87_v46, 16  ;;  %v470_v8 = vshll.u32 %v87_v46, 16  ;;  %v476_v4 = vshll.u32 %v19123_v19, 16  ;;  %v21631_v3 = vsel %vm19458_vm2, %v15498_v61, %v5153_v30 }
 0x188   :  { %17359 = vmatprep.mubr.bf16.mxu0 %v21006_v21  ;;  %v455_v21 = vsel %vm20245_vm5, %v450_v25, %v454_v31  ;;  %17003 = vmatprep.mubr.bf16.mxu1 %v15068_v1  ;;  %v465_v55 = vsel %vm20245_vm5, %v460_v6, %v464_v52  ;;  %v480_v48 = vshrl.u32 %v19123_v19, 16  ;;  %v19124_v46 = vld [vmem:[%s25365_s0 + $0x100] sm:$0xf]  ;;  %v19125_v6 = vld [vmem:[%s25365_s0 + $0x98] sm:$0x1]  ;;  %v491_v37 = vshrl.u32 %v89_v17, 16 }
 0x189   :  { %v15069_v12 = vcombine.low %v455_v21, %v465_v55  ;;  %v469_v31 = vrot.slane %v467_v5, 4  ;;  %v5167_v52 = vrot.slane %v19124_v46, 5  ;;  %v472_v25 = vrot.slane %v470_v8, 5  ;;  %v19126_v5 = vld [vmem:[%s25365_s0 + $0xa0] sm:$0xf] }
 0x18a   :  { %v478_v1 = vrot.slane %v476_v4, 5  ;;  %v486_v30 = vshll.u32 %v19125_v6, 16  ;;  %v482_v61 = vrot.slane %v480_v48, 4  ;;  %v494_v21 = vshll.u32 %v89_v17, 16  ;;  %v19127_v8 = vld [vmem:[%s25365_s0 + $0xa4] sm:$0x1] }
 0x18b   :  { %17004 = vmatmul.mubr.bf16.gmra.mrb[20].mxu1 %v15069_v12  ;;  %v500_v55 = vshll.u32 %v19126_v5, 16  ;;  %v473_v19 = vor.u32 %v472_v25, %v469_v31  ;;  %v504_v34 = vshrl.u32 %v19126_v5, 16  ;;  %v510_v4 = vshll.u32 %v19127_v8, 16  ;;  %v19128_v31 = vld [vmem:[%s25365_s0 + $0xf8] sm:$0x1] }
 0x18c   :  { %v488_v23 = vrot.slane %v486_v30, 5  ;;  %v483_v46 = vor.u32 %v482_v61, %v478_v1  ;;  %v493_v12 = vrot.slane %v491_v37, 4  ;;  %v496_v48 = vrot.slane %v494_v21, 5  ;;  %v21656_v30 = vld [vmem:[%s25365_s0 + $0x108] sm:$0xe] }
 0x18d   :  { %v502_v6 = vrot.slane %v500_v55, 5  ;;  %v5162_v17 = vrot.slane %v5160_v28, 4  ;;  %v5163_v25 = vrot.slane %v19128_v31, 5  ;;  %v474_v5 = vrot.slane %v473_v19, 4 }
 0x18e   :  { %v506_v8 = vrot.slane %v504_v34, 4  ;;  %v5169_v61 = vrot.slane %v5167_v52, 4  ;;  %v484_v37 = vrot.slane %v483_v46, 4  ;;  %v497_v21 = vor.u32 %v496_v48, %v493_v12 }
 0x18f   :  { %17360 = vmatmul.mubr.bf16.gmra.mrb[56].mxu0 %v21013_v15  ;;  %v15500_v15 = vrot.slane %v15468_v14, 9  ;;  %v479_v59 = vsel %vm20245_vm5, %v474_v5, %v478_v1  ;;  %v512_v56 = vrot.slane %v510_v4, 5  ;;  %v25556_v34 = vrot.slane %v21605_v41, 5  ;;  %v19130_v41 = vld [vmem:[%s25365_s0 + $0x10c] sm:$0xf] }
 0x190   :  { %17363 = vmatprep.mubr.bf16.mxu0 %v21015_v22  ;;  %v19129_v22 = vld [vmem:[%s25365_s0 + $0x104] sm:$0x1]  ;;  %v507_v31 = vor.u32 %v506_v8, %v502_v6  ;;  %v15501_v19 = vrot.slane %v21656_v30, 9  ;;  %v489_v46 = vsel %vm20245_vm5, %v484_v37, %v488_v23  ;;  %v498_v12 = vrot.slane %v497_v21, 4  ;;  %v93_v30 = vld [vmem:[%s25365_s0 + $0xb4] sm:$0xf] }
 0x191   :  { %v5170_v55 = vrot.slane %v19129_v22, 5  ;;  %v21670_v14 = vsel %vm19458_vm2, %v5155_v40, %v25556_v34  ;;  %v25557_v1 = vrot.slane %v21573_v43, 9  ;;  %v5174_v48 = vrot.slane %v19130_v41, 5  ;;  %v19131_v43 = vld [vmem:[%s25365_s0 + $0x110] sm:$0x1] }
 0x192   :  { %v15070_v5 = vcombine.low %v479_v59, %v489_v46  ;;  %v508_v40 = vrot.slane %v507_v31, 4  ;;  %v21689_v23 = vsel %vm19458_vm2, %v5162_v17, %v5163_v25  ;;  %v503_v8 = vsel %vm20245_vm5, %v498_v12, %v502_v6  ;;  %v19132_v17 = vld [vmem:[%s25365_s0 + $0xac] sm:$0xf]  ;;  %v19133_v12 = vld [vmem:[%s25365_s0 + $0xb0] sm:$0x1] }
 0x193   :  { %v21679_v4 = vsel %vm19458_vm2, %v25557_v1, %v5160_v28  ;;  %v5177_v28 = vrot.slane %v19131_v43, 5  ;;  %v515_v37 = vshrl.u32 %v91_v39, 16  ;;  %v21698_v59 = vsel %vm19458_vm2, %v15500_v15, %v5167_v52  ;;  %v19135_v43 = vld [vmem:[%s25365_s0 + $0xbc] sm:$0x1] }
 0x194   :  { %17007 = vmatprep.mubr.bf16.mxu1 %v15070_v5  ;;  %v513_v21 = vsel %vm20245_vm5, %v508_v40, %v512_v56  ;;  %v518_v22 = vshll.u32 %v91_v39, 16  ;;  %v524_v25 = vshll.u32 %v19132_v17, 16  ;;  %v21708_v6 = vsel %vm19458_vm2, %v5169_v61, %v5170_v55  ;;  %v19134_v55 = vld [vmem:[%s25365_s0 + $0xb8] sm:$0xf] }
 0x195   :  { %v15071_v31 = vcombine.low %v503_v8, %v513_v21  ;;  %v517_v34 = vrot.slane %v515_v37, 4  ;;  %v528_v52 = vshrl.u32 %v19132_v17, 16  ;;  %v25558_v15 = vcombine.low %v20989_v35, %v20993_v18  ;;  %v18727_v37 = vld [vmem:[#allocation6 + $0x188] sm:$0xff]  }
 0x196   :  { %v5176_v56 = vrot.slane %v5174_v48, 4  ;;  %v520_v39 = vrot.slane %v518_v22, 5  ;;  %v526_v46 = vrot.slane %v524_v25, 5  ;;  %v534_v1 = vshll.u32 %v19133_v12, 16 }
 0x197   :  { %17364 = vmatmul.mubr.bf16.gmra.mrb[60].mxu0 %v21095_v20  ;;  %17008 = vmatmul.mubr.bf16.gmra.mrb[24].mxu1 %v15071_v31  ;;  %v530_v20 = vrot.slane %v528_v52, 4  ;;  %v539_v41 = vshrl.u32 %v93_v30, 16  ;;  %v542_v61 = vshll.u32 %v93_v30, 16  ;;  %v548_v5 = vshll.u32 %v19134_v55, 16  ;;  %v21734_v52 = vld [vmem:[%s25365_s0 + $0x120] sm:$0xe] }
 0x198   :  { %17383 = vmatprep.mubr.bf16.mxu0 %v25558_v15  ;;  %v521_v40 = vor.u32 %v520_v39, %v517_v34  ;;  %v536_v18 = vrot.slane %v534_v1, 5  ;;  %v552_v35 = vshrl.u32 %v19134_v55, 16  ;;  %v558_v8 = vshll.u32 %v19135_v43, 16  ;;  %v21729_v34 = vld [vmem:[%s25365_s0 + $0x114] sm:$0xe] }
 0x199   :  { %v531_v21 = vor.u32 %v530_v20, %v526_v46  ;;  %v541_v22 = vrot.slane %v539_v41, 4  ;;  %v544_v17 = vrot.slane %v542_v61, 5  ;;  %v550_v25 = vrot.slane %v548_v5, 5  ;;  %v21741_v1 = vld [vmem:[%s25365_s0 + $0x118] sm:$0xf] }
 0x19a   :  { %v522_v15 = vrot.slane %v521_v40, 4  ;;  %v554_v39 = vrot.slane %v552_v35, 4  ;;  %v25402_v20 = vrot.slane %v21741_v1, 5  ;;  %v95_v55 = vld [vmem:[%s25365_s0 + $0xd8] sm:$0xf]  ;;  %v21749_v5 = vsel %vm19458_vm2, %v15501_v19, %v5174_v48 }
 0x19b   :  { %v532_v41 = vrot.slane %v531_v21, 4  ;;  %v545_v61 = vor.u32 %v544_v17, %v541_v22  ;;  %v560_v43 = vrot.slane %v558_v8, 5  ;;  %v25559_v12 = vcombine.low %v21025_v42, %v21035_v58  ;;  %v19137_v22 = vld [vmem:[%s25365_s0 + $0x124] sm:$0xf]  ;;  %v19139_v58 = vld [vmem:[%s25365_s0 + $0x11c] sm:$0x1] }
 0x19c   :  { %v527_v40 = vsel %vm20245_vm5, %v522_v15, %v526_v46  ;;  %v555_v35 = vor.u32 %v554_v39, %v550_v25  ;;  %v21758_v21 = vsel %vm19458_vm2, %v5176_v56, %v5177_v28  ;;  %v5188_v17 = vrot.slane %v19137_v22, 5  ;;  %v19138_v46 = vld [vmem:[#allocation6 + $0x180] sm:$0xff]   ;;  %v18732_v39 = vld [vmem:[#allocation6 + $0x190] sm:$0xff]  }
 0x19d   :  { %25560 = vst [vmem:[#allocation23_spill] sm:$0xff] %v21758_v21  ;;  %v537_v19 = vsel %vm20245_vm5, %v532_v41, %v536_v18  ;;  %v546_v48 = vrot.slane %v545_v61, 4  ;;  %v25561_v8 = vcombine.low %v21043_v62, %v21047_v0  ;;  %v15502_v42 = vrot.slane %v21729_v34, 9  ;;  %v97_v34 = vld [vmem:[%s25365_s0 + $0xe4] sm:$0xf] }
 0x19e   :  { %v5184_v28 = vrot.slane %v19139_v58, 5  ;;  %v15072_v56 = vcombine.low %v527_v40, %v537_v19  ;;  %v556_v15 = vrot.slane %v555_v35, 4  ;;  %v5183_v18 = vrot.slane %v25402_v20, 4  ;;  %v18746_v20 = vld [vmem:[#allocation6] sm:$0xff]  }
 0x19f   :  { %17384 = vmatmul.mubr.bf16.vlgmr.msra.gmra.mrb[0].mxu0 %v25559_v12  ;;  %v15503_v12 = vrot.slane %v21734_v52, 9  ;;  %v551_v62 = vsel %vm20245_vm5, %v546_v48, %v550_v25  ;;  %v563_v0 = vshrl.u32 %v95_v55, 16  ;;  %v566_v40 = vshll.u32 %v95_v55, 16  ;;  %v19140_v52 = vld [vmem:[%s25365_s0 + $0xdc] sm:$0xf]  ;;  %17047 = vmatprep.subr.bf16.mxu1 %v18746_v20 }
 0x1a0   :  { %17448 = vmatpush3.bf16.msra.mxu0 %v19138_v46  ;;  %17387 = vmatprep.mubr.bf16.mxu0 %v25561_v8  ;;  %v561_v61 = vsel %vm20245_vm5, %v556_v15, %v560_v43  ;;  %v572_v35 = vshll.u32 %v19140_v52, 16  ;;  %v5190_v22 = vrot.slane %v5188_v17, 4  ;;  %v576_v48 = vshrl.u32 %v19140_v52, 16  ;;  %v18736_v46 = vld [vmem:[#allocation6 + $0x198] sm:$0xff]   ;;  %v19142_v55 = vld [vmem:[%s25365_s0 + $0xe0] sm:$0x1] }
 0x1a1   :  { %17449 = vmatprep.subr.bf16.mxu0 %v18727_v37  ;;  %17011 = vmatprep.mubr.bf16.mxu1 %v15072_v56  ;;  %v15073_v25 = vcombine.low %v551_v62, %v561_v61  ;;  %v565_v19 = vrot.slane %v563_v0, 4  ;;  %v19141_v8 = vld [vmem:[%s25365_s0 + $0x128] sm:$0x1]  ;;  %v568_v56 = vrot.slane %v566_v40, 5  ;;  %v582_v43 = vshll.u32 %v19142_v55, 16 }
 0x1a2   :  { %v5191_v58 = vrot.slane %v19141_v8, 5  ;;  %v574_v41 = vrot.slane %v572_v35, 5  ;;  %v578_v15 = vrot.slane %v576_v48, 4  ;;  %v587_v62 = vshrl.u32 %v97_v34, 16  ;;  %v19144_v40 = vld [vmem:[%s25365_s0 + $0xec] sm:$0x1]  ;;  %17048 = vmatpush3.bf16.msra.mxu1 %v18746_v20 }
 0x1a3   :  { %17012 = vmatmul.mubr.bf16.gmra.mrb[28].mxu1 %v15073_v25  ;;  %v590_v0 = vshll.u32 %v97_v34, 16  ;;  %v569_v52 = vor.u32 %v568_v56, %v565_v19  ;;  %v584_v31 = vrot.slane %v582_v43, 5  ;;  %v606_v35 = vshll.u32 %v19144_v40, 16  ;;  %v21858_v20 = vld [vmem:[%s25365_s0 + $0x134] sm:$0x1] }
 0x1a4   :  { %17450 = vmatpush3.bf16.msra.mxu0 %v18727_v37  ;;  %v19143_v37 = vld [vmem:[%s25365_s0 + $0xe8] sm:$0xf]  ;;  %v25562_v55 = vcombine.low %v21105_v63, %v21114_v7  ;;  %v579_v25 = vor.u32 %v578_v15, %v574_v41  ;;  %v589_v48 = vrot.slane %v587_v62, 4  ;;  %v25563_v21 = vcombine.low %v21163_v45, %v21170_v44  ;;  %v21818_v7 = vld [vmem:[%s25365_s0 + $0x12c] sm:$0xe]  ;;  %v18737_v45 = vld [vmem:[#allocation6 + $0x1a0] sm:$0xff]  }
 0x1a5   :  { %17451 = vmatprep.subr.bf16.mxu0 %v18732_v39  ;;  %v596_v61 = vshll.u32 %v19143_v37, 16  ;;  %v600_v8 = vshrl.u32 %v19143_v37, 16  ;;  %v592_v34 = vrot.slane %v590_v0, 5  ;;  %v25564_v19 = vrot.slane %v21741_v1, 5  ;;  %v18738_v62 = vld [vmem:[#allocation6 + $0x1a8] sm:$0xff]  }
 0x1a6   :  { %v21813_v63 = vsel %vm19458_vm2, %v15503_v12, %v5188_v17  ;;  %v570_v43 = vrot.slane %v569_v52, 4  ;;  %v21822_v44 = vsel %vm19458_vm2, %v5183_v18, %v5184_v28  ;;  %v21826_v1 = vsel %vm19458_vm2, %v5190_v22, %v5191_v58  ;;  %v21837_v12 = vld [vmem:[%s25365_s0 + $0x138] sm:$0xe]  ;;  %v99_v58 = vld [vmem:[%s25365_s0 + $0xf0] sm:$0xf] }
 0x1a7   :  { %17388 = vmatmul.mubr.bf16.gmra.mrb[4].mxu0 %v25562_v55  ;;  %v598_v30 = vrot.slane %v596_v61, 5  ;;  %v21809_v56 = vsel %vm19458_vm2, %v15502_v42, %v25564_v19  ;;  %v602_v15 = vrot.slane %v600_v8, 4  ;;  %v593_v17 = vor.u32 %v592_v34, %v589_v48  ;;  %v21831_v42 = vld [vmem:[%s25365_s0 + $0x130] sm:$0xf]  ;;  %v21848_v37 = vld [vmem:[%s25365_s0 + $0x13c] sm:$0xf] }
 0x1a8   :  { %17391 = vmatprep.mubr.bf16.mxu0 %v25563_v21  ;;  %17452 = vmatpush3.bf16.msra.mxu0 %v18732_v39  ;;  %v580_v21 = vrot.slane %v579_v25, 4  ;;  %v5195_v39 = vrot.slane %v21831_v42, 5  ;;  %v575_v28 = vsel %vm20245_vm5, %v570_v43, %v574_v41  ;;  %v608_v22 = vrot.slane %v606_v35, 5  ;;  %v101_v25 = vld [vmem:[%s25365_s0 + $0xfc] sm:$0xf] }
 0x1a9   :  { %17453 = vmatprep.subr.bf16.mxu0 %v18736_v46  ;;  %v603_v18 = vor.u32 %v602_v15, %v598_v30  ;;  %v15504_v0 = vrot.slane %v21818_v7, 9  ;;  %v25404_v61 = vrot.slane %v21848_v37, 5  ;;  %v594_v52 = vrot.slane %v593_v17, 4  ;;  %v21911_v40 = vld [vmem:[%s25365_s0 + $0x140] sm:$0x1] }
 0x1aa   :  { %v585_v41 = vsel %vm20245_vm5, %v580_v21, %v584_v31  ;;  %v611_v34 = vshrl.u32 %v99_v58, 16  ;;  %v21871_v19 = vrot.slane %v5195_v39, 4  ;;  %v614_v15 = vshll.u32 %v99_v58, 16  ;;  %v19148_v21 = vld [vmem:[%s25365_s0 + $0xf4] sm:$0xf] }
 0x1ab   :  { %v15074_v35 = vcombine.low %v575_v28, %v585_v41  ;;  %v604_v55 = vrot.slane %v603_v18, 4  ;;  %v599_v48 = vsel %vm20245_vm5, %v594_v52, %v598_v30  ;;  %v620_v17 = vshll.u32 %v19148_v21, 16  ;;  %v18750_v28 = vld [vmem:[#allocation6 + $0x8] sm:$0xff]   ;;  %v21891_v58 = vld [vmem:[%s25365_s0 + $0x148] sm:$0xf] }
 0x1ac   :  { %17454 = vmatpush3.bf16.msra.mxu0 %v18736_v46  ;;  %v25565_v18 = vcombine.low %v21183_v26, %v21190_v9  ;;  %v21883_v30 = vrot.slane %v25404_v61, 4  ;;  %v613_v52 = vrot.slane %v611_v34, 4  ;;  %v616_v9 = vrot.slane %v614_v15, 5  ;;  %v21903_v15 = vld [vmem:[%s25365_s0 + $0x144] sm:$0xe]  ;;  %17049 = vmatprep.subr.bf16.mxu1 %v18750_v28 }
 0x1ad   :  { %17455 = vmatprep.subr.bf16.mxu0 %v18737_v45  ;;  %17015 = vmatprep.mubr.bf16.mxu1 %v15074_v35  ;;  %v609_v43 = vsel %vm20245_vm5, %v604_v55, %v608_v22  ;;  %v624_v35 = vshrl.u32 %v19148_v21, 16  ;;  %v25566_v22 = vcombine.low %v21238_v16, %v21244_v53  ;;  %v622_v55 = vrot.slane %v620_v17, 5  ;;  %v18739_v21 = vld [vmem:[#allocation6 + $0x1b0] sm:$0xff]   ;;  %v103_v26 = vld [vmem:[%s25365_s0 + $0x108] sm:$0xf] }
 0x1ae   :  { %v15075_v41 = vcombine.low %v599_v48, %v609_v43  ;;  %v19150_v48 = vld [vmem:[%s25365_s0 + $0xf8] sm:$0x1]  ;;  %v18751_v43 = vld [vmem:[#allocation6 + $0x10] sm:$0xff]   ;;  %v635_v53 = vshrl.u32 %v101_v25, 16  ;;  %v617_v17 = vor.u32 %v616_v9, %v613_v52  ;;  %17050 = vmatpush3.bf16.msra.mxu1 %v18750_v28  ;;  %v21917_v9 = vld [vmem:[%s25365_s0 + $0x150] sm:$0xe] }
 0x1af   :  { %17392 = vmatmul.mubr.bf16.gmra.mrb[8].mxu0 %v25565_v18  ;;  %v630_v34 = vshll.u32 %v19150_v48, 16  ;;  %v626_v16 = vrot.slane %v624_v35, 4  ;;  %v19151_v18 = vld [vmem:[%s25365_s0 + $0x100] sm:$0xf]  ;;  %17051 = vmatprep.subr.bf16.mxu1 %v18751_v43  ;;  %v25570_v7 = vrot.slane %v21891_v58, 5 }
 0x1b0   :  { %17395 = vmatprep.mubr.bf16.mxu0 %v25566_v22  ;;  %17456 = vmatpush3.bf16.msra.mxu0 %v18737_v45  ;;  %v638_v45 = vshll.u32 %v101_v25, 16  ;;  %v644_v22 = vshll.u32 %v19151_v18, 16  ;;  %v648_v48 = vshrl.u32 %v19151_v18, 16  ;;  %v637_v61 = vrot.slane %v635_v53, 4 }
 0x1b1   :  { %17457 = vmatprep.subr.bf16.mxu0 %v18738_v62  ;;  %17016 = vmatmul.mubr.bf16.gmra.mrb[32].mxu1 %v15075_v41  ;;  %v632_v46 = vrot.slane %v630_v34, 5  ;;  %v19152_v41 = vld [vmem:[%s25365_s0 + $0x104] sm:$0x1]  ;;  %v627_v25 = vor.u32 %v626_v16, %v622_v55  ;;  %v21922_v34 = vld [vmem:[%s25365_s0 + $0x154] sm:$0xf]  ;;  %v21955_v42 = vrot.slane %v25570_v7, 4 }
 0x1b2   :  { %v654_v35 = vshll.u32 %v19152_v41, 16  ;;  %v640_v31 = vrot.slane %v638_v45, 5  ;;  %v646_v8 = vrot.slane %v644_v22, 5  ;;  %v650_v16 = vrot.slane %v648_v48, 4  ;;  %v21929_v45 = vld [vmem:[%s25365_s0 + $0x14c] sm:$0x1]  ;;  %17052 = vmatpush3.bf16.msra.mxu1 %v18751_v43 }
 0x1b3   :  { %25567 = vst [vmem:[#allocation25_spill] sm:$0xff] %v21929_v45  ;;  %v21935_v22 = vld [vmem:[%s25365_s0 + $0x15c] sm:$0xe]  ;;  %v18740_v41 = vld [vmem:[#allocation6 + $0x1b8] sm:$0xff]   ;;  %v628_v52 = vrot.slane %v627_v25, 4  ;;  %v21943_v48 = vsel %vm19458_vm2, %v15504_v0, %v5195_v39 }
 0x1b4   :  { %17458 = vmatpush3.bf16.msra.mxu0 %v18738_v62  ;;  %v618_v62 = vrot.slane %v617_v17, 4  ;;  %25568 = vst [vmem:[#allocation27_spill] sm:$0xff] %v21935_v22  ;;  %v641_v17 = vor.u32 %v640_v31, %v637_v61  ;;  %v651_v53 = vor.u32 %v650_v16, %v646_v8  ;;  %v656_v28 = vrot.slane %v654_v35, 5  ;;  %v18754_v45 = vld [vmem:[#allocation6 + $0x18] sm:$0xff]   ;;  %v18759_v16 = vld [vmem:[#allocation6 + $0x28] sm:$0xff]  }
 0x1b5   :  { %17459 = vmatprep.subr.bf16.mxu0 %v18739_v21  ;;  %v25569_v61 = vcombine.low %v21267_v47, %v21273_v51  ;;  %v633_v0 = vsel %vm20245_vm5, %v628_v52, %v632_v46  ;;  %v25572_v35 = vrot.slane %v21922_v34, 5  ;;  %v21970_v47 = vld [vmem:[%s25365_s0 + $0x158] sm:$0x1]  ;;  %v21976_v46 = vld [vmem:[%s25365_s0 + $0x168] sm:$0xe]  ;;  %17053 = vmatprep.subr.bf16.mxu1 %v18754_v45 }
 0x1b6   :  { %v623_v18 = vsel %vm20245_vm5, %v618_v62, %v622_v55  ;;  %v642_v31 = vrot.slane %v641_v17, 4  ;;  %v25571_v55 = vcombine.low %v21282_v50, %v21296_v27  ;;  %25574 = vst [vmem:[#allocation28_spill] sm:$0xff] %v21970_v47  ;;  %25575 = vst [vmem:[#allocation32_spill] sm:$0xff] %v21976_v46  ;;  %v652_v50 = vrot.slane %v651_v53, 4  ;;  %v18755_v27 = vld [vmem:[#allocation6 + $0x20] sm:$0xff]   ;;  %17054 = vmatpush3.bf16.msra.mxu1 %v18754_v45 }
 0x1b7   :  { %17396 = vmatmul.mubr.bf16.gmra.mrb[12].mxu0 %v25569_v61  ;;  %v21965_v25 = vrot.slane %v25572_v35, 4  ;;  %v15076_v43 = vcombine.low %v623_v18, %v633_v0  ;;  %v21982_v62 = vld [vmem:[%s25365_s0 + $0x160] sm:$0xf]  ;;  %v659_v17 = vshrl.u32 %v103_v26, 16  ;;  %v105_v18 = vld [vmem:[%s25365_s0 + $0x114] sm:$0xf]  ;;  %17055 = vmatprep.subr.bf16.mxu1 %v18755_v27 }
 0x1b8   :  { %17399 = vmatprep.mubr.bf16.mxu0 %v25571_v55  ;;  %17460 = vmatpush3.bf16.msra.mxu0 %v18739_v21  ;;  %v647_v21 = vsel %vm20245_vm5, %v642_v31, %v646_v8  ;;  %v18743_v53 = vld [vmem:[#allocation6 + $0x1c0] sm:$0xff]   ;;  %v25576_v61 = vrot.slane %v21858_v20, 5  ;;  %v657_v0 = vsel %vm20245_vm5, %v652_v50, %v656_v28  ;;  %v662_v55 = vshll.u32 %v103_v26, 16  ;;  %v19158_v8 = vld [vmem:[%s25365_s0 + $0x10c] sm:$0xf] }
 0x1b9   :  { %25573 = vst [vmem:[#allocation26_spill] sm:$0xff] %v21965_v25  ;;  %17461 = vmatprep.subr.bf16.mxu0 %v18740_v41  ;;  %17019 = vmatprep.mubr.bf16.mxu1 %v15076_v43  ;;  %v668_v31 = vshll.u32 %v19158_v8, 16  ;;  %v22005_v35 = vld [vmem:[%s25365_s0 + $0x164] sm:$0x1]  ;;  %v15077_v52 = vcombine.low %v647_v21, %v657_v0  ;;  %v107_v28 = vld [vmem:[%s25365_s0 + $0x120] sm:$0xf] }
 0x1ba   :  { %v21995_v7 = vsel %vm19458_vm2, %v21871_v19, %v25576_v61  ;;  %25577 = vst [vmem:[#allocation29_spill] sm:$0xff] %v22005_v35  ;;  %v661_v19 = vrot.slane %v659_v17, 4  ;;  %v672_v61 = vshrl.u32 %v19158_v8, 16  ;;  %v664_v43 = vrot.slane %v662_v55, 5  ;;  %v19160_v51 = vld [vmem:[%s25365_s0 + $0x110] sm:$0x1]  ;;  %17056 = vmatpush3.bf16.msra.mxu1 %v18755_v27 }
 0x1bb   :  { %v670_v50 = vrot.slane %v668_v31, 5  ;;  %v678_v39 = vshll.u32 %v19160_v51, 16  ;;  %v108_v21 = vld [vmem:[%s25365_s0 + $0x124] sm:$0xf]  ;;  %17020 = vmatmul.mubr.bf16.gmra.mrb[36].mxu1 %v15077_v52  ;;  %v683_v0 = vshrl.u32 %v105_v18, 16  ;;  %v686_v8 = vshll.u32 %v105_v18, 16  ;;  %17057 = vmatprep.subr.bf16.mxu1 %v18759_v16 }
 0x1bc   :  { %17462 = vmatpush3.bf16.msra.mxu0 %v18740_v41  ;;  %v674_v17 = vrot.slane %v672_v61, 4  ;;  %v19161_v45 = vld [vmem:[%s25365_s0 + $0x118] sm:$0xf]  ;;  %v665_v55 = vor.u32 %v664_v43, %v661_v19  ;;  %v19162_v51 = vld [vmem:[%s25365_s0 + $0x11c] sm:$0x1]  ;;  %v25578_v52 = vcombine.low %v21300_v33, %v21330_v24  ;;  %v707_v22 = vshrl.u32 %v107_v28, 16 }
 0x1bd   :  { %v692_v41 = vshll.u32 %v19161_v45, 16  ;;  %17527 = vmatprep.subr.bf16.mxu0 %v18743_v53  ;;  %v680_v31 = vrot.slane %v678_v39, 5  ;;  %v696_v26 = vshrl.u32 %v19161_v45, 16  ;;  %v702_v20 = vshll.u32 %v19162_v51, 16  ;;  %v165_v53 = vld [vmem:[%s25365_s0 + $0x128] sm:$0x1] }
 0x1be   :  { %v675_v18 = vor.u32 %v674_v17, %v670_v50  ;;  %v685_v61 = vrot.slane %v683_v0, 4  ;;  %v688_v46 = vrot.slane %v686_v8, 5  ;;  %v25579_v39 = vld [vmem:[#allocation22_spill] sm:$0xff]  ;;  %v666_v43 = vrot.slane %v665_v55, 4  ;;  %v18760_v24 = vld [vmem:[#allocation6 + $0x30] sm:$0xff]   ;;  %17058 = vmatpush3.bf16.msra.mxu1 %v18759_v16 }
 0x1bf   :  { %17400 = vmatmul.mubr.bf16.gmra.mrb[16].mxu0 %v25578_v52  ;;  %v694_v35 = vrot.slane %v692_v41, 5  ;;  %v25580_v19 = vcombine.low %v21413_v36, %v25579_v39  ;;  %v698_v45 = vrot.slane %v696_v26, 4  ;;  %v704_v51 = vrot.slane %v702_v20, 5  ;;  %v109_v33 = vld [vmem:[%s25365_s0 + $0x12c] sm:$0xf]  ;;  %17059 = vmatprep.subr.bf16.mxu1 %v18760_v24 }
 0x1c0   :  { %v676_v17 = vrot.slane %v675_v18, 4  ;;  %v689_v0 = vor.u32 %v688_v46, %v685_v61  ;;  %v710_v8 = vshll.u32 %v107_v28, 16  ;;  %v716_v41 = vshll.u32 %v108_v21, 16  ;;  %v110_v27 = vld [vmem:[%s25365_s0 + $0x130] sm:$0xf] }
 0x1c1   :  { %17403 = vmatprep.mubr.bf16.mxu0 %v25580_v19  ;;  %v671_v36 = vsel %vm20245_vm5, %v666_v43, %v670_v50  ;;  %v699_v26 = vor.u32 %v698_v45, %v694_v35  ;;  %v709_v20 = vrot.slane %v707_v22, 4  ;;  %v720_v55 = vshrl.u32 %v108_v21, 16  ;;  %v166_v46 = vld [vmem:[%s25365_s0 + $0x134] sm:$0x1]  ;;  %v111_v22 = vld [vmem:[%s25365_s0 + $0x138] sm:$0xf] }
 0x1c2   :  { %v681_v52 = vsel %vm20245_vm5, %v676_v17, %v680_v31  ;;  %v690_v39 = vrot.slane %v689_v0, 4  ;;  %v712_v19 = vrot.slane %v710_v8, 5  ;;  %v718_v25 = vrot.slane %v716_v41, 5  ;;  %v18763_v8 = vld [vmem:[#allocation6 + $0x38] sm:$0xff]   ;;  %17060 = vmatpush3.bf16.msra.mxu1 %v18760_v24 }
 0x1c3   :  { %v15078_v28 = vcombine.low %v671_v36, %v681_v52  ;;  %v700_v18 = vrot.slane %v699_v26, 4  ;;  %v722_v61 = vrot.slane %v720_v55, 4  ;;  %v726_v47 = vshll.u32 %v165_v53, 16  ;;  %v112_v53 = vld [vmem:[%s25365_s0 + $0x13c] sm:$0xf]  ;;  %17061 = vmatprep.subr.bf16.mxu1 %v18763_v8 }
 0x1c4   :  { %v695_v50 = vsel %vm20245_vm5, %v690_v39, %v694_v35  ;;  %v713_v21 = vor.u32 %v712_v19, %v709_v20  ;;  %v731_v31 = vshrl.u32 %v109_v33, 16  ;;  %v734_v43 = vshll.u32 %v109_v33, 16  ;;  %v167_v39 = vld [vmem:[%s25365_s0 + $0x140] sm:$0x1] }
 0x1c5   :  { %17023 = vmatprep.mubr.bf16.mxu1 %v15078_v28  ;;  %v705_v45 = vsel %vm20245_vm5, %v700_v18, %v704_v51  ;;  %v723_v16 = vor.u32 %v722_v61, %v718_v25  ;;  %v728_v17 = vrot.slane %v726_v47, 5  ;;  %v740_v0 = vshll.u32 %v110_v27, 16  ;;  %v114_v61 = vld [vmem:[%s25365_s0 + $0x148] sm:$0xf] }
 0x1c6   :  { %v25581_v41 = vcombine.low %v21451_v49, %v21469_v60  ;;  %v15079_v35 = vcombine.low %v695_v50, %v705_v45  ;;  %v714_v36 = vrot.slane %v713_v21, 4  ;;  %v733_v26 = vrot.slane %v731_v31, 4  ;;  %v113_v49 = vld [vmem:[%s25365_s0 + $0x144] sm:$0xf]  ;;  %v22071_v60 = vld [vmem:[%s25365_s0 + $0x16c] sm:$0xf]  ;;  %17062 = vmatpush3.bf16.msra.mxu1 %v18763_v8 }
 0x1c7   :  { %v736_v33 = vrot.slane %v734_v43, 5  ;;  %v25582_v51 = vcombine.low %v21499_v54, %v21503_v29  ;;  %v724_v47 = vrot.slane %v723_v16, 4  ;;  %v742_v20 = vrot.slane %v740_v0, 5 }
 0x1c8   :  { %17404 = vmatmul.mubr.bf16.gmra.mrb[20].mxu0 %v25581_v41  ;;  %v744_v55 = vshrl.u32 %v110_v27, 16  ;;  %v750_v52 = vshll.u32 %v166_v46, 16  ;;  %v5230_v54 = vrot.slane %v22071_v60, 5  ;;  %17024 = vmatmul.mubr.bf16.gmra.mrb[40].mxu1 %v15079_v35  ;;  %v719_v29 = vsel %vm20245_vm5, %v714_v36, %v718_v25  ;;  %v168_v25 = vld [vmem:[%s25365_s0 + $0x14c] sm:$0x1]  ;;  %v22084_v41 = vld [vmem:[#allocation6 + $0x80] sm:$0xff]  }
 0x1c9   :  { %17407 = vmatprep.mubr.bf16.mxu0 %v25582_v51  ;;  %v737_v24 = vor.u32 %v736_v33, %v733_v26  ;;  %v755_v27 = vshrl.u32 %v111_v22, 16  ;;  %v729_v19 = vsel %vm20245_vm5, %v724_v47, %v728_v17  ;;  %v758_v18 = vshll.u32 %v111_v22, 16  ;;  %17995 = vmatprep.subr.bf16.mxu1 %v22084_v41  ;;  %v115_v33 = vld [vmem:[%s25365_s0 + $0x150] sm:$0xf] }
 0x1ca   :  { %v746_v46 = vrot.slane %v744_v55, 4  ;;  %v752_v28 = vrot.slane %v750_v52, 5  ;;  %v15080_v50 = vcombine.low %v719_v29, %v729_v19  ;;  %v764_v43 = vshll.u32 %v112_v53, 16 }
 0x1cb   :  { %v738_v21 = vrot.slane %v737_v24, 4  ;;  %v757_v31 = vrot.slane %v755_v27, 4  ;;  %v760_v16 = vrot.slane %v758_v18, 5  ;;  %v768_v0 = vshrl.u32 %v112_v53, 16 }
 0x1cc   :  { %v747_v45 = vor.u32 %v746_v46, %v742_v20  ;;  %v774_v17 = vshll.u32 %v167_v39, 16  ;;  %17027 = vmatprep.mubr.bf16.mxu1 %v15080_v50  ;;  %v766_v35 = vrot.slane %v764_v43, 5  ;;  %v779_v36 = vshrl.u32 %v113_v49, 16 }
 0x1cd   :  { %v743_v22 = vsel %vm20245_vm5, %v738_v21, %v742_v20  ;;  %v782_v26 = vshll.u32 %v113_v49, 16  ;;  %v761_v51 = vor.u32 %v760_v16, %v757_v31  ;;  %v770_v47 = vrot.slane %v768_v0, 4  ;;  %v116_v20 = vld [vmem:[%s25365_s0 + $0x154] sm:$0xf]  ;;  %v117_v31 = vld [vmem:[%s25365_s0 + $0x15c] sm:$0xf] }
 0x1ce   :  { %v748_v8 = vrot.slane %v747_v45, 4  ;;  %v776_v53 = vrot.slane %v774_v17, 5  ;;  %v25583_v55 = vcombine.low %v21509_v38, %v21527_v32  ;;  %v781_v52 = vrot.slane %v779_v36, 4  ;;  %v169_v38 = vld [vmem:[%s25365_s0 + $0x158] sm:$0x1] }
 0x1cf   :  { %v784_v39 = vrot.slane %v782_v26, 5  ;;  %v788_v29 = vshll.u32 %v114_v61, 16  ;;  %v792_v24 = vshrl.u32 %v114_v61, 16  ;;  %v25584_v49 = vcombine.low %v21579_v11, %v21586_v57 }
 0x1d0   :  { %17408 = vmatmul.mubr.bf16.gmra.mrb[24].mxu0 %v25583_v55  ;;  %v753_v27 = vsel %vm20245_vm5, %v748_v8, %v752_v28  ;;  %v762_v19 = vrot.slane %v761_v51, 4  ;;  %v771_v46 = vor.u32 %v770_v47, %v766_v35  ;;  %v798_v18 = vshll.u32 %v168_v25, 16  ;;  %v22114_v25 = vld [vmem:[%s25365_s0 + $0x160] sm:$0xf] }
 0x1d1   :  { %17411 = vmatprep.mubr.bf16.mxu0 %v25584_v49  ;;  %v15081_v32 = vcombine.low %v743_v22, %v753_v27  ;;  %v785_v61 = vor.u32 %v784_v39, %v781_v52  ;;  %v790_v50 = vrot.slane %v788_v29, 5  ;;  %v794_v21 = vrot.slane %v792_v24, 4  ;;  %v25585_v49 = vld [vmem:[#allocation24_spill] sm:$0xff] }
 0x1d2   :  { %v767_v57 = vsel %vm20245_vm5, %v762_v19, %v766_v35  ;;  %v772_v11 = vrot.slane %v771_v46, 4  ;;  %v800_v28 = vrot.slane %v798_v18, 5  ;;  %v803_v43 = vshrl.u32 %v115_v33, 16  ;;  %v170_v35 = vld [vmem:[%s25365_s0 + $0x164] sm:$0x1] }
 0x1d3   :  { %17028 = vmatmul.mubr.bf16.gmra.mrb[44].mxu1 %v15081_v32  ;;  %v786_v45 = vrot.slane %v785_v61, 4  ;;  %v795_v16 = vor.u32 %v794_v21, %v790_v50  ;;  %v806_v0 = vshll.u32 %v115_v33, 16  ;;  %v812_v17 = vshll.u32 %v116_v20, 16  ;;  %v22132_v18 = vld [vmem:[%s25365_s0 + $0x168] sm:$0xf] }
 0x1d4   :  { %v777_v22 = vsel %vm20245_vm5, %v772_v11, %v776_v53  ;;  %v805_v36 = vrot.slane %v803_v43, 4  ;;  %v816_v26 = vshrl.u32 %v116_v20, 16  ;;  %v822_v8 = vshll.u32 %v169_v38, 16  ;;  %v22141_v21 = vld [vmem:[%s25365_s0 + $0x16c] sm:$0xf] }
 0x1d5   :  { %v15082_v51 = vcombine.low %v767_v57, %v777_v22  ;;  %v791_v47 = vsel %vm20245_vm5, %v786_v45, %v790_v50  ;;  %v796_v55 = vrot.slane %v795_v16, 4  ;;  %v808_v52 = vrot.slane %v806_v0, 5  ;;  %v171_v43 = vld [vmem:[%s25365_s0 + $0x170] sm:$0x1] }
 0x1d6   :  { %v814_v39 = vrot.slane %v812_v17, 5  ;;  %v818_v29 = vrot.slane %v816_v26, 4  ;;  %v824_v33 = vrot.slane %v822_v8, 5  ;;  %v827_v24 = vshrl.u32 %v117_v31, 16  ;;  %v22156_v17 = vld [vmem:[%s25365_s0 + $0x178] sm:$0xf] }
 0x1d7   :  { %v25586_v53 = vcombine.low %v21590_v13, %v25585_v49  ;;  %17031 = vmatprep.mubr.bf16.mxu1 %v15082_v51  ;;  %v801_v20 = vsel %vm20245_vm5, %v796_v55, %v800_v28  ;;  %v809_v27 = vor.u32 %v808_v52, %v805_v36  ;;  %v830_v19 = vshll.u32 %v117_v31, 16 }
 0x1d8   :  { %v836_v46 = vshll.u32 %v22114_v25, 16  ;;  %v25587_v38 = vcombine.low %v21631_v3, %v21670_v14  ;;  %v15083_v32 = vcombine.low %v791_v47, %v801_v20  ;;  %v819_v13 = vor.u32 %v818_v29, %v814_v39  ;;  %v22149_v3 = vld [vmem:[%s25365_s0 + $0x174] sm:$0xf] }
 0x1d9   :  { %17412 = vmatmul.mubr.bf16.gmra.mrb[28].mxu0 %v25586_v53  ;;  %v829_v61 = vrot.slane %v827_v24, 4  ;;  %v840_v50 = vshrl.u32 %v22114_v25, 16  ;;  %v810_v31 = vrot.slane %v809_v27, 4  ;;  %v832_v57 = vrot.slane %v830_v19, 5  ;;  %v172_v53 = vld [vmem:[%s25365_s0 + $0x17c] sm:$0x1] }
 0x1da   :  { %17415 = vmatprep.mubr.bf16.mxu0 %v25587_v38  ;;  %v838_v11 = vrot.slane %v836_v46, 5  ;;  %v846_v28 = vshll.u32 %v170_v35, 16  ;;  %v820_v14 = vrot.slane %v819_v13, 4  ;;  %v851_v16 = vshrl.u32 %v22132_v18, 16 }
 0x1db   :  { %v842_v45 = vrot.slane %v840_v50, 4  ;;  %v854_v0 = vshll.u32 %v22132_v18, 16  ;;  %17032 = vmatmul.mubr.bf16.gmra.mrb[48].mxu1 %v15083_v32  ;;  %v815_v22 = vsel %vm20245_vm5, %v810_v31, %v814_v39  ;;  %v833_v36 = vor.u32 %v832_v57, %v829_v61  ;;  %v22170_v39 = vld [vmem:[%s25365_s0 + $0x180] sm:$0xf]  ;;  %v22183_v50 = vld [vmem:[%s25365_s0 + $0x184] sm:$0xf] }
 0x1dc   :  { %v848_v26 = vrot.slane %v846_v28, 5  ;;  %v860_v8 = vshll.u32 %v22141_v21, 16  ;;  %v825_v35 = vsel %vm20245_vm5, %v820_v14, %v824_v33  ;;  %v853_v47 = vrot.slane %v851_v16, 4  ;;  %v173_v16 = vld [vmem:[%s25365_s0 + $0x188] sm:$0x1] }
 0x1dd   :  { %v843_v51 = vor.u32 %v842_v45, %v838_v11  ;;  %v856_v55 = vrot.slane %v854_v0, 5  ;;  %v15084_v52 = vcombine.low %v815_v22, %v825_v35  ;;  %v834_v29 = vrot.slane %v833_v36, 4  ;;  %v22200_v36 = vld [vmem:[%s25365_s0 + $0x18c] sm:$0xf] }
 0x1de   :  { %v862_v24 = vrot.slane %v860_v8, 5  ;;  %v864_v49 = vshrl.u32 %v22141_v21, 16  ;;  %v870_v33 = vshll.u32 %v171_v43, 16  ;;  %v875_v19 = vshrl.u32 %v22149_v3, 16 }
 0x1df   :  { %v844_v20 = vrot.slane %v843_v51, 4  ;;  %v857_v27 = vor.u32 %v856_v55, %v853_v47  ;;  %v25588_v46 = vcombine.low %v21679_v4, %v21689_v23  ;;  %17035 = vmatprep.mubr.bf16.mxu1 %v15084_v52  ;;  %v839_v38 = vsel %vm20245_vm5, %v834_v29, %v838_v11  ;;  %v22207_v47 = vld [vmem:[%s25365_s0 + $0x190] sm:$0xf] }
 0x1e0   :  { %v866_v32 = vrot.slane %v864_v49, 4  ;;  %v878_v13 = vshll.u32 %v22149_v3, 16  ;;  %v884_v61 = vshll.u32 %v22156_v17, 16  ;;  %v25589_v31 = vcombine.low %v21698_v59, %v21708_v6 }
 0x1e1   :  { %17416 = vmatmul.mubr.bf16.gmra.mrb[32].mxu0 %v25588_v46  ;;  %v849_v4 = vsel %vm20245_vm5, %v844_v20, %v848_v26  ;;  %v858_v23 = vrot.slane %v857_v27, 4  ;;  %v872_v57 = vrot.slane %v870_v33, 5  ;;  %v877_v11 = vrot.slane %v875_v19, 4 }
 0x1e2   :  { %17419 = vmatprep.mubr.bf16.mxu0 %v25589_v31  ;;  %v15085_v28 = vcombine.low %v839_v38, %v849_v4  ;;  %v867_v43 = vor.u32 %v866_v32, %v862_v24  ;;  %v880_v14 = vrot.slane %v878_v13, 5  ;;  %v886_v45 = vrot.slane %v884_v61, 5  ;;  %v25590_v32 = vld [vmem:[#allocation23_spill] sm:$0xff] }
 0x1e3   :  { %v863_v0 = vsel %vm20245_vm5, %v858_v23, %v862_v24  ;;  %v888_v59 = vshrl.u32 %v22156_v17, 16  ;;  %v894_v6 = vshll.u32 %v172_v53, 16  ;;  %v899_v22 = vshrl.u32 %v22170_v39, 16  ;;  %v174_v4 = vld [vmem:[%s25365_s0 + $0x194] sm:$0x1] }
 0x1e4   :  { %17036 = vmatmul.mubr.bf16.gmra.mrb[52].mxu1 %v15085_v28  ;;  %v868_v26 = vrot.slane %v867_v43, 4  ;;  %v881_v8 = vor.u32 %v880_v14, %v877_v11  ;;  %v902_v35 = vshll.u32 %v22170_v39, 16  ;;  %v908_v51 = vshll.u32 %v22183_v50, 16 }
 0x1e5   :  { %v890_v55 = vrot.slane %v888_v59, 4  ;;  %v896_v52 = vrot.slane %v894_v6, 5  ;;  %v901_v29 = vrot.slane %v899_v22, 4  ;;  %v912_v24 = vshrl.u32 %v22183_v50, 16  ;;  %v22230_v6 = vld [vmem:[%s25365_s0 + $0x174] sm:$0xe] }
 0x1e6   :  { %v873_v49 = vsel %vm20245_vm5, %v868_v26, %v872_v57  ;;  %v882_v53 = vrot.slane %v881_v8, 4  ;;  %v904_v20 = vrot.slane %v902_v35, 5  ;;  %v910_v27 = vrot.slane %v908_v51, 5 }
 0x1e7   :  { %v15086_v33 = vcombine.low %v863_v0, %v873_v49  ;;  %v891_v19 = vor.u32 %v890_v55, %v886_v45  ;;  %v914_v46 = vrot.slane %v912_v24, 4  ;;  %v918_v38 = vshll.u32 %v173_v16, 16 }
 0x1e8   :  { %v25591_v13 = vcombine.low %v21749_v5, %v25590_v32  ;;  %v887_v61 = vsel %vm20245_vm5, %v882_v53, %v886_v45  ;;  %v905_v31 = vor.u32 %v904_v20, %v901_v29  ;;  %v923_v23 = vshrl.u32 %v22200_v36, 16 }
 0x1e9   :  { %v926_v57 = vshll.u32 %v22200_v36, 16  ;;  %v25592_v11 = vcombine.low %v21809_v56, %v21822_v44  ;;  %17039 = vmatprep.mubr.bf16.mxu1 %v15086_v33  ;;  %v892_v28 = vrot.slane %v891_v19, 4  ;;  %v915_v5 = vor.u32 %v914_v46, %v910_v27 }
 0x1ea   :  { %17420 = vmatmul.mubr.bf16.gmra.mrb[36].mxu0 %v25591_v13  ;;  %v920_v43 = vrot.slane %v918_v38, 5  ;;  %v932_v14 = vshll.u32 %v22207_v47, 16  ;;  %v906_v45 = vrot.slane %v905_v31, 4  ;;  %v925_v16 = vrot.slane %v923_v23, 4  ;;  %v19166_v23 = vld [vmem:[%s25365_s0 + $0x178] sm:$0xf] }
 0x1eb   :  { %17423 = vmatprep.mubr.bf16.mxu0 %v25592_v11  ;;  %v928_v0 = vrot.slane %v926_v57, 5  ;;  %v936_v59 = vshrl.u32 %v22207_v47, 16  ;;  %v897_v56 = vsel %vm20245_vm5, %v892_v28, %v896_v52  ;;  %v916_v44 = vrot.slane %v915_v5, 4  ;;  %v25600_v5 = vld [vmem:[#allocation25_spill] sm:$0xff] }
 0x1ec   :  { %v934_v22 = vrot.slane %v932_v14, 5  ;;  %v942_v26 = vshll.u32 %v174_v4, 16  ;;  %v15087_v8 = vcombine.low %v887_v61, %v897_v56  ;;  %v911_v35 = vsel %vm20245_vm5, %v906_v45, %v910_v27  ;;  %v22288_v45 = vld [vmem:[%s25365_s0 + $0x180] sm:$0xe] }
 0x1ed   :  { %v929_v51 = vor.u32 %v928_v0, %v925_v16  ;;  %v938_v55 = vrot.slane %v936_v59, 4  ;;  %v15536_v29 = vcombine.low %v21943_v48, %v21995_v7  ;;  %v25593_v24 = vrot.slane %v21982_v62, 5  ;;  %v19165_v48 = vld [vmem:[%s25365_s0 + $0x170] sm:$0x1]  ;;  %v19169_v16 = vld [vmem:[%s25365_s0] sm:$0xf] }
 0x1ee   :  { %v22242_v53 = vrot.slane %v5230_v54, 4  ;;  %v921_v52 = vsel %vm20245_vm5, %v916_v44, %v920_v43  ;;  %17040 = vmatmul.mubr.bf16.gmra.mrb[56].mxu1 %v15087_v8  ;;  %v944_v27 = vrot.slane %v942_v26, 5  ;;  %v25594_v46 = vcombine.low %v21813_v63, %v21826_v1  ;;  %v19170_v44 = vld [vmem:[%s25365_s0 + $0x184] sm:$0xf] }
 0x1ef   :  { %v5225_v49 = vrot.slane %v25593_v24, 4  ;;  %v15088_v20 = vcombine.low %v911_v35, %v921_v52  ;;  %v930_v33 = vrot.slane %v929_v51, 4  ;;  %v939_v19 = vor.u32 %v938_v55, %v934_v22  ;;  %v25604_v51 = vld [vmem:[#allocation28_spill] sm:$0xff] }
 0x1f0   :  { %v5233_v7 = vrot.slane %v19165_v48, 5  ;;  %v15510_v38 = vrot.slane %v22230_v6, 9  ;;  %v25595_v61 = vrot.slane %v21848_v37, 5  ;;  %v25596_v31 = vrot.slane %v21837_v12, 9  ;;  %v19167_v37 = vld [vmem:[%s25365_s0 + $0x17c] sm:$0x1] }
 0x1f1   :  { %17043 = vmatprep.mubr.bf16.mxu1 %v15088_v20  ;;  %v935_v32 = vsel %vm20245_vm5, %v930_v33, %v934_v22  ;;  %v940_v13 = vrot.slane %v939_v19, 4  ;;  %v25597_v1 = vrot.slane %v21911_v40, 5  ;;  %v5237_v57 = vrot.slane %v19166_v23, 5  ;;  %v19171_v20 = vld [vmem:[%s25365_s0 + $0x190] sm:$0xf] }
 0x1f2   :  { %17424 = vmatmul.mubr.bf16.gmra.mrb[40].mxu0 %v25594_v46  ;;  %v5203_v63 = vsel %vm19458_vm2, %v25596_v31, %v25595_v61  ;;  %v5240_v11 = vrot.slane %v19167_v37, 5  ;;  %v25598_v12 = vrot.slane %v21891_v58, 5  ;;  %v25599_v28 = vrot.slane %v21903_v15, 9  ;;  %v19168_v15 = vld [vmem:[%s25365_s0 + $0x4] sm:$0xf] }
 0x1f3   :  { %17427 = vmatprep.mubr.bf16.mxu0 %v15536_v29  ;;  %v5206_v4 = vsel %vm19458_vm2, %v21883_v30, %v25597_v1  ;;  %v25601_v43 = vrot.slane %v25600_v5, 5  ;;  %v945_v14 = vsel %vm20245_vm5, %v940_v13, %v944_v27  ;;  %v15098_v0 = vcombine.low %v19169_v16, %v19168_v15  ;;  %v25606_v29 = vld [vmem:[#allocation26_spill] sm:$0xff]  ;;  %v25610_v46 = vld [vmem:[#allocation29_spill] sm:$0xff]  ;;  %v19177_v5 = vld [vmem:[%s25365_s0 + $0x194] sm:$0x1] }
 0x1f4   :  { %v5210_v40 = vsel %vm19458_vm2, %v25599_v28, %v25598_v12  ;;  %v15089_v58 = vcombine.low %v935_v32, %v945_v14  ;;  %v15537_v59 = vcombine.low %v5203_v63, %v5206_v4  ;;  %v15511_v56 = vrot.slane %v22288_v45, 9  ;;  %v19172_v13 = vld [vmem:[%s25365_s0 + $0x10] sm:$0xf]  ;;  %v19173_v61 = vld [vmem:[%s25365_s0 + $0xc] sm:$0xf]  ;;  %v25612_v14 = vld [vmem:[#allocation32_spill] sm:$0xff] }
 0x1f5   :  { %v5213_v30 = vsel %vm19458_vm2, %v21955_v42, %v25601_v43  ;;  %v5244_v22 = vrot.slane %v19170_v44, 5  ;;  %v25602_v26 = vrot.slane %v21922_v34, 5  ;;  %v25603_v8 = vrot.slane %v21917_v9, 9  ;;  %v25608_v34 = vld [vmem:[#allocation27_spill] sm:$0xff]  ;;  %v19174_v63 = vld [vmem:[%s25365_s0 + $0x1c] sm:$0xf] }
 0x1f6   :  { %v15538_v42 = vcombine.low %v5210_v40, %v5213_v30  ;;  %17044 = vmatmul.mubr.bf16.gmra.mrb[60].mxu1 %v15089_v58  ;;  %v25605_v55 = vrot.slane %v25604_v51, 5  ;;  %v5239_v52 = vrot.slane %v5237_v57, 4  ;;  %v5251_v33 = vrot.slane %v19171_v20, 5  ;;  %v19176_v12 = vld [vmem:[%s25365_s0 + $0x188] sm:$0x1]  ;;  %v19178_v30 = vld [vmem:[#allocation6 + $0x88] sm:$0xff]  }
 0x1f7   :  { %17063 = vmatprep.mubr.bf16.mxu1 %v15098_v0  ;;  %v5217_v35 = vsel %vm19458_vm2, %v25603_v8, %v25602_v26  ;;  %v25607_v19 = vrot.slane %v21982_v62, 5  ;;  %v25609_v27 = vrot.slane %v25608_v34, 9  ;;  %v25611_v48 = vrot.slane %v25610_v46, 5  ;;  %v15480_v62 = vld [vmem:[%s25365_s0 + $0x18c] sm:$0xe]  ;;  %v19184_v44 = vld [vmem:[#allocation6 + $0x90] sm:$0xff]  }
 0x1f8   :  { %v5220_v24 = vsel %vm19458_vm2, %v25606_v29, %v25605_v55  ;;  %v15099_v31 = vcombine.low %v19173_v61, %v19172_v13  ;;  %v5246_v37 = vrot.slane %v5244_v22, 4  ;;  %v5247_v28 = vrot.slane %v19176_v12, 5  ;;  %v19179_v16 = vld [vmem:[%s25365_s0 + $0x19c] sm:$0xf]  ;;  %v19182_v6 = vld [vmem:[%s25365_s0 + $0x34] sm:$0xf] }
 0x1f9   :  { %v5224_v9 = vsel %vm19458_vm2, %v25609_v27, %v25607_v19  ;;  %v5227_v32 = vsel %vm19458_vm2, %v5225_v49, %v25611_v48  ;;  %v19175_v49 = vld [vmem:[%s25365_s0 + $0x18] sm:$0xf]  ;;  %v15539_v4 = vcombine.low %v5217_v35, %v5220_v24  ;;  %v15512_v40 = vrot.slane %v15480_v62, 9  ;;  %v19185_v35 = vld [vmem:[#allocation6 + $0x98] sm:$0xff]   ;;  %v19186_v24 = vld [vmem:[%s25365_s0 + $0x1a0] sm:$0x1] }
 0x1fa   :  { %17428 = vmatmul.mubr.bf16.gmra.mrb[44].mxu0 %v15537_v59  ;;  %v15100_v1 = vcombine.low %v19175_v49, %v19174_v63  ;;  %v15540_v23 = vcombine.low %v5224_v9, %v5227_v32  ;;  %v5254_v43 = vrot.slane %v19177_v5, 5  ;;  %v5234_v58 = vsel %vm19458_vm2, %v22242_v53, %v5233_v7  ;;  %v19181_v53 = vld [vmem:[%s25365_s0 + $0x24] sm:$0xf]  ;;  %v19187_v34 = vld [vmem:[%s25365_s0 + $0x40] sm:$0xf]  ;;  %v19191_v48 = vld [vmem:[#allocation6 + $0xa0] sm:$0xff]  }
 0x1fb   :  { %17431 = vmatprep.mubr.bf16.mxu0 %v15538_v42  ;;  %v5253_v15 = vrot.slane %v5251_v33, 4  ;;  %v5258_v0 = vrot.slane %v19179_v16, 5  ;;  %v5238_v60 = vsel %vm19458_vm2, %v15510_v38, %v5237_v57  ;;  %v5241_v59 = vsel %vm19458_vm2, %v5239_v52, %v5240_v11  ;;  %v15481_v42 = vld [vmem:[%s25365_s0 + $0x198] sm:$0xe]  ;;  %v19183_v38 = vld [vmem:[%s25365_s0 + $0x30] sm:$0xf] }
 0x1fc   :  { %v15102_v57 = vcombine.low %v19183_v38, %v19182_v6  ;;  %v15542_v26 = vcombine.low %v5238_v60, %v5241_v59  ;;  %v15513_v8 = vrot.slane %v15481_v42, 9  ;;  %v5245_v51 = vsel %vm19458_vm2, %v15511_v56, %v5244_v22  ;;  %v19188_v56 = vld [vmem:[%s25365_s0 + $0x3c] sm:$0xf]  ;;  %v19189_v27 = vld [vmem:[%s25365_s0 + $0x4c] sm:$0xf]  ;;  %v19197_v12 = vld [vmem:[#allocation6 + $0xb0] sm:$0xff]  }
 0x1fd   :  { %v5248_v55 = vsel %vm19458_vm2, %v5246_v37, %v5247_v28  ;;  %v5260_v29 = vrot.slane %v5258_v0, 4  ;;  %v5261_v52 = vrot.slane %v19186_v24, 5  ;;  %v5252_v20 = vsel %vm19458_vm2, %v15512_v40, %v5251_v33  ;;  %v19190_v33 = vld [vmem:[%s25365_s0 + $0x48] sm:$0xf]  ;;  %v19192_v13 = vld [vmem:[#allocation6 + $0xa8] sm:$0xff]   ;;  %v18758_v60 = vld [vmem:[#allocation6 + $0x1d0] sm:$0xff]  }
 0x1fe   :  { %17064 = vmatmul.mubr.bf16.vlgmr.msra.gmra.mrb[0].mxu1 %v15099_v31  ;;  %v5255_v19 = vsel %vm19458_vm2, %v5253_v15, %v5254_v43  ;;  %v15103_v22 = vcombine.low %v19188_v56, %v19187_v34  ;;  %v15104_v9 = vcombine.low %v19190_v33, %v19189_v27  ;;  %v15543_v46 = vcombine.low %v5245_v51, %v5248_v55  ;;  %v19193_v62 = vld [vmem:[%s25365_s0 + $0x58] sm:$0xf]  ;;  %v19194_v63 = vld [vmem:[%s25365_s0 + $0x54] sm:$0xf]  ;;  %v19198_v40 = vld [vmem:[#allocation6 + $0xb8] sm:$0xff]  }
 0x1ff   :  { %17067 = vmatprep.mubr.bf16.mxu1 %v15100_v1  ;;  %18003 = vmatpush3.bf16.msra.mxu1 %v22084_v41  ;;  %v25613_v41 = vrot.slane %v25612_v14, 9  ;;  %v15544_v32 = vcombine.low %v5252_v20, %v5255_v19  ;;  %v5259_v61 = vsel %vm19458_vm2, %v15513_v8, %v5258_v0  ;;  %v5262_v31 = vsel %vm19458_vm2, %v5260_v29, %v5261_v52  ;;  %v19195_v1 = vld [vmem:[%s25365_s0 + $0x64] sm:$0xf]  ;;  %v18741_v28 = vld [vmem:[%s25365_s0 + $0x18] sm:$0xff]   ;;  %v19199_v5 = vld [vmem:[%s25365_s0 + $0x70] sm:$0xf] }
 0x200   :  { %17996 = vmatprep.subr.bf16.mxu1 %v19178_v30  ;;  %v15105_v49 = vcombine.low %v19194_v63, %v19193_v62  ;;  %v15545_v37 = vcombine.low %v5259_v61, %v5262_v31  ;;  %v19200_v43 = vld [vmem:[%s25365_s0 + $0x6c] sm:$0xf]  ;;  %v19201_v14 = vld [vmem:[%s25365_s0 + $0x7c] sm:$0xf]  ;;  %v18744_v15 = vld [vmem:[%s25365_s0 + $0x30] sm:$0xff]  }
 0x201   :  { %v5231_v45 = vsel %vm19458_vm2, %v25613_v41, %v5230_v54  ;;  %v19180_v54 = vld [vmem:[%s25365_s0 + $0x28] sm:$0xf]  ;;  %v19202_v41 = vld [vmem:[%s25365_s0 + $0x78] sm:$0xf]  ;;  %v19203_v0 = vld [vmem:[#allocation6 + $0x1c0] sm:$0xff]  }
 0x202   :  { %17432 = vmatmul.mubr.bf16.gmra.mrb[48].mxu0 %v15539_v4  ;;  %v15101_v7 = vcombine.low %v19181_v53, %v19180_v54  ;;  %v15541_v11 = vcombine.low %v5231_v45, %v5234_v58  ;;  %v19196_v4 = vld [vmem:[%s25365_s0 + $0x60] sm:$0xf]  ;;  %v15108_v45 = vcombine.low %v19202_v41, %v19201_v14  ;;  %v18742_v58 = vld [vmem:[%s25365_s0 + $0x24] sm:$0xff]   ;;  %v18749_v16 = vld [vmem:[#allocation6 + $0x1c8] sm:$0xff]  }
 0x203   :  { %17435 = vmatprep.mubr.bf16.mxu0 %v15540_v23  ;;  %18004 = vmatpush3.bf16.msra.mxu1 %v19178_v30  ;;  %v15106_v23 = vcombine.low %v19196_v4, %v19195_v1  ;;  %v15107_v30 = vcombine.low %v19200_v43, %v19199_v5  ;;  %v19204_v59 = vld [vmem:[%s25365_s0 + $0x88] sm:$0xf]  ;;  %v19205_v54 = vld [vmem:[%s25365_s0 + $0x84] sm:$0xf]  ;;  %v19207_v42 = vld [vmem:[%s25365_s0 + $0x90] sm:$0xf] }
 0x204   :  { %17997 = vmatprep.subr.bf16.mxu1 %v19184_v44  ;;  %v15109_v53 = vcombine.low %v19205_v54, %v19204_v59  ;;  %v18745_v38 = vld [vmem:[%s25365_s0 + $0x3c] sm:$0xff]   ;;  %v19210_v51 = vld [vmem:[%s25365_s0 + $0xac] sm:$0xf]  ;;  %v19211_v55 = vld [vmem:[%s25365_s0 + $0xa8] sm:$0xf] }
 0x205   :  { %v19209_v8 = vld [vmem:[%s25365_s0 + $0x9c] sm:$0xf]  ;;  %v15112_v29 = vcombine.low %v19211_v55, %v19210_v51  ;;  %v18748_v24 = vld [vmem:[%s25365_s0 + $0x54] sm:$0xff]   ;;  %v18752_v52 = vld [vmem:[%s25365_s0 + $0x60] sm:$0xff]  }
 0x206   :  { %17068 = vmatmul.mubr.bf16.gmra.mrb[4].mxu1 %v15101_v7  ;;  %v19206_v7 = vld [vmem:[%s25365_s0 + $0x94] sm:$0xf]  ;;  %v18786_v20 = vld [vmem:[#allocation6 + $0x1e8] sm:$0xff]   ;;  %v18795_v19 = vld [vmem:[#allocation6 + $0x1f0] sm:$0xff]  }
 0x207   :  { %17071 = vmatprep.mubr.bf16.mxu1 %v15102_v57  ;;  %18005 = vmatpush3.bf16.msra.mxu1 %v19184_v44  ;;  %v15110_v6 = vcombine.low %v19207_v42, %v19206_v7  ;;  %v18747_v57 = vld [vmem:[%s25365_s0 + $0x48] sm:$0xff]   ;;  %v18777_v44 = vld [vmem:[#allocation6 + $0x1e0] sm:$0xff]   ;;  %v19212_v34 = vld [vmem:[%s25365_s0 + $0xb8] sm:$0xf] }
 0x208   :  { %17998 = vmatprep.subr.bf16.mxu1 %v19185_v35  ;;  %v19213_v56 = vld [vmem:[%s25365_s0 + $0xb4] sm:$0xf]  ;;  %v19214_v27 = vld [vmem:[%s25365_s0 + $0xdc] sm:$0xf]  ;;  %v19215_v33 = vld [vmem:[%s25365_s0 + $0xd8] sm:$0xf] }
 0x209   :  { %v19217_v61 = vld [vmem:[%s25365_s0 + $0xe4] sm:$0xf]  ;;  %v22499_v62 = vld [vmem:[#allocation6 + $0x200] sm:$0xff]   ;;  %v19223_v5 = vld [vmem:[%s25365_s0 + $0x108] sm:$0xf] }
 0x20a   :  { %17436 = vmatmul.mubr.bf16.gmra.mrb[52].mxu0 %v15541_v11  ;;  %v18768_v11 = vld [vmem:[#allocation6 + $0x1d8] sm:$0xff]   ;;  %v19218_v63 = vld [vmem:[%s25365_s0 + $0xf4] sm:$0xf]  ;;  %v19224_v41 = vld [vmem:[%s25365_s0 + $0x118] sm:$0xf] }
 0x20b   :  { %17439 = vmatprep.mubr.bf16.mxu0 %v15542_v26  ;;  %18006 = vmatpush3.bf16.msra.mxu1 %v19185_v35  ;;  %v19208_v26 = vld [vmem:[%s25365_s0 + $0xa0] sm:$0xf]  ;;  %v18757_v4 = vld [vmem:[%s25365_s0 + $0x84] sm:$0xff]   ;;  %v19228_v54 = vld [vmem:[%s25365_s0 + $0x12c] sm:$0xf] }
 0x20c   :  { %17999 = vmatprep.subr.bf16.mxu1 %v19191_v48  ;;  %v15111_v35 = vcombine.low %v19209_v8, %v19208_v26  ;;  %v18766_v14 = vld [vmem:[%s25365_s0 + $0xa8] sm:$0xff]   ;;  %v18771_v59 = vld [vmem:[%s25365_s0 + $0xc0] sm:$0xff]   ;;  %v19230_v42 = vld [vmem:[%s25365_s0 + $0x138] sm:$0xf] }
 0x20d   :  { %v22583_v26 = vld [vmem:[%s25365_s0 + $0x148] sm:$0xf]  ;;  %v22592_v51 = vld [vmem:[%s25365_s0 + $0x154] sm:$0xf] }
 0x20e   :  { %17072 = vmatmul.mubr.bf16.gmra.mrb[8].mxu1 %v15103_v22  ;;  %v15113_v22 = vcombine.low %v19213_v56, %v19212_v34 }
 0x20f   :  { %17075 = vmatprep.mubr.bf16.mxu1 %v15104_v9  ;;  %18007 = vmatpush3.bf16.msra.mxu1 %v19191_v48  ;;  %v15114_v9 = vcombine.low %v19215_v33, %v19214_v27  ;;  %v18756_v48 = vld [vmem:[%s25365_s0 + $0x78] sm:$0xff]  }
 0x210   :  { %18000 = vmatprep.subr.bf16.mxu1 %v19192_v13  ;;  %v19236_v33 = vld [vmem:[%s25365_s0 + $0x15c] sm:$0xf] }
 0x212   :  { %17440 = vmatmul.mubr.bf16.gmra.mrb[56].mxu0 %v15543_v46  ;;  %v18753_v46 = vld [vmem:[%s25365_s0 + $0x6c] sm:$0xff]  }
 0x213   :  { %17443 = vmatprep.mubr.bf16.mxu0 %v15544_v32  ;;  %18008 = vmatpush3.bf16.msra.mxu1 %v19192_v13  ;;  %v18804_v32 = vld [vmem:[#allocation6 + $0x1f8] sm:$0xff]  }
 0x214   :  { %18001 = vmatprep.subr.bf16.mxu1 %v19197_v12  ;;  %v19216_v13 = vld [vmem:[%s25365_s0 + $0xe8] sm:$0xf] }
 0x215   :  { %v15115_v31 = vcombine.low %v19217_v61, %v19216_v13  ;;  %v18781_v13 = vld [vmem:[%s25365_s0 + $0x114] sm:$0xff]   ;;  %v18784_v61 = vld [vmem:[%s25365_s0 + $0x120] sm:$0xff]  }
 0x216   :  { %17076 = vmatmul.mubr.bf16.gmra.mrb[12].mxu1 %v15105_v49  ;;  %v19219_v49 = vld [vmem:[%s25365_s0 + $0xf0] sm:$0xf] }
 0x217   :  { %17079 = vmatprep.mubr.bf16.mxu1 %v15106_v23  ;;  %18009 = vmatpush3.bf16.msra.mxu1 %v19197_v12  ;;  %v15116_v1 = vcombine.low %v19219_v49, %v19218_v63  ;;  %v18761_v23 = vld [vmem:[%s25365_s0 + $0x90] sm:$0xff]   ;;  %v19221_v12 = vld [vmem:[%s25365_s0 + $0xfc] sm:$0xf] }
 0x218   :  { %18002 = vmatprep.subr.bf16.mxu1 %v19198_v40 }
 0x21a   :  { %17444 = vmatmul.mubr.bf16.gmra.mrb[60].mxu0 %v15545_v37  ;;  %v19220_v37 = vld [vmem:[%s25365_s0 + $0x100] sm:$0xf] }
 0x21b   :  { %17463 = vmatprep.mubr.bf16.mxu0 %v18741_v28  ;;  %18010 = vmatpush3.bf16.msra.mxu1 %v19198_v40  ;;  %v15117_v28 = vcombine.low %v19221_v12, %v19220_v37  ;;  %v19222_v40 = vld [vmem:[%s25365_s0 + $0x10c] sm:$0xf] }
 0x21c   :  { %v15118_v43 = vcombine.low %v19223_v5, %v19222_v40  ;;  %v1979_v40 = vld [vmem:[%s25365_s0 + $0x120] sm:$0xe] }
 0x21e   :  { %17080 = vmatmul.mubr.bf16.gmra.mrb[16].mxu1 %v15107_v30  ;;  %v18762_v30 = vld [vmem:[%s25365_s0 + $0x9c] sm:$0xff]  }
 0x21f   :  { %17083 = vmatprep.mubr.bf16.mxu1 %v15108_v45  ;;  %v19225_v45 = vld [vmem:[%s25365_s0 + $0x114] sm:$0xf] }
 0x222   :  { %17464 = vmatmul.mubr.bf16.vlgmr.msra.gmra.mrb[0].mxu0 %v18742_v58  ;;  %v15119_v58 = vcombine.low %v19225_v45, %v19224_v41  ;;  %v15128_v45 = vcombine.low %v22170_v39, %v22183_v50  ;;  %v18789_v50 = vld [vmem:[%s25365_s0 + $0x138] sm:$0xff]  }
 0x223   :  { %17528 = vmatpush3.bf16.msra.mxu0 %v19203_v0  ;;  %17467 = vmatprep.mubr.bf16.mxu0 %v18744_v15  ;;  %v19226_v15 = vld [vmem:[%s25365_s0 + $0x120] sm:$0xf] }
 0x224   :  { %17529 = vmatprep.subr.bf16.mxu0 %v18749_v16 }
 0x226   :  { %17084 = vmatmul.mubr.bf16.gmra.mrb[20].mxu1 %v15109_v53  ;;  %v22559_v53 = vld [vmem:[%s25365_s0 + $0x130] sm:$0xf] }
 0x227   :  { %17530 = vmatpush3.bf16.msra.mxu0 %v18749_v16  ;;  %17087 = vmatprep.mubr.bf16.mxu1 %v15110_v6  ;;  %v22544_v16 = vld [vmem:[%s25365_s0 + $0x124] sm:$0xf]  ;;  %v15121_v7 = vcombine.low %v19228_v54, %v22559_v53  ;;  %v22568_v6 = vld [vmem:[%s25365_s0 + $0x13c] sm:$0xf] }
 0x228   :  { %17531 = vmatprep.subr.bf16.mxu0 %v18758_v60  ;;  %v15120_v0 = vcombine.low %v19226_v15, %v22544_v16  ;;  %v15664_v15 = vld [vmem:[%s25365_s0 + $0x30] sm:$0xf] }
 0x22a   :  { %17468 = vmatmul.mubr.bf16.gmra.mrb[4].mxu0 %v18745_v38  ;;  %v15122_v38 = vcombine.low %v19230_v42, %v22568_v6 }
 0x22b   :  { %17471 = vmatprep.mubr.bf16.mxu0 %v18747_v57  ;;  %17532 = vmatpush3.bf16.msra.mxu0 %v18758_v60  ;;  %v18767_v60 = vld [vmem:[%s25365_s0 + $0xb4] sm:$0xff]   ;;  %v18772_v57 = vld [vmem:[%s25365_s0 + $0xcc] sm:$0xff]  }
 0x22c   :  { %17533 = vmatprep.subr.bf16.mxu0 %v18768_v11 }
 0x22e   :  { %17088 = vmatmul.mubr.bf16.gmra.mrb[24].mxu1 %v15111_v35  ;;  %v19234_v35 = vld [vmem:[%s25365_s0 + $0x150] sm:$0xf] }
 0x22f   :  { %17534 = vmatpush3.bf16.msra.mxu0 %v18768_v11  ;;  %17091 = vmatprep.mubr.bf16.mxu1 %v15112_v29  ;;  %v18775_v11 = vld [vmem:[%s25365_s0 + $0xf0] sm:$0xff]   ;;  %v15124_v55 = vcombine.low %v19234_v35, %v22592_v51  ;;  %v18776_v29 = vld [vmem:[%s25365_s0 + $0xfc] sm:$0xff]   ;;  %v2219_v35 = vrot.slane %v22559_v53, 5 }
 0x230   :  { %17535 = vmatprep.subr.bf16.mxu0 %v18777_v44 }
 0x232   :  { %17472 = vmatmul.mubr.bf16.gmra.mrb[8].mxu0 %v18748_v24  ;;  %v18780_v24 = vld [vmem:[%s25365_s0 + $0x108] sm:$0xff]  }
 0x233   :  { %17475 = vmatprep.mubr.bf16.mxu0 %v18752_v52  ;;  %17536 = vmatpush3.bf16.msra.mxu0 %v18777_v44  ;;  %v19232_v44 = vld [vmem:[%s25365_s0 + $0x144] sm:$0xf]  ;;  %v15658_v52 = vld [vmem:[%s25365_s0 + $0x18] sm:$0xf] }
 0x234   :  { %17537 = vmatprep.subr.bf16.mxu0 %v18786_v20  ;;  %v15123_v8 = vcombine.low %v19232_v44, %v22583_v26  ;;  %v6581_v34 = vshrl.u32 %v15658_v52, 16  ;;  %v6584_v56 = vshll.u32 %v15658_v52, 16  ;;  %v15665_v44 = vld [vmem:[%s25365_s0 + $0x34] sm:$0xf] }
 0x236   :  { %17092 = vmatmul.mubr.bf16.gmra.mrb[28].mxu1 %v15113_v22  ;;  %v6586_v63 = vrot.slane %v6584_v56, 5 }
 0x237   :  { %17538 = vmatpush3.bf16.msra.mxu0 %v18786_v20  ;;  %17095 = vmatprep.mubr.bf16.mxu1 %v15114_v9  ;;  %v15659_v20 = vld [vmem:[%s25365_s0 + $0x1c] sm:$0xf]  ;;  %v15125_v9 = vcombine.low %v19236_v33, %v22114_v25  ;;  %v15662_v25 = vld [vmem:[%s25365_s0 + $0x28] sm:$0xf]  ;;  %v15129_v33 = vcombine.low %v22200_v36, %v22207_v47  ;;  %v19239_v36 = vld [vmem:[%s25365_s0 + $0x140] sm:$0x1] }
 0x238   :  { %17539 = vmatprep.subr.bf16.mxu0 %v18795_v19  ;;  %v6590_v22 = vshll.u32 %v15659_v20, 16  ;;  %v6594_v27 = vshrl.u32 %v15659_v20, 16  ;;  %v6614_v12 = vshll.u32 %v15662_v25, 16  ;;  %v1980_v20 = vld [vmem:[%s25365_s0 + $0x12c] sm:$0xe]  ;;  %v2229_v47 = vrot.slane %v19239_v36, 5 }
 0x23a   :  { %17476 = vmatmul.mubr.bf16.gmra.mrb[12].mxu0 %v18753_v46  ;;  %v22622_v49 = vrot.slane %v6590_v22, 5  ;;  %v22659_v54 = vrot.slane %v6614_v12, 5  ;;  %v6638_v22 = vshll.u32 %v15665_v44, 16 }
 0x23b   :  { %17479 = vmatprep.mubr.bf16.mxu0 %v18756_v48  ;;  %17540 = vmatpush3.bf16.msra.mxu0 %v18795_v19  ;;  %v15661_v19 = vld [vmem:[%s25365_s0 + $0x24] sm:$0xf] }
 0x23c   :  { %17541 = vmatprep.subr.bf16.mxu0 %v18804_v32  ;;  %v6605_v46 = vshrl.u32 %v15661_v19, 16  ;;  %v6608_v48 = vshll.u32 %v15661_v19, 16  ;;  %v2226_v19 = vrot.slane %v22568_v6, 5 }
 0x23e   :  { %17096 = vmatmul.mubr.bf16.gmra.mrb[32].mxu1 %v15115_v31  ;;  %v6583_v31 = vrot.slane %v6581_v34, 4  ;;  %v1981_v34 = vld [vmem:[%s25365_s0 + $0x138] sm:$0xe] }
 0x23f   :  { %17542 = vmatpush3.bf16.msra.mxu0 %v18804_v32  ;;  %17099 = vmatprep.mubr.bf16.mxu1 %v15116_v1  ;;  %v15126_v32 = vcombine.low %v22132_v18, %v22141_v21  ;;  %v6596_v1 = vrot.slane %v6594_v27, 4  ;;  %v6610_v18 = vrot.slane %v6608_v48, 5  ;;  %v15660_v21 = vld [vmem:[%s25365_s0 + $0x20] sm:$0x1]  ;;  %v6642_v27 = vshrl.u32 %v15665_v44, 16 }
 0x240   :  { %17607 = vmatprep.subr.bf16.mxu0 %v22499_v62  ;;  %v6587_v37 = vor.u32 %v6586_v63, %v6583_v31  ;;  %v15161_v48 = vrot.slane %v1980_v20, 9  ;;  %v15162_v63 = vrot.slane %v1981_v34, 9  ;;  %v19241_v20 = vld [vmem:[%s25365_s0 + $0x158] sm:$0x1] }
 0x241   :  { %v6597_v5 = vor.u32 %v6596_v1, %v22622_v49  ;;  %v2228_v1 = vrot.slane %v2226_v19, 4 }
 0x242   :  { %17480 = vmatmul.mubr.bf16.gmra.mrb[16].mxu0 %v18757_v4  ;;  %v6607_v4 = vrot.slane %v6605_v46, 4 }
 0x243   :  { %17483 = vmatprep.mubr.bf16.mxu0 %v18761_v23  ;;  %v2212_v23 = vrot.slane %v22544_v16, 5  ;;  %v15160_v16 = vrot.slane %v1979_v40, 9  ;;  %v22661_v42 = vrot.slane %v6597_v5, 4  ;;  %v15670_v40 = vld [vmem:[%s25365_s0 + $0x48] sm:$0xf]  ;;  %v2220_v5 = vsel %vm19458_vm2, %v15161_v48, %v2219_v35 }
 0x244   :  { %v6611_v41 = vor.u32 %v6610_v18, %v6607_v4  ;;  %v15668_v18 = vld [vmem:[%s25365_s0 + $0x40] sm:$0xf] }
 0x246   :  { %17100 = vmatmul.mubr.bf16.gmra.mrb[36].mxu1 %v15117_v28  ;;  %v6618_v28 = vshrl.u32 %v15662_v25, 16 }
 0x247   :  { %17103 = vmatprep.mubr.bf16.mxu1 %v15118_v43  ;;  %v15127_v43 = vcombine.low %v22149_v3, %v22156_v17  ;;  %v19237_v3 = vld [vmem:[%s25365_s0 + $0x128] sm:$0x1] }
 0x248   :  { %v2215_v17 = vrot.slane %v19237_v3, 5  ;;  %v6666_v3 = vshrl.u32 %v15668_v18, 16 }
 0x24a   :  { %17484 = vmatmul.mubr.bf16.gmra.mrb[20].mxu0 %v18762_v30  ;;  %v6600_v30 = vshll.u32 %v15660_v21, 16 }
 0x24b   :  { %17487 = vmatprep.mubr.bf16.mxu0 %v18766_v14  ;;  %v15663_v14 = vld [vmem:[%s25365_s0 + $0x2c] sm:$0x1] }
 0x24e   :  { %17104 = vmatmul.mubr.bf16.gmra.mrb[40].mxu1 %v15119_v58  ;;  %v18785_v58 = vld [vmem:[%s25365_s0 + $0x12c] sm:$0xff]  }
 0x24f   :  { %17107 = vmatprep.mubr.bf16.mxu1 %v15120_v0  ;;  %v2214_v0 = vrot.slane %v2212_v23, 4 }
 0x251   :  { %v2216_v52 = vsel %vm19458_vm2, %v2214_v0, %v2215_v17  ;;  %v6662_v0 = vshll.u32 %v15668_v18, 16  ;;  %v6677_v17 = vshrl.u32 %v15670_v40, 16 }
 0x252   :  { %17488 = vmatmul.mubr.bf16.gmra.mrb[24].mxu0 %v18767_v60  ;;  %v19238_v60 = vld [vmem:[%s25365_s0 + $0x134] sm:$0x1] }
 0x253   :  { %17491 = vmatprep.mubr.bf16.mxu0 %v18771_v59  ;;  %v2222_v39 = vrot.slane %v19238_v60, 5  ;;  %v22657_v59 = vrot.slane %v6587_v37, 4  ;;  %v6644_v37 = vrot.slane %v6642_v27, 4  ;;  %v6680_v60 = vshll.u32 %v15670_v40, 16  ;;  %v22779_v40 = vld [vmem:[%s25365_s0 + $0x58] sm:$0xf] }
 0x254   :  { %v6668_v27 = vrot.slane %v6666_v3, 4 }
 0x256   :  { %17108 = vmatmul.mubr.bf16.gmra.mrb[44].mxu1 %v15121_v7  ;;  %v6620_v7 = vrot.slane %v6618_v28, 4 }
 0x257   :  { %17111 = vmatprep.mubr.bf16.mxu1 %v15122_v38  ;;  %v6624_v38 = vshll.u32 %v15663_v14, 16 }
 0x258   :  { %v6621_v53 = vor.u32 %v6620_v7, %v22659_v54 }
 0x259   :  { %v22686_v56 = vrot.slane %v6624_v38, 5 }
 0x25a   :  { %17492 = vmatmul.mubr.bf16.gmra.mrb[28].mxu0 %v18772_v57  ;;  %v22663_v57 = vrot.slane %v6600_v30, 5  ;;  %v22705_v21 = vrot.slane %v6621_v53, 4  ;;  %v2233_v30 = vrot.slane %v22583_v26, 5  ;;  %v1983_v26 = vld [vmem:[%s25365_s0 + $0x150] sm:$0xe] }
 0x25b   :  { %17495 = vmatprep.mubr.bf16.mxu0 %v18775_v11  ;;  %v22665_v11 = vrot.slane %v6611_v41, 4  ;;  %v2227_v41 = vsel %vm19458_vm2, %v15162_v63, %v2226_v19  ;;  %v2243_v19 = vrot.slane %v19241_v20, 5  ;;  %v6714_v20 = vshrl.u32 %v22779_v40, 16 }
 0x25c   :  { %v2235_v44 = vrot.slane %v2233_v30, 4 }
 0x25e   :  { %17112 = vmatmul.mubr.bf16.gmra.mrb[48].mxu1 %v15123_v8  ;;  %v6629_v8 = vshrl.u32 %v15664_v15, 16 }
 0x25f   :  { %17115 = vmatprep.mubr.bf16.mxu1 %v15124_v55  ;;  %v6632_v55 = vshll.u32 %v15664_v15, 16  ;;  %v2240_v15 = vrot.slane %v22592_v51, 5  ;;  %v19240_v51 = vld [vmem:[%s25365_s0 + $0x14c] sm:$0x1] }
 0x260   :  { %v6631_v25 = vrot.slane %v6629_v8, 4  ;;  %v2236_v8 = vrot.slane %v19240_v51, 5 }
 0x261   :  { %v6634_v4 = vrot.slane %v6632_v55, 5 }
 0x262   :  { %17496 = vmatmul.mubr.bf16.gmra.mrb[32].mxu0 %v18776_v29  ;;  %v15667_v29 = vld [vmem:[%s25365_s0 + $0x3c] sm:$0xf] }
 0x263   :  { %17499 = vmatprep.mubr.bf16.mxu0 %v18780_v24  ;;  %v2213_v24 = vsel %vm19458_vm2, %v15160_v16, %v2212_v23  ;;  %v6653_v46 = vshrl.u32 %v15667_v29, 16  ;;  %v6656_v31 = vshll.u32 %v15667_v29, 16  ;;  %v22707_v23 = vrot.slane %v6638_v22, 5  ;;  %v15669_v29 = vld [vmem:[%s25365_s0 + $0x44] sm:$0x1] }
 0x264   :  { %v15192_v6 = vcombine.low %v2213_v24, %v2216_v52  ;;  %v6635_v16 = vor.u32 %v6634_v4, %v6631_v25  ;;  %v15164_v24 = vrot.slane %v1983_v26, 9  ;;  %v2242_v52 = vrot.slane %v2240_v15, 4  ;;  %v1984_v25 = vld [vmem:[%s25365_s0 + $0x15c] sm:$0xe]  ;;  %v19243_v4 = vld [vmem:[%s25365_s0 + $0x16c] sm:$0xf] }
 0x265   :  { %v6655_v28 = vrot.slane %v6653_v46, 4  ;;  %v6658_v14 = vrot.slane %v6656_v31, 5  ;;  %v6645_v55 = vor.u32 %v6644_v37, %v22707_v23  ;;  %v22748_v22 = vrot.slane %v6662_v0, 5  ;;  %v19242_v31 = vld [vmem:[%s25365_s0 + $0x160] sm:$0xf]  ;;  %v18799_v26 = vld [vmem:[%s25365_s0 + $0x174] sm:$0xff]  }
 0x266   :  { %17116 = vmatmul.mubr.bf16.gmra.mrb[52].mxu1 %v15125_v9  ;;  %v15666_v9 = vld [vmem:[%s25365_s0 + $0x38] sm:$0x1]  ;;  %v22744_v53 = vrot.slane %v6635_v16, 4  ;;  %v6679_v46 = vrot.slane %v6677_v17, 4  ;;  %v6672_v48 = vshll.u32 %v15669_v29, 16  ;;  %v2247_v63 = vrot.slane %v19242_v31, 5 }
 0x267   :  { %17119 = vmatprep.mubr.bf16.mxu1 %v15126_v32  ;;  %v2221_v32 = vrot.slane %v2219_v35, 4  ;;  %v6648_v12 = vshll.u32 %v15666_v9, 16  ;;  %v18798_v35 = vld [vmem:[%s25365_s0 + $0x168] sm:$0xff]   ;;  %v2241_v36 = vsel %vm19458_vm2, %v15164_v24, %v2240_v15  ;;  %v2254_v18 = vrot.slane %v19243_v4, 5  ;;  %v19244_v0 = vld [vmem:[%s25365_s0 + $0x164] sm:$0x1] }
 0x268   :  { %v15671_v9 = vld [vmem:[%s25365_s0 + $0x4c] sm:$0xf]  ;;  %v6669_v37 = vor.u32 %v6668_v27, %v22748_v22  ;;  %v15165_v15 = vrot.slane %v1984_v25, 9  ;;  %v2249_v16 = vrot.slane %v2247_v63, 4  ;;  %v2250_v3 = vrot.slane %v19244_v0, 5  ;;  %v18802_v17 = vld [vmem:[%s25365_s0 + $0x180] sm:$0xff]  }
 0x269   :  { %v22746_v34 = vrot.slane %v6648_v12, 5  ;;  %v6686_v12 = vshll.u32 %v15671_v9, 16  ;;  %v22803_v51 = vrot.slane %v6672_v48, 5  ;;  %v15676_v27 = vld [vmem:[%s25365_s0 + $0x60] sm:$0xf]  ;;  %v6593_v4 = vsel %vm20245_vm5, %v22657_v59, %v22622_v49 }
 0x26a   :  { %17500 = vmatmul.mubr.bf16.gmra.mrb[36].mxu0 %v18781_v13  ;;  %v18790_v13 = vld [vmem:[%s25365_s0 + $0x144] sm:$0xff]   ;;  %v1987_v25 = vld [vmem:[%s25365_s0 + $0x180] sm:$0xe] }
 0x26b   :  { %17503 = vmatprep.mubr.bf16.mxu0 %v18784_v61  ;;  %v18793_v61 = vld [vmem:[%s25365_s0 + $0x150] sm:$0xff]   ;;  %v19247_v31 = vld [vmem:[%s25365_s0 + $0x184] sm:$0xf]  ;;  %v19249_v49 = vld [vmem:[%s25365_s0 + $0x188] sm:$0x1] }
 0x26c   :  { %v2271_v59 = vrot.slane %v19249_v49, 5 }
 0x26e   :  { %17120 = vmatmul.mubr.bf16.gmra.mrb[56].mxu1 %v15127_v43  ;;  %v2223_v43 = vsel %vm19458_vm2, %v2221_v32, %v2222_v39  ;;  %v15673_v32 = vld [vmem:[%s25365_s0 + $0x54] sm:$0xf] }
 0x26f   :  { %17123 = vmatprep.mubr.bf16.mxu1 %v15128_v45  ;;  %v2230_v45 = vsel %vm19458_vm2, %v2228_v1, %v2229_v47  ;;  %v15193_v39 = vcombine.low %v2220_v5, %v2223_v43  ;;  %v22763_v1 = vrot.slane %v6645_v55, 4  ;;  %v2244_v47 = vsel %vm19458_vm2, %v2242_v52, %v2243_v19  ;;  %v1985_v5 = vld [vmem:[%s25365_s0 + $0x168] sm:$0xe]  ;;  %v15675_v55 = vld [vmem:[%s25365_s0 + $0x5c] sm:$0x1] }
 0x270   :  { %v15194_v7 = vcombine.low %v2227_v41, %v2230_v45  ;;  %v15672_v45 = vld [vmem:[%s25365_s0 + $0x50] sm:$0x1]  ;;  %v6710_v52 = vshll.u32 %v22779_v40, 16 }
 0x271   :  { %v6696_v24 = vshll.u32 %v15672_v45, 16  ;;  %v6728_v45 = vshll.u32 %v15676_v27, 16  ;;  %v6651_v49 = vsel %vm20245_vm5, %v22763_v1, %v22746_v34 }
 0x272   :  { %17504 = vmatmul.mubr.bf16.gmra.mrb[40].mxu0 %v18785_v58  ;;  %v1982_v58 = vld [vmem:[%s25365_s0 + $0x144] sm:$0xe] }
 0x273   :  { %17507 = vmatprep.mubr.bf16.mxu0 %v18789_v50  ;;  %v18794_v50 = vld [vmem:[%s25365_s0 + $0x15c] sm:$0xff]   ;;  %v15163_v38 = vrot.slane %v1982_v58, 9  ;;  %v15196_v58 = vcombine.low %v2241_v36, %v2244_v47  ;;  %v15677_v47 = vld [vmem:[%s25365_s0 + $0x64] sm:$0xf] }
 0x276   :  { %17124 = vmatmul.mubr.bf16.gmra.mrb[60].mxu1 %v15129_v33  ;;  %v6659_v33 = vor.u32 %v6658_v14, %v6655_v28  ;;  %v6690_v28 = vshrl.u32 %v15671_v9, 16  ;;  %v6701_v14 = vshrl.u32 %v15673_v32, 16  ;;  %v2251_v9 = vsel %vm19458_vm2, %v2249_v16, %v2250_v3  ;;  %v18807_v16 = vld [vmem:[%s25365_s0 + $0x198] sm:$0xff]  }
 0x277   :  { %17187 = vmatprep.mubr.bf16.mxu1 %v15192_v6  ;;  %v6682_v6 = vrot.slane %v6680_v60, 5  ;;  %v6704_v60 = vshll.u32 %v15673_v32, 16  ;;  %v22863_v3 = vrot.slane %v6696_v24, 5 }
 0x278   :  { %v22784_v43 = vrot.slane %v6659_v33, 4  ;;  %v22814_v19 = vrot.slane %v6701_v14, 4  ;;  %v2248_v33 = vsel %vm19458_vm2, %v15165_v15, %v2247_v63  ;;  %v2268_v63 = vrot.slane %v19247_v31, 5 }
 0x279   :  { %v22826_v48 = vrot.slane %v6704_v60, 5  ;;  %v6603_v60 = vsel %vm20245_vm5, %v22661_v42, %v22663_v57  ;;  %v15680_v42 = vld [vmem:[%s25365_s0 + $0x70] sm:$0xf] }
 0x27a   :  { %17508 = vmatmul.mubr.bf16.gmra.mrb[44].mxu0 %v18790_v13  ;;  %v2234_v13 = vsel %vm19458_vm2, %v15163_v38, %v2233_v30  ;;  %v6683_v30 = vor.u32 %v6682_v6, %v6679_v46  ;;  %v19246_v46 = vld [vmem:[%s25365_s0 + $0x178] sm:$0xf]  ;;  %v2270_v15 = vrot.slane %v2268_v63, 4 }
 0x27b   :  { %17511 = vmatprep.mubr.bf16.mxu0 %v18793_v61  ;;  %v2237_v61 = vsel %vm19458_vm2, %v2235_v44, %v2236_v8  ;;  %v22801_v44 = vrot.slane %v6669_v37, 4  ;;  %v22805_v8 = vrot.slane %v6686_v12, 5  ;;  %v2261_v6 = vrot.slane %v19246_v46, 5 }
 0x27c   :  { %v15195_v41 = vcombine.low %v2234_v13, %v2237_v61  ;;  %v22810_v29 = vrot.slane %v6683_v30, 4  ;;  %v1986_v61 = vld [vmem:[%s25365_s0 + $0x174] sm:$0xe]  ;;  %v6725_v37 = vshrl.u32 %v15676_v27, 16  ;;  %v15197_v12 = vcombine.low %v2248_v33, %v2251_v9  ;;  %v19248_v30 = vld [vmem:[%s25365_s0 + $0x17c] sm:$0x1] }
 0x27d   :  { %v15167_v40 = vrot.slane %v1986_v61, 9  ;;  %v2264_v14 = vrot.slane %v19248_v30, 5  ;;  %v6730_v27 = vrot.slane %v6728_v45, 5  ;;  %v15681_v33 = vld [vmem:[%s25365_s0 + $0x74] sm:$0x1]  ;;  %v2272_v46 = vsel %vm19458_vm2, %v2270_v15, %v2271_v59 }
 0x27e   :  { %17188 = vmatmul.mubr.bf16.vlgmr.msra.gmra.mrb[44].mxu1 %v15193_v39  ;;  %v15166_v39 = vrot.slane %v1985_v5, 9  ;;  %v2263_v5 = vrot.slane %v2261_v6, 4  ;;  %v6758_v30 = vshll.u32 %v15680_v42, 16  ;;  %v6762_v45 = vshrl.u32 %v15680_v42, 16 }
 0x27f   :  { %17191 = vmatprep.mubr.bf16.mxu1 %v15194_v7  ;;  %v19245_v7 = vld [vmem:[%s25365_s0 + $0x170] sm:$0x1]  ;;  %v2262_v57 = vsel %vm19458_vm2, %v15167_v40, %v2261_v6  ;;  %v1988_v6 = vld [vmem:[%s25365_s0 + $0x18c] sm:$0xe]  ;;  %v6641_v15 = vsel %vm20245_vm5, %v22744_v53, %v22707_v23 }
 0x280   :  { %v2257_v38 = vrot.slane %v19245_v7, 5  ;;  %v2255_v32 = vsel %vm19458_vm2, %v15166_v39, %v2254_v18  ;;  %v6707_v39 = vor.u32 %v22826_v48, %v22814_v19  ;;  %v6716_v7 = vrot.slane %v6714_v20, 4 }
 0x281   :  { %v2265_v24 = vsel %vm19458_vm2, %v2263_v5, %v2264_v14  ;;  %v6727_v19 = vrot.slane %v6725_v37, 4  ;;  %v15754_v48 = vcombine.low %v6593_v4, %v6603_v60  ;;  %v15169_v37 = vrot.slane %v1988_v6, 9 }
 0x282   :  { %17512 = vmatmul.mubr.bf16.gmra.mrb[48].mxu0 %v18794_v50  ;;  %v2256_v50 = vrot.slane %v2254_v18, 4  ;;  %v6720_v18 = vshll.u32 %v15675_v55, 16  ;;  %v15678_v55 = vld [vmem:[%s25365_s0 + $0x68] sm:$0x1]  ;;  %v6627_v14 = vsel %vm20245_vm5, %v22705_v21, %v22686_v56  ;;  %v15683_v56 = vld [vmem:[%s25365_s0 + $0x7c] sm:$0xf] }
 0x283   :  { %17515 = vmatprep.mubr.bf16.mxu0 %v18798_v35  ;;  %v6692_v35 = vrot.slane %v6690_v28, 4  ;;  %v6731_v40 = vor.u32 %v6730_v27, %v6727_v19  ;;  %v6744_v5 = vshll.u32 %v15678_v55, 16  ;;  %v22945_v1 = vrot.slane %v6758_v30, 5  ;;  %v15688_v19 = vld [vmem:[%s25365_s0 + $0x90] sm:$0xf] }
 0x284   :  { %v2258_v13 = vsel %vm19458_vm2, %v2256_v50, %v2257_v38  ;;  %v22871_v50 = vrot.slane %v6710_v52, 5  ;;  %v15679_v38 = vld [vmem:[%s25365_s0 + $0x6c] sm:$0xf]  ;;  %v19250_v52 = vld [vmem:[%s25365_s0 + $0x190] sm:$0xf]  ;;  %v6782_v42 = vshll.u32 %v15683_v56, 16 }
 0x285   :  { %v6693_v36 = vor.u32 %v6692_v35, %v22805_v8  ;;  %v15198_v28 = vcombine.low %v2255_v32, %v2258_v13  ;;  %v22876_v35 = vrot.slane %v6720_v18, 5  ;;  %v2275_v20 = vrot.slane %v19250_v52, 5 }
 0x286   :  { %17192 = vmatmul.mubr.bf16.gmra.mrb[48].mxu1 %v15195_v41  ;;  %v18803_v41 = vld [vmem:[%s25365_s0 + $0x18c] sm:$0xff]   ;;  %v6617_v32 = vsel %vm20245_vm5, %v22665_v11, %v22659_v54  ;;  %v6717_v31 = vor.u32 %v6716_v7, %v22871_v50  ;;  %v18808_v11 = vld [vmem:[%s25365_s0 + $0x1a4] sm:$0xff]   ;;  %v22941_v53 = vrot.slane %v6731_v40, 4  ;;  %v22943_v34 = vrot.slane %v6744_v5, 5 }
 0x287   :  { %17195 = vmatprep.mubr.bf16.mxu1 %v15196_v58  ;;  %v15168_v58 = vrot.slane %v1987_v25, 9  ;;  %v22861_v0 = vrot.slane %v6693_v36, 4  ;;  %v6752_v36 = vshll.u32 %v15679_v38, 16  ;;  %v15199_v25 = vcombine.low %v2262_v57, %v2265_v24  ;;  %v15686_v57 = vld [vmem:[%s25365_s0 + $0x88] sm:$0xf] }
 0x288   :  { %v2277_v4 = vrot.slane %v2275_v20, 4  ;;  %v22932_v59 = vrot.slane %v6717_v31, 4  ;;  %v15684_v24 = vld [vmem:[%s25365_s0 + $0x80] sm:$0x1]  ;;  %v6665_v31 = vsel %vm20245_vm5, %v22784_v43, %v22748_v22  ;;  %v6675_v22 = vsel %vm20245_vm5, %v22801_v44, %v22803_v51 }
 0x289   :  { %v2269_v9 = vsel %vm19458_vm2, %v15168_v58, %v2268_v63  ;;  %v6749_v63 = vshrl.u32 %v15679_v38, 16  ;;  %v6768_v58 = vshll.u32 %v15681_v33, 16  ;;  %v6764_v38 = vrot.slane %v6762_v45, 4 }
 0x28a   :  { %17516 = vmatmul.mubr.bf16.gmra.mrb[52].mxu0 %v18799_v26  ;;  %v6734_v26 = vshll.u32 %v15677_v47, 16  ;;  %v15200_v18 = vcombine.low %v2269_v9, %v2272_v46  ;;  %v15755_v33 = vcombine.low %v6617_v32, %v6627_v14  ;;  %v6821_v32 = vshrl.u32 %v15688_v19, 16 }
 0x28b   :  { %17519 = vmatprep.mubr.bf16.mxu0 %v18802_v17  ;;  %v6738_v17 = vshrl.u32 %v15677_v47, 16  ;;  %v15682_v47 = vld [vmem:[%s25365_s0 + $0x78] sm:$0xf]  ;;  %v22952_v55 = vrot.slane %v6768_v58, 5  ;;  %v6792_v5 = vshll.u32 %v15684_v24, 16  ;;  %v6689_v43 = vsel %vm20245_vm5, %v22810_v29, %v22805_v8 }
 0x28c   :  { %v22905_v13 = vrot.slane %v6734_v26, 5  ;;  %v6773_v21 = vshrl.u32 %v15682_v47, 16  ;;  %v6754_v26 = vrot.slane %v6752_v36, 5  ;;  %v6776_v60 = vshll.u32 %v15682_v47, 16  ;;  %v18816_v47 = vld [vmem:[#allocation6 + $0x208] sm:$0xff]  }
 0x28d   :  { %v6740_v61 = vrot.slane %v6738_v17, 4  ;;  %v2276_v17 = vsel %vm19458_vm2, %v15169_v37, %v2275_v20  ;;  %v6786_v20 = vshrl.u32 %v15683_v56, 16  ;;  %v6810_v36 = vshrl.u32 %v15686_v57, 16  ;;  %v15690_v8 = vld [vmem:[%s25365_s0 + $0x98] sm:$0x1] }
 0x28e   :  { %17196 = vmatmul.mubr.bf16.gmra.mrb[52].mxu1 %v15197_v12  ;;  %v19251_v12 = vld [vmem:[%s25365_s0 + $0x194] sm:$0x1]  ;;  %v6775_v52 = vrot.slane %v6773_v21, 4  ;;  %v6824_v37 = vshll.u32 %v15688_v19, 16  ;;  %v6699_v44 = vsel %vm20245_vm5, %v22861_v0, %v22863_v3  ;;  %v6823_v29 = vrot.slane %v6821_v32, 4 }
 0x28f   :  { %17199 = vmatprep.mubr.bf16.mxu1 %v15198_v28  ;;  %v2278_v54 = vrot.slane %v19251_v12, 5  ;;  %v22917_v28 = vrot.slane %v6707_v39, 4  ;;  %v15685_v39 = vld [vmem:[%s25365_s0 + $0x84] sm:$0xf]  ;;  %v6788_v12 = vrot.slane %v6786_v20, 4  ;;  %v6812_v58 = vrot.slane %v6810_v36, 4 }
 0x290   :  { %v6797_v46 = vshrl.u32 %v15685_v39, 16  ;;  %v6800_v6 = vshll.u32 %v15685_v39, 16  ;;  %v15692_v3 = vld [vmem:[%s25365_s0 + $0xa0] sm:$0xf]  ;;  %v15758_v39 = vcombine.low %v6689_v43, %v6699_v44  ;;  %v6840_v20 = vshll.u32 %v15690_v8, 16 }
 0x291   :  { %v2279_v23 = vsel %vm19458_vm2, %v2277_v4, %v2278_v54  ;;  %v22971_v4 = vrot.slane %v6782_v42, 5  ;;  %v15693_v19 = vld [vmem:[%s25365_s0 + $0xa4] sm:$0x1]  ;;  %v6737_v36 = vsel %vm20245_vm5, %v22941_v53, %v22905_v13  ;;  %v15696_v43 = vld [vmem:[%s25365_s0 + $0xb0] sm:$0x1] }
 0x292   :  { %17520 = vmatmul.mubr.bf16.gmra.mrb[56].mxu0 %v18803_v41  ;;  %v6741_v41 = vor.u32 %v6740_v61, %v22905_v13  ;;  %v15201_v27 = vcombine.low %v2276_v17, %v2279_v23  ;;  %v15756_v61 = vcombine.low %v6641_v15, %v6651_v49  ;;  %v6799_v30 = vrot.slane %v6797_v46, 4  ;;  %v15691_v15 = vld [vmem:[%s25365_s0 + $0x9c] sm:$0xf] }
 0x293   :  { %17523 = vmatprep.mubr.bf16.mxu0 %v18807_v16  ;;  %v6751_v16 = vrot.slane %v6749_v63, 4  ;;  %v6806_v63 = vshll.u32 %v15686_v57, 16  ;;  %v6802_v14 = vrot.slane %v6800_v6, 5  ;;  %v6826_v49 = vrot.slane %v6824_v37, 5  ;;  %v18824_v6 = vld [vmem:[#allocation6 + $0x218] sm:$0xff]  }
 0x294   :  { %v22950_v7 = vrot.slane %v6741_v41, 4  ;;  %v15687_v41 = vld [vmem:[%s25365_s0 + $0x8c] sm:$0x1]  ;;  %v6789_v21 = vor.u32 %v6788_v12, %v22971_v4  ;;  %v23004_v17 = vrot.slane %v6792_v5, 5  ;;  %v6848_v42 = vshll.u32 %v15691_v15, 16 }
 0x295   :  { %v6755_v9 = vor.u32 %v6754_v26, %v6751_v16  ;;  %v22986_v45 = vrot.slane %v6806_v63, 5  ;;  %v18821_v16 = vld [vmem:[#allocation6 + $0x210] sm:$0xff]   ;;  %v6803_v23 = vor.u32 %v6802_v14, %v6799_v30  ;;  %v6816_v0 = vshll.u32 %v15687_v41, 16  ;;  %v15698_v12 = vld [vmem:[%s25365_s0 + $0xb8] sm:$0xf] }
 0x296   :  { %17200 = vmatmul.mubr.bf16.gmra.mrb[56].mxu1 %v15199_v25  ;;  %v6765_v25 = vor.u32 %v6764_v38, %v22945_v1  ;;  %v6845_v38 = vshrl.u32 %v15691_v15, 16  ;;  %v6858_v46 = vshrl.u32 %v15692_v3, 16  ;;  %v23048_v53 = vrot.slane %v6840_v20, 5  ;;  %v15700_v30 = vld [vmem:[%s25365_s0 + $0xc0] sm:$0xf] }
 0x297   :  { %17203 = vmatprep.mubr.bf16.mxu1 %v15200_v18  ;;  %v6778_v18 = vrot.slane %v6776_v60, 5  ;;  %v22973_v40 = vrot.slane %v6755_v9, 4  ;;  %v15757_v60 = vcombine.low %v6665_v31, %v6675_v22  ;;  %v6813_v24 = vor.u32 %v6812_v58, %v22986_v45 }
 0x298   :  { %v22999_v56 = vrot.slane %v6765_v25, 4  ;;  %v6854_v9 = vshll.u32 %v15692_v3, 16  ;;  %v23026_v31 = vrot.slane %v6803_v23, 4  ;;  %v23028_v63 = vrot.slane %v6816_v0, 5 }
 0x299   :  { %v6779_v51 = vor.u32 %v6778_v18, %v6775_v52  ;;  %v6827_v52 = vor.u32 %v6826_v49, %v6823_v29  ;;  %v23044_v25 = vrot.slane %v6813_v24, 4  ;;  %v6864_v18 = vshll.u32 %v15693_v19, 16 }
 0x29a   :  { %17524 = vmatmul.mubr.bf16.gmra.mrb[60].mxu0 %v18808_v11  ;;  %v23055_v32 = vrot.slane %v6854_v9, 5  ;;  %v6860_v37 = vrot.slane %v6858_v46, 4  ;;  %v6761_v14 = vsel %vm20245_vm5, %v22973_v40, %v22945_v1  ;;  %v6771_v15 = vsel %vm20245_vm5, %v22999_v56, %v22952_v55  ;;  %v23081_v1 = vld [vmem:[%s25365_s0 + $0xbc] sm:$0x1]  ;;  %v15701_v40 = vld [vmem:[%s25365_s0 + $0xc4] sm:$0xf] }
 0x29b   :  { %17543 = vmatprep.mubr.bf16.mxu0 %v15754_v48  ;;  %v15689_v48 = vld [vmem:[%s25365_s0 + $0x94] sm:$0xf]  ;;  %v23009_v57 = vrot.slane %v6779_v51, 4  ;;  %v23046_v13 = vrot.slane %v6827_v52, 4  ;;  %v23090_v29 = vrot.slane %v6864_v18, 5  ;;  %v18826_v56 = vld [vmem:[#allocation6 + $0x228] sm:$0xff]   ;;  %v6819_v18 = vsel %vm20245_vm5, %v23044_v25, %v23028_v63 }
 0x29c   :  { %v6830_v54 = vshll.u32 %v15689_v48, 16  ;;  %v6834_v11 = vshrl.u32 %v15689_v48, 16  ;;  %v6713_v48 = vsel %vm20245_vm5, %v22917_v28, %v22871_v50  ;;  %v6747_v50 = vsel %vm20245_vm5, %v22950_v7, %v22943_v34  ;;  %v15697_v34 = vld [vmem:[%s25365_s0 + $0xb4] sm:$0xf]  ;;  %v18827_v9 = vld [vmem:[#allocation6 + $0x230] sm:$0xff]  }
 0x29d   :  { %v6847_v28 = vrot.slane %v6845_v38, 4  ;;  %v15760_v5 = vcombine.low %v6737_v36, %v6747_v50  ;;  %v6785_v44 = vsel %vm20245_vm5, %v23009_v57, %v22971_v4  ;;  %v6893_v4 = vshrl.u32 %v15697_v34, 16  ;;  %v15704_v36 = vld [vmem:[%s25365_s0 + $0xd0] sm:$0xf] }
 0x29e   :  { %17204 = vmatmul.mubr.bf16.gmra.mrb[60].mxu1 %v15201_v27  ;;  %v6836_v26 = vrot.slane %v6834_v11, 4  ;;  %v23015_v27 = vrot.slane %v6789_v21, 4  ;;  %v6896_v49 = vshll.u32 %v15697_v34, 16  ;;  %v6902_v21 = vshll.u32 %v15698_v12, 16 }
 0x29f   :  { %v6920_v23 = vshll.u32 %v15700_v30, 16  ;;  %v6888_v57 = vshll.u32 %v15696_v43, 16  ;;  %v6861_v24 = vor.u32 %v6860_v37, %v23055_v32  ;;  %v6895_v52 = vrot.slane %v6893_v4, 4 }
 0x2a0   :  { %v6795_v55 = vsel %vm20245_vm5, %v23015_v27, %v23004_v17  ;;  %v6898_v20 = vrot.slane %v6896_v49, 5  ;;  %v6912_v19 = vshll.u32 %v23081_v1, 16  ;;  %v15702_v27 = vld [vmem:[%s25365_s0 + $0xc8] sm:$0x1]  ;;  %v23104_v46 = vrot.slane %v6902_v21, 5 }
 0x2a1   :  { %v15761_v50 = vcombine.low %v6761_v14, %v6771_v15  ;;  %v23119_v37 = vrot.slane %v6861_v24, 4  ;;  %v6936_v14 = vshll.u32 %v15702_v27, 16  ;;  %v6950_v25 = vshll.u32 %v15704_v36, 16  ;;  %v15709_v24 = vld [vmem:[%s25365_s0 + $0xfc] sm:$0xf] }
 0x2a2   :  { %17544 = vmatmul.mubr.bf16.vlgmr.msra.gmra.mrb[0].mxu0 %v15755_v33  ;;  %v6954_v43 = vshrl.u32 %v15704_v36, 16 }
 0x2a3   :  { %17608 = vmatpush3.bf16.msra.mxu0 %v22499_v62  ;;  %17547 = vmatprep.mubr.bf16.mxu0 %v15756_v61  ;;  %v23002_v62 = vrot.slane %v6830_v54, 5  ;;  %v6723_v61 = vsel %vm20245_vm5, %v22932_v59, %v22876_v35  ;;  %v15694_v35 = vld [vmem:[%s25365_s0 + $0xa8] sm:$0xf]  ;;  %v15695_v59 = vld [vmem:[%s25365_s0 + $0xac] sm:$0xf]  ;;  %v18825_v54 = vld [vmem:[#allocation6 + $0x220] sm:$0xff]  }
 0x2a4   :  { %17609 = vmatprep.subr.bf16.mxu0 %v18816_v47  ;;  %v15759_v11 = vcombine.low %v6713_v48, %v6723_v61  ;;  %v6869_v41 = vshrl.u32 %v15694_v35, 16  ;;  %v6872_v58 = vshll.u32 %v15694_v35, 16  ;;  %v6878_v51 = vshll.u32 %v15695_v59, 16 }
 0x2a5   :  { %v6837_v33 = vor.u32 %v6836_v26, %v23002_v62  ;;  %v6882_v8 = vshrl.u32 %v15695_v59, 16  ;;  %v6917_v26 = vshrl.u32 %v15700_v30, 16  ;;  %v6922_v61 = vrot.slane %v6920_v23, 5  ;;  %v15705_v23 = vld [vmem:[%s25365_s0 + $0xd4] sm:$0x1] }
 0x2a6   :  { %v6871_v3 = vrot.slane %v6869_v41, 4  ;;  %v6874_v38 = vrot.slane %v6872_v58, 5  ;;  %v15762_v35 = vcombine.low %v6785_v44, %v6795_v55  ;;  %v6809_v59 = vsel %vm20245_vm5, %v23026_v31, %v22986_v45  ;;  %v15706_v41 = vld [vmem:[%s25365_s0 + $0xf0] sm:$0xf] }
 0x2a7   :  { %17610 = vmatpush3.bf16.msra.mxu0 %v18816_v47  ;;  %v6850_v47 = vrot.slane %v6848_v42, 5  ;;  %v23053_v7 = vrot.slane %v6837_v33, 4  ;;  %v23094_v42 = vrot.slane %v6878_v51, 5  ;;  %v6884_v17 = vrot.slane %v6882_v8, 4  ;;  %v15703_v33 = vld [vmem:[%s25365_s0 + $0xcc] sm:$0xf] }
 0x2a8   :  { %17611 = vmatprep.subr.bf16.mxu0 %v18821_v16  ;;  %v6919_v48 = vrot.slane %v6917_v26, 4  ;;  %v6875_v34 = vor.u32 %v6874_v38, %v6871_v3  ;;  %v6941_v45 = vshrl.u32 %v15703_v33, 16  ;;  %v6944_v31 = vshll.u32 %v15703_v33, 16  ;;  %v15707_v51 = vld [vmem:[%s25365_s0 + $0xf4] sm:$0xf] }
 0x2a9   :  { %v6851_v22 = vor.u32 %v6850_v47, %v6847_v28  ;;  %v15763_v58 = vcombine.low %v6809_v59, %v6819_v18  ;;  %v6914_v44 = vrot.slane %v6912_v19, 5  ;;  %v6833_v8 = vsel %vm20245_vm5, %v23046_v13, %v23002_v62  ;;  %v15712_v18 = vld [vmem:[%s25365_s0 + $0x108] sm:$0xf] }
 0x2aa   :  { %17548 = vmatmul.mubr.bf16.gmra.mrb[4].mxu0 %v15757_v60  ;;  %v6926_v60 = vshll.u32 %v15701_v40, 16  ;;  %v6876_v15 = vrot.slane %v6875_v34, 4  ;;  %v6843_v1 = vsel %vm20245_vm5, %v23053_v7, %v23048_v53  ;;  %v6938_v49 = vrot.slane %v6936_v14, 5 }
 0x2ab   :  { %17551 = vmatprep.mubr.bf16.mxu0 %v15758_v39  ;;  %17612 = vmatpush3.bf16.msra.mxu0 %v18821_v16  ;;  %v6906_v16 = vshrl.u32 %v15698_v12, 16  ;;  %v23092_v0 = vrot.slane %v6851_v22, 4  ;;  %v6930_v39 = vshrl.u32 %v15701_v40, 16  ;;  %v6885_v12 = vor.u32 %v6884_v17, %v23094_v42 }
 0x2ac   :  { %17613 = vmatprep.subr.bf16.mxu0 %v18824_v6  ;;  %v23109_v28 = vrot.slane %v6926_v60, 5  ;;  %v6923_v22 = vor.u32 %v6922_v61, %v6919_v48  ;;  %v6946_v21 = vrot.slane %v6944_v31, 5  ;;  %v23143_v3 = vrot.slane %v6950_v25, 5 }
 0x2ad   :  { %v6932_v47 = vrot.slane %v6930_v39, 4  ;;  %v6886_v40 = vrot.slane %v6885_v12, 4  ;;  %v6956_v62 = vrot.slane %v6954_v43, 4  ;;  %v15764_v13 = vcombine.low %v6833_v8, %v6843_v1  ;;  %v15711_v43 = vld [vmem:[%s25365_s0 + $0x104] sm:$0x1] }
 0x2ae   :  { %v6857_v53 = vsel %vm20245_vm5, %v23092_v0, %v23055_v32  ;;  %v6965_v7 = vshrl.u32 %v15706_v41, 16  ;;  %v6968_v60 = vshll.u32 %v15706_v41, 16  ;;  %v6867_v39 = vsel %vm20245_vm5, %v23119_v37, %v23090_v29 }
 0x2af   :  { %17614 = vmatpush3.bf16.msra.mxu0 %v18824_v6  ;;  %v6908_v6 = vrot.slane %v6906_v16, 4  ;;  %v6933_v63 = vor.u32 %v6932_v47, %v23109_v28  ;;  %v6924_v16 = vrot.slane %v6923_v22, 4  ;;  %v6881_v38 = vsel %vm20245_vm5, %v6876_v15, %v23094_v42  ;;  %v15710_v42 = vld [vmem:[%s25365_s0 + $0x100] sm:$0xf]  ;;  %v15716_v22 = vld [vmem:[%s25365_s0 + $0x118] sm:$0xf] }
 0x2b0   :  { %17615 = vmatprep.subr.bf16.mxu0 %v18825_v54  ;;  %v6974_v17 = vshll.u32 %v15707_v51, 16  ;;  %v6957_v33 = vor.u32 %v6956_v62, %v23143_v3  ;;  %v6992_v48 = vshll.u32 %v15709_v24, 16  ;;  %v7002_v47 = vshrl.u32 %v15710_v42, 16 }
 0x2b1   :  { %v6909_v30 = vor.u32 %v6908_v6, %v23104_v46  ;;  %v6934_v26 = vrot.slane %v6933_v63, 4  ;;  %v6989_v6 = vshrl.u32 %v15709_v24, 16  ;;  %v7013_v15 = vshrl.u32 %v15712_v18, 16 }
 0x2b2   :  { %17552 = vmatmul.mubr.bf16.gmra.mrb[8].mxu0 %v15759_v11  ;;  %v6899_v11 = vor.u32 %v6898_v20, %v6895_v52  ;;  %v6960_v52 = vshll.u32 %v15705_v23, 16  ;;  %v6929_v20 = vsel %vm20245_vm5, %v6924_v16, %v23109_v28  ;;  %v23176_v61 = vrot.slane %v6974_v17, 5  ;;  %v15708_v28 = vld [vmem:[%s25365_s0 + $0xf8] sm:$0x1]  ;;  %v23220_v17 = vld [vmem:[%s25365_s0 + $0x124] sm:$0xf] }
 0x2b3   :  { %17555 = vmatprep.mubr.bf16.mxu0 %v15760_v5  ;;  %17616 = vmatpush3.bf16.msra.mxu0 %v18825_v54  ;;  %v23122_v54 = vrot.slane %v6888_v57, 5  ;;  %v18828_v5 = vld [vmem:[#allocation6 + $0x238] sm:$0xff]   ;;  %v6910_v4 = vrot.slane %v6909_v30, 4  ;;  %v6978_v57 = vshrl.u32 %v15707_v51, 16  ;;  %v6939_v19 = vsel %vm20245_vm5, %v6934_v26, %v6938_v49 }
 0x2b4   :  { %17617 = vmatprep.subr.bf16.mxu0 %v18826_v56  ;;  %v6900_v55 = vrot.slane %v6899_v11, 4  ;;  %v23184_v37 = vcombine.low %v6929_v20, %v6939_v19  ;;  %v15713_v11 = vld [vmem:[%s25365_s0 + $0x10c] sm:$0xf]  ;;  %v6958_v30 = vrot.slane %v6957_v33, 4  ;;  %v6994_v31 = vrot.slane %v6992_v48, 5 }
 0x2b5   :  { %v6891_v32 = vsel %vm20245_vm5, %v6886_v40, %v23122_v54  ;;  %v6915_v29 = vsel %vm20245_vm5, %v6910_v4, %v6914_v44  ;;  %v6980_v36 = vrot.slane %v6978_v57, 4  ;;  %v6962_v54 = vrot.slane %v6960_v52, 5  ;;  %v15717_v57 = vld [vmem:[%s25365_s0 + $0x11c] sm:$0x1] }
 0x2b6   :  { %v6905_v0 = vsel %vm20245_vm5, %v6900_v55, %v23104_v46  ;;  %v6970_v46 = vrot.slane %v6968_v60, 5  ;;  %v15766_v59 = vcombine.low %v6881_v38, %v6891_v32  ;;  %v6984_v25 = vshll.u32 %v15708_v28, 16 }
 0x2b7   :  { %17618 = vmatpush3.bf16.msra.mxu0 %v18826_v56  ;;  %v6943_v56 = vrot.slane %v6941_v45, 4  ;;  %v15767_v34 = vcombine.low %v6905_v0, %v6915_v29  ;;  %v6991_v45 = vrot.slane %v6989_v6, 4  ;;  %v6981_v63 = vor.u32 %v6980_v36, %v23176_v61  ;;  %v15721_v6 = vld [vmem:[%s25365_s0 + $0x12c] sm:$0xf] }
 0x2b8   :  { %17619 = vmatprep.subr.bf16.mxu0 %v18827_v9  ;;  %v7016_v44 = vshll.u32 %v15712_v18, 16  ;;  %v7022_v51 = vshll.u32 %v15713_v11, 16  ;;  %v7026_v8 = vshrl.u32 %v15713_v11, 16  ;;  %v7046_v55 = vshll.u32 %v15716_v22, 16  ;;  %v23243_v18 = vld [vmem:[%s25365_s0 + $0x128] sm:$0x1] }
 0x2b9   :  { %v6947_v27 = vor.u32 %v6946_v21, %v6943_v56  ;;  %v7050_v4 = vshrl.u32 %v15716_v22, 16  ;;  %v6995_v21 = vor.u32 %v6994_v31, %v6991_v45  ;;  %v7008_v16 = vshll.u32 %v15711_v43, 16 }
 0x2ba   :  { %17556 = vmatmul.mubr.bf16.gmra.mrb[12].mxu0 %v15761_v50  ;;  %v6998_v50 = vshll.u32 %v15710_v42, 16  ;;  %v6963_v26 = vsel %vm20245_vm5, %v6958_v30, %v6962_v54  ;;  %v6982_v23 = vrot.slane %v6981_v63, 4  ;;  %v6986_v62 = vrot.slane %v6984_v25, 5  ;;  %v15724_v30 = vld [vmem:[%s25365_s0 + $0x138] sm:$0xf] }
 0x2bb   :  { %17559 = vmatprep.mubr.bf16.mxu0 %v15762_v35  ;;  %17620 = vmatpush3.bf16.msra.mxu0 %v18827_v9  ;;  %v6967_v9 = vrot.slane %v6965_v7, 4  ;;  %v15765_v35 = vcombine.low %v6857_v53, %v6867_v39  ;;  %v6948_v12 = vrot.slane %v6947_v27, 4  ;;  %v23210_v53 = vld [vmem:[%s25365_s0 + $0x110] sm:$0x1]  ;;  %v15718_v7 = vld [vmem:[%s25365_s0 + $0x120] sm:$0xf] }
 0x2bc   :  { %17621 = vmatprep.subr.bf16.mxu0 %v18828_v5  ;;  %v23199_v41 = vrot.slane %v6998_v50, 5  ;;  %v7018_v60 = vrot.slane %v7016_v44, 5  ;;  %v23215_v39 = vrot.slane %v7022_v51, 5  ;;  %v7028_v38 = vrot.slane %v7026_v8, 4 }
 0x2bd   :  { %v6971_v14 = vor.u32 %v6970_v46, %v6967_v9  ;;  %v6953_v49 = vsel %vm20245_vm5, %v6948_v12, %v23143_v3  ;;  %v7015_v3 = vrot.slane %v7013_v15, 4  ;;  %v23225_v0 = vrot.slane %v7046_v55, 5  ;;  %v23248_v12 = vld [vmem:[%s25365_s0 + $0x130] sm:$0xf]  ;;  %v23268_v15 = vld [vmem:[%s25365_s0 + $0x13c] sm:$0xf] }
 0x2be   :  { %v7052_v29 = vrot.slane %v7050_v4, 4  ;;  %v6996_v42 = vrot.slane %v6995_v21, 4  ;;  %v7010_v20 = vrot.slane %v7008_v16, 5  ;;  %v7061_v19 = vshrl.u32 %v15718_v7, 16 }
 0x2bf   :  { %17622 = vmatpush3.bf16.msra.mxu0 %v18828_v5  ;;  %v15715_v5 = vld [vmem:[%s25365_s0 + $0x114] sm:$0xf]  ;;  %v6972_v56 = vrot.slane %v6971_v14, 4  ;;  %v6987_v27 = vsel %vm20245_vm5, %v6982_v23, %v6986_v62  ;;  %v7064_v33 = vshll.u32 %v15718_v7, 16  ;;  %v7070_v9 = vshll.u32 %v23220_v17, 16 }
 0x2c0   :  { %v7037_v1 = vshrl.u32 %v15715_v5, 16  ;;  %v7040_v40 = vshll.u32 %v15715_v5, 16  ;;  %v7074_v46 = vshrl.u32 %v23220_v17, 16  ;;  %v7019_v36 = vor.u32 %v7018_v60, %v7015_v3  ;;  %v23284_v3 = vld [vmem:[%s25365_s0 + $0x134] sm:$0x1] }
 0x2c1   :  { %v6977_v52 = vsel %vm20245_vm5, %v6972_v56, %v23176_v61  ;;  %v7032_v50 = vshll.u32 %v23210_v53, 16  ;;  %v7056_v61 = vshll.u32 %v15717_v57, 16  ;;  %v7053_v28 = vor.u32 %v7052_v29, %v23225_v0  ;;  %v15727_v29 = vld [vmem:[%s25365_s0 + $0x144] sm:$0xf] }
 0x2c2   :  { %17560 = vmatmul.mubr.bf16.gmra.mrb[16].mxu0 %v15763_v58  ;;  %v7004_v58 = vrot.slane %v7002_v47, 4  ;;  %v7039_v24 = vrot.slane %v7037_v1, 4  ;;  %v7042_v32 = vrot.slane %v7040_v40, 5  ;;  %v15769_v47 = vcombine.low %v6953_v49, %v6963_v26 }
 0x2c3   :  { %17563 = vmatprep.mubr.bf16.mxu0 %v15764_v13  ;;  %v15770_v54 = vcombine.low %v6977_v52, %v6987_v27  ;;  %v7063_v11 = vrot.slane %v7061_v19, 4  ;;  %v7085_v5 = vshrl.u32 %v15721_v6, 16  ;;  %v7066_v45 = vrot.slane %v7064_v33, 5  ;;  %v23303_v52 = vld [vmem:[%s25365_s0 + $0x148] sm:$0xf] }
 0x2c4   :  { %v7005_v13 = vor.u32 %v7004_v58, %v23199_v41  ;;  %v23259_v31 = vrot.slane %v7070_v9, 5  ;;  %v7076_v22 = vrot.slane %v7074_v46, 4  ;;  %v7088_v63 = vshll.u32 %v15721_v6, 16 }
 0x2c5   :  { %v7020_v43 = vrot.slane %v7019_v36, 4  ;;  %v7058_v58 = vrot.slane %v7056_v61, 5  ;;  %v7054_v1 = vrot.slane %v7053_v28, 4  ;;  %v7080_v40 = vshll.u32 %v23243_v18, 16 }
 0x2c6   :  { %v7006_v48 = vrot.slane %v7005_v13, 4  ;;  %v7094_v4 = vshll.u32 %v23248_v12, 16  ;;  %v7098_v49 = vshrl.u32 %v23248_v12, 16  ;;  %v7109_v56 = vshrl.u32 %v15724_v30, 16 }
 0x2c7   :  { %v7112_v21 = vshll.u32 %v15724_v30, 16  ;;  %v7067_v16 = vor.u32 %v7066_v45, %v7063_v11  ;;  %v7077_v26 = vor.u32 %v7076_v22, %v23259_v31  ;;  %v7087_v23 = vrot.slane %v7085_v5, 4 }
 0x2c8   :  { %v7090_v62 = vrot.slane %v7088_v63, 5  ;;  %v7025_v7 = vsel %vm20245_vm5, %v7020_v43, %v23215_v39  ;;  %v7118_v60 = vshll.u32 %v23268_v15, 16  ;;  %v7111_v19 = vrot.slane %v7109_v56, 4  ;;  %v23332_v63 = vld [vmem:[%s25365_s0 + $0x154] sm:$0xf] }
 0x2c9   :  { %v7068_v33 = vrot.slane %v7067_v16, 4  ;;  %v7078_v9 = vrot.slane %v7077_v26, 4  ;;  %v7104_v6 = vshll.u32 %v23284_v3, 16  ;;  %v7142_v11 = vshll.u32 %v23303_v52, 16 }
 0x2ca   :  { %17564 = vmatmul.mubr.bf16.gmra.mrb[20].mxu0 %v15765_v35  ;;  %v7029_v35 = vor.u32 %v7028_v38, %v23215_v39  ;;  %v7122_v38 = vshrl.u32 %v23268_v15, 16  ;;  %v7059_v39 = vsel %vm20245_vm5, %v7054_v1, %v7058_v58  ;;  %v7091_v46 = vor.u32 %v7090_v62, %v7087_v23  ;;  %v15733_v1 = vld [vmem:[%s25365_s0 + $0x15c] sm:$0xf] }
 0x2cb   :  { %17567 = vmatprep.mubr.bf16.mxu0 %v15766_v59  ;;  %v7043_v59 = vor.u32 %v7042_v32, %v7039_v24  ;;  %v23295_v32 = vrot.slane %v7080_v40, 5  ;;  %v7146_v5 = vshrl.u32 %v23303_v52, 16  ;;  %v23359_v16 = vrot.slane %v7142_v11, 5 }
 0x2cc   :  { %v7030_v51 = vrot.slane %v7029_v35, 4  ;;  %v7124_v61 = vrot.slane %v7122_v38, 4  ;;  %v7136_v35 = vshll.u32 %v15727_v29, 16  ;;  %v7166_v23 = vshll.u32 %v23332_v63, 16 }
 0x2cd   :  { %v7044_v8 = vrot.slane %v7043_v59, 4  ;;  %v7083_v58 = vsel %vm20245_vm5, %v7078_v9, %v23295_v32  ;;  %v7148_v26 = vrot.slane %v7146_v5, 4  ;;  %v7170_v62 = vshrl.u32 %v23332_v63, 16 }
 0x2ce   :  { %v7138_v56 = vrot.slane %v7136_v35, 5 }
 0x2cf   :  { %v7049_v24 = vsel %vm20245_vm5, %v7044_v8, %v23225_v0  ;;  %v7114_v0 = vrot.slane %v7112_v21, 5  ;;  %v23342_v8 = vrot.slane %v7104_v6, 5  ;;  %v23357_v21 = vld [vmem:[%s25365_s0 + $0x14c] sm:$0x1]  ;;  %v7172_v35 = vrot.slane %v7170_v62, 4 }
 0x2d0   :  { %v7152_v9 = vshll.u32 %v23357_v21, 16 }
 0x2d1   :  { %v23257_v14 = vpop.f32.mrb[0].mxu1  ;;  %v7115_v22 = vor.u32 %v7114_v0, %v7111_v19 }
 0x2d2   :  { %17568 = vmatmul.mubr.bf16.gmra.mrb[24].mxu0 %v15767_v34  ;;  %v7001_v34 = vsel %vm20245_vm5, %v6996_v42, %v23199_v41  ;;  %v23261_v25 = vpop.f32.mrb[1].mxu1  ;;  %v7034_v41 = vrot.slane %v7032_v50, 5  ;;  %v23305_v42 = vrot.slane %v7094_v4, 5  ;;  %v23315_v50 = vrot.slane %v7118_v60, 5 }
 0x2d3   :  { %17571 = vmatprep.mubr.bf16.mxu0 %v23184_v37  ;;  %v7011_v37 = vsel %vm20245_vm5, %v7006_v48, %v7010_v20  ;;  %v23270_v44 = vpop.f32.mrb[2].mxu1  ;;  %v7100_v20 = vrot.slane %v7098_v49, 4  ;;  %v15730_v48 = vld [vmem:[%s25365_s0 + $0x150] sm:$0xf]  ;;  %v7116_v60 = vrot.slane %v7115_v22, 4 }
 0x2d4   :  { %v23273_v55 = vpop.f32.mrb[3].mxu1  ;;  %v15771_v13 = vcombine.low %v7001_v34, %v7011_v37  ;;  %v7035_v57 = vsel %vm20245_vm5, %v7030_v51, %v7034_v41  ;;  %v23322_v34 = vld [vmem:[%s25365_s0 + $0x140] sm:$0x1]  ;;  %v7157_v37 = vshrl.u32 %v15730_v48, 16  ;;  %v7160_v43 = vshll.u32 %v15730_v48, 16 }
 0x2d5   :  { %v15772_v28 = vcombine.low %v7025_v7, %v7035_v57  ;;  %v7101_v45 = vor.u32 %v7100_v20, %v23305_v42  ;;  %v7073_v41 = vsel %vm20245_vm5, %v7068_v33, %v23259_v31  ;;  %v23340_v51 = vrot.slane %v7091_v46, 4  ;;  %v23352_v31 = vld [vmem:[%s25365_s0 + $0x160] sm:$0xf] }
 0x2d6   :  { %v7125_v40 = vor.u32 %v7124_v61, %v23315_v50  ;;  %v7128_v4 = vshll.u32 %v23322_v34, 16  ;;  %v7159_v38 = vrot.slane %v7157_v37, 4  ;;  %v7162_v57 = vrot.slane %v7160_v43, 5  ;;  %v23376_v61 = vld [vmem:[%s25365_s0 + $0x158] sm:$0x1] }
 0x2d7   :  { %v7102_v7 = vrot.slane %v7101_v45, 4  ;;  %v7190_v32 = vshll.u32 %v23352_v31, 16  ;;  %v15774_v6 = vcombine.low %v7073_v41, %v7083_v58  ;;  %v7149_v48 = vor.u32 %v7148_v26, %v23359_v16  ;;  %v15736_v37 = vld [vmem:[%s25365_s0 + $0x168] sm:$0xf] }
 0x2d8   :  { %v7126_v19 = vrot.slane %v7125_v40, 4  ;;  %v7130_v0 = vrot.slane %v7128_v4, 5  ;;  %v7097_v11 = vsel %vm20245_vm5, %v23340_v51, %v23305_v42  ;;  %v7121_v45 = vsel %vm20245_vm5, %v7116_v60, %v23315_v50  ;;  %v23400_v42 = vld [vmem:[%s25365_s0 + $0x16c] sm:$0xf]  ;;  %v23408_v4 = vld [vmem:[%s25365_s0 + $0x164] sm:$0x1] }
 0x2d9   :  { %v23307_v27 = vpop.f32.mrb[4].mxu1  ;;  %v7107_v5 = vsel %vm20245_vm5, %v7102_v7, %v23342_v8  ;;  %v7163_v22 = vor.u32 %v7162_v57, %v7159_v38  ;;  %v23395_v58 = vrot.slane %v7190_v32, 5  ;;  %v7154_v50 = vrot.slane %v7152_v9, 5  ;;  %v23428_v9 = vld [vmem:[%s25365_s0 + $0x170] sm:$0x1] }
 0x2da   :  { %17572 = vmatmul.mubr.bf16.gmra.mrb[28].mxu0 %v15769_v47  ;;  %v23313_v36 = vpop.f32.mrb[5].mxu1  ;;  %v7133_v47 = vshrl.u32 %v15727_v29, 16  ;;  %v7194_v29 = vshrl.u32 %v23352_v31, 16  ;;  %v7131_v51 = vsel %vm20245_vm5, %v7126_v19, %v7130_v0  ;;  %v7176_v40 = vshll.u32 %v23376_v61, 16 }
 0x2db   :  { %17575 = vmatprep.mubr.bf16.mxu0 %v15770_v54  ;;  %v23317_v59 = vpop.f32.mrb[6].mxu1  ;;  %v15773_v54 = vcombine.low %v7049_v24, %v7059_v39  ;;  %v7184_v39 = vshll.u32 %v15733_v1, 16  ;;  %v7205_v26 = vshrl.u32 %v15736_v37, 16  ;;  %v7214_v62 = vshll.u32 %v23400_v42, 16 }
 0x2dc   :  { %25614 = vst [vmem:[#allocation34_spill] sm:$0xff] %v23317_v59  ;;  %v23326_v30 = vpop.f32.mrb[7].mxu1  ;;  %v7135_v49 = vrot.slane %v7133_v47, 4  ;;  %v23378_v47 = vrot.slane %v7166_v23, 5  ;;  %v7208_v23 = vshll.u32 %v15736_v37, 16  ;;  %v7218_v7 = vshrl.u32 %v23400_v42, 16 }
 0x2dd   :  { %25615 = vst [vmem:[#allocation33_spill] sm:$0xff] %v23326_v30  ;;  %v7186_v41 = vrot.slane %v7184_v39, 5  ;;  %v7164_v38 = vrot.slane %v7163_v22, 4  ;;  %v7200_v39 = vshll.u32 %v23408_v4, 16  ;;  %v15776_v19 = vcombine.low %v7121_v45, %v7131_v51  ;;  %v23449_v51 = vld [vmem:[%s25365_s0 + $0x184] sm:$0xf] }
 0x2de   :  { %v7139_v33 = vor.u32 %v7138_v56, %v7135_v49  ;;  %v7150_v49 = vrot.slane %v7149_v48, 4  ;;  %v7173_v56 = vor.u32 %v7172_v35, %v23378_v47  ;;  %v7210_v45 = vrot.slane %v7208_v23, 5 }
 0x2df   :  { %v23444_v37 = vrot.slane %v7214_v62, 5 }
 0x2e0   :  { %v7140_v8 = vrot.slane %v7139_v33, 4  ;;  %v7178_v33 = vrot.slane %v7176_v40, 5  ;;  %v7155_v35 = vsel %vm20245_vm5, %v7150_v49, %v7154_v50  ;;  %v7202_v49 = vrot.slane %v7200_v39, 5 }
 0x2e1   :  { %v23363_v24 = vpop.f32.mrb[8].mxu1 }
 0x2e2   :  { %17576 = vmatmul.mubr.bf16.gmra.mrb[32].mxu0 %v15771_v13  ;;  %25616 = vst [vmem:[#allocation35_spill] sm:$0xff] %v23363_v24  ;;  %v7181_v13 = vshrl.u32 %v15733_v1, 16  ;;  %v23367_v20 = vpop.f32.mrb[9].mxu1  ;;  %v7196_v1 = vrot.slane %v7194_v29, 4  ;;  %v15775_v29 = vcombine.low %v7097_v11, %v7107_v5  ;;  %v7145_v0 = vsel %vm20245_vm5, %v7140_v8, %v23359_v16  ;;  %v15742_v16 = vld [vmem:[%s25365_s0 + $0x180] sm:$0xf] }
 0x2e3   :  { %17579 = vmatprep.mubr.bf16.mxu0 %v15772_v28  ;;  %25617 = vst [vmem:[#allocation30_spill] sm:$0xff] %v23367_v20  ;;  %v23370_v46 = vpop.f32.mrb[10].mxu1  ;;  %v7174_v11 = vrot.slane %v7173_v56, 4  ;;  %v7207_v5 = vrot.slane %v7205_v26, 4  ;;  %v7169_v8 = vsel %vm20245_vm5, %v7164_v38, %v23378_v47  ;;  %v7253_v23 = vshrl.u32 %v15742_v16, 16 }
 0x2e4   :  { %25618 = vst [vmem:[#allocation36_spill] sm:$0xff] %v23370_v46  ;;  %v23380_v28 = vpop.f32.mrb[11].mxu1  ;;  %v7183_v43 = vrot.slane %v7181_v13, 4  ;;  %v7197_v13 = vor.u32 %v7196_v1, %v23395_v58  ;;  %v7256_v62 = vshll.u32 %v15742_v16, 16 }
 0x2e5   :  { %25619 = vst [vmem:[#allocation37_spill] sm:$0xff] %v23380_v28  ;;  %v7211_v47 = vor.u32 %v7210_v45, %v7207_v5 }
 0x2e6   :  { %v7187_v57 = vor.u32 %v7186_v41, %v7183_v43  ;;  %v7220_v43 = vrot.slane %v7218_v7, 4  ;;  %v7198_v40 = vrot.slane %v7197_v13, 4  ;;  %v7179_v7 = vsel %vm20245_vm5, %v7174_v11, %v7178_v33  ;;  %v23472_v11 = vld [vmem:[%s25365_s0 + $0x17c] sm:$0x1] }
 0x2e7   :  { %v7258_v16 = vrot.slane %v7256_v62, 5 }
 0x2e8   :  { %v7188_v50 = vrot.slane %v7187_v57, 4  ;;  %v7221_v38 = vor.u32 %v7220_v43, %v23444_v37  ;;  %v7203_v33 = vsel %vm20245_vm5, %v7198_v40, %v7202_v49  ;;  %v15778_v43 = vcombine.low %v7169_v8, %v7179_v7  ;;  %v23496_v8 = vld [vmem:[%s25365_s0 + $0x190] sm:$0xf] }
 0x2e9   :  { %v23413_v60 = vpop.f32.mrb[12].mxu1 }
 0x2ea   :  { %17580 = vmatmul.mubr.bf16.gmra.mrb[36].mxu0 %v15773_v54  ;;  %25620 = vst [vmem:[#allocation38_spill] sm:$0xff] %v23413_v60  ;;  %v15739_v54 = vld [vmem:[%s25365_s0 + $0x174] sm:$0xf]  ;;  %v23420_v32 = vpop.f32.mrb[13].mxu1 }
 0x2eb   :  { %17583 = vmatprep.mubr.bf16.mxu0 %v15774_v6  ;;  %25621 = vst [vmem:[#allocation31_spill] sm:$0xff] %v23420_v32  ;;  %v23433_v6 = vld [vmem:[%s25365_s0 + $0x178] sm:$0xf]  ;;  %v23435_v48 = vpop.f32.mrb[14].mxu1  ;;  %v7229_v41 = vshrl.u32 %v15739_v54, 16  ;;  %v7232_v1 = vshll.u32 %v15739_v54, 16  ;;  %v15777_v32 = vcombine.low %v7145_v0, %v7155_v35 }
 0x2ec   :  { %25622 = vst [vmem:[#allocation39_spill] sm:$0xff] %v23435_v48  ;;  %v23442_v22 = vpop.f32.mrb[15].mxu1  ;;  %v7238_v56 = vshll.u32 %v23433_v6, 16  ;;  %v7242_v26 = vshrl.u32 %v23433_v6, 16  ;;  %v7224_v54 = vshll.u32 %v23428_v9, 16  ;;  %v7266_v48 = vshrl.u32 %v23449_v51, 16 }
 0x2ed   :  { %25623 = vst [vmem:[#allocation40_spill] sm:$0xff] %v23442_v22  ;;  %v7262_v22 = vshll.u32 %v23449_v51, 16  ;;  %v7231_v57 = vrot.slane %v7229_v41, 4  ;;  %v7234_v13 = vrot.slane %v7232_v1, 5  ;;  %v7255_v35 = vrot.slane %v7253_v23, 4 }
 0x2ee   :  { %v23479_v45 = vrot.slane %v7238_v56, 5  ;;  %v7244_v0 = vrot.slane %v7242_v26, 4  ;;  %v7226_v41 = vrot.slane %v7224_v54, 5  ;;  %v23486_v1 = vld [vmem:[%s25365_s0 + $0x188] sm:$0x1]  ;;  %v7268_v40 = vrot.slane %v7266_v48, 4 }
 0x2ef   :  { %v7222_v56 = vrot.slane %v7221_v38, 4  ;;  %v7248_v26 = vshll.u32 %v23472_v11, 16  ;;  %v7259_v7 = vor.u32 %v7258_v16, %v7255_v35  ;;  %v15748_v48 = vld [vmem:[%s25365_s0 + $0x198] sm:$0xf] }
 0x2f0   :  { %v7245_v62 = vor.u32 %v7244_v0, %v23479_v45 }
 0x2f1   :  { %v23462_v39 = vpop.f32.mrb[16].mxu1  ;;  %v7227_v0 = vsel %vm20245_vm5, %v7222_v56, %v7226_v41  ;;  %v7250_v16 = vrot.slane %v7248_v26, 5 }
 0x2f2   :  { %17584 = vmatmul.mubr.bf16.gmra.mrb[40].mxu0 %v15775_v29  ;;  %25624 = vst [vmem:[#allocation41_spill] sm:$0xff] %v23462_v39  ;;  %v7193_v29 = vsel %vm20245_vm5, %v7188_v50, %v23395_v58  ;;  %v23477_v5 = vpop.f32.mrb[17].mxu1  ;;  %v23488_v50 = vrot.slane %v7262_v22, 5  ;;  %v7235_v39 = vor.u32 %v7234_v13, %v7231_v57  ;;  %v7272_v22 = vshll.u32 %v23486_v1, 16 }
 0x2f3   :  { %17587 = vmatprep.mubr.bf16.mxu0 %v15776_v19  ;;  %v15745_v19 = vld [vmem:[%s25365_s0 + $0x18c] sm:$0xf]  ;;  %25625 = vst [vmem:[#allocation42_spill] sm:$0xff] %v23477_v5  ;;  %v23481_v58 = vpop.f32.mrb[18].mxu1  ;;  %v7212_v5 = vrot.slane %v7211_v47, 4  ;;  %v15779_v23 = vcombine.low %v7193_v29, %v7203_v33  ;;  %v7286_v13 = vshll.u32 %v23496_v8, 16 }
 0x2f4   :  { %25626 = vst [vmem:[#allocation43_spill] sm:$0xff] %v23481_v58  ;;  %v23490_v49 = vpop.f32.mrb[19].mxu1  ;;  %v7277_v54 = vshrl.u32 %v15745_v19, 16  ;;  %v23506_v47 = vld [vmem:[%s25365_s0 + $0x19c] sm:$0xf]  ;;  %v7269_v38 = vor.u32 %v7268_v40, %v23488_v50  ;;  %v7280_v57 = vshll.u32 %v15745_v19, 16 }
 0x2f5   :  { %25627 = vst [vmem:[#allocation44_spill] sm:$0xff] %v23490_v49  ;;  %v7290_v29 = vshrl.u32 %v23496_v8, 16  ;;  %v7217_v33 = vsel %vm20245_vm5, %v7212_v5, %v23444_v37  ;;  %v7236_v35 = vrot.slane %v7235_v39, 4  ;;  %v7301_v19 = vshrl.u32 %v15748_v48, 16 }
 0x2f6   :  { %v7304_v40 = vshll.u32 %v15748_v48, 16  ;;  %v7314_v58 = vshrl.u32 %v23506_v47, 16  ;;  %v7246_v37 = vrot.slane %v7245_v62, 4  ;;  %v7260_v5 = vrot.slane %v7259_v7, 4  ;;  %v15751_v48 = vld [vmem:[%s25365_s0 + $0x1a4] sm:$0xf] }
 0x2f7   :  { %v7274_v41 = vrot.slane %v7272_v22, 5  ;;  %v7279_v39 = vrot.slane %v7277_v54, 4  ;;  %v7270_v26 = vrot.slane %v7269_v38, 4  ;;  %v7288_v28 = vrot.slane %v7286_v13, 5  ;;  %v23537_v7 = vld [vmem:[%s25365_s0 + $0x1a8] sm:$0xf] }
 0x2f8   :  { %v7292_v46 = vrot.slane %v7290_v29, 4  ;;  %v15780_v24 = vcombine.low %v7217_v33, %v7227_v0  ;;  %v7303_v30 = vrot.slane %v7301_v19, 4  ;;  %v7306_v59 = vrot.slane %v7304_v40, 5 }
 0x2f9   :  { %v23516_v49 = vpop.f32.mrb[20].mxu1  ;;  %v7316_v62 = vrot.slane %v7314_v58, 4  ;;  %v7241_v22 = vsel %vm20245_vm5, %v7236_v35, %v23479_v45  ;;  %v7251_v54 = vsel %vm20245_vm5, %v7246_v37, %v7250_v16  ;;  %v7265_v58 = vsel %vm20245_vm5, %v7260_v5, %v23488_v50 }
 0x2fa   :  { %17588 = vmatmul.mubr.bf16.gmra.mrb[44].mxu0 %v15777_v32  ;;  %25628 = vst [vmem:[#allocation45_spill] sm:$0xff] %v23516_v49  ;;  %v23521_v32 = vld [vmem:[%s25365_s0 + $0x194] sm:$0x1]  ;;  %v23525_v60 = vpop.f32.mrb[21].mxu1  ;;  %v7282_v49 = vrot.slane %v7280_v57, 5  ;;  %v7275_v13 = vsel %vm20245_vm5, %v7270_v26, %v7274_v41  ;;  %v7293_v45 = vor.u32 %v7292_v46, %v7288_v28  ;;  %v7325_v33 = vshrl.u32 %v15751_v48, 16 }
 0x2fb   :  { %17591 = vmatprep.mubr.bf16.mxu0 %v15778_v43  ;;  %v7310_v43 = vshll.u32 %v23506_v47, 16  ;;  %25629 = vst [vmem:[#allocation47_spill] sm:$0xff] %v23525_v60  ;;  %v23527_v56 = vpop.f32.mrb[22].mxu1  ;;  %v7296_v38 = vshll.u32 %v23521_v32, 16  ;;  %v23548_v57 = vld [vmem:[%s25365_s0 + $0x1a0] sm:$0x1]  ;;  %v7307_v40 = vor.u32 %v7306_v59, %v7303_v30  ;;  %v15781_v50 = vcombine.low %v7241_v22, %v7251_v54 }
 0x2fc   :  { %25630 = vst [vmem:[#allocation48_spill] sm:$0xff] %v23527_v56  ;;  %v23529_v20 = vpop.f32.mrb[23].mxu1  ;;  %v7283_v29 = vor.u32 %v7282_v49, %v7279_v39  ;;  %v7328_v0 = vshll.u32 %v15751_v48, 16  ;;  %v7334_v35 = vshll.u32 %v23537_v7, 16  ;;  %v7338_v16 = vshrl.u32 %v23537_v7, 16 }
 0x2fd   :  { %25631 = vst [vmem:[#allocation49_spill] sm:$0xff] %v23529_v20  ;;  %v7312_v60 = vrot.slane %v7310_v43, 5  ;;  %v7320_v43 = vshll.u32 %v23548_v57, 16  ;;  %v15782_v49 = vcombine.low %v7265_v58, %v7275_v13  ;;  %v7298_v41 = vrot.slane %v7296_v38, 5 }
 0x2fe   :  { %v7284_v46 = vrot.slane %v7283_v29, 4  ;;  %v7327_v26 = vrot.slane %v7325_v33, 4  ;;  %v7330_v48 = vrot.slane %v7328_v0, 5  ;;  %v7336_v20 = vrot.slane %v7334_v35, 5 }
 0x2ff   :  { %v7340_v56 = vrot.slane %v7338_v16, 4  ;;  %v7322_v30 = vrot.slane %v7320_v43, 5 }
 0x300   :  { %v7289_v22 = vsel %vm20245_vm5, %v7284_v46, %v7288_v28  ;;  %v7331_v38 = vor.u32 %v7330_v48, %v7327_v26  ;;  %v19252_v28 = vld [vmem:[%s25365_s0 + $0x1c] sm:$0xf] }
 0x301   :  { %v23557_v19 = vpop.f32.mrb[24].mxu1  ;;  %v7341_v58 = vor.u32 %v7340_v56, %v7336_v20  ;;  %v8024_v0 = vrot.slane %v19252_v28, 5  ;;  %v15794_v56 = vld [vmem:[%s25365_s0 + $0x18] sm:$0xe] }
 0x302   :  { %17592 = vmatmul.mubr.bf16.gmra.mrb[48].mxu0 %v15779_v23  ;;  %25632 = vst [vmem:[#allocation46_spill] sm:$0xff] %v23557_v19  ;;  %v7317_v23 = vor.u32 %v7316_v62, %v7312_v60  ;;  %v23560_v37 = vpop.f32.mrb[25].mxu1  ;;  %v7308_v19 = vrot.slane %v7307_v40, 4  ;;  %v23569_v62 = vld [vmem:[%s25365_s0 + $0x1ac] sm:$0x1] }
 0x303   :  { %17595 = vmatprep.mubr.bf16.mxu0 %v15780_v24  ;;  %v23562_v5 = vpop.f32.mrb[26].mxu1  ;;  %v7294_v24 = vrot.slane %v7293_v45, 4  ;;  %v7344_v13 = vshll.u32 %v23569_v62, 16  ;;  %v7342_v43 = vrot.slane %v7341_v58, 4  ;;  %v8026_v46 = vrot.slane %v8024_v0, 4 }
 0x304   :  { %v23564_v39 = vpop.f32.mrb[27].mxu1  ;;  %v7318_v59 = vrot.slane %v7317_v23, 4  ;;  %v7313_v45 = vsel %vm20245_vm5, %v7308_v19, %v7312_v60  ;;  %v7332_v19 = vrot.slane %v7331_v38, 4  ;;  %v19255_v58 = vld [vmem:[%s25365_s0 + $0x34] sm:$0xf] }
 0x305   :  { %v7299_v54 = vsel %vm20245_vm5, %v7294_v24, %v7298_v41  ;;  %v19253_v24 = vld [vmem:[%s25365_s0 + $0x20] sm:$0x1] }
 0x306   :  { %v7323_v33 = vsel %vm20245_vm5, %v7318_v59, %v7322_v30  ;;  %v15783_v40 = vcombine.low %v7289_v22, %v7299_v54  ;;  %v8027_v41 = vrot.slane %v19253_v24, 5  ;;  %v7337_v26 = vsel %vm20245_vm5, %v7332_v19, %v7336_v20  ;;  %v19254_v59 = vld [vmem:[%s25365_s0 + $0x28] sm:$0xf]  ;;  %v15795_v20 = vld [vmem:[%s25365_s0 + $0x24] sm:$0xe] }
 0x307   :  { %v15784_v60 = vcombine.low %v7313_v45, %v7323_v33  ;;  %v8031_v30 = vrot.slane %v19254_v59, 5  ;;  %v15796_v33 = vld [vmem:[%s25365_s0 + $0x30] sm:$0xe]  ;;  %v19257_v24 = vld [vmem:[%s25365_s0 + $0x38] sm:$0x1] }
 0x308   :  { %v8028_v38 = vsel %vm19458_vm2, %v8026_v46, %v8027_v41  ;;  %v8041_v41 = vrot.slane %v19257_v24, 5  ;;  %v19258_v59 = vld [vmem:[%s25365_s0 + $0x40] sm:$0xf]  ;;  %v19260_v24 = vld [vmem:[%s25365_s0 + $0x44] sm:$0x1] }
 0x309   :  { %v23576_v29 = vpop.f32.mrb[28].mxu1  ;;  %v8033_v19 = vrot.slane %v8031_v30, 4 }
 0x30a   :  { %17596 = vmatmul.mubr.bf16.gmra.mrb[52].mxu0 %v15781_v50  ;;  %v23585_v35 = vpop.f32.mrb[29].mxu1  ;;  %v7346_v50 = vrot.slane %v7344_v13, 5  ;;  %v8038_v13 = vrot.slane %v19255_v58, 5 }
 0x30b   :  { %17599 = vmatprep.mubr.bf16.mxu0 %v15782_v49  ;;  %v23590_v16 = vpop.f32.mrb[30].mxu1  ;;  %v15826_v49 = vrot.slane %v15794_v56, 9 }
 0x30c   :  { %v23592_v23 = vpop.f32.mrb[31].mxu1  ;;  %v7347_v48 = vsel %vm20245_vm5, %v7342_v43, %v7346_v50  ;;  %v19256_v43 = vld [vmem:[%s25365_s0 + $0x2c] sm:$0x1]  ;;  %v8040_v46 = vrot.slane %v8038_v13, 4 }
 0x30d   :  { %v8025_v54 = vsel %vm19458_vm2, %v15826_v49, %v8024_v0  ;;  %v15785_v0 = vcombine.low %v7337_v26, %v7347_v48  ;;  %v8034_v50 = vrot.slane %v19256_v43, 5  ;;  %v15828_v49 = vrot.slane %v15796_v33, 9  ;;  %v19259_v33 = vld [vmem:[%s25365_s0 + $0x4c] sm:$0xf] }
 0x30e   :  { %v8042_v58 = vsel %vm19458_vm2, %v8040_v46, %v8041_v41  ;;  %v8048_v41 = vrot.slane %v19260_v24, 5 }
 0x30f   :  { %v8035_v48 = vsel %vm19458_vm2, %v8033_v19, %v8034_v50 }
 0x311   :  { %v23604_v22 = vpop.f32.mrb[32].mxu1 }
 0x312   :  { %17600 = vmatmul.mubr.bf16.gmra.mrb[56].mxu0 %v15783_v40  ;;  %v23616_v45 = vpop.f32.mrb[33].mxu1  ;;  %v15858_v40 = vcombine.low %v8025_v54, %v8028_v38  ;;  %v8045_v54 = vrot.slane %v19258_v59, 5 }
 0x313   :  { %17603 = vmatprep.mubr.bf16.mxu0 %v15784_v60  ;;  %v23621_v28 = vpop.f32.mrb[34].mxu1  ;;  %v15827_v60 = vrot.slane %v15795_v20, 9  ;;  %v8039_v20 = vsel %vm19458_vm2, %v15828_v49, %v8038_v13 }
 0x314   :  { %v23623_v56 = vpop.f32.mrb[35].mxu1  ;;  %v15860_v50 = vcombine.low %v8039_v20, %v8042_v58  ;;  %v8047_v46 = vrot.slane %v8045_v54, 4  ;;  %v19262_v20 = vld [vmem:[%s25365_s0 + $0x58] sm:$0xf] }
 0x315   :  { %v8032_v26 = vsel %vm19458_vm2, %v15827_v60, %v8031_v30  ;;  %v15797_v30 = vld [vmem:[%s25365_s0 + $0x3c] sm:$0xe]  ;;  %v15798_v60 = vld [vmem:[%s25365_s0 + $0x48] sm:$0xe]  ;;  %v8059_v58 = vrot.slane %v19262_v20, 5 }
 0x316   :  { %v15859_v13 = vcombine.low %v8032_v26, %v8035_v48  ;;  %v15829_v49 = vrot.slane %v15797_v30, 9  ;;  %v15830_v59 = vrot.slane %v15798_v60, 9  ;;  %v8049_v48 = vsel %vm19458_vm2, %v8047_v46, %v8048_v41  ;;  %v15800_v46 = vld [vmem:[%s25365_s0 + $0x60] sm:$0xe]  ;;  %v19264_v20 = vld [vmem:[%s25365_s0 + $0x5c] sm:$0x1] }
 0x318   :  { %v8046_v26 = vsel %vm19458_vm2, %v15829_v49, %v8045_v54  ;;  %v15799_v54 = vld [vmem:[%s25365_s0 + $0x54] sm:$0xe] }
 0x319   :  { %v23638_v38 = vpop.f32.mrb[36].mxu1 }
 0x31a   :  { %17604 = vmatmul.mubr.bf16.gmra.mrb[60].mxu0 %v15785_v0  ;;  %25633 = vst [vmem:[#allocation52_spill] sm:$0xff] %v23638_v38  ;;  %v8052_v0 = vrot.slane %v19259_v33, 5 }
 0x31b   :  { %17623 = vmatprep.mubr.bf16.mxu0 %v15858_v40  ;;  %v23650_v40 = vpop.f32.mrb[37].mxu1 }
 0x31c   :  { %25634 = vst [vmem:[#allocation50_spill] sm:$0xff] %v23650_v40  ;;  %v23655_v19 = vpop.f32.mrb[38].mxu1  ;;  %v8054_v33 = vrot.slane %v8052_v0, 4  ;;  %v19261_v40 = vld [vmem:[%s25365_s0 + $0x50] sm:$0x1]  ;;  %v8053_v60 = vsel %vm19458_vm2, %v15830_v59, %v8052_v0  ;;  %v15861_v0 = vcombine.low %v8046_v26, %v8049_v48  ;;  %v15831_v59 = vrot.slane %v15799_v54, 9 }
 0x31d   :  { %25635 = vst [vmem:[#allocation53_spill] sm:$0xff] %v23655_v19  ;;  %v23657_v43 = vpop.f32.mrb[39].mxu1  ;;  %v8055_v38 = vrot.slane %v19261_v40, 5 }
 0x31e   :  { %25636 = vst [vmem:[#allocation51_spill] sm:$0xff] %v23657_v43  ;;  %v8060_v26 = vsel %vm19458_vm2, %v15831_v59, %v8059_v58 }
 0x31f   :  { %v8056_v40 = vsel %vm19458_vm2, %v8054_v33, %v8055_v38  ;;  %v8061_v33 = vrot.slane %v8059_v58, 4  ;;  %v19267_v58 = vld [vmem:[%s25365_s0 + $0x7c] sm:$0xf] }
 0x320   :  { %v15862_v38 = vcombine.low %v8053_v60, %v8056_v40  ;;  %v19266_v60 = vld [vmem:[%s25365_s0 + $0x70] sm:$0xf] }
 0x321   :  { %v23672_v30 = vpop.f32.mrb[40].mxu1  ;;  %v8073_v40 = vrot.slane %v19266_v60, 5  ;;  %v19269_v60 = vld [vmem:[%s25365_s0 + $0x80] sm:$0x1] }
 0x322   :  { %17624 = vmatmul.mubr.bf16.vlgmr.msra.gmra.mrb[0].mxu0 %v15859_v13  ;;  %25637 = vst [vmem:[#allocation54_spill] sm:$0xff] %v23672_v30  ;;  %v19263_v13 = vld [vmem:[%s25365_s0 + $0x64] sm:$0xf]  ;;  %v23684_v49 = vpop.f32.mrb[41].mxu1  ;;  %v8062_v30 = vrot.slane %v19264_v20, 5 }
 0x323   :  { %17627 = vmatprep.mubr.bf16.mxu0 %v15860_v50  ;;  %v8066_v50 = vrot.slane %v19263_v13, 5  ;;  %25638 = vst [vmem:[#allocation55_spill] sm:$0xff] %v23684_v49  ;;  %v23689_v24 = vpop.f32.mrb[42].mxu1  ;;  %v15832_v13 = vrot.slane %v15800_v46, 9  ;;  %v19265_v49 = vld [vmem:[%s25365_s0 + $0x68] sm:$0x1] }
 0x324   :  { %v23691_v41 = vpop.f32.mrb[43].mxu1  ;;  %v8069_v19 = vrot.slane %v19265_v49, 5  ;;  %v8063_v48 = vsel %vm19458_vm2, %v8061_v33, %v8062_v30  ;;  %v15801_v49 = vld [vmem:[%s25365_s0 + $0x6c] sm:$0xe]  ;;  %v8080_v30 = vrot.slane %v19267_v58, 5  ;;  %v8083_v58 = vrot.slane %v19269_v60, 5 }
 0x325   :  { %25639 = vst [vmem:[#allocation56_spill] sm:$0xff] %v23691_v41  ;;  %v8068_v43 = vrot.slane %v8066_v50, 4  ;;  %v8067_v54 = vsel %vm19458_vm2, %v15832_v13, %v8066_v50  ;;  %v15833_v33 = vrot.slane %v15801_v49, 9  ;;  %v8075_v50 = vrot.slane %v8073_v40, 4 }
 0x326   :  { %v8082_v13 = vrot.slane %v8080_v30, 4 }
 0x327   :  { %v8070_v46 = vsel %vm19458_vm2, %v8068_v43, %v8069_v19  ;;  %v19268_v19 = vld [vmem:[%s25365_s0 + $0x74] sm:$0x1] }
 0x328   :  { %v15864_v59 = vcombine.low %v8067_v54, %v8070_v46  ;;  %v8076_v43 = vrot.slane %v19268_v19, 5  ;;  %v19270_v54 = vld [vmem:[%s25365_s0 + $0x88] sm:$0xf] }
 0x329   :  { %v8087_v46 = vrot.slane %v19270_v54, 5  ;;  %v19273_v54 = vld [vmem:[%s25365_s0 + $0x98] sm:$0x1] }
 0x32a   :  { %17628 = vmatmul.mubr.bf16.gmra.mrb[4].mxu0 %v15861_v0  ;;  %v15802_v0 = vld [vmem:[%s25365_s0 + $0x78] sm:$0xe] }
 0x32b   :  { %17631 = vmatprep.mubr.bf16.mxu0 %v15862_v38  ;;  %v15863_v38 = vcombine.low %v8060_v26, %v8063_v48  ;;  %v15834_v20 = vrot.slane %v15802_v0, 9  ;;  %v8074_v26 = vsel %vm19458_vm2, %v15833_v33, %v8073_v40  ;;  %v8077_v48 = vsel %vm19458_vm2, %v8075_v50, %v8076_v43  ;;  %v19271_v40 = vld [vmem:[%s25365_s0 + $0x94] sm:$0xf]  ;;  %v15804_v33 = vld [vmem:[%s25365_s0 + $0x90] sm:$0xe] }
 0x32c   :  { %v8084_v0 = vsel %vm19458_vm2, %v8082_v13, %v8083_v58  ;;  %v15865_v50 = vcombine.low %v8074_v26, %v8077_v48  ;;  %v15836_v60 = vrot.slane %v15804_v33, 9 }
 0x32d   :  { %v8081_v49 = vsel %vm19458_vm2, %v15834_v20, %v8080_v30  ;;  %v8089_v30 = vrot.slane %v8087_v46, 4  ;;  %v19272_v20 = vld [vmem:[%s25365_s0 + $0x8c] sm:$0x1] }
 0x32e   :  { %v15866_v19 = vcombine.low %v8081_v49, %v8084_v0  ;;  %v8090_v13 = vrot.slane %v19272_v20, 5  ;;  %v19274_v49 = vld [vmem:[%s25365_s0 + $0xa0] sm:$0xf] }
 0x32f   :  { %v8101_v0 = vrot.slane %v19274_v49, 5  ;;  %v19277_v49 = vld [vmem:[%s25365_s0 + $0xb0] sm:$0x1] }
 0x330   :  { %v8091_v48 = vsel %vm19458_vm2, %v8089_v30, %v8090_v13 }
 0x332   :  { %17632 = vmatmul.mubr.bf16.gmra.mrb[8].mxu0 %v15863_v38  ;;  %v15803_v38 = vld [vmem:[%s25365_s0 + $0x84] sm:$0xe] }
 0x333   :  { %17635 = vmatprep.mubr.bf16.mxu0 %v15864_v59  ;;  %v8094_v59 = vrot.slane %v19271_v40, 5  ;;  %v15835_v43 = vrot.slane %v15803_v38, 9  ;;  %v8097_v40 = vrot.slane %v19273_v54, 5 }
 0x335   :  { %v8096_v58 = vrot.slane %v8094_v59, 4  ;;  %v8088_v26 = vsel %vm19458_vm2, %v15835_v43, %v8087_v46  ;;  %v8095_v38 = vsel %vm19458_vm2, %v15836_v60, %v8094_v59  ;;  %v19275_v46 = vld [vmem:[%s25365_s0 + $0xac] sm:$0xf]  ;;  %v15806_v43 = vld [vmem:[%s25365_s0 + $0xa8] sm:$0xe]  ;;  %v8103_v59 = vrot.slane %v8101_v0, 4 }
 0x336   :  { %v15867_v30 = vcombine.low %v8088_v26, %v8091_v48  ;;  %v19276_v60 = vld [vmem:[%s25365_s0 + $0xa4] sm:$0x1]  ;;  %v15838_v54 = vrot.slane %v15806_v43, 9 }
 0x337   :  { %v8098_v33 = vsel %vm19458_vm2, %v8096_v58, %v8097_v40  ;;  %v8104_v58 = vrot.slane %v19276_v60, 5 }
 0x338   :  { %v15868_v20 = vcombine.low %v8095_v38, %v8098_v33  ;;  %v19278_v38 = vld [vmem:[%s25365_s0 + $0xb8] sm:$0xf] }
 0x339   :  { %v8105_v48 = vsel %vm19458_vm2, %v8103_v59, %v8104_v58  ;;  %v8115_v33 = vrot.slane %v19278_v38, 5  ;;  %v19281_v38 = vld [vmem:[%s25365_s0 + $0xc8] sm:$0x1] }
 0x33a   :  { %17636 = vmatmul.mubr.bf16.gmra.mrb[12].mxu0 %v15865_v50  ;;  %v15805_v50 = vld [vmem:[%s25365_s0 + $0x9c] sm:$0xe] }
 0x33b   :  { %17639 = vmatprep.mubr.bf16.mxu0 %v15866_v19  ;;  %v8108_v19 = vrot.slane %v19275_v46, 5  ;;  %v15837_v13 = vrot.slane %v15805_v50, 9  ;;  %v8111_v46 = vrot.slane %v19277_v49, 5 }
 0x33d   :  { %v8110_v40 = vrot.slane %v8108_v19, 4  ;;  %v8102_v26 = vsel %vm19458_vm2, %v15837_v13, %v8101_v0  ;;  %v8109_v50 = vsel %vm19458_vm2, %v15838_v54, %v8108_v19  ;;  %v19279_v0 = vld [vmem:[%s25365_s0 + $0xc4] sm:$0xf]  ;;  %v15808_v13 = vld [vmem:[%s25365_s0 + $0xc0] sm:$0xe]  ;;  %v8117_v19 = vrot.slane %v8115_v33, 4 }
 0x33e   :  { %v15869_v59 = vcombine.low %v8102_v26, %v8105_v48  ;;  %v19280_v54 = vld [vmem:[%s25365_s0 + $0xbc] sm:$0x1]  ;;  %v15840_v49 = vrot.slane %v15808_v13, 9 }
 0x33f   :  { %v8112_v43 = vsel %vm19458_vm2, %v8110_v40, %v8111_v46  ;;  %v8118_v40 = vrot.slane %v19280_v54, 5 }
 0x340   :  { %v15870_v60 = vcombine.low %v8109_v50, %v8112_v43  ;;  %v19282_v50 = vld [vmem:[%s25365_s0 + $0xd0] sm:$0xf] }
 0x341   :  { %v8119_v48 = vsel %vm19458_vm2, %v8117_v19, %v8118_v40  ;;  %v8129_v43 = vrot.slane %v19282_v50, 5  ;;  %v19285_v50 = vld [vmem:[%s25365_s0 + $0xf8] sm:$0x1] }
 0x342   :  { %17640 = vmatmul.mubr.bf16.gmra.mrb[16].mxu0 %v15867_v30  ;;  %v15807_v30 = vld [vmem:[%s25365_s0 + $0xb4] sm:$0xe] }
 0x343   :  { %17643 = vmatprep.mubr.bf16.mxu0 %v15868_v20  ;;  %v8122_v20 = vrot.slane %v19279_v0, 5  ;;  %v15839_v58 = vrot.slane %v15807_v30, 9  ;;  %v8125_v0 = vrot.slane %v19281_v38, 5 }
 0x345   :  { %v8124_v46 = vrot.slane %v8122_v20, 4  ;;  %v8116_v26 = vsel %vm19458_vm2, %v15839_v58, %v8115_v33  ;;  %v8123_v30 = vsel %vm19458_vm2, %v15840_v49, %v8122_v20  ;;  %v19283_v33 = vld [vmem:[%s25365_s0 + $0xf4] sm:$0xf]  ;;  %v15810_v58 = vld [vmem:[%s25365_s0 + $0xf0] sm:$0xe]  ;;  %v8131_v20 = vrot.slane %v8129_v43, 4 }
 0x346   :  { %v15871_v19 = vcombine.low %v8116_v26, %v8119_v48  ;;  %v19284_v49 = vld [vmem:[%s25365_s0 + $0xd4] sm:$0x1]  ;;  %v15842_v38 = vrot.slane %v15810_v58, 9 }
 0x347   :  { %v8126_v13 = vsel %vm19458_vm2, %v8124_v46, %v8125_v0  ;;  %v8132_v46 = vrot.slane %v19284_v49, 5  ;;  %v15812_v49 = vld [vmem:[%s25365_s0 + $0x108] sm:$0xe] }
 0x348   :  { %v15872_v54 = vcombine.low %v8123_v30, %v8126_v13  ;;  %v19286_v30 = vld [vmem:[%s25365_s0 + $0x100] sm:$0xf] }
 0x349   :  { %v8133_v48 = vsel %vm19458_vm2, %v8131_v20, %v8132_v46  ;;  %v8143_v13 = vrot.slane %v19286_v30, 5  ;;  %v19288_v30 = vld [vmem:[%s25365_s0 + $0x104] sm:$0x1] }
 0x34a   :  { %17644 = vmatmul.mubr.bf16.gmra.mrb[20].mxu0 %v15869_v59  ;;  %v15809_v59 = vld [vmem:[%s25365_s0 + $0xcc] sm:$0xe] }
 0x34b   :  { %17647 = vmatprep.mubr.bf16.mxu0 %v15870_v60  ;;  %v8136_v60 = vrot.slane %v19283_v33, 5  ;;  %v15841_v40 = vrot.slane %v15809_v59, 9  ;;  %v8139_v33 = vrot.slane %v19285_v50, 5 }
 0x34d   :  { %v8138_v0 = vrot.slane %v8136_v60, 4  ;;  %v8130_v26 = vsel %vm19458_vm2, %v15841_v40, %v8129_v43  ;;  %v8137_v58 = vsel %vm19458_vm2, %v15842_v38, %v8136_v60  ;;  %v15811_v43 = vld [vmem:[%s25365_s0 + $0xfc] sm:$0xe] }
 0x34e   :  { %v15873_v60 = vcombine.low %v8130_v26, %v8133_v48  ;;  %v15843_v50 = vrot.slane %v15811_v43, 9  ;;  %v19289_v48 = vld [vmem:[%s25365_s0 + $0x118] sm:$0xf] }
 0x351   :  { %v23836_v59 = vpop.f32.mrb[44].mxu1 }
 0x352   :  { %17648 = vmatmul.mubr.bf16.gmra.mrb[24].mxu0 %v15871_v19  ;;  %25640 = vst [vmem:[#allocation59_spill] sm:$0xff] %v23836_v59  ;;  %v8140_v19 = vsel %vm19458_vm2, %v8138_v0, %v8139_v33  ;;  %v23848_v20 = vpop.f32.mrb[45].mxu1  ;;  %v8145_v33 = vrot.slane %v8143_v13, 4  ;;  %v8146_v59 = vrot.slane %v19288_v30, 5 }
 0x353   :  { %17651 = vmatprep.mubr.bf16.mxu0 %v15872_v54  ;;  %v19287_v54 = vld [vmem:[%s25365_s0 + $0x10c] sm:$0xf]  ;;  %25641 = vst [vmem:[#allocation58_spill] sm:$0xff] %v23848_v20  ;;  %v23853_v46 = vpop.f32.mrb[46].mxu1  ;;  %v15874_v0 = vcombine.low %v8137_v58, %v8140_v19  ;;  %v8153_v20 = vrot.slane %v23210_v53, 5  ;;  %v8157_v58 = vrot.slane %v19289_v48, 5 }
 0x354   :  { %v8150_v40 = vrot.slane %v19287_v54, 5  ;;  %25642 = vst [vmem:[#allocation57_spill] sm:$0xff] %v23853_v46  ;;  %v23855_v38 = vpop.f32.mrb[47].mxu1  ;;  %v15844_v54 = vrot.slane %v15812_v49, 9  ;;  %v8144_v46 = vsel %vm19458_vm2, %v15843_v50, %v8143_v13  ;;  %v8147_v26 = vsel %vm19458_vm2, %v8145_v33, %v8146_v59  ;;  %v15813_v13 = vld [vmem:[%s25365_s0 + $0x114] sm:$0xe] }
 0x355   :  { %v8164_v49 = vrot.slane %v23220_v17, 5  ;;  %v15875_v50 = vcombine.low %v8144_v46, %v8147_v26  ;;  %v15845_v30 = vrot.slane %v15813_v13, 9  ;;  %v8171_v26 = vrot.slane %v23248_v12, 5  ;;  %v15816_v12 = vld [vmem:[%s25365_s0 + $0x138] sm:$0xe] }
 0x356   :  { %v8152_v41 = vrot.slane %v8150_v40, 4  ;;  %v8151_v43 = vsel %vm19458_vm2, %v15844_v54, %v8150_v40 }
 0x357   :  { %v8166_v48 = vrot.slane %v8164_v49, 4 }
 0x358   :  { %v8154_v53 = vsel %vm19458_vm2, %v8152_v41, %v8153_v20  ;;  %v8159_v41 = vrot.slane %v8157_v58, 4  ;;  %v19290_v20 = vld [vmem:[%s25365_s0 + $0x11c] sm:$0x1] }
 0x359   :  { %v23868_v19 = vpop.f32.mrb[48].mxu1  ;;  %v15876_v40 = vcombine.low %v8151_v43, %v8154_v53  ;;  %v8160_v54 = vrot.slane %v19290_v20, 5  ;;  %v8174_v20 = vrot.slane %v23284_v3, 5 }
 0x35a   :  { %17652 = vmatmul.mubr.bf16.gmra.mrb[28].mxu0 %v15873_v60  ;;  %v23878_v59 = vpop.f32.mrb[49].mxu1  ;;  %v15814_v60 = vld [vmem:[%s25365_s0 + $0x120] sm:$0xe] }
 0x35b   :  { %17655 = vmatprep.mubr.bf16.mxu0 %v15874_v0  ;;  %25643 = vst [vmem:[#allocation62_spill] sm:$0xff] %v23878_v59  ;;  %v23883_v0 = vpop.f32.mrb[50].mxu1  ;;  %v15846_v17 = vrot.slane %v15814_v60, 9  ;;  %v8167_v59 = vrot.slane %v23243_v18, 5  ;;  %v8161_v46 = vsel %vm19458_vm2, %v8159_v41, %v8160_v54  ;;  %v15815_v18 = vld [vmem:[%s25365_s0 + $0x12c] sm:$0xe] }
 0x35c   :  { %25644 = vst [vmem:[#allocation61_spill] sm:$0xff] %v23883_v0  ;;  %v23885_v33 = vpop.f32.mrb[51].mxu1  ;;  %v8158_v0 = vsel %vm19458_vm2, %v15845_v30, %v8157_v58  ;;  %v8178_v60 = vrot.slane %v23268_v15, 5  ;;  %v15847_v41 = vrot.slane %v15815_v18, 9  ;;  %v15848_v54 = vrot.slane %v15816_v12, 9 }
 0x35d   :  { %v8165_v53 = vsel %vm19458_vm2, %v15846_v17, %v8164_v49  ;;  %v8168_v13 = vsel %vm19458_vm2, %v8166_v48, %v8167_v59  ;;  %v8173_v59 = vrot.slane %v8171_v26, 4  ;;  %v8181_v15 = vrot.slane %v23322_v34, 5  ;;  %v15817_v34 = vld [vmem:[%s25365_s0 + $0x144] sm:$0xe] }
 0x35e   :  { %v15878_v49 = vcombine.low %v8165_v53, %v8168_v13  ;;  %v8180_v17 = vrot.slane %v8178_v60, 4  ;;  %v8172_v48 = vsel %vm19458_vm2, %v15847_v41, %v8171_v26  ;;  %v8179_v53 = vsel %vm19458_vm2, %v15848_v54, %v8178_v60 }
 0x35f   :  { %v8192_v13 = vrot.slane %v23332_v63, 5  ;;  %v8195_v63 = vrot.slane %v23376_v61, 5  ;;  %v15819_v61 = vld [vmem:[%s25365_s0 + $0x15c] sm:$0xe] }
 0x360   :  { %v8182_v3 = vsel %vm19458_vm2, %v8180_v17, %v8181_v15 }
 0x361   :  { %v23896_v43 = vpop.f32.mrb[52].mxu1  ;;  %v15880_v60 = vcombine.low %v8179_v53, %v8182_v3  ;;  %v8194_v54 = vrot.slane %v8192_v13, 4  ;;  %v8206_v3 = vrot.slane %v23400_v42, 5  ;;  %v8209_v42 = vrot.slane %v23428_v9, 5  ;;  %v15821_v9 = vld [vmem:[%s25365_s0 + $0x174] sm:$0xe] }
 0x362   :  { %17656 = vmatmul.mubr.bf16.gmra.mrb[32].mxu0 %v15875_v50  ;;  %v23906_v58 = vpop.f32.mrb[53].mxu1 }
 0x363   :  { %17659 = vmatprep.mubr.bf16.mxu0 %v15876_v40  ;;  %v23911_v50 = vpop.f32.mrb[54].mxu1  ;;  %v15877_v40 = vcombine.low %v8158_v0, %v8161_v46  ;;  %v8185_v0 = vrot.slane %v23303_v52, 5  ;;  %v15818_v52 = vld [vmem:[%s25365_s0 + $0x150] sm:$0xe] }
 0x364   :  { %25645 = vst [vmem:[#allocation60_spill] sm:$0xff] %v23911_v50  ;;  %v23913_v30 = vpop.f32.mrb[55].mxu1  ;;  %v8175_v50 = vsel %vm19458_vm2, %v8173_v59, %v8174_v20  ;;  %v8188_v59 = vrot.slane %v23357_v21, 5  ;;  %v15850_v20 = vrot.slane %v15818_v52, 9  ;;  %v8196_v21 = vsel %vm19458_vm2, %v8194_v54, %v8195_v63 }
 0x365   :  { %v15879_v12 = vcombine.low %v8172_v48, %v8175_v50  ;;  %v8187_v41 = vrot.slane %v8185_v0, 4  ;;  %v8199_v50 = vrot.slane %v23352_v31, 5  ;;  %v15820_v31 = vld [vmem:[%s25365_s0 + $0x168] sm:$0xe] }
 0x366   :  { %v8193_v53 = vsel %vm19458_vm2, %v15850_v20, %v8192_v13  ;;  %v8208_v20 = vrot.slane %v8206_v3, 4 }
 0x367   :  { %v8189_v15 = vsel %vm19458_vm2, %v8187_v41, %v8188_v59  ;;  %v15882_v13 = vcombine.low %v8193_v53, %v8196_v21  ;;  %v8202_v41 = vrot.slane %v23408_v4, 5  ;;  %v15852_v59 = vrot.slane %v15820_v31, 9 }
 0x368   :  { %v8210_v4 = vsel %vm19458_vm2, %v8208_v20, %v8209_v42  ;;  %v8220_v53 = vrot.slane %v23449_v51, 5  ;;  %v15853_v31 = vrot.slane %v15821_v9, 9  ;;  %v8234_v20 = vrot.slane %v23506_v47, 5  ;;  %v15824_v42 = vld [vmem:[%s25365_s0 + $0x198] sm:$0xe] }
 0x369   :  { %v23922_v46 = vpop.f32.mrb[56].mxu1  ;;  %v15856_v47 = vrot.slane %v15824_v42, 9  ;;  %v8237_v9 = vrot.slane %v23548_v57, 5  ;;  %v15825_v57 = vld [vmem:[%s25365_s0 + $0x1a4] sm:$0xe] }
 0x36a   :  { %17660 = vmatmul.mubr.bf16.gmra.mrb[36].mxu0 %v15877_v40  ;;  %v23932_v26 = vpop.f32.mrb[57].mxu1  ;;  %v18835_v42 = vld [vmem:[#allocation9 + $0x70] sm:$0xff]  }
 0x36b   :  { %17663 = vmatprep.mubr.bf16.mxu0 %v15878_v49  ;;  %v23937_v18 = vpop.f32.mrb[58].mxu1  ;;  %v15849_v49 = vrot.slane %v15817_v34, 9 }
 0x36c   :  { %v23939_v40 = vpop.f32.mrb[59].mxu1 }
 0x36d   :  { %v8186_v17 = vsel %vm19458_vm2, %v15849_v49, %v8185_v0  ;;  %v8201_v49 = vrot.slane %v8199_v50, 4 }
 0x36e   :  { %v15881_v52 = vcombine.low %v8186_v17, %v8189_v15  ;;  %v8213_v17 = vrot.slane %v23433_v6, 5  ;;  %v8207_v15 = vsel %vm19458_vm2, %v15852_v59, %v8206_v3 }
 0x36f   :  { %v8203_v63 = vsel %vm19458_vm2, %v8201_v49, %v8202_v41  ;;  %v8227_v41 = vrot.slane %v23496_v8, 5 }
 0x370   :  { %v8215_v6 = vrot.slane %v8213_v17, 4  ;;  %v8214_v49 = vsel %vm19458_vm2, %v15853_v31, %v8213_v17 }
 0x371   :  { %v23948_v48 = vpop.f32.mrb[60].mxu1  ;;  %v8229_v8 = vrot.slane %v8227_v41, 4 }
 0x372   :  { %17664 = vmatmul.mubr.bf16.gmra.mrb[40].mxu0 %v15879_v12  ;;  %v23958_v0 = vpop.f32.mrb[61].mxu1 }
 0x373   :  { %17667 = vmatprep.mubr.bf16.mxu0 %v15880_v60  ;;  %v23963_v34 = vpop.f32.mrb[62].mxu1  ;;  %v15851_v60 = vrot.slane %v15819_v61, 9  ;;  %v15884_v61 = vcombine.low %v8207_v15, %v8210_v4  ;;  %v8230_v15 = vrot.slane %v23521_v32, 5  ;;  %v19378_v4 = vmov 0  }
 0x374   :  { %v23965_v12 = vpop.f32.mrb[63].mxu1  ;;  %8992 = vst [vmem:[#allocation3 + $0x8] sm:$0xf] %v19378_v4  ;;  %8990 = vst [vmem:[#allocation3] sm:$0xf] %v19378_v4  ;;  %v8236_v32 = vrot.slane %v8234_v20, 4 }
 0x375   :  { %v8200_v54 = vsel %vm19458_vm2, %v15851_v60, %v8199_v50  ;;  %v15822_v50 = vld [vmem:[%s25365_s0 + $0x180] sm:$0xe]  ;;  %v8223_v60 = vrot.slane %v23486_v1, 5  ;;  %v15823_v1 = vld [vmem:[%s25365_s0 + $0x18c] sm:$0xe] }
 0x376   :  { %v15883_v21 = vcombine.low %v8200_v54, %v8203_v63  ;;  %v15854_v3 = vrot.slane %v15822_v50, 9  ;;  %v15855_v17 = vrot.slane %v15823_v1, 9  ;;  %8991 = vst [vmem:[#allocation3 + $0x4] sm:$0x1] %v19378_v4  ;;  %8993 = vst [vmem:[#allocation3 + $0xc] sm:$0x1] %v19378_v4  ;;  %v8231_v50 = vsel %vm19458_vm2, %v8229_v8, %v8230_v15 }
 0x377   :  { %8994 = vst [vmem:[#allocation3 + $0x10] sm:$0xf] %v19378_v4  ;;  %8995 = vst [vmem:[#allocation3 + $0x14] sm:$0x1] %v19378_v4  ;;  %v8238_v31 = vsel %vm19458_vm2, %v8236_v32, %v8237_v9  ;;  %v18833_v1 = vld [vmem:[#allocation9 + $0x60] sm:$0xff]  }
 0x378   :  { %v8221_v59 = vsel %vm19458_vm2, %v15854_v3, %v8220_v53  ;;  %8996 = vst [vmem:[#allocation3 + $0x18] sm:$0xf] %v19378_v4  ;;  %8997 = vst [vmem:[#allocation3 + $0x1c] sm:$0x1] %v19378_v4  ;;  %v15857_v3 = vrot.slane %v15825_v57, 9 }
 0x379   :  { %8998 = vst [vmem:[#allocation3 + $0x20] sm:$0xf] %v19378_v4  ;;  %8999 = vst [vmem:[#allocation3 + $0x24] sm:$0x1] %v19378_v4 }
 0x37a   :  { %17668 = vmatmul.mubr.bf16.gmra.mrb[44].mxu0 %v15881_v52  ;;  %v8216_v52 = vrot.slane %v23472_v11, 5  ;;  %9000 = vst [vmem:[#allocation3 + $0x28] sm:$0xf] %v19378_v4  ;;  %9001 = vst [vmem:[#allocation3 + $0x2c] sm:$0x1] %v19378_v4 }
 0x37b   :  { %17671 = vmatprep.mubr.bf16.mxu0 %v15882_v13  ;;  %v8222_v13 = vrot.slane %v8220_v53, 4  ;;  %9002 = vst [vmem:[#allocation3 + $0x30] sm:$0xf] %v19378_v4  ;;  %9003 = vst [vmem:[#allocation3 + $0x34] sm:$0x1] %v19378_v4  ;;  %v8228_v53 = vsel %vm19458_vm2, %v15855_v17, %v8227_v41  ;;  %v18829_v41 = vld [vmem:[#allocation9 + $0x40] sm:$0xff]  }
 0x37c   :  { %v8217_v51 = vsel %vm19458_vm2, %v8215_v6, %v8216_v52  ;;  %9004 = vst [vmem:[#allocation3 + $0x38] sm:$0xf] %v19378_v4  ;;  %9005 = vst [vmem:[#allocation3 + $0x3c] sm:$0x1] %v19378_v4  ;;  %v15887_v6 = vcombine.low %v8228_v53, %v8231_v50  ;;  %17687 = vmatprep.subr.bf16.mxu1 %v18829_v41 }
 0x37d   :  { %v8224_v11 = vsel %vm19458_vm2, %v8222_v13, %v8223_v60  ;;  %v15885_v54 = vcombine.low %v8214_v49, %v8217_v51  ;;  %9006 = vst [vmem:[#allocation3 + $0x40] sm:$0xf] %v19378_v4  ;;  %9007 = vst [vmem:[#allocation3 + $0x44] sm:$0x1] %v19378_v4  ;;  %v8244_v60 = vrot.slane %v23569_v62, 5  ;;  %17688 = vmatpush3.bf16.msra.mxu1 %v18829_v41  ;;  %v18832_v62 = vld [vmem:[#allocation9 + $0x58] sm:$0xff]  }
 0x37e   :  { %v15886_v63 = vcombine.low %v8221_v59, %v8224_v11  ;;  %9008 = vst [vmem:[#allocation3 + $0x48] sm:$0xf] %v19378_v4  ;;  %9009 = vst [vmem:[#allocation3 + $0x4c] sm:$0x1] %v19378_v4  ;;  %v18830_v59 = vld [vmem:[#allocation9 + $0x48] sm:$0xff]   ;;  %v18831_v11 = vld [vmem:[#allocation9 + $0x50] sm:$0xff]  }
 0x37f   :  { %9010 = vst [vmem:[#allocation3 + $0x50] sm:$0xf] %v19378_v4  ;;  %9011 = vst [vmem:[#allocation3 + $0x54] sm:$0x1] %v19378_v4  ;;  %17689 = vmatprep.subr.bf16.mxu1 %v18830_v59 }
 0x380   :  { %9012 = vst [vmem:[#allocation3 + $0x58] sm:$0xf] %v19378_v4  ;;  %9013 = vst [vmem:[#allocation3 + $0x5c] sm:$0x1] %v19378_v4 }
 0x381   :  { %9014 = vst [vmem:[#allocation3 + $0x60] sm:$0xf] %v19378_v4  ;;  %9015 = vst [vmem:[#allocation3 + $0x64] sm:$0x1] %v19378_v4  ;;  %17690 = vmatpush3.bf16.msra.mxu1 %v18830_v59  ;;  %v25647_v59 = vld [vmem:[#allocation33_spill] sm:$0xff] }
 0x382   :  { %17672 = vmatmul.mubr.bf16.gmra.mrb[48].mxu0 %v15883_v21  ;;  %9016 = vst [vmem:[#allocation3 + $0x68] sm:$0xf] %v19378_v4  ;;  %9017 = vst [vmem:[#allocation3 + $0x6c] sm:$0x1] %v19378_v4  ;;  %v8241_v21 = vrot.slane %v23537_v7, 5  ;;  %17691 = vmatprep.subr.bf16.mxu1 %v18831_v11 }
 0x383   :  { %17675 = vmatprep.mubr.bf16.mxu0 %v15884_v61  ;;  %9018 = vst [vmem:[#allocation3 + $0x70] sm:$0xf] %v19378_v4  ;;  %9019 = vst [vmem:[#allocation3 + $0x74] sm:$0x1] %v19378_v4  ;;  %v8235_v61 = vsel %vm19458_vm2, %v15856_v47, %v8234_v20  ;;  %v18834_v20 = vld [vmem:[#allocation9 + $0x68] sm:$0xff]  }
 0x384   :  { %9020 = vst [vmem:[#allocation3 + $0x78] sm:$0xf] %v19378_v4  ;;  %9021 = vst [vmem:[#allocation3 + $0x7c] sm:$0x1] %v19378_v4  ;;  %v15888_v52 = vcombine.low %v8235_v61, %v8238_v31  ;;  %v8243_v13 = vrot.slane %v8241_v21, 4  ;;  %v8242_v7 = vsel %vm19458_vm2, %v15857_v3, %v8241_v21 }
 0x385   :  { %9022 = vst [vmem:[#allocation3 + $0x80] sm:$0xf] %v19378_v4  ;;  %9023 = vst [vmem:[#allocation3 + $0x84] sm:$0x1] %v19378_v4  ;;  %17692 = vmatpush3.bf16.msra.mxu1 %v18831_v11 }
 0x386   :  { %9024 = vst [vmem:[#allocation3 + $0x88] sm:$0xf] %v19378_v4  ;;  %9025 = vst [vmem:[#allocation3 + $0x8c] sm:$0x1] %v19378_v4  ;;  %v8245_v49 = vsel %vm19458_vm2, %v8243_v13, %v8244_v60  ;;  %17693 = vmatprep.subr.bf16.mxu1 %v18832_v62 }
 0x387   :  { %9026 = vst [vmem:[#allocation3 + $0x90] sm:$0xf] %v19378_v4  ;;  %9027 = vst [vmem:[#allocation3 + $0x94] sm:$0x1] %v19378_v4  ;;  %v15889_v51 = vcombine.low %v8242_v7, %v8245_v49  ;;  %v25646_v7 = vld [vmem:[#allocation34_spill] sm:$0xff] }
 0x388   :  { %9028 = vst [vmem:[#allocation3 + $0x98] sm:$0xf] %v19378_v4  ;;  %9029 = vst [vmem:[#allocation3 + $0x9c] sm:$0x1] %v19378_v4 }
 0x389   :  { %17694 = vmatpush3.bf16.msra.mxu1 %v18832_v62 }
 0x38a   :  { %17676 = vmatmul.mubr.bf16.gmra.mrb[52].mxu0 %v15885_v54  ;;  %17695 = vmatprep.subr.bf16.mxu1 %v18833_v1  ;;  %v18836_v54 = vld [vmem:[#allocation9 + $0x78] sm:$0xff]  }
 0x38b   :  { %17679 = vmatprep.mubr.bf16.mxu0 %v15886_v63  ;;  %v24025_v63 = vld [vmem:[%s25367_s2] ss:$0 sm:$0xff] }
 0x38d   :  { %17696 = vmatpush3.bf16.msra.mxu1 %v18833_v1 }
 0x38e   :  { %17697 = vmatprep.subr.bf16.mxu1 %v18834_v20 }
 0x391   :  { %17698 = vmatpush3.bf16.msra.mxu1 %v18834_v20 }
 0x392   :  { %17680 = vmatmul.mubr.bf16.gmra.mrb[56].mxu0 %v15887_v6  ;;  %17699 = vmatprep.subr.bf16.mxu1 %v18835_v42 }
 0x393   :  { %17683 = vmatprep.mubr.bf16.mxu0 %v15888_v52 }
 0x395   :  { %17700 = vmatpush3.bf16.msra.mxu1 %v18835_v42 }
 0x396   :  { %17701 = vmatprep.subr.bf16.mxu1 %v18836_v54 }
 0x399   :  { %17702 = vmatpush3.bf16.msra.mxu1 %v18836_v54  ;;  %v9540_v54 = vld [vmem:[#allocation3] sm:$0xf] }
 0x39a   :  { %17684 = vmatmul.mubr.bf16.gmra.mrb[60].mxu0 %v15889_v51 }
 0x3f5   :  { %v17625_v17 = vpop.f32.mrb[0].mxu0 }
 0x3f6   :  { %v18011_v8 = vadd.f32 %v17625_v17, %v23257_v14  ;;  %v8473_v15 = vpop.f32.mrb[1].mxu0 }
 0x3f7   :  { %v18012_v4 = vadd.f32 %v8473_v15, %v23261_v25  ;;  %v17626_v47 = vpop.f32.mrb[2].mxu0 }
 0x3f8   :  { %v8800_v32 = vadd.f32 %v18011_v8, %v24025_v63  ;;  %v18013_v9 = vadd.f32 %v17626_v47, %v23270_v44  ;;  %v8476_v53 = vpop.f32.mrb[3].mxu0 }
 0x3f9   :  { %v8798_v50 = vadd.f32 %v18012_v4, %v24025_v63  ;;  %v18014_v21 = vadd.f32 %v8476_v53, %v23273_v55 }
 0x3fa   :  { %v8864_v61 = vmax.f32 %v8800_v32, 0.0  ;;  %v8801_v31 = vadd.f32 %v18013_v9, %v24025_v63  ;;  %v25648_v9 = vld [vmem:[#allocation35_spill] sm:$0xff] }
 0x3fb   :  { %v8862_v57 = vmax.f32 %v8798_v50, 0.0  ;;  %v8799_v6 = vadd.f32 %v18014_v21, %v24025_v63 }
 0x3fc   :  { %8928 = vst [vmem:[#allocation2 + $0x10] sm:$0xff] %v8864_v61  ;;  %v8865_v14 = vmax.f32 %v8801_v31, 0.0  ;;  %v25649_v61 = vld [vmem:[#allocation30_spill] sm:$0xff] }
 0x3fd   :  { %8926 = vst [vmem:[#allocation2] sm:$0xff] %v8862_v57  ;;  %v8863_v25 = vmax.f32 %v8799_v6, 0.0  ;;  %v17629_v52 = vpop.f32.mrb[4].mxu0 }
 0x3fe   :  { %8929 = vst [vmem:[#allocation2 + $0x18] sm:$0xff] %v8865_v14  ;;  %v18015_v3 = vadd.f32 %v17629_v52, %v23307_v27  ;;  %v8489_v44 = vpop.f32.mrb[5].mxu0  ;;  %v25650_v14 = vld [vmem:[#allocation36_spill] sm:$0xff] }
 0x3ff   :  { %8927 = vst [vmem:[#allocation2 + $0x8] sm:$0xff] %v8863_v25  ;;  %v18016_v13 = vadd.f32 %v8489_v44, %v23313_v36  ;;  %v17630_v60 = vpop.f32.mrb[6].mxu0  ;;  %v9592_v44 = vshll.u32 %v9540_v54, 16 }
 0x400   :  { %v8804_v55 = vadd.f32 %v18015_v3, %v24025_v63  ;;  %v18017_v49 = vadd.f32 %v17630_v60, %v25646_v7  ;;  %v8492_v51 = vpop.f32.mrb[7].mxu0  ;;  %v9589_v3 = vshrl.u32 %v9540_v54, 16 }
 0x401   :  { %v8802_v41 = vadd.f32 %v18016_v13, %v24025_v63  ;;  %v18018_v11 = vadd.f32 %v8492_v51, %v25647_v59 }
 0x402   :  { %v8868_v62 = vmax.f32 %v8804_v55, 0.0  ;;  %v8805_v1 = vadd.f32 %v18017_v49, %v24025_v63  ;;  %v25651_v55 = vld [vmem:[#allocation37_spill] sm:$0xff]  ;;  %v24049_v49 = vld [vmem:[#allocation9] sm:$0xff]  }
 0x403   :  { %v8866_v20 = vmax.f32 %v8802_v41, 0.0  ;;  %v8803_v27 = vadd.f32 %v18018_v11, %v24025_v63  ;;  %17719 = vmatprep.subr.bf16.mxu1 %v24049_v49 }
 0x404   :  { %8932 = vst [vmem:[#allocation2 + $0x30] sm:$0xff] %v8868_v62  ;;  %v8869_v42 = vmax.f32 %v8805_v1, 0.0 }
 0x405   :  { %v9038_v36 = vld [vmem:[#allocation2 + $0x10] ss:$2 sm:$0xff]  ;;  %v9042_v17 = vld [vmem:[#allocation2 + $0x11] ss:$2 sm:$0xff]  ;;  %8930 = vst [vmem:[#allocation2 + $0x20] sm:$0xff] %v8866_v20  ;;  %v8867_v8 = vmax.f32 %v8803_v27, 0.0 }
 0x406   :  { %v17633_v15 = vpop.f32.mrb[8].mxu0  ;;  %v9047_v4 = vmax.f32 %v9038_v36, %v9042_v17  ;;  %v9030_v47 = vld [vmem:[#allocation2] ss:$2 sm:$0xff]  ;;  %v9034_v32 = vld [vmem:[#allocation2 + $0x1] ss:$2 sm:$0xff]  ;;  %8933 = vst [vmem:[#allocation2 + $0x38] sm:$0xff] %v8869_v42 }
 0x407   :  { %v18019_v53 = vadd.f32 %v17633_v15, %v25648_v9  ;;  %v8505_v50 = vpop.f32.mrb[9].mxu0  ;;  %v9045_v21 = vmax.f32 %v9030_v47, %v9034_v32  ;;  %8931 = vst [vmem:[#allocation2 + $0x28] sm:$0xff] %v8867_v8  ;;  %v9591_v20 = vrot.slane %v9589_v3, 4  ;;  %v9594_v27 = vrot.slane %v9592_v44, 5  ;;  %v9089_v3 = vld [vmem:[#allocation3 + $0xc] sm:$0x1] }
 0x408   :  { %v18020_v31 = vadd.f32 %v8505_v50, %v25649_v61  ;;  %v17634_v57 = vpop.f32.mrb[10].mxu0 }
 0x409   :  { %v8808_v6 = vadd.f32 %v18019_v53, %v24025_v63  ;;  %v18021_v25 = vadd.f32 %v17634_v57, %v25650_v14  ;;  %v8508_v52 = vpop.f32.mrb[11].mxu0  ;;  %v9049_v13 = vmax.f32 %v9045_v21, %v9047_v4  ;;  %v25654_v21 = vld [vmem:[#allocation38_spill] sm:$0xff]  ;;  %v25657_v14 = vld [vmem:[#allocation31_spill] sm:$0xff]  ;;  %v9595_v44 = vor.u32 %v9594_v27, %v9591_v20 }
 0x40a   :  { %v8806_v60 = vadd.f32 %v18020_v31, %v24025_v63  ;;  %v18022_v7 = vadd.f32 %v8508_v52, %v25651_v55  ;;  %v9083_v57 = vld [vmem:[#allocation3 + $0x8] sm:$0xf]  ;;  %v18849_v53 = vld [vmem:[#allocation9 + $0x88] sm:$0xff]  }
 0x40b   :  { %v8872_v51 = vmax.f32 %v8808_v6, 0.0  ;;  %v8809_v41 = vadd.f32 %v18021_v25, %v24025_v63  ;;  %v16262_v59 = vpack.c.bf16 %v9049_v13, %v9049_v13 }
 0x40c   :  { %v8870_v11 = vmax.f32 %v8806_v60, 0.0  ;;  %v8807_v62 = vadd.f32 %v18022_v7, %v24025_v63 }
 0x40d   :  { %8936 = vst [vmem:[#allocation2 + $0x50] sm:$0xff] %v8872_v51  ;;  %v8873_v1 = vmax.f32 %v8809_v41, 0.0  ;;  %v9060_v42 = vshrl.u32 %v16262_v59, 16  ;;  %v9107_v54 = vld [vmem:[#allocation2 + $0x30] ss:$2 sm:$0xff]  ;;  %v17637_v47 = vpop.f32.mrb[12].mxu0 }
 0x40e   :  { %v9111_v36 = vld [vmem:[#allocation2 + $0x31] ss:$2 sm:$0xff]  ;;  %8934 = vst [vmem:[#allocation2 + $0x40] sm:$0xff] %v8870_v11  ;;  %v9099_v8 = vld [vmem:[#allocation2 + $0x20] ss:$2 sm:$0xff]  ;;  %v8871_v4 = vmax.f32 %v8807_v62, 0.0  ;;  %v18023_v61 = vadd.f32 %v17637_v47, %v25654_v21 }
 0x40f   :  { %v9116_v17 = vmax.f32 %v9107_v54, %v9111_v36  ;;  %v9103_v15 = vld [vmem:[#allocation2 + $0x21] ss:$2 sm:$0xff]  ;;  %8937 = vst [vmem:[#allocation2 + $0x58] sm:$0xff] %v8873_v1  ;;  %v9062_v32 = vrot.slane %v9060_v42, 7  ;;  %v9063_v9 = vshll.u32 %v16262_v59, 16  ;;  %v8521_v31 = vpop.f32.mrb[13].mxu0 }
 0x410   :  { %v9114_v50 = vmax.f32 %v9099_v8, %v9103_v15  ;;  %8935 = vst [vmem:[#allocation2 + $0x48] sm:$0xff] %v8871_v4  ;;  %v18024_v25 = vadd.f32 %v8521_v31, %v25657_v14  ;;  %v17638_v52 = vpop.f32.mrb[14].mxu0  ;;  %v8812_v7 = vadd.f32 %v18023_v61, %v24025_v63  ;;  %v9572_v41 = vld [vmem:[#allocation3 + $0x4] sm:$0x1]  ;;  %v25658_v11 = vld [vmem:[#allocation39_spill] sm:$0xff]  ;;  %v25659_v1 = vld [vmem:[#allocation40_spill] sm:$0xff] }
 0x411   :  { %v9065_v13 = vor.u32 %v9063_v9, %v9062_v32  ;;  %v9066_v60 = vrot.slane %v9062_v32, 4  ;;  %v8524_v51 = vpop.f32.mrb[15].mxu0  ;;  %v18025_v62 = vadd.f32 %v17638_v52, %v25658_v11  ;;  %v9598_v54 = vshll.u32 %v9572_v41, 16  ;;  %v9548_v36 = vld [vmem:[#allocation3 + $0x50] sm:$0xf] }
 0x412   :  { %v9118_v55 = vmax.f32 %v9114_v50, %v9116_v17  ;;  %v8810_v59 = vadd.f32 %v18024_v25, %v24025_v63  ;;  %v18026_v42 = vadd.f32 %v8524_v51, %v25659_v1  ;;  %v8876_v20 = vmax.f32 %v8812_v7, 0.0  ;;  %v25660_v7 = vld [vmem:[#allocation41_spill] sm:$0xff]  ;;  %v25661_v11 = vld [vmem:[#allocation42_spill] sm:$0xff] }
 0x413   :  { %v9084_v8 = vsel %vm24056_vm10, %v9065_v13, %v9083_v57  ;;  %v9090_v27 = vsel %vm24063_vm11, %v9066_v60, %v9089_v3  ;;  %v8813_v4 = vadd.f32 %v18025_v62, %v24025_v63  ;;  %v24078_v32 = vrot.slane %v9595_v44, 4  ;;  %v9149_v57 = vld [vmem:[#allocation3 + $0x10] sm:$0xf]  ;;  %v9152_v44 = vld [vmem:[#allocation3 + $0x14] sm:$0x1] }
 0x414   :  { %v16264_v15 = vpack.c.bf16 %v9118_v55, %v9118_v55  ;;  %9085 = vst [vmem:[#allocation3 + $0x8] sm:$0xf] %v9084_v8  ;;  %v8874_v17 = vmax.f32 %v8810_v59, 0.0  ;;  %v8811_v47 = vadd.f32 %v18026_v42, %v24025_v63  ;;  %9091 = vst [vmem:[#allocation3 + $0xc] sm:$0x1] %v9090_v27  ;;  %v9701_v61 = vshrl.u32 %v9548_v36, 16 }
 0x415   :  { %8940 = vst [vmem:[#allocation2 + $0x70] sm:$0xff] %v8876_v20  ;;  %v8877_v25 = vmax.f32 %v8813_v4, 0.0  ;;  %v17641_v3 = vpop.f32.mrb[16].mxu0  ;;  %v24082_v42 = vrot.slane %v9598_v54, 5  ;;  %v9704_v8 = vshll.u32 %v9548_v36, 16 }
 0x416   :  { %v9129_v9 = vshrl.u32 %v16264_v15, 16  ;;  %v9170_v50 = vld [vmem:[#allocation2 + $0x50] ss:$2 sm:$0xff]  ;;  %v9174_v21 = vld [vmem:[#allocation2 + $0x51] ss:$2 sm:$0xff]  ;;  %v9132_v31 = vshll.u32 %v16264_v15, 16  ;;  %v18027_v51 = vadd.f32 %v17641_v3, %v25660_v7 }
 0x417   :  { %v9179_v14 = vmax.f32 %v9170_v50, %v9174_v21  ;;  %8938 = vst [vmem:[#allocation2 + $0x60] sm:$0xff] %v8874_v17  ;;  %v8875_v52 = vmax.f32 %v8811_v47, 0.0  ;;  %v9162_v60 = vld [vmem:[#allocation2 + $0x40] ss:$2 sm:$0xff]  ;;  %v9166_v55 = vld [vmem:[#allocation2 + $0x41] ss:$2 sm:$0xff] }
 0x418   :  { %v9131_v13 = vrot.slane %v9129_v9, 7  ;;  %v8537_v41 = vpop.f32.mrb[17].mxu0  ;;  %v9177_v59 = vmax.f32 %v9162_v60, %v9166_v55  ;;  %8941 = vst [vmem:[#allocation2 + $0x78] sm:$0xff] %v8877_v25  ;;  %v8816_v27 = vadd.f32 %v18027_v51, %v24025_v63  ;;  %v25662_v17 = vld [vmem:[#allocation43_spill] sm:$0xff]  ;;  %v25663_v21 = vld [vmem:[#allocation44_spill] sm:$0xff]  ;;  %v24088_v25 = vrot.slane %v9701_v61, 4 }
 0x419   :  { %8939 = vst [vmem:[#allocation2 + $0x68] sm:$0xff] %v8875_v52  ;;  %v18028_v62 = vadd.f32 %v8537_v41, %v25661_v11  ;;  %v17642_v1 = vpop.f32.mrb[18].mxu0  ;;  %v24096_v11 = vrot.slane %v9704_v8, 5 }
 0x41a   :  { %v9134_v15 = vor.u32 %v9132_v31, %v9131_v13  ;;  %v9135_v20 = vrot.slane %v9131_v13, 4  ;;  %v18029_v4 = vadd.f32 %v17642_v1, %v25662_v17  ;;  %v8540_v47 = vpop.f32.mrb[19].mxu0  ;;  %v9181_v9 = vmax.f32 %v9177_v59, %v9179_v14 }
 0x41b   :  { %v8814_v50 = vadd.f32 %v18028_v62, %v24025_v63  ;;  %v18030_v3 = vadd.f32 %v8540_v47, %v25663_v21  ;;  %v8880_v36 = vmax.f32 %v8816_v27, 0.0  ;;  %v9541_v13 = vld [vmem:[#allocation3 + $0x8] sm:$0xf]  ;;  %v9573_v60 = vld [vmem:[#allocation3 + $0xc] sm:$0x1] }
 0x41c   :  { %v9150_v52 = vsel %vm24056_vm10, %v9134_v15, %v9149_v57  ;;  %v9153_v54 = vsel %vm24063_vm11, %v9135_v20, %v9152_v44  ;;  %v8817_v31 = vadd.f32 %v18029_v4, %v24025_v63  ;;  %v16266_v14 = vpack.c.bf16 %v9181_v9, %v9181_v9  ;;  %v25664_v15 = vld [vmem:[#allocation45_spill] sm:$0xff]  ;;  %v25665_v9 = vld [vmem:[#allocation47_spill] sm:$0xff] }
 0x41d   :  { %9151 = vst [vmem:[#allocation3 + $0x10] sm:$0xf] %v9150_v52  ;;  %9154 = vst [vmem:[#allocation3 + $0x14] sm:$0x1] %v9153_v54  ;;  %v8878_v55 = vmax.f32 %v8814_v50, 0.0  ;;  %v8815_v7 = vadd.f32 %v18030_v3, %v24025_v63  ;;  %v9603_v51 = vshrl.u32 %v9541_v13, 16 }
 0x41e   :  { %8944 = vst [vmem:[#allocation2 + $0x90] sm:$0xff] %v8880_v36  ;;  %v8881_v61 = vmax.f32 %v8817_v31, 0.0  ;;  %v17645_v41 = vpop.f32.mrb[20].mxu0  ;;  %v9606_v59 = vshll.u32 %v9541_v13, 16  ;;  %v9612_v57 = vshll.u32 %v9573_v60, 16  ;;  %v9192_v44 = vshrl.u32 %v16266_v14, 16 }
 0x41f   :  { %v9195_v62 = vshll.u32 %v16266_v14, 16  ;;  %8942 = vst [vmem:[#allocation2 + $0x80] sm:$0xff] %v8878_v55  ;;  %v8879_v1 = vmax.f32 %v8815_v7, 0.0  ;;  %v18031_v20 = vadd.f32 %v17645_v41, %v25664_v15  ;;  %v8553_v27 = vpop.f32.mrb[21].mxu0  ;;  %v9233_v17 = vld [vmem:[#allocation2 + $0x70] ss:$2 sm:$0xff] }
 0x420   :  { %v9237_v4 = vld [vmem:[#allocation2 + $0x71] ss:$2 sm:$0xff]  ;;  %v9225_v47 = vld [vmem:[#allocation2 + $0x60] ss:$2 sm:$0xff]  ;;  %8945 = vst [vmem:[#allocation2 + $0x98] sm:$0xff] %v8881_v61  ;;  %v18032_v50 = vadd.f32 %v8553_v27, %v25665_v9  ;;  %v9194_v21 = vrot.slane %v9192_v44, 7 }
 0x421   :  { %v9242_v3 = vmax.f32 %v9233_v17, %v9237_v4  ;;  %v9229_v52 = vld [vmem:[#allocation2 + $0x61] ss:$2 sm:$0xff]  ;;  %8943 = vst [vmem:[#allocation2 + $0x88] sm:$0xff] %v8879_v1  ;;  %v8820_v8 = vadd.f32 %v18031_v20, %v24025_v63  ;;  %v17646_v54 = vpop.f32.mrb[22].mxu0  ;;  %v9605_v36 = vrot.slane %v9603_v51, 4  ;;  %v9608_v15 = vrot.slane %v9606_v59, 5 }
 0x422   :  { %v9212_v31 = vld [vmem:[#allocation3 + $0x18] sm:$0xf]  ;;  %v9215_v13 = vld [vmem:[#allocation3 + $0x1c] sm:$0x1]  ;;  %v9240_v60 = vmax.f32 %v9225_v47, %v9229_v52  ;;  %v8818_v14 = vadd.f32 %v18032_v50, %v24025_v63  ;;  %v8556_v41 = vpop.f32.mrb[23].mxu0  ;;  %v9197_v61 = vor.u32 %v9195_v62, %v9194_v21  ;;  %v9198_v10 = vrot.slane %v9194_v21, 4 }
 0x423   :  { %v25666_v55 = vld [vmem:[#allocation48_spill] sm:$0xff]  ;;  %v8884_v27 = vmax.f32 %v8820_v8, 0.0  ;;  %v25667_v44 = vld [vmem:[#allocation49_spill] sm:$0xff]  ;;  %v9609_v9 = vor.u32 %v9608_v15, %v9605_v36  ;;  %v9614_v62 = vrot.slane %v9612_v57, 5  ;;  %v9707_v57 = vor.u32 %v24096_v11, %v24088_v25 }
 0x424   :  { %v18033_v7 = vadd.f32 %v17646_v54, %v25666_v55  ;;  %v18034_v17 = vadd.f32 %v8556_v41, %v25667_v44  ;;  %v9244_v4 = vmax.f32 %v9240_v60, %v9242_v3  ;;  %v8882_v1 = vmax.f32 %v8818_v14, 0.0  ;;  %v24105_v51 = vld [vmem:[#allocation3 + $0x10] sm:$0xf] }
 0x425   :  { %v9213_v47 = vsel %vm24056_vm10, %v9197_v61, %v9212_v31  ;;  %v9216_v50 = vsel %vm24063_vm11, %v9198_v10, %v9215_v13  ;;  %8948 = vst [vmem:[#allocation2 + $0xb0] sm:$0xff] %v8884_v27  ;;  %v17649_v52 = vpop.f32.mrb[24].mxu0  ;;  %v9610_v8 = vrot.slane %v9609_v9, 4  ;;  %v9617_v54 = vshrl.u32 %v24105_v51, 16  ;;  %v25668_v31 = vld [vmem:[#allocation46_spill] sm:$0xff] }
 0x426   :  { %v8821_v20 = vadd.f32 %v18033_v7, %v24025_v63  ;;  %v8819_v59 = vadd.f32 %v18034_v17, %v24025_v63  ;;  %9214 = vst [vmem:[#allocation3 + $0x18] sm:$0xf] %v9213_v47  ;;  %9217 = vst [vmem:[#allocation3 + $0x1c] sm:$0x1] %v9216_v50  ;;  %v16268_v21 = vpack.c.bf16 %v9244_v4, %v9244_v4  ;;  %v8569_v7 = vpop.f32.mrb[25].mxu0 }
 0x427   :  { %8946 = vst [vmem:[#allocation2 + $0xa0] sm:$0xff] %v8882_v1  ;;  %v9296_v36 = vld [vmem:[#allocation2 + $0x90] ss:$2 sm:$0xff]  ;;  %v9300_v60 = vld [vmem:[#allocation2 + $0x91] ss:$2 sm:$0xff]  ;;  %v18035_v55 = vadd.f32 %v17649_v52, %v25668_v31  ;;  %v9601_v10 = vsel %vm20245_vm5, %v24078_v32, %v24082_v42  ;;  %v18036_v44 = vadd.f32 %v8569_v7, %v23560_v37  ;;  %v17650_v1 = vpop.f32.mrb[26].mxu0 }
 0x428   :  { %v8885_v3 = vmax.f32 %v8821_v20, 0.0  ;;  %v8883_v14 = vmax.f32 %v8819_v59, 0.0  ;;  %v9255_v13 = vshrl.u32 %v16268_v21, 16  ;;  %v9258_v41 = vshll.u32 %v16268_v21, 16  ;;  %v9288_v61 = vld [vmem:[#allocation2 + $0x80] ss:$2 sm:$0xff] }
 0x429   :  { %v9305_v15 = vmax.f32 %v9296_v36, %v9300_v60  ;;  %v9292_v27 = vld [vmem:[#allocation2 + $0x81] ss:$2 sm:$0xff]  ;;  %v8824_v4 = vadd.f32 %v18035_v55, %v24025_v63  ;;  %v9615_v20 = vsel %vm20245_vm5, %v9610_v8, %v9614_v62  ;;  %v9619_v32 = vrot.slane %v9617_v54, 4  ;;  %v8572_v59 = vpop.f32.mrb[27].mxu0  ;;  %v9574_v21 = vld [vmem:[#allocation3 + $0x14] sm:$0x1] }
 0x42a   :  { %8949 = vst [vmem:[#allocation2 + $0xb8] sm:$0xff] %v8885_v3  ;;  %v9303_v17 = vmax.f32 %v9288_v61, %v9292_v27  ;;  %8947 = vst [vmem:[#allocation2 + $0xa8] sm:$0xff] %v8883_v14  ;;  %v9257_v42 = vrot.slane %v9255_v13, 7  ;;  %v8822_v9 = vadd.f32 %v18036_v44, %v24025_v63  ;;  %v18037_v47 = vadd.f32 %v17650_v1, %v23562_v5  ;;  %v9275_v3 = vld [vmem:[#allocation3 + $0x20] sm:$0xf] }
 0x42b   :  { %v15915_v50 = vcombine.low %v9601_v10, %v9615_v20  ;;  %v8888_v37 = vmax.f32 %v8824_v4, 0.0  ;;  %v18038_v36 = vadd.f32 %v8572_v59, %v23564_v39  ;;  %v9620_v60 = vshll.u32 %v24105_v51, 16  ;;  %v9278_v13 = vld [vmem:[#allocation3 + $0x24] sm:$0x1] }
 0x42c   :  { %v9307_v52 = vmax.f32 %v9303_v17, %v9305_v15  ;;  %v9260_v14 = vor.u32 %v9258_v41, %v9257_v42  ;;  %v9261_v31 = vrot.slane %v9257_v42, 4  ;;  %v8886_v55 = vmax.f32 %v8822_v9, 0.0  ;;  %v9338_v9 = vld [vmem:[#allocation3 + $0x28] sm:$0xf] }
 0x42d   :  { %v8825_v62 = vadd.f32 %v18037_v47, %v24025_v63  ;;  %17703 = vmatprep.mubr.bf16.mxu1 %v15915_v50  ;;  %8952 = vst [vmem:[#allocation2 + $0xd0] sm:$0xff] %v8888_v37  ;;  %v8823_v5 = vadd.f32 %v18038_v36, %v24025_v63  ;;  %v24130_v54 = vld [vmem:[#allocation3 + $0x18] sm:$0xf]  ;;  %v9622_v7 = vrot.slane %v9620_v60, 5  ;;  %v9626_v10 = vshll.u32 %v9574_v21, 16  ;;  %v17653_v41 = vpop.f32.mrb[28].mxu0 }
 0x42e   :  { %v16270_v8 = vpack.c.bf16 %v9307_v52, %v9307_v52  ;;  %v9276_v39 = vsel %vm24056_vm10, %v9260_v14, %v9275_v3  ;;  %8950 = vst [vmem:[#allocation2 + $0xc0] sm:$0xff] %v8886_v55  ;;  %v9631_v61 = vshrl.u32 %v24130_v54, 16  ;;  %v9634_v27 = vshll.u32 %v24130_v54, 16  ;;  %v8585_v3 = vpop.f32.mrb[29].mxu0  ;;  %v24143_v55 = vld [vmem:[#allocation3 + $0x54] sm:$0x1] }
 0x42f   :  { %v8889_v15 = vmax.f32 %v8825_v62, 0.0  ;;  %9277 = vst [vmem:[#allocation3 + $0x20] sm:$0xf] %v9276_v39  ;;  %v18039_v20 = vadd.f32 %v17653_v41, %v23576_v29  ;;  %v9623_v42 = vor.u32 %v9622_v7, %v9619_v32  ;;  %v8887_v21 = vmax.f32 %v8823_v5, 0.0  ;;  %v17654_v32 = vpop.f32.mrb[30].mxu0 }
 0x430   :  { %v9318_v44 = vshrl.u32 %v16270_v8, 16  ;;  %v9321_v17 = vshll.u32 %v16270_v8, 16  ;;  %v9279_v52 = vsel %vm24063_vm11, %v9261_v31, %v9278_v13  ;;  %v15932_v37 = vcombine.low %v24105_v51, %v24130_v54  ;;  %v8588_v8 = vpop.f32.mrb[31].mxu0  ;;  %v9575_v5 = vld [vmem:[#allocation3 + $0x1c] sm:$0x1]  ;;  %v18855_v51 = vld [vmem:[#allocation9 + $0xa0] sm:$0xff]  }
 0x431   :  { %v9359_v4 = vld [vmem:[#allocation2 + $0xb0] ss:$2 sm:$0xff]  ;;  %v9363_v1 = vld [vmem:[#allocation2 + $0xb1] ss:$2 sm:$0xff]  ;;  %v9351_v50 = vld [vmem:[#allocation2 + $0xa0] ss:$2 sm:$0xff]  ;;  %v8828_v14 = vadd.f32 %v18039_v20, %v24025_v63  ;;  %v18040_v29 = vadd.f32 %v8585_v3, %v23585_v35  ;;  %v18041_v62 = vadd.f32 %v17654_v32, %v23590_v16  ;;  %v18042_v20 = vadd.f32 %v8588_v8, %v23592_v23 }
 0x432   :  { %v9368_v47 = vmax.f32 %v9359_v4, %v9363_v1  ;;  %v9355_v59 = vld [vmem:[#allocation2 + $0xa1] ss:$2 sm:$0xff]  ;;  %8953 = vst [vmem:[#allocation2 + $0xd8] sm:$0xff] %v8889_v15  ;;  %v9320_v36 = vrot.slane %v9318_v44, 7  ;;  %9280 = vst [vmem:[#allocation3 + $0x24] sm:$0x1] %v9279_v52 }
 0x433   :  { %v9366_v60 = vmax.f32 %v9351_v50, %v9355_v59  ;;  %8951 = vst [vmem:[#allocation2 + $0xc8] sm:$0xff] %v8887_v21  ;;  %v24146_v7 = vrot.slane %v9623_v42, 4  ;;  %v9633_v31 = vrot.slane %v9631_v61, 4  ;;  %v9710_v13 = vshll.u32 %v24143_v55, 16  ;;  %v9341_v4 = vld [vmem:[#allocation3 + $0x2c] sm:$0x1] }
 0x434   :  { %v9323_v39 = vor.u32 %v9321_v17, %v9320_v36  ;;  %v9324_v15 = vrot.slane %v9320_v36, 4  ;;  %v8892_v44 = vmax.f32 %v8828_v14, 0.0  ;;  %v8826_v35 = vadd.f32 %v18040_v29, %v24025_v63  ;;  %v10199_v54 = vld [vmem:[#allocation3] sm:$0xe] }
 0x435   :  { %v9370_v41 = vmax.f32 %v9366_v60, %v9368_v47  ;;  %v8829_v1 = vadd.f32 %v18041_v62, %v24025_v63  ;;  %v9628_v50 = vrot.slane %v9626_v10, 5  ;;  %v9636_v61 = vrot.slane %v9634_v27, 5  ;;  %v17657_v3 = vpop.f32.mrb[32].mxu0 }
 0x436   :  { %v9339_v16 = vsel %vm24056_vm10, %v9323_v39, %v9338_v9  ;;  %8956 = vst [vmem:[#allocation2 + $0xf0] sm:$0xff] %v8892_v44  ;;  %v9640_v59 = vshll.u32 %v9575_v5, 16  ;;  %v8890_v17 = vmax.f32 %v8826_v35, 0.0  ;;  %v8827_v47 = vadd.f32 %v18042_v20, %v24025_v63  ;;  %v24157_v36 = vld [vmem:[#allocation3 + $0x20] sm:$0xf]  ;;  %v8601_v62 = vpop.f32.mrb[33].mxu0 }
 0x437   :  { %v16272_v42 = vpack.c.bf16 %v9370_v41, %v9370_v41  ;;  %9340 = vst [vmem:[#allocation3 + $0x28] sm:$0xf] %v9339_v16  ;;  %v8893_v21 = vmax.f32 %v8829_v1, 0.0  ;;  %v9342_v52 = vsel %vm24063_vm11, %v9324_v15, %v9341_v4  ;;  %v18043_v9 = vadd.f32 %v17657_v3, %v23604_v22  ;;  %v17658_v35 = vpop.f32.mrb[34].mxu0 }
 0x438   :  { %v9637_v29 = vor.u32 %v9636_v61, %v9633_v31  ;;  %9343 = vst [vmem:[#allocation3 + $0x2c] sm:$0x1] %v9342_v52  ;;  %8954 = vst [vmem:[#allocation2 + $0xe0] sm:$0xff] %v8890_v17  ;;  %v8891_v32 = vmax.f32 %v8827_v47, 0.0  ;;  %v9642_v8 = vrot.slane %v9640_v59, 5  ;;  %v9645_v5 = vshrl.u32 %v24157_v36, 16 }
 0x439   :  { %v9381_v23 = vshrl.u32 %v16272_v42, 16  ;;  %v9384_v10 = vshll.u32 %v16272_v42, 16  ;;  %v9422_v60 = vld [vmem:[#allocation2 + $0xd0] ss:$2 sm:$0xff]  ;;  %v9426_v14 = vld [vmem:[#allocation2 + $0xd1] ss:$2 sm:$0xff]  ;;  %v8832_v44 = vadd.f32 %v18043_v9, %v24025_v63  ;;  %v18044_v4 = vadd.f32 %v8601_v62, %v23616_v45 }
 0x43a   :  { %v9431_v27 = vmax.f32 %v9422_v60, %v9426_v14  ;;  %8957 = vst [vmem:[#allocation2 + $0xf8] sm:$0xff] %v8893_v21  ;;  %v9414_v15 = vld [vmem:[#allocation2 + $0xc0] ss:$2 sm:$0xff]  ;;  %v9418_v41 = vld [vmem:[#allocation2 + $0xc1] ss:$2 sm:$0xff]  ;;  %v9629_v22 = vsel %vm20245_vm5, %v24146_v7, %v9628_v50  ;;  %8955 = vst [vmem:[#allocation2 + $0xe8] sm:$0xff] %v8891_v32  ;;  %v18045_v20 = vadd.f32 %v17658_v35, %v23621_v28 }
 0x43b   :  { %v9383_v39 = vrot.slane %v9381_v23, 7  ;;  %v9401_v31 = vld [vmem:[#allocation3 + $0x30] sm:$0xf]  ;;  %v9429_v1 = vmax.f32 %v9414_v15, %v9418_v41  ;;  %v9638_v16 = vrot.slane %v9637_v29, 4  ;;  %v8604_v42 = vpop.f32.mrb[35].mxu0  ;;  %v9647_v61 = vrot.slane %v9645_v5, 4 }
 0x43c   :  { %v8896_v21 = vmax.f32 %v8832_v44, 0.0  ;;  %v8830_v47 = vadd.f32 %v18044_v4, %v24025_v63  ;;  %v8833_v45 = vadd.f32 %v18045_v20, %v24025_v63  ;;  %v18046_v7 = vadd.f32 %v8604_v42, %v23623_v56  ;;  %v9404_v50 = vld [vmem:[#allocation3 + $0x34] sm:$0x1]  ;;  %v18838_v23 = vld [vmem:[#allocation9 + $0x8] sm:$0xff]   ;;  %v9576_v9 = vld [vmem:[#allocation3 + $0x24] sm:$0x1] }
 0x43d   :  { %v9386_v59 = vor.u32 %v9384_v10, %v9383_v39  ;;  %v9387_v17 = vrot.slane %v9383_v39, 4  ;;  %v9433_v3 = vmax.f32 %v9429_v1, %v9431_v27  ;;  %v9643_v52 = vsel %vm20245_vm5, %v9638_v16, %v9642_v8  ;;  %v17661_v8 = vpop.f32.mrb[36].mxu0  ;;  %v25669_v15 = vld [vmem:[#allocation52_spill] sm:$0xff] }
 0x43e   :  { %8960 = vst [vmem:[#allocation2 + $0x110] sm:$0xff] %v8896_v21  ;;  %v8894_v60 = vmax.f32 %v8830_v47, 0.0  ;;  %v15916_v10 = vcombine.low %v9629_v22, %v9643_v52  ;;  %v24174_v14 = vld [vmem:[#allocation3 + $0x28] sm:$0xf]  ;;  %v9648_v29 = vshll.u32 %v24157_v36, 16  ;;  %v8897_v32 = vmax.f32 %v8833_v45, 0.0 }
 0x43f   :  { %v9402_v28 = vsel %vm24056_vm10, %v9386_v59, %v9401_v31  ;;  %v16274_v27 = vpack.c.bf16 %v9433_v3, %v9433_v3  ;;  %v8831_v62 = vadd.f32 %v18046_v7, %v24025_v63  ;;  %v24181_v56 = vrot.slane %v9707_v57, 4  ;;  %v8617_v44 = vpop.f32.mrb[37].mxu0  ;;  %v25670_v59 = vld [vmem:[#allocation50_spill] sm:$0xff]  ;;  %v25671_v47 = vld [vmem:[#allocation53_spill] sm:$0xff] }
 0x440   :  { %9403 = vst [vmem:[#allocation3 + $0x30] sm:$0xf] %v9402_v28  ;;  %8958 = vst [vmem:[#allocation2 + $0x100] sm:$0xff] %v8894_v60  ;;  %17704 = vmatmul.mubr.bf16.vlgmr.msra.gmra.mrb[64].mxu1 %v15916_v10  ;;  %v18047_v41 = vadd.f32 %v17661_v8, %v25669_v15  ;;  %v9650_v4 = vrot.slane %v9648_v29, 5  ;;  %v9405_v35 = vsel %vm24063_vm11, %v9387_v17, %v9404_v50  ;;  %v17662_v11 = vpop.f32.mrb[38].mxu0  ;;  %v9654_v57 = vshll.u32 %v9576_v9, 16 }
 0x441   :  { %v9485_v5 = vld [vmem:[#allocation2 + $0xf0] ss:$2 sm:$0xff]  ;;  %v9489_v39 = vld [vmem:[#allocation2 + $0xf1] ss:$2 sm:$0xff]  ;;  %v15933_v22 = vcombine.low %v24157_v36, %v24174_v14  ;;  %v9444_v31 = vshrl.u32 %v16274_v27, 16  ;;  %8961 = vst [vmem:[#allocation2 + $0x118] sm:$0xff] %v8897_v32  ;;  %17720 = vmatpush3.bf16.msra.mxu1 %v24049_v49  ;;  %v18048_v21 = vadd.f32 %v8617_v44, %v25670_v59  ;;  %v18049_v17 = vadd.f32 %v17662_v11, %v25671_v47 }
 0x442   :  { %v9494_v1 = vmax.f32 %v9485_v5, %v9489_v39  ;;  %v8895_v25 = vmax.f32 %v8831_v62, 0.0  ;;  %9406 = vst [vmem:[#allocation3 + $0x34] sm:$0x1] %v9405_v35  ;;  %v9477_v20 = vld [vmem:[#allocation2 + $0xe0] ss:$2 sm:$0xff]  ;;  %v8836_v42 = vadd.f32 %v18047_v41, %v24025_v63  ;;  %v8620_v3 = vpop.f32.mrb[39].mxu0  ;;  %v9651_v45 = vor.u32 %v9650_v4, %v9647_v61  ;;  %17721 = vmatprep.subr.bf16.mxu1 %v18838_v23 }
 0x443   :  { %v9481_v16 = vld [vmem:[#allocation2 + $0xe1] ss:$2 sm:$0xff]  ;;  %v9446_v7 = vrot.slane %v9444_v31, 7  ;;  %v9447_v50 = vshll.u32 %v16274_v27, 16  ;;  %v25672_v60 = vld [vmem:[#allocation51_spill] sm:$0xff]  ;;  %v8834_v29 = vadd.f32 %v18048_v21, %v24025_v63  ;;  %v8837_v32 = vadd.f32 %v18049_v17, %v24025_v63 }
 0x444   :  { %v18839_v52 = vld [vmem:[#allocation9 + $0x10] sm:$0xff]   ;;  %v9492_v28 = vmax.f32 %v9477_v20, %v9481_v16  ;;  %8959 = vst [vmem:[#allocation2 + $0x108] sm:$0xff] %v8895_v25  ;;  %v18050_v10 = vadd.f32 %v8620_v3, %v25672_v60  ;;  %v9464_v9 = vld [vmem:[#allocation3 + $0x38] sm:$0xf]  ;;  %v8900_v49 = vmax.f32 %v8836_v42, 0.0  ;;  %v24195_v62 = vrot.slane %v9651_v45, 4 }
 0x445   :  { %v9449_v8 = vor.u32 %v9447_v50, %v9446_v7  ;;  %v9450_v5 = vrot.slane %v9446_v7, 4  ;;  %v9467_v15 = vld [vmem:[#allocation3 + $0x3c] sm:$0x1]  ;;  %17722 = vmatpush3.bf16.msra.mxu1 %v18838_v23  ;;  %v18840_v27 = vld [vmem:[#allocation9 + $0x18] sm:$0xff]   ;;  %v8898_v41 = vmax.f32 %v8834_v29, 0.0  ;;  %v8901_v44 = vmax.f32 %v8837_v32, 0.0 }
 0x446   :  { %v9496_v39 = vmax.f32 %v9492_v28, %v9494_v1  ;;  %v8835_v61 = vadd.f32 %v18050_v10, %v24025_v63  ;;  %8964 = vst [vmem:[#allocation2 + $0x130] sm:$0xff] %v8900_v49  ;;  %v9577_v4 = vld [vmem:[#allocation3 + $0x2c] sm:$0x1]  ;;  %v24198_v35 = vrot.slane %v9654_v57, 5  ;;  %v9659_v31 = vshrl.u32 %v24174_v14, 16  ;;  %17723 = vmatprep.subr.bf16.mxu1 %v18839_v52  ;;  %v17665_v1 = vpop.f32.mrb[40].mxu0 }
 0x447   :  { %v9465_v25 = vsel %vm24056_vm10, %v9449_v8, %v9464_v9  ;;  %v9662_v16 = vshll.u32 %v24174_v14, 16  ;;  %v24204_v42 = vld [vmem:[#allocation3 + $0x30] sm:$0xf]  ;;  %8962 = vst [vmem:[#allocation2 + $0x120] sm:$0xff] %v8898_v41  ;;  %8965 = vst [vmem:[#allocation2 + $0x138] sm:$0xff] %v8901_v44  ;;  %v8633_v47 = vpop.f32.mrb[41].mxu0  ;;  %v9468_v45 = vsel %vm24063_vm11, %v9450_v5, %v9467_v15 }
 0x448   :  { %v16276_v11 = vpack.c.bf16 %v9496_v39, %v9496_v39  ;;  %v8899_v20 = vmax.f32 %v8835_v61, 0.0  ;;  %9466 = vst [vmem:[#allocation3 + $0x38] sm:$0xf] %v9465_v25  ;;  %v9040_v23 = vld [vmem:[#allocation2 + $0x110] ss:$2 sm:$0xff]  ;;  %v9657_v17 = vsel %vm20245_vm5, %v24195_v62, %v24198_v35  ;;  %v9661_v3 = vrot.slane %v9659_v31, 4 }
 0x449   :  { %v9044_v59 = vld [vmem:[#allocation2 + $0x111] ss:$2 sm:$0xff]  ;;  %v17666_v9 = vpop.f32.mrb[42].mxu0  ;;  %9469 = vst [vmem:[#allocation3 + $0x3c] sm:$0x1] %v9468_v45  ;;  %17724 = vmatpush3.bf16.msra.mxu1 %v18839_v52  ;;  %v9664_v61 = vrot.slane %v9662_v16, 5 }
 0x44a   :  { %v25673_v57 = vld [vmem:[#allocation54_spill] sm:$0xff]  ;;  %v9507_v7 = vshrl.u32 %v16276_v11, 16  ;;  %v9510_v50 = vshll.u32 %v16276_v11, 16  ;;  %v9048_v28 = vmax.f32 %v9040_v23, %v9044_v59  ;;  %8963 = vst [vmem:[#allocation2 + $0x128] sm:$0xff] %v8899_v20  ;;  %v25674_v60 = vld [vmem:[#allocation55_spill] sm:$0xff]  ;;  %v18053_v39 = vadd.f32 %v17666_v9, %v23689_v24  ;;  %17725 = vmatprep.subr.bf16.mxu1 %v18840_v27  ;;  %v8636_v31 = vpop.f32.mrb[43].mxu0 }
 0x44b   :  { %v18051_v21 = vadd.f32 %v17665_v1, %v25673_v57  ;;  %v18052_v10 = vadd.f32 %v8633_v47, %v25674_v60  ;;  %v18841_v49 = vld [vmem:[#allocation9 + $0x20] sm:$0xff]   ;;  %v9032_v29 = vld [vmem:[#allocation2 + $0x100] ss:$2 sm:$0xff]  ;;  %v9036_v32 = vld [vmem:[#allocation2 + $0x101] ss:$2 sm:$0xff]  ;;  %v9668_v41 = vshll.u32 %v9577_v4, 16  ;;  %v9665_v20 = vor.u32 %v9664_v61, %v9661_v3 }
 0x44c   :  { %v9509_v5 = vrot.slane %v9507_v7, 7  ;;  %v9046_v15 = vmax.f32 %v9032_v29, %v9036_v32  ;;  %v9673_v25 = vshrl.u32 %v24204_v42, 16  ;;  %v8841_v52 = vadd.f32 %v18053_v39, %v24025_v63  ;;  %v9527_v23 = vld [vmem:[#allocation3 + $0x40] sm:$0xf]  ;;  %v18842_v60 = vld [vmem:[#allocation9 + $0x28] sm:$0xff]  }
 0x44d   :  { %v8840_v8 = vadd.f32 %v18051_v21, %v24025_v63  ;;  %v8838_v44 = vadd.f32 %v18052_v10, %v24025_v63  ;;  %v9670_v1 = vrot.slane %v9668_v41, 5  ;;  %17726 = vmatpush3.bf16.msra.mxu1 %v18840_v27  ;;  %v9666_v16 = vrot.slane %v9665_v20, 4  ;;  %v25675_v47 = vld [vmem:[#allocation56_spill] sm:$0xff]  ;;  %v9530_v10 = vld [vmem:[#allocation3 + $0x44] sm:$0x1]  ;;  %v17669_v32 = vpop.f32.mrb[44].mxu0 }
 0x44e   :  { %v9512_v59 = vor.u32 %v9510_v50, %v9509_v5  ;;  %v9513_v57 = vrot.slane %v9509_v5, 4  ;;  %v9050_v21 = vmax.f32 %v9046_v15, %v9048_v28  ;;  %v8905_v4 = vmax.f32 %v8841_v52, 0.0  ;;  %17727 = vmatprep.subr.bf16.mxu1 %v18841_v49  ;;  %v9109_v29 = vld [vmem:[#allocation2 + $0x130] ss:$2 sm:$0xff]  ;;  %v9113_v3 = vld [vmem:[#allocation2 + $0x131] ss:$2 sm:$0xff] }
 0x44f   :  { %v8904_v11 = vmax.f32 %v8840_v8, 0.0  ;;  %v8902_v24 = vmax.f32 %v8838_v44, 0.0  ;;  %v18054_v45 = vadd.f32 %v8636_v31, %v25675_v47  ;;  %v24220_v7 = vrot.slane %v9673_v25, 4  ;;  %v25676_v15 = vld [vmem:[#allocation59_spill] sm:$0xff]  ;;  %v8649_v31 = vpop.f32.mrb[45].mxu0 }
 0x450   :  { %v16263_v9 = vpack.c.bf16 %v9050_v21, %v9050_v21  ;;  %v9676_v50 = vshll.u32 %v24204_v42, 16  ;;  %v9528_v27 = vsel %vm24056_vm10, %v9512_v59, %v9527_v23  ;;  %v9531_v28 = vsel %vm24063_vm11, %v9513_v57, %v9530_v10  ;;  %8969 = vst [vmem:[#allocation2 + $0x158] sm:$0xff] %v8905_v4  ;;  %v17670_v23 = vpop.f32.mrb[46].mxu0  ;;  %v24236_v59 = vld [vmem:[#allocation3 + $0x34] sm:$0x1]  ;;  %v25677_v21 = vld [vmem:[#allocation58_spill] sm:$0xff] }
 0x451   :  { %8968 = vst [vmem:[#allocation2 + $0x150] sm:$0xff] %v8904_v11  ;;  %8966 = vst [vmem:[#allocation2 + $0x140] sm:$0xff] %v8902_v24  ;;  %v9117_v8 = vmax.f32 %v9109_v29, %v9113_v3  ;;  %v9101_v39 = vld [vmem:[#allocation2 + $0x120] ss:$2 sm:$0xff]  ;;  %v9105_v61 = vld [vmem:[#allocation2 + $0x121] ss:$2 sm:$0xff]  ;;  %v9671_v41 = vsel %vm20245_vm5, %v9666_v16, %v9670_v1  ;;  %v8839_v5 = vadd.f32 %v18054_v45, %v24025_v63  ;;  %17728 = vmatpush3.bf16.msra.mxu1 %v18841_v49 }
 0x452   :  { %v18055_v44 = vadd.f32 %v17669_v32, %v25676_v15  ;;  %9529 = vst [vmem:[#allocation3 + $0x40] sm:$0xf] %v9528_v27  ;;  %9532 = vst [vmem:[#allocation3 + $0x44] sm:$0x1] %v9531_v28  ;;  %v9068_v25 = vshrl.u32 %v16263_v9, 16  ;;  %v9071_v11 = vshll.u32 %v16263_v9, 16  ;;  %v9115_v52 = vmax.f32 %v9101_v39, %v9105_v61  ;;  %17729 = vmatprep.subr.bf16.mxu1 %v18842_v60 }
 0x453   :  { %v15917_v20 = vcombine.low %v9657_v17, %v9671_v41  ;;  %v8903_v1 = vmax.f32 %v8839_v5, 0.0  ;;  %v18056_v24 = vadd.f32 %v8649_v31, %v25677_v21  ;;  %v25678_v4 = vld [vmem:[#allocation57_spill] sm:$0xff]  ;;  %v8652_v47 = vpop.f32.mrb[47].mxu0  ;;  %v9678_v35 = vrot.slane %v9676_v50, 5  ;;  %v9092_v17 = vld [vmem:[#allocation3 + $0x58] sm:$0xf] }
 0x454   :  { %v8844_v57 = vadd.f32 %v18055_v44, %v24025_v63  ;;  %v18057_v16 = vadd.f32 %v17670_v23, %v25678_v4  ;;  %v18843_v45 = vld [vmem:[#allocation9 + $0x30] sm:$0xff]   ;;  %v9070_v10 = vrot.slane %v9068_v25, 7  ;;  %v9119_v9 = vmax.f32 %v9115_v52, %v9117_v8  ;;  %v9095_v27 = vld [vmem:[#allocation3 + $0x5c] sm:$0x1]  ;;  %v24251_v50 = vld [vmem:[#allocation3 + $0x38] sm:$0xf] }
 0x455   :  { %17707 = vmatprep.mubr.bf16.mxu1 %v15917_v20  ;;  %v18058_v62 = vadd.f32 %v8652_v47, %v23855_v38  ;;  %8967 = vst [vmem:[#allocation2 + $0x148] sm:$0xff] %v8903_v1  ;;  %v24245_v63 = vld [vmem:[%s25367_s2] ss:$0 sm:$0xff]  ;;  %v9682_v32 = vshll.u32 %v24236_v59, 16  ;;  %17730 = vmatpush3.bf16.msra.mxu1 %v18842_v60  ;;  %v24253_v5 = vld [vmem:[#allocation3 + $0x3c] sm:$0x1]  ;;  %v9679_v15 = vor.u32 %v9678_v35, %v24220_v7 }
 0x456   :  { %v8908_v29 = vmax.f32 %v8844_v57, 0.0  ;;  %v8842_v49 = vadd.f32 %v24245_v63, %v18056_v24  ;;  %v8845_v3 = vadd.f32 %v24245_v63, %v18057_v16  ;;  %v9073_v28 = vor.u32 %v9071_v11, %v9070_v10  ;;  %17731 = vmatprep.subr.bf16.mxu1 %v18843_v45  ;;  %v18845_v31 = vld [vmem:[#allocation9 + $0x38] sm:$0xff]   ;;  %v9155_v24 = vld [vmem:[#allocation3 + $0x60] sm:$0xf]  ;;  %v18857_v14 = vld [vmem:[#allocation9 + $0xa8] sm:$0xff]  }
 0x457   :  { %v9074_v8 = vrot.slane %v9070_v10, 4  ;;  %v16265_v39 = vpack.c.bf16 %v9119_v9, %v9119_v9  ;;  %v8843_v38 = vadd.f32 %v24245_v63, %v18058_v62  ;;  %v24258_v44 = vrot.slane %v9710_v13, 5  ;;  %v17673_v13 = vpop.f32.mrb[48].mxu0  ;;  %v25679_v9 = vld [vmem:[#allocation62_spill] sm:$0xff] }
 0x458   :  { %8972 = vst [vmem:[#allocation2 + $0x170] sm:$0xff] %v8908_v29  ;;  %v8906_v61 = vmax.f32 %v8842_v49, 0.0  ;;  %v8909_v41 = vmax.f32 %v8845_v3, 0.0  ;;  %v9093_v25 = vsel %vm24056_vm10, %v9073_v28, %v9092_v17  ;;  %v9172_v52 = vld [vmem:[#allocation2 + $0x150] ss:$2 sm:$0xff]  ;;  %v24262_v60 = vrot.slane %v9682_v32, 5 }
 0x459   :  { %v9137_v11 = vshrl.u32 %v16265_v39, 16  ;;  %v9176_v20 = vld [vmem:[#allocation2 + $0x151] ss:$2 sm:$0xff]  ;;  %v9096_v23 = vsel %vm24063_vm11, %v9074_v8, %v9095_v27  ;;  %9094 = vst [vmem:[#allocation3 + $0x58] sm:$0xf] %v9093_v25  ;;  %v9140_v1 = vshll.u32 %v16265_v39, 16  ;;  %v18059_v4 = vadd.f32 %v17673_v13, %v23868_v19  ;;  %17732 = vmatpush3.bf16.msra.mxu1 %v18843_v45 }
 0x45a   :  { %v9180_v7 = vmax.f32 %v9172_v52, %v9176_v20  ;;  %8970 = vst [vmem:[#allocation2 + $0x160] sm:$0xff] %v8906_v61  ;;  %8973 = vst [vmem:[#allocation2 + $0x178] sm:$0xff] %v8909_v41  ;;  %v8907_v55 = vmax.f32 %v8843_v38, 0.0  ;;  %v9687_v57 = vshrl.u32 %v24251_v50, 16  ;;  %v8665_v16 = vpop.f32.mrb[49].mxu0  ;;  %v9690_v47 = vshll.u32 %v24251_v50, 16  ;;  %17733 = vmatprep.subr.bf16.mxu1 %v18845_v31 }
 0x45b   :  { %9097 = vst [vmem:[#allocation3 + $0x5c] sm:$0x1] %v9096_v23  ;;  %v9139_v21 = vrot.slane %v9137_v11, 7  ;;  %v9696_v10 = vshll.u32 %v24253_v5, 16  ;;  %v18060_v62 = vadd.f32 %v8665_v16, %v25679_v9  ;;  %v17674_v35 = vpop.f32.mrb[50].mxu0  ;;  %v9680_v17 = vrot.slane %v9679_v15, 4 }
 0x45c   :  { %8971 = vst [vmem:[#allocation2 + $0x168] sm:$0xff] %v8907_v55  ;;  %v9689_v29 = vrot.slane %v9687_v57, 4  ;;  %v9158_v49 = vld [vmem:[#allocation3 + $0x64] sm:$0x1]  ;;  %v24271_v3 = vld [vmem:[#allocation9 + $0x80] sm:$0xff]   ;;  %v15934_v32 = vcombine.low %v24204_v42, %v24251_v50  ;;  %v8848_v39 = vadd.f32 %v24245_v63, %v18059_v4  ;;  %v8668_v61 = vpop.f32.mrb[51].mxu0 }
 0x45d   :  { %v9142_v19 = vor.u32 %v9140_v1, %v9139_v21  ;;  %v9143_v27 = vrot.slane %v9139_v21, 4  ;;  %v9164_v28 = vld [vmem:[#allocation2 + $0x140] ss:$2 sm:$0xff]  ;;  %v9168_v8 = vld [vmem:[#allocation2 + $0x141] ss:$2 sm:$0xff]  ;;  %v8846_v15 = vadd.f32 %v24245_v63, %v18060_v62  ;;  %v9692_v25 = vrot.slane %v9690_v47, 5  ;;  %17734 = vmatpush3.bf16.msra.mxu1 %v18845_v31 }
 0x45e   :  { %v25680_v45 = vld [vmem:[#allocation61_spill] sm:$0xff]  ;;  %v9178_v41 = vmax.f32 %v9164_v28, %v9168_v8  ;;  %v9698_v11 = vrot.slane %v9696_v10, 5  ;;  %v8912_v20 = vmax.f32 %v8848_v39, 0.0  ;;  %v18062_v1 = vadd.f32 %v8668_v61, %v23885_v33  ;;  %17751 = vmatprep.subr.bf16.mxu1 %v24271_v3  ;;  %v17677_v10 = vpop.f32.mrb[52].mxu0 }
 0x45f   :  { %v18061_v38 = vadd.f32 %v17674_v35, %v25680_v45  ;;  %v9156_v52 = vsel %vm24056_vm10, %v9142_v19, %v9155_v24  ;;  %v8910_v13 = vmax.f32 %v8846_v15, 0.0  ;;  %v9693_v57 = vor.u32 %v9692_v25, %v9689_v29  ;;  %v8681_v62 = vpop.f32.mrb[53].mxu0  ;;  %v19295_v42 = vld [vmem:[#allocation3 + $0x4] sm:$0x1] }
 0x460   :  { %9157 = vst [vmem:[#allocation3 + $0x60] sm:$0xf] %v9156_v52  ;;  %v9182_v55 = vmax.f32 %v9178_v41, %v9180_v7  ;;  %v9159_v21 = vsel %vm24063_vm11, %v9143_v27, %v9158_v49  ;;  %8976 = vst [vmem:[#allocation2 + $0x190] sm:$0xff] %v8912_v20  ;;  %v8847_v24 = vadd.f32 %v24245_v63, %v18062_v1  ;;  %v24287_v35 = vld [vmem:[#allocation3 + $0x58] sm:$0xf]  ;;  %v17678_v8 = vpop.f32.mrb[54].mxu0 }
 0x461   :  { %v8849_v23 = vadd.f32 %v24245_v63, %v18061_v38  ;;  %v9235_v4 = vld [vmem:[#allocation2 + $0x170] ss:$2 sm:$0xff]  ;;  %v9239_v16 = vld [vmem:[#allocation2 + $0x171] ss:$2 sm:$0xff]  ;;  %9160 = vst [vmem:[#allocation3 + $0x64] sm:$0x1] %v9159_v21  ;;  %v18063_v7 = vadd.f32 %v17677_v10, %v23896_v43  ;;  %v9685_v19 = vsel %vm20245_vm5, %v9680_v17, %v24262_v60  ;;  %v18064_v28 = vadd.f32 %v8681_v62, %v23906_v58 }
 0x462   :  { %v16267_v9 = vpack.c.bf16 %v9182_v55, %v9182_v55  ;;  %v9243_v33 = vmax.f32 %v9235_v4, %v9239_v16  ;;  %8974 = vst [vmem:[#allocation2 + $0x180] sm:$0xff] %v8910_v13  ;;  %v9694_v31 = vrot.slane %v9693_v57, 4  ;;  %v8911_v27 = vmax.f32 %v8847_v24, 0.0  ;;  %v8684_v41 = vpop.f32.mrb[55].mxu0  ;;  %v25681_v58 = vld [vmem:[#allocation60_spill] sm:$0xff] }
 0x463   :  { %v8913_v47 = vmax.f32 %v8849_v23, 0.0  ;;  %v9227_v29 = vld [vmem:[#allocation2 + $0x160] ss:$2 sm:$0xff]  ;;  %v9231_v49 = vld [vmem:[#allocation2 + $0x161] ss:$2 sm:$0xff]  ;;  %v9713_v39 = vsel %vm20245_vm5, %v24181_v56, %v24258_v44  ;;  %v8852_v60 = vadd.f32 %v24245_v63, %v18063_v7  ;;  %v8850_v17 = vadd.f32 %v24245_v63, %v18064_v28 }
 0x464   :  { %v9200_v43 = vshrl.u32 %v16267_v9, 16  ;;  %v9203_v45 = vshll.u32 %v16267_v9, 16  ;;  %v9241_v38 = vmax.f32 %v9227_v29, %v9231_v49  ;;  %v9699_v61 = vsel %vm20245_vm5, %v9694_v31, %v9698_v11  ;;  %8975 = vst [vmem:[#allocation2 + $0x188] sm:$0xff] %v8911_v27  ;;  %v24303_v1 = vld [vmem:[#allocation3 + $0x5c] sm:$0x1] }
 0x465   :  { %8977 = vst [vmem:[#allocation2 + $0x198] sm:$0xff] %v8913_v47  ;;  %v15918_v15 = vcombine.low %v9685_v19, %v9699_v61  ;;  %v18065_v25 = vadd.f32 %v17678_v8, %v25681_v58  ;;  %v18066_v23 = vadd.f32 %v8684_v41, %v23913_v30  ;;  %v9715_v55 = vshrl.u32 %v24287_v35, 16  ;;  %v9218_v13 = vld [vmem:[#allocation3 + $0x68] sm:$0xf]  ;;  %v9221_v9 = vld [vmem:[#allocation3 + $0x6c] sm:$0x1] }
 0x466   :  { %v9202_v52 = vrot.slane %v9200_v43, 7  ;;  %v9245_v20 = vmax.f32 %v9241_v38, %v9243_v33  ;;  %v8916_v11 = vmax.f32 %v8852_v60, 0.0  ;;  %v8914_v57 = vmax.f32 %v8850_v17, 0.0  ;;  %v17681_v31 = vpop.f32.mrb[56].mxu0 }
 0x467   :  { %17708 = vmatmul.mubr.bf16.gmra.mrb[68].mxu1 %v15918_v15  ;;  %v8853_v21 = vadd.f32 %v24245_v63, %v18065_v25  ;;  %v9718_v4 = vshll.u32 %v24287_v35, 16  ;;  %v8851_v10 = vadd.f32 %v24245_v63, %v18066_v23  ;;  %v24309_v33 = vld [vmem:[#allocation3 + $0x60] sm:$0xf]  ;;  %v9717_v7 = vrot.slane %v9715_v55, 4  ;;  %v8697_v61 = vpop.f32.mrb[57].mxu0 }
 0x468   :  { %v9205_v16 = vor.u32 %v9203_v45, %v9202_v52  ;;  %v9206_v47 = vrot.slane %v9202_v52, 4  ;;  %v16269_v24 = vpack.c.bf16 %v9245_v20, %v9245_v20  ;;  %8980 = vst [vmem:[#allocation2 + $0x1b0] sm:$0xff] %v8916_v11  ;;  %8978 = vst [vmem:[#allocation2 + $0x1a0] sm:$0xff] %v8914_v57  ;;  %v9724_v29 = vshll.u32 %v24303_v1, 16  ;;  %v17682_v20 = vpop.f32.mrb[58].mxu0 }
 0x469   :  { %v8917_v30 = vmax.f32 %v8853_v21, 0.0  ;;  %v9720_v62 = vrot.slane %v9718_v4, 5  ;;  %v18067_v43 = vadd.f32 %v17681_v31, %v23922_v46  ;;  %v8915_v38 = vmax.f32 %v8851_v10, 0.0  ;;  %v9281_v55 = vld [vmem:[#allocation3 + $0x70] sm:$0xf]  ;;  %v8700_v57 = vpop.f32.mrb[59].mxu0 }
 0x46a   :  { %v9219_v49 = vsel %vm24056_vm10, %v9205_v16, %v9218_v13  ;;  %v9263_v19 = vshrl.u32 %v16269_v24, 16  ;;  %v9266_v27 = vshll.u32 %v16269_v24, 16  ;;  %v9726_v15 = vrot.slane %v9724_v29, 5  ;;  %v9284_v31 = vld [vmem:[#allocation3 + $0x74] sm:$0x1] }
 0x46b   :  { %9220 = vst [vmem:[#allocation3 + $0x68] sm:$0xf] %v9219_v49  ;;  %8981 = vst [vmem:[#allocation2 + $0x1b8] sm:$0xff] %v8917_v30  ;;  %v9721_v41 = vor.u32 %v9720_v62, %v9717_v7  ;;  %v9290_v17 = vld [vmem:[#allocation2 + $0x180] ss:$2 sm:$0xff]  ;;  %v8856_v25 = vadd.f32 %v24245_v63, %v18067_v43  ;;  %v18068_v52 = vadd.f32 %v8697_v61, %v23932_v26  ;;  %v9729_v21 = vshrl.u32 %v24309_v33, 16 }
 0x46c   :  { %v9298_v28 = vld [vmem:[#allocation2 + $0x190] ss:$2 sm:$0xff]  ;;  %v9302_v8 = vld [vmem:[#allocation2 + $0x191] ss:$2 sm:$0xff]  ;;  %v9265_v60 = vrot.slane %v9263_v19, 7  ;;  %v9222_v23 = vsel %vm24063_vm11, %v9206_v47, %v9221_v9  ;;  %8979 = vst [vmem:[#allocation2 + $0x1a8] sm:$0xff] %v8915_v38  ;;  %v18069_v13 = vadd.f32 %v17682_v20, %v23937_v18  ;;  %v18070_v9 = vadd.f32 %v8700_v57, %v23939_v40 }
 0x46d   :  { %v9306_v45 = vmax.f32 %v9298_v28, %v9302_v8  ;;  %v9294_v58 = vld [vmem:[#allocation2 + $0x181] ss:$2 sm:$0xff]  ;;  %v9722_v11 = vrot.slane %v9721_v41, 4  ;;  %9223 = vst [vmem:[#allocation3 + $0x6c] sm:$0x1] %v9222_v23  ;;  %v8920_v24 = vmax.f32 %v8856_v25, 0.0  ;;  %v8854_v10 = vadd.f32 %v24245_v63, %v18068_v52 }
 0x46e   :  { %v9304_v46 = vmax.f32 %v9290_v17, %v9294_v58  ;;  %v9268_v4 = vor.u32 %v9266_v27, %v9265_v60  ;;  %v9269_v16 = vrot.slane %v9265_v60, 4  ;;  %v8857_v30 = vadd.f32 %v24245_v63, %v18069_v13  ;;  %v17685_v27 = vpop.f32.mrb[60].mxu0  ;;  %v9344_v57 = vld [vmem:[#allocation3 + $0x78] sm:$0xf] }
 0x46f   :  { %v9727_v47 = vsel %vm20245_vm5, %v9722_v11, %v9726_v15  ;;  %8984 = vst [vmem:[#allocation2 + $0x1d0] sm:$0xff] %v8920_v24  ;;  %v8918_v7 = vmax.f32 %v8854_v10, 0.0  ;;  %v8855_v19 = vadd.f32 %v24245_v63, %v18070_v9  ;;  %v9732_v40 = vshll.u32 %v24309_v33, 16  ;;  %v24344_v11 = vld [vmem:[#allocation3 + $0x64] sm:$0x1] }
 0x470   :  { %v9308_v26 = vmax.f32 %v9304_v46, %v9306_v45  ;;  %v9282_v18 = vsel %vm24056_vm10, %v9268_v4, %v9281_v55  ;;  %v15919_v62 = vcombine.low %v9713_v39, %v9727_v47  ;;  %v8921_v49 = vmax.f32 %v8857_v30, 0.0  ;;  %v8713_v45 = vpop.f32.mrb[61].mxu0  ;;  %v9347_v47 = vld [vmem:[#allocation3 + $0x7c] sm:$0x1] }
 0x471   :  { %9283 = vst [vmem:[#allocation3 + $0x70] sm:$0xf] %v9282_v18  ;;  %8982 = vst [vmem:[#allocation2 + $0x1c0] sm:$0xff] %v8918_v7  ;;  %v18071_v43 = vadd.f32 %v17685_v27, %v23948_v48  ;;  %v9731_v38 = vrot.slane %v9729_v21, 4  ;;  %v9285_v56 = vsel %vm24063_vm11, %v9269_v16, %v9284_v31  ;;  %v8919_v61 = vmax.f32 %v8855_v19, 0.0  ;;  %v17686_v41 = vpop.f32.mrb[62].mxu0 }
 0x472   :  { %v16271_v29 = vpack.c.bf16 %v9308_v26, %v9308_v26  ;;  %v9361_v28 = vld [vmem:[#allocation2 + $0x1b0] ss:$2 sm:$0xff]  ;;  %v9365_v8 = vld [vmem:[#allocation2 + $0x1b1] ss:$2 sm:$0xff]  ;;  %17711 = vmatprep.mubr.bf16.mxu1 %v15919_v62  ;;  %8985 = vst [vmem:[#allocation2 + $0x1d8] sm:$0xff] %v8921_v49  ;;  %v18072_v58 = vadd.f32 %v8713_v45, %v23958_v0  ;;  %v18073_v25 = vadd.f32 %v17686_v41, %v23963_v34  ;;  %v8716_v48 = vpop.f32.mrb[63].mxu0 }
 0x473   :  { %v9369_v39 = vmax.f32 %v9361_v28, %v9365_v8  ;;  %9286 = vst [vmem:[#allocation3 + $0x74] sm:$0x1] %v9285_v56  ;;  %v9353_v15 = vld [vmem:[#allocation2 + $0x1a0] ss:$2 sm:$0xff]  ;;  %v9357_v60 = vld [vmem:[#allocation2 + $0x1a1] ss:$2 sm:$0xff]  ;;  %v8860_v17 = vadd.f32 %v24245_v63, %v18071_v43  ;;  %v18074_v46 = vadd.f32 %v8716_v48, %v23965_v12 }
 0x474   :  { %v9326_v44 = vshrl.u32 %v16271_v29, 16  ;;  %v9734_v52 = vrot.slane %v9732_v40, 5  ;;  %v9329_v23 = vshll.u32 %v16271_v29, 16  ;;  %v9367_v55 = vmax.f32 %v9353_v15, %v9357_v60  ;;  %8983 = vst [vmem:[#allocation2 + $0x1c8] sm:$0xff] %v8919_v61  ;;  %v24342_v13 = vld [vmem:[#allocation3 + $0x68] sm:$0xf] }
 0x475   :  { %v8924_v21 = vmax.f32 %v8860_v17, 0.0  ;;  %v8858_v4 = vadd.f32 %v24245_v63, %v18072_v58  ;;  %v8861_v0 = vadd.f32 %v24245_v63, %v18073_v25  ;;  %v8859_v26 = vadd.f32 %v24245_v63, %v18074_v46  ;;  %v24349_v30 = vld [vmem:[#allocation3 + $0x6c] sm:$0x1]  ;;  %v9407_v25 = vld [vmem:[#allocation3 + $0x80] sm:$0xf] }
 0x476   :  { %v9328_v20 = vrot.slane %v9326_v44, 7  ;;  %v9735_v16 = vor.u32 %v9734_v52, %v9731_v38  ;;  %v9371_v10 = vmax.f32 %v9367_v55, %v9369_v39  ;;  %v9738_v31 = vshll.u32 %v24344_v11, 16 }
 0x477   :  { %8988 = vst [vmem:[#allocation2 + $0x1f0] sm:$0xff] %v8924_v21  ;;  %v8922_v12 = vmax.f32 %v8858_v4, 0.0  ;;  %v8925_v9 = vmax.f32 %v8861_v0, 0.0  ;;  %v9743_v18 = vshrl.u32 %v24342_v13, 16  ;;  %v8923_v29 = vmax.f32 %v8859_v26, 0.0 }
 0x478   :  { %v9331_v34 = vor.u32 %v9329_v23, %v9328_v20  ;;  %v9332_v24 = vrot.slane %v9328_v20, 4  ;;  %v16273_v62 = vpack.c.bf16 %v9371_v10, %v9371_v10  ;;  %v9746_v49 = vshll.u32 %v24342_v13, 16  ;;  %v24356_v19 = vld [vmem:[#allocation3 + $0x70] sm:$0xf]  ;;  %v9410_v20 = vld [vmem:[#allocation3 + $0x84] sm:$0x1] }
 0x479   :  { %v9424_v63 = vld [vmem:[#allocation2 + $0x1d0] ss:$2 sm:$0xff]  ;;  %v9428_v27 = vld [vmem:[#allocation2 + $0x1d1] ss:$2 sm:$0xff]  ;;  %8986 = vst [vmem:[#allocation2 + $0x1e0] sm:$0xff] %v8922_v12  ;;  %8989 = vst [vmem:[#allocation2 + $0x1f8] sm:$0xff] %v8925_v9  ;;  %v15936_v36 = vcombine.low %v24309_v33, %v24342_v13 }
 0x47a   :  { %v9345_v7 = vsel %vm24056_vm10, %v9331_v34, %v9344_v57  ;;  %v9745_v40 = vrot.slane %v9743_v18, 4  ;;  %v9752_v28 = vshll.u32 %v24349_v30, 16  ;;  %v9348_v8 = vsel %vm24063_vm11, %v9332_v24, %v9347_v47  ;;  %8987 = vst [vmem:[#allocation2 + $0x1e8] sm:$0xff] %v8923_v29  ;;  %v24365_v4 = vld [vmem:[#allocation3 + $0x74] sm:$0x1] }
 0x47b   :  { %9346 = vst [vmem:[#allocation3 + $0x78] sm:$0xf] %v9345_v7  ;;  %v9389_v43 = vshrl.u32 %v16273_v62, 16  ;;  %v9432_v45 = vmax.f32 %v9424_v63, %v9428_v27  ;;  %v9736_v38 = vrot.slane %v9735_v16, 4  ;;  %v9748_v56 = vrot.slane %v9746_v49, 5 }
 0x47c   :  { %9349 = vst [vmem:[#allocation3 + $0x7c] sm:$0x1] %v9348_v8  ;;  %v9392_v44 = vshll.u32 %v16273_v62, 16  ;;  %v9416_v39 = vld [vmem:[#allocation2 + $0x1c0] ss:$2 sm:$0xff]  ;;  %v9757_v41 = vshrl.u32 %v24356_v19, 16 }
 0x47d   :  { %v9420_v61 = vld [vmem:[#allocation2 + $0x1c1] ss:$2 sm:$0xff]  ;;  %v9391_v15 = vrot.slane %v9389_v43, 7  ;;  %v9749_v17 = vor.u32 %v9748_v56, %v9745_v40  ;;  %v9760_v58 = vshll.u32 %v24356_v19, 16  ;;  %v9740_v48 = vrot.slane %v9738_v31, 5 }
 0x47e   :  { %v9430_v60 = vmax.f32 %v9416_v39, %v9420_v61  ;;  %v9754_v52 = vrot.slane %v9752_v28, 5  ;;  %v9759_v0 = vrot.slane %v9757_v41, 4  ;;  %v9766_v28 = vshll.u32 %v24365_v4, 16  ;;  %v9473_v41 = vld [vmem:[#allocation3 + $0x8c] sm:$0x1] }
 0x47f   :  { %v9394_v23 = vor.u32 %v9392_v44, %v9391_v15  ;;  %v9395_v55 = vrot.slane %v9391_v15, 4  ;;  %v9750_v57 = vrot.slane %v9749_v17, 4  ;;  %v9741_v21 = vsel %vm20245_vm5, %v9736_v38, %v9740_v48  ;;  %v9470_v44 = vld [vmem:[#allocation3 + $0x88] sm:$0xf] }
 0x480   :  { %v9434_v46 = vmax.f32 %v9430_v60, %v9432_v45  ;;  %v9762_v16 = vrot.slane %v9760_v58, 5  ;;  %v9487_v10 = vld [vmem:[#allocation2 + $0x1f0] ss:$2 sm:$0xff]  ;;  %v9491_v26 = vld [vmem:[#allocation2 + $0x1f1] ss:$2 sm:$0xff]  ;;  %v10249_v50 = vrot.slane %v19295_v42, 5 }
 0x481   :  { %v9408_v34 = vsel %vm24056_vm10, %v9394_v23, %v9407_v25  ;;  %v9755_v47 = vsel %vm20245_vm5, %v9750_v57, %v9754_v52  ;;  %v9411_v9 = vsel %vm24063_vm11, %v9395_v55, %v9410_v20  ;;  %v9495_v31 = vmax.f32 %v9487_v10, %v9491_v26  ;;  %v9479_v18 = vld [vmem:[#allocation2 + $0x1e0] ss:$2 sm:$0xff]  ;;  %v9483_v7 = vld [vmem:[#allocation2 + $0x1e1] ss:$2 sm:$0xff]  ;;  %v18866_v42 = vld [vmem:[#allocation9 + $0xe8] sm:$0xff]  }
 0x482   :  { %v16275_v24 = vpack.c.bf16 %v9434_v46, %v9434_v46  ;;  %v24371_v12 = vld [vmem:[#allocation3 + $0x78] sm:$0xf]  ;;  %9409 = vst [vmem:[#allocation3 + $0x80] sm:$0xf] %v9408_v34  ;;  %v15920_v62 = vcombine.low %v9741_v21, %v9755_v47  ;;  %9412 = vst [vmem:[#allocation3 + $0x84] sm:$0x1] %v9411_v9  ;;  %v9493_v49 = vmax.f32 %v9479_v18, %v9483_v7 }
 0x483   :  { %v24375_v63 = vld [vmem:[#allocation3 + $0x7c] sm:$0x1]  ;;  %v9771_v27 = vshrl.u32 %v24371_v12, 16  ;;  %v9763_v40 = vor.u32 %v9762_v16, %v9759_v0  ;;  %v9774_v8 = vshll.u32 %v24371_v12, 16  ;;  %v9768_v52 = vrot.slane %v9766_v28, 5 }
 0x484   :  { %v9452_v29 = vshrl.u32 %v16275_v24, 16  ;;  %17712 = vmatmul.mubr.bf16.gmra.mrb[72].mxu1 %v15920_v62  ;;  %v9455_v45 = vshll.u32 %v16275_v24, 16  ;;  %v9497_v38 = vmax.f32 %v9493_v49, %v9495_v31  ;;  %v9780_v61 = vshll.u32 %v24375_v63, 16  ;;  %v10205_v16 = vld [vmem:[#allocation3 + $0x30] sm:$0xe] }
 0x485   :  { %v9773_v56 = vrot.slane %v9771_v27, 4  ;;  %v9776_v39 = vrot.slane %v9774_v8, 5  ;;  %v9764_v58 = vrot.slane %v9763_v40, 4  ;;  %v10206_v9 = vld [vmem:[#allocation3 + $0x38] sm:$0xe]  ;;  %v15953_v18 = vrot.slane %v10205_v16, 9 }
 0x486   :  { %v9454_v43 = vrot.slane %v9452_v29, 7  ;;  %v16277_v17 = vpack.c.bf16 %v9497_v38, %v9497_v38  ;;  %v9782_v46 = vrot.slane %v9780_v61, 5  ;;  %v10273_v7 = vrot.slane %v24236_v59, 5  ;;  %v10209_v40 = vld [vmem:[#allocation3 + $0x60] sm:$0xe] }
 0x487   :  { %v9777_v25 = vor.u32 %v9776_v39, %v9773_v56  ;;  %v9769_v34 = vsel %vm20245_vm5, %v9764_v58, %v9768_v52  ;;  %v15954_v49 = vrot.slane %v10206_v9, 9  ;;  %v10277_v27 = vrot.slane %v24253_v5, 5  ;;  %v10210_v8 = vld [vmem:[#allocation3 + $0x68] sm:$0xe]  ;;  %v10211_v5 = vld [vmem:[#allocation3 + $0x70] sm:$0xe] }
 0x488   :  { %v9457_v15 = vor.u32 %v9455_v45, %v9454_v43  ;;  %v9458_v60 = vrot.slane %v9454_v43, 4  ;;  %v9515_v0 = vshrl.u32 %v16277_v17, 16  ;;  %v9518_v43 = vshll.u32 %v16277_v17, 16  ;;  %v18928_v56 = vld [vmem:[%s25370_s5 + $0x8] sm:$0xff]  }
 0x489   :  { %v24385_v23 = vld [vmem:[#allocation3 + $0x80] sm:$0xf]  ;;  %v9778_v55 = vrot.slane %v9777_v25, 4  ;;  %v9586_v10 = vld [vmem:[#allocation3 + $0x84] sm:$0x1]  ;;  %v15957_v58 = vrot.slane %v10209_v40, 9 }
 0x48a   :  { %v9471_v48 = vsel %vm24056_vm10, %v9457_v15, %v9470_v44  ;;  %v9474_v20 = vsel %vm24063_vm11, %v9458_v60, %v9473_v41  ;;  %v9785_v57 = vshrl.u32 %v24385_v23, 16  ;;  %v9788_v21 = vshll.u32 %v24385_v23, 16  ;;  %v10212_v25 = vld [vmem:[#allocation3 + $0x78] sm:$0xe] }
 0x48b   :  { %9472 = vst [vmem:[#allocation3 + $0x88] sm:$0xf] %v9471_v48  ;;  %9475 = vst [vmem:[#allocation3 + $0x8c] sm:$0x1] %v9474_v20  ;;  %v9783_v24 = vsel %vm20245_vm5, %v9778_v55, %v9782_v46  ;;  %v24394_v62 = vrot.slane %v9515_v0, 7  ;;  %v9794_v29 = vshll.u32 %v9586_v10, 16  ;;  %v24401_v44 = vsel %vm19458_vm2, %v15954_v49, %v10277_v27 }
 0x48c   :  { %v9787_v26 = vrot.slane %v9785_v57, 4  ;;  %v9790_v47 = vrot.slane %v9788_v21, 5  ;;  %v15921_v31 = vcombine.low %v9769_v34, %v9783_v24  ;;  %v24407_v41 = vsel %vm19458_vm2, %v15953_v18, %v10273_v7  ;;  %v10213_v46 = vld [vmem:[#allocation3 + $0x80] sm:$0xe] }
 0x48d   :  { %v9520_v15 = vor.u32 %v9518_v43, %v24394_v62  ;;  %v9796_v60 = vrot.slane %v9794_v29, 5  ;;  %v15966_v17 = vcombine.low %v24407_v41, %v24401_v44  ;;  %v10289_v57 = vrot.slane %v24344_v11, 5  ;;  %v9533_v29 = vld [vmem:[#allocation3 + $0x90] sm:$0xf]  ;;  %v18869_v44 = vld [vmem:[#allocation9 + $0xf8] sm:$0xff]  }
 0x48e   :  { %17715 = vmatprep.mubr.bf16.mxu1 %v15921_v31  ;;  %v9791_v28 = vor.u32 %v9790_v47, %v9787_v26  ;;  %v15958_v21 = vrot.slane %v10210_v8, 9  ;;  %v10293_v0 = vrot.slane %v24349_v30, 5  ;;  %v15959_v16 = vrot.slane %v10211_v5, 9  ;;  %v19293_v5 = vld [vmem:[#allocation3 + $0x8] sm:$0xf] }
 0x48f   :  { %v10297_v24 = vrot.slane %v24365_v4, 5  ;;  %v15960_v26 = vrot.slane %v10212_v25, 9  ;;  %v10301_v47 = vrot.slane %v24375_v63, 5  ;;  %v24418_v31 = vsel %vm19458_vm2, %v15957_v58, %v10289_v57  ;;  %v18853_v25 = vld [vmem:[#allocation9 + $0x98] sm:$0xff]   ;;  %v18859_v57 = vld [vmem:[#allocation9 + $0xb0] sm:$0xff]  }
 0x490   :  { %v9792_v48 = vrot.slane %v9791_v28, 4  ;;  %v24422_v18 = vsel %vm19458_vm2, %v15958_v21, %v10293_v0  ;;  %v15961_v11 = vrot.slane %v10213_v46, 9  ;;  %v10305_v7 = vrot.slane %v9586_v10, 5  ;;  %v9536_v46 = vld [vmem:[#allocation3 + $0x94] sm:$0x1]  ;;  %v18860_v0 = vld [vmem:[#allocation9 + $0xb8] sm:$0xff]  }
 0x491   :  { %v15968_v49 = vcombine.low %v24418_v31, %v24422_v18  ;;  %v24428_v4 = vsel %vm19458_vm2, %v15959_v16, %v10297_v24  ;;  %v24432_v63 = vsel %vm19458_vm2, %v15960_v26, %v10301_v47  ;;  %v9534_v43 = vsel %vm24056_vm10, %v9520_v15, %v9533_v29  ;;  %v18851_v15 = vld [vmem:[#allocation9 + $0x90] sm:$0xff]   ;;  %v10201_v16 = vld [vmem:[#allocation3 + $0x10] sm:$0xe]  ;;  %v19297_v26 = vld [vmem:[#allocation3 + $0x1c] sm:$0x1] }
 0x492   :  { %v24397_v45 = vld [vmem:[#allocation3 + $0x88] sm:$0xf]  ;;  %v9587_v38 = vld [vmem:[#allocation3 + $0x8c] sm:$0x1]  ;;  %v15969_v27 = vcombine.low %v24428_v4, %v24432_v63  ;;  %v9797_v10 = vsel %vm20245_vm5, %v9792_v48, %v9796_v60  ;;  %9535 = vst [vmem:[#allocation3 + $0x90] sm:$0xf] %v9534_v43 }
 0x493   :  { %v9799_v59 = vshrl.u32 %v24397_v45, 16  ;;  %v9802_v39 = vshll.u32 %v24397_v45, 16  ;;  %v9808_v61 = vshll.u32 %v9587_v38, 16  ;;  %v10214_v9 = vld [vmem:[#allocation3 + $0x88] sm:$0xe]  ;;  %v10309_v28 = vrot.slane %v9587_v38, 5 }
 0x494   :  { %v15962_v40 = vrot.slane %v10214_v9, 9  ;;  %v19292_v38 = vld [vmem:[#allocation3] sm:$0xf]  ;;  %v19294_v48 = vld [vmem:[#allocation3 + $0x50] sm:$0xf]  ;;  %v15938_v21 = vcombine.low %v24385_v23, %v24397_v45  ;;  %v10261_v47 = vrot.slane %v19297_v26, 5 }
 0x495   :  { %v9801_v52 = vrot.slane %v9799_v59, 4  ;;  %v9804_v20 = vrot.slane %v9802_v39, 5  ;;  %v9810_v55 = vrot.slane %v9808_v61, 5  ;;  %v24444_v39 = vsel %vm19458_vm2, %v15961_v11, %v10305_v7  ;;  %v10203_v9 = vld [vmem:[#allocation3 + $0x20] sm:$0xe]  ;;  %v18873_v18 = vld [vmem:[#allocation9 + $0x108] sm:$0xff]  }
 0x496   :  { %v24448_v61 = vsel %vm19458_vm2, %v15962_v40, %v10309_v28  ;;  %v15931_v58 = vcombine.low %v19292_v38, %v19293_v5  ;;  %v19298_v7 = vld [vmem:[#allocation3 + $0x2c] sm:$0x1]  ;;  %v15949_v6 = vrot.slane %v10201_v16, 9  ;;  %v18861_v28 = vld [vmem:[#allocation9 + $0xc0] sm:$0xff]   ;;  %v15951_v23 = vrot.slane %v10203_v9, 9 }
 0x497   :  { %v9805_v34 = vor.u32 %v9804_v20, %v9801_v52  ;;  %v15970_v60 = vcombine.low %v24444_v39, %v24448_v61  ;;  %v15935_v52 = vcombine.low %v19294_v48, %v24287_v35  ;;  %v9521_v35 = vrot.slane %v24394_v62, 4  ;;  %v19296_v20 = vld [vmem:[#allocation3 + $0xc] sm:$0x1]  ;;  %v10204_v62 = vld [vmem:[#allocation3 + $0x28] sm:$0xe] }
 0x498   :  { %v15952_v11 = vrot.slane %v10204_v62, 9  ;;  %v10269_v29 = vrot.slane %v19298_v7, 5  ;;  %v19300_v45 = vld [vmem:[#allocation3 + $0x24] sm:$0x1]  ;;  %v10207_v38 = vld [vmem:[#allocation3 + $0x50] sm:$0xe] }
 0x499   :  { %v9806_v30 = vrot.slane %v9805_v34, 4  ;;  %v10208_v5 = vld [vmem:[#allocation3 + $0x58] sm:$0xe]  ;;  %v15955_v48 = vrot.slane %v10207_v38, 9  ;;  %v18868_v41 = vld [vmem:[#allocation3 + $0x8] ss:$8 sps:$4 sm:$0xff]  }
 0x49a   :  { %v10270_v43 = vsel %vm19458_vm2, %v15952_v11, %v10269_v29  ;;  %v18870_v31 = vld [vmem:[#allocation3 + $0x18] ss:$8 sps:$4 sm:$0xff]   ;;  %v18872_v4 = vld [vmem:[#allocation3 + $0x28] ss:$8 sps:$4 sm:$0xff]  }
 0x49b   :  { %v9811_v8 = vsel %vm20245_vm5, %v9806_v30, %v9810_v55  ;;  %v10253_v55 = vrot.slane %v19296_v20, 5  ;;  %v19299_v30 = vld [vmem:[#allocation3 + $0x14] sm:$0x1]  ;;  %v10765_v63 = vld [vmem:[#allocation3 + $0x10] sm:$0xf]  ;;  %v18875_v20 = vld [vmem:[#allocation9 + $0x110] sm:$0xff]  }
 0x49c   :  { %v15922_v59 = vcombine.low %v9797_v10, %v9811_v8  ;;  %v10257_v40 = vrot.slane %v19299_v30, 5  ;;  %v10265_v10 = vrot.slane %v19300_v45, 5  ;;  %v10810_v39 = vshrl.u32 %v10765_v63, 16  ;;  %v10771_v16 = vld [vmem:[#allocation3 + $0x28] sm:$0xf] }
 0x49d   :  { %v10813_v61 = vshll.u32 %v10765_v63, 16  ;;  %v10773_v29 = vld [vmem:[#allocation3 + $0x30] sm:$0xf] }
 0x49e   :  { %17716 = vmatmul.mubr.bf16.gmra.mrb[76].mxu1 %v15922_v59  ;;  %v10258_v59 = vsel %vm19458_vm2, %v15949_v6, %v10257_v40  ;;  %v10812_v62 = vrot.slane %v10810_v39, 4  ;;  %v18879_v6 = vld [vmem:[#allocation9 + $0x120] sm:$0xff]   ;;  %v24505_v40 = vld [vmem:[#allocation3 + $0x1c] sm:$0x1]  ;;  %v10866_v38 = vshrl.u32 %v10773_v29, 16 }
 0x49f   :  { %17735 = vmatprep.mubr.bf16.mxu1 %v15931_v58  ;;  %v24522_v39 = vld [vmem:[#allocation3 + $0x3c] sm:$0x1] }
 0x4a6   :  { %17736 = vmatmul.mubr.bf16.vlgmr.msra.gmra.mrb[64].mxu1 %v15932_v37  ;;  %v10200_v37 = vld [vmem:[#allocation3 + $0x8] sm:$0xe] }
 0x4a7   :  { %17739 = vmatprep.mubr.bf16.mxu1 %v15933_v22  ;;  %17752 = vmatpush3.bf16.msra.mxu1 %v24271_v3  ;;  %v15937_v22 = vcombine.low %v24356_v19, %v24371_v12  ;;  %v15947_v3 = vrot.slane %v10199_v54, 9  ;;  %v10202_v19 = vld [vmem:[#allocation3 + $0x18] sm:$0xe]  ;;  %v9537_v12 = vsel %vm24063_vm11, %v9521_v35, %v9536_v46  ;;  %v15956_v54 = vrot.slane %v10208_v5, 9 }
 0x4a8   :  { %17753 = vmatprep.subr.bf16.mxu1 %v18849_v53  ;;  %9538 = vst [vmem:[#allocation3 + $0x94] sm:$0x1] %v9537_v12  ;;  %v15950_v24 = vrot.slane %v10202_v19, 9  ;;  %v18874_v19 = vld [vmem:[#allocation3 + $0x38] ss:$8 sps:$4 sm:$0xff]   ;;  %v18877_v12 = vld [vmem:[#allocation9 + $0x118] sm:$0xff]  }
 0x4a9   :  { %v10250_v33 = vsel %vm19458_vm2, %v15947_v3, %v10249_v50  ;;  %v18864_v3 = vld [vmem:[#allocation9 + $0xd8] sm:$0xff]   ;;  %v18867_v50 = vld [vmem:[#allocation9 + $0xf0] sm:$0xff]   ;;  %v10869_v5 = vshll.u32 %v10773_v29, 16 }
 0x4aa   :  { %v10262_v8 = vsel %vm19458_vm2, %v15950_v24, %v10261_v47  ;;  %v24503_v24 = vld [vmem:[#allocation3 + $0x14] sm:$0x1] }
 0x4ab   :  { %17754 = vmatpush3.bf16.msra.mxu1 %v18849_v53  ;;  %v15964_v58 = vcombine.low %v10258_v59, %v10262_v8  ;;  %v10266_v53 = vsel %vm19458_vm2, %v15951_v23, %v10265_v10  ;;  %v10855_v23 = vshll.u32 %v10771_v16, 16  ;;  %v10819_v10 = vshll.u32 %v24503_v24, 16  ;;  %v24509_v8 = vld [vmem:[#allocation3 + $0x24] sm:$0x1] }
 0x4ac   :  { %17755 = vmatprep.subr.bf16.mxu1 %v18851_v15 }
 0x4ae   :  { %17740 = vmatmul.mubr.bf16.gmra.mrb[68].mxu1 %v15934_v32  ;;  %v15948_v32 = vrot.slane %v10200_v37, 9  ;;  %v10285_v37 = vrot.slane %v24303_v1, 5  ;;  %v18865_v1 = vld [vmem:[#allocation9 + $0xe0] sm:$0xff]  }
 0x4af   :  { %17743 = vmatprep.mubr.bf16.mxu1 %v15935_v52  ;;  %17756 = vmatpush3.bf16.msra.mxu1 %v18851_v15  ;;  %v18862_v15 = vld [vmem:[#allocation9 + $0xc8] sm:$0xff]   ;;  %v19301_v52 = vld [vmem:[#allocation3 + $0x54] sm:$0x1] }
 0x4b0   :  { %17757 = vmatprep.subr.bf16.mxu1 %v18853_v25  ;;  %v10254_v13 = vsel %vm19458_vm2, %v15948_v32, %v10253_v55 }
 0x4b1   :  { %v15963_v34 = vcombine.low %v10250_v33, %v10254_v13 }
 0x4b3   :  { %17758 = vmatpush3.bf16.msra.mxu1 %v18853_v25  ;;  %v15965_v25 = vcombine.low %v10266_v53, %v10270_v43 }
 0x4b4   :  { %17759 = vmatprep.subr.bf16.mxu1 %v18855_v51 }
 0x4b6   :  { %17744 = vmatmul.mubr.bf16.gmra.mrb[72].mxu1 %v15936_v36  ;;  %v18863_v36 = vld [vmem:[#allocation9 + $0xd0] sm:$0xff]  }
 0x4b7   :  { %17747 = vmatprep.mubr.bf16.mxu1 %v15937_v22  ;;  %17760 = vmatpush3.bf16.msra.mxu1 %v18855_v51  ;;  %v10281_v51 = vrot.slane %v19301_v52, 5  ;;  %v10286_v22 = vsel %vm19458_vm2, %v15956_v54, %v10285_v37  ;;  %v18878_v52 = vld [vmem:[#allocation3 + $0x68] ss:$8 sps:$4 sm:$0xff]   ;;  %v10847_v54 = vshll.u32 %v24509_v8, 16 }
 0x4b8   :  { %17761 = vmatprep.subr.bf16.mxu1 %v18857_v14 }
 0x4bb   :  { %17762 = vmatpush3.bf16.msra.mxu1 %v18857_v14  ;;  %v10282_v14 = vsel %vm19458_vm2, %v15955_v48, %v10281_v51  ;;  %v24512_v48 = vld [vmem:[#allocation3 + $0x2c] sm:$0x1] }
 0x4bc   :  { %17763 = vmatprep.subr.bf16.mxu1 %v18859_v57  ;;  %v15967_v35 = vcombine.low %v10282_v14, %v10286_v22  ;;  %v18880_v14 = vld [vmem:[#allocation3 + $0x78] ss:$8 sps:$4 sm:$0xff]  }
 0x4be   :  { %17748 = vmatmul.mubr.bf16.gmra.mrb[76].mxu1 %v15938_v21  ;;  %v10815_v21 = vrot.slane %v10813_v61, 5 }
 0x4bf   :  { %17764 = vmatpush3.bf16.msra.mxu1 %v18859_v57  ;;  %17767 = vmatprep.mubr.bf16.mxu1 %v15963_v34  ;;  %v10767_v57 = vld [vmem:[#allocation3 + $0x18] sm:$0xf]  ;;  %v24501_v34 = vld [vmem:[#allocation3 + $0xc] sm:$0x1] }
 0x4c0   :  { %17765 = vmatprep.subr.bf16.mxu1 %v18860_v0  ;;  %v10824_v26 = vshrl.u32 %v10767_v57, 16  ;;  %v10827_v47 = vshll.u32 %v10767_v57, 16  ;;  %v10816_v30 = vor.u32 %v10815_v21, %v10812_v62  ;;  %v10805_v45 = vshll.u32 %v24501_v34, 16  ;;  %v10779_v57 = vld [vmem:[#allocation3 + $0x58] sm:$0xf]  ;;  %v18884_v21 = vld [vmem:[#allocation9 + $0x138] sm:$0xff]  }
 0x4c1   :  { %v10911_v29 = vshll.u32 %v10779_v57, 16 }
 0x4c2   :  { %v10826_v43 = vrot.slane %v10824_v26, 4  ;;  %v10829_v59 = vrot.slane %v10827_v47, 5  ;;  %v10817_v51 = vrot.slane %v10816_v30, 4  ;;  %v10807_v22 = vrot.slane %v10805_v45, 5  ;;  %v18882_v47 = vld [vmem:[#allocation3 + $0x88] ss:$8 sps:$4 sm:$0xff]  }
 0x4c3   :  { %17766 = vmatpush3.bf16.msra.mxu1 %v18860_v0  ;;  %v18876_v0 = vld [vmem:[#allocation3 + $0x58] ss:$8 sps:$4 sm:$0xff]  }
 0x4c4   :  { %17783 = vmatprep.subr.bf16.mxu1 %v18861_v28 }
 0x4c6   :  { %17768 = vmatmul.mubr.bf16.vlgmr.msra.gmra.mrb[64].mxu1 %v15964_v58  ;;  %v18881_v58 = vld [vmem:[#allocation9 + $0x128] sm:$0xff]  }
 0x4c7   :  { %17771 = vmatprep.mubr.bf16.mxu1 %v15965_v25  ;;  %17784 = vmatpush3.bf16.msra.mxu1 %v18861_v28  ;;  %v10852_v28 = vshrl.u32 %v10771_v16, 16 }
 0x4c8   :  { %17785 = vmatprep.subr.bf16.mxu1 %v18862_v15 }
 0x4c9   :  { %v10854_v37 = vrot.slane %v10852_v28, 4 }
 0x4cb   :  { %17786 = vmatpush3.bf16.msra.mxu1 %v18862_v15  ;;  %v10833_v15 = vshll.u32 %v24505_v40, 16 }
 0x4cc   :  { %17787 = vmatprep.subr.bf16.mxu1 %v18863_v36 }
 0x4ce   :  { %17772 = vmatmul.mubr.bf16.gmra.mrb[68].mxu1 %v15966_v17  ;;  %v18871_v17 = vld [vmem:[#allocation9 + $0x100] sm:$0xff]  }
 0x4cf   :  { %17775 = vmatprep.mubr.bf16.mxu1 %v15967_v35  ;;  %17788 = vmatpush3.bf16.msra.mxu1 %v18863_v36  ;;  %v10857_v36 = vrot.slane %v10855_v23, 5  ;;  %v10821_v35 = vrot.slane %v10819_v10, 5 }
 0x4d0   :  { %17789 = vmatprep.subr.bf16.mxu1 %v18864_v3 }
 0x4d1   :  { %v10822_v63 = vsel %vm20245_vm5, %v10817_v51, %v10821_v35  ;;  %v24538_v35 = vld [vmem:[#allocation3 + $0x64] sm:$0x1] }
 0x4d3   :  { %17790 = vmatpush3.bf16.msra.mxu1 %v18864_v3  ;;  %v10775_v3 = vld [vmem:[#allocation3 + $0x38] sm:$0xf] }
 0x4d4   :  { %17791 = vmatprep.subr.bf16.mxu1 %v18865_v1  ;;  %v10880_v61 = vshrl.u32 %v10775_v3, 16 }
 0x4d6   :  { %17776 = vmatmul.mubr.bf16.gmra.mrb[72].mxu1 %v15968_v49  ;;  %v10763_v49 = vld [vmem:[#allocation3 + $0x8] sm:$0xf] }
 0x4d7   :  { %17779 = vmatprep.mubr.bf16.mxu1 %v15969_v27  ;;  %17792 = vmatpush3.bf16.msra.mxu1 %v18865_v1  ;;  %v10796_v27 = vshrl.u32 %v10763_v49, 16  ;;  %v10799_v32 = vshll.u32 %v10763_v49, 16  ;;  %v10830_v1 = vor.u32 %v10829_v59, %v10826_v43  ;;  %v18883_v49 = vld [vmem:[#allocation9 + $0x130] sm:$0xff]  }
 0x4d8   :  { %17793 = vmatprep.subr.bf16.mxu1 %v18866_v42  ;;  %v24530_v43 = vld [vmem:[#allocation3 + $0x44] sm:$0x1] }
 0x4d9   :  { %v10798_v55 = vrot.slane %v10796_v27, 4  ;;  %v10801_v46 = vrot.slane %v10799_v32, 5  ;;  %v10849_v27 = vrot.slane %v10847_v54, 5  ;;  %v24520_v32 = vld [vmem:[#allocation3 + $0x34] sm:$0x1] }
 0x4da   :  { %v10875_v26 = vshll.u32 %v24520_v32, 16 }
 0x4db   :  { %17794 = vmatpush3.bf16.msra.mxu1 %v18866_v42  ;;  %v10802_v9 = vor.u32 %v10801_v46, %v10798_v55  ;;  %v10868_v42 = vrot.slane %v10866_v38, 4 }
 0x4dc   :  { %17795 = vmatprep.subr.bf16.mxu1 %v18867_v50 }
 0x4dd   :  { %v10803_v53 = vrot.slane %v10802_v9, 4 }
 0x4de   :  { %17780 = vmatmul.mubr.bf16.gmra.mrb[76].mxu1 %v15970_v60  ;;  %v10769_v60 = vld [vmem:[#allocation3 + $0x20] sm:$0xf] }
 0x4df   :  { %17796 = vmatpush3.bf16.msra.mxu1 %v18867_v50  ;;  %17799 = vmatprep.mubr.bf16.mxu1 %v18868_v41  ;;  %v10838_v33 = vshrl.u32 %v10769_v60, 16  ;;  %v10841_v13 = vshll.u32 %v10769_v60, 16  ;;  %v10871_v50 = vrot.slane %v10869_v5, 5  ;;  %v10835_v41 = vrot.slane %v10833_v15, 5  ;;  %v10785_v5 = vld [vmem:[#allocation3 + $0x70] sm:$0xf] }
 0x4e0   :  { %17797 = vmatprep.subr.bf16.mxu1 %v18869_v44  ;;  %v10883_v60 = vshll.u32 %v10775_v3, 16  ;;  %v24532_v15 = vld [vmem:[#allocation3 + $0x5c] sm:$0x1] }
 0x4e1   :  { %v10840_v11 = vrot.slane %v10838_v33, 4  ;;  %v10843_v7 = vrot.slane %v10841_v13, 5  ;;  %v10831_v33 = vrot.slane %v10830_v1, 4  ;;  %v10872_v13 = vor.u32 %v10871_v50, %v10868_v42  ;;  %v10787_v50 = vld [vmem:[#allocation3 + $0x78] sm:$0xf] }
 0x4e2   :  { %v10885_v30 = vrot.slane %v10883_v60, 5  ;;  %v10950_v1 = vshrl.u32 %v10785_v5, 16  ;;  %v10953_v42 = vshll.u32 %v10785_v5, 16  ;;  %v10964_v60 = vshrl.u32 %v10787_v50, 16 }
 0x4e3   :  { %17798 = vmatpush3.bf16.msra.mxu1 %v18869_v44  ;;  %v10844_v25 = vor.u32 %v10843_v7, %v10840_v11  ;;  %v10777_v44 = vld [vmem:[#allocation3 + $0x40] sm:$0xf]  ;;  %v10889_v11 = vshll.u32 %v24522_v39, 16  ;;  %v10908_v7 = vshrl.u32 %v10779_v57, 16  ;;  %v10836_v45 = vsel %vm20245_vm5, %v10831_v33, %v10835_v41  ;;  %v24545_v33 = vld [vmem:[#allocation3 + $0x6c] sm:$0x1] }
 0x4e4   :  { %17815 = vmatprep.subr.bf16.mxu1 %v18871_v17  ;;  %v10894_v55 = vshrl.u32 %v10777_v44, 16  ;;  %v10897_v46 = vshll.u32 %v10777_v44, 16  ;;  %v10873_v10 = vrot.slane %v10872_v13, 4  ;;  %v10952_v13 = vrot.slane %v10950_v1, 4 }
 0x4e5   :  { %v24536_v54 = vrot.slane %v10889_v11, 5 }
 0x4e6   :  { %17800 = vmatmul.mubr.bf16.vlgmr.msra.gmra.mrb[64].mxu1 %v18870_v31  ;;  %v10861_v31 = vshll.u32 %v24512_v48, 16  ;;  %v10896_v28 = vrot.slane %v10894_v55, 4  ;;  %v10899_v23 = vrot.slane %v10897_v46, 5  ;;  %v10967_v55 = vshll.u32 %v10787_v50, 16 }
 0x4e7   :  { %17803 = vmatprep.mubr.bf16.mxu1 %v18872_v4  ;;  %17816 = vmatpush3.bf16.msra.mxu1 %v18871_v17  ;;  %v10845_v17 = vrot.slane %v10844_v25, 4  ;;  %v10808_v4 = vsel %vm20245_vm5, %v10803_v53, %v10807_v22  ;;  %v10877_v53 = vrot.slane %v10875_v26, 5  ;;  %v10789_v25 = vld [vmem:[#allocation3 + $0x80] sm:$0xf]  ;;  %v10793_v26 = vld [vmem:[#allocation3 + $0x90] sm:$0xf] }
 0x4e8   :  { %17817 = vmatprep.subr.bf16.mxu1 %v18873_v18  ;;  %v15995_v62 = vcombine.low %v10808_v4, %v10822_v63  ;;  %v10863_v16 = vrot.slane %v10861_v31, 5  ;;  %v10900_v3 = vor.u32 %v10899_v23, %v10896_v28  ;;  %v10981_v31 = vshll.u32 %v10789_v25, 16 }
 0x4e9   :  { %v10878_v44 = vsel %vm20245_vm5, %v10873_v10, %v10877_v53  ;;  %v10966_v28 = vrot.slane %v10964_v60, 4  ;;  %v10969_v23 = vrot.slane %v10967_v55, 5  ;;  %v11006_v5 = vshrl.u32 %v10793_v26, 16  ;;  %v18889_v60 = vld [vmem:[#allocation9 + $0x160] sm:$0xff]  }
 0x4ea   :  { %v10901_v57 = vrot.slane %v10900_v3, 4 }
 0x4eb   :  { %17818 = vmatpush3.bf16.msra.mxu1 %v18873_v18  ;;  %v10781_v18 = vld [vmem:[#allocation3 + $0x60] sm:$0xf]  ;;  %v10970_v50 = vor.u32 %v10969_v23, %v10966_v28 }
 0x4ec   :  { %17819 = vmatprep.subr.bf16.mxu1 %v18875_v20 }
 0x4ed   :  { %v10971_v55 = vrot.slane %v10970_v50, 4 }
 0x4ee   :  { %17804 = vmatmul.mubr.bf16.gmra.mrb[68].mxu1 %v18874_v19  ;;  %v10922_v19 = vshrl.u32 %v10781_v18, 16 }
 0x4ef   :  { %17807 = vmatprep.mubr.bf16.mxu1 %v18876_v0  ;;  %17820 = vmatpush3.bf16.msra.mxu1 %v18875_v20  ;;  %v10858_v20 = vor.u32 %v10857_v36, %v10854_v37  ;;  %v10850_v0 = vsel %vm20245_vm5, %v10845_v17, %v10849_v27  ;;  %v10910_v37 = vrot.slane %v10908_v7, 4  ;;  %v10913_v36 = vrot.slane %v10911_v29, 5  ;;  %v18886_v27 = vld [vmem:[#allocation9 + $0x148] sm:$0xff]  }
 0x4f0   :  { %17821 = vmatprep.subr.bf16.mxu1 %v18877_v12  ;;  %v10924_v59 = vrot.slane %v10922_v19, 4  ;;  %v10978_v17 = vshrl.u32 %v10789_v25, 16  ;;  %v10955_v19 = vrot.slane %v10953_v42, 5 }
 0x4f1   :  { %v10859_v9 = vrot.slane %v10858_v20, 4  ;;  %v10914_v20 = vor.u32 %v10913_v36, %v10910_v37 }
 0x4f3   :  { %17822 = vmatpush3.bf16.msra.mxu1 %v18877_v12  ;;  %v10925_v12 = vshll.u32 %v10781_v18, 16  ;;  %v10864_v51 = vsel %vm20245_vm5, %v10859_v9, %v10863_v16  ;;  %v10903_v18 = vshll.u32 %v24530_v43, 16  ;;  %v10983_v16 = vrot.slane %v10981_v31, 5  ;;  %v18887_v9 = vld [vmem:[#allocation9 + $0x150] sm:$0xff]  }
 0x4f4   :  { %17823 = vmatprep.subr.bf16.mxu1 %v18879_v6  ;;  %v15997_v46 = vcombine.low %v10864_v51, %v10878_v44  ;;  %v11008_v31 = vrot.slane %v11006_v5, 4 }
 0x4f5   :  { %v10927_v38 = vrot.slane %v10925_v12, 5 }
 0x4f6   :  { %17808 = vmatmul.mubr.bf16.gmra.mrb[72].mxu1 %v18878_v52  ;;  %v18885_v52 = vld [vmem:[#allocation9 + $0x140] sm:$0xff]  }
 0x4f7   :  { %17811 = vmatprep.mubr.bf16.mxu1 %v18880_v14  ;;  %17824 = vmatpush3.bf16.msra.mxu1 %v18879_v6  ;;  %v10882_v6 = vrot.slane %v10880_v61, 4  ;;  %v10783_v14 = vld [vmem:[#allocation3 + $0x68] sm:$0xf]  ;;  %v10928_v41 = vor.u32 %v10927_v38, %v10924_v59  ;;  %v10931_v61 = vshll.u32 %v24538_v35, 16  ;;  %v10956_v59 = vor.u32 %v10955_v19, %v10952_v13  ;;  %v24551_v38 = vld [vmem:[#allocation3 + $0x84] sm:$0x1] }
 0x4f8   :  { %17825 = vmatprep.subr.bf16.mxu1 %v18881_v58  ;;  %v10936_v4 = vshrl.u32 %v10783_v14, 16  ;;  %v10939_v63 = vshll.u32 %v10783_v14, 16  ;;  %v24560_v14 = vld [vmem:[#allocation3 + $0x7c] sm:$0x1]  ;;  %v10987_v44 = vshll.u32 %v24551_v38, 16 }
 0x4f9   :  { %v10886_v22 = vor.u32 %v10885_v30, %v10882_v6  ;;  %v10915_v6 = vrot.slane %v10914_v20, 4  ;;  %v10933_v30 = vrot.slane %v10931_v61, 5 }
 0x4fa   :  { %v10938_v7 = vrot.slane %v10936_v4, 4  ;;  %v10941_v29 = vrot.slane %v10939_v63, 5 }
 0x4fb   :  { %17826 = vmatpush3.bf16.msra.mxu1 %v18881_v58  ;;  %v15996_v58 = vcombine.low %v10836_v45, %v10850_v0  ;;  %v10887_v12 = vrot.slane %v10886_v22, 4  ;;  %v10980_v0 = vrot.slane %v10978_v17, 4  ;;  %v10791_v45 = vld [vmem:[#allocation3 + $0x88] sm:$0xf]  ;;  %v10957_v17 = vrot.slane %v10956_v59, 4 }
 0x4fc   :  { %17827 = vmatprep.subr.bf16.mxu1 %v18883_v49  ;;  %v10942_v37 = vor.u32 %v10941_v29, %v10938_v7  ;;  %v10992_v22 = vshrl.u32 %v10791_v45, 16  ;;  %v10995_v3 = vshll.u32 %v10791_v45, 16  ;;  %v11229_v45 = vld [vmem:[#allocation3 + $0x8] sm:$0xe]  ;;  %v11283_v59 = vrot.slane %v24503_v24, 5 }
 0x4fd   :  { %v10892_v53 = vsel %vm20245_vm5, %v10887_v12, %v24536_v54  ;;  %v10984_v51 = vor.u32 %v10983_v16, %v10980_v0  ;;  %v18888_v54 = vld [vmem:[#allocation9 + $0x158] sm:$0xff]  }
 0x4fe   :  { %17812 = vmatmul.mubr.bf16.gmra.mrb[76].mxu1 %v18882_v47  ;;  %v10905_v47 = vrot.slane %v10903_v18, 5  ;;  %v10943_v63 = vrot.slane %v10942_v37, 4  ;;  %v10994_v20 = vrot.slane %v10992_v22, 4  ;;  %v10997_v61 = vrot.slane %v10995_v3, 5  ;;  %v24572_v16 = vld [vmem:[#allocation3 + $0x8c] sm:$0x1] }
 0x4ff   :  { %17828 = vmatpush3.bf16.msra.mxu1 %v18883_v49  ;;  %17831 = vmatprep.mubr.bf16.mxu1 %v15995_v62  ;;  %v10917_v49 = vshll.u32 %v24532_v15, 16  ;;  %v10929_v62 = vrot.slane %v10928_v41, 4  ;;  %v10985_v4 = vrot.slane %v10984_v51, 4  ;;  %v11001_v28 = vshll.u32 %v24572_v16, 16  ;;  %v11232_v22 = vld [vmem:[#allocation3 + $0x20] sm:$0xe] }
 0x500   :  { %17829 = vmatprep.subr.bf16.mxu1 %v18884_v21  ;;  %v10906_v10 = vsel %vm20245_vm5, %v10901_v57, %v10905_v47  ;;  %v24566_v57 = vld [vmem:[#allocation3 + $0x94] sm:$0x1]  ;;  %v10998_v47 = vor.u32 %v10997_v61, %v10994_v20  ;;  %v11234_v3 = vld [vmem:[#allocation3 + $0x30] sm:$0xe]  ;;  %v11295_v20 = vrot.slane %v24512_v48, 5 }
 0x501   :  { %v10919_v11 = vrot.slane %v10917_v49, 5  ;;  %v10934_v25 = vsel %vm20245_vm5, %v10929_v62, %v10933_v30  ;;  %v15998_v1 = vcombine.low %v10892_v53, %v10906_v10  ;;  %v10973_v49 = vshll.u32 %v24560_v14, 16  ;;  %v18891_v53 = vld [vmem:[#allocation9 + $0x170] sm:$0xff]  }
 0x502   :  { %v10999_v5 = vrot.slane %v10998_v47, 4  ;;  %v11003_v51 = vrot.slane %v11001_v28, 5  ;;  %v11315_v47 = vrot.slane %v24538_v35, 5  ;;  %v11240_v28 = vld [vmem:[#allocation3 + $0x70] sm:$0xe] }
 0x503   :  { %17830 = vmatpush3.bf16.msra.mxu1 %v18884_v21  ;;  %v24547_v21 = vld [vmem:[#allocation3 + $0x74] sm:$0x1]  ;;  %v10920_v42 = vsel %vm20245_vm5, %v10915_v6, %v10919_v11  ;;  %v10975_v62 = vrot.slane %v10973_v49, 5  ;;  %v11230_v11 = vld [vmem:[#allocation3 + $0x10] sm:$0xe]  ;;  %v18890_v6 = vld [vmem:[#allocation9 + $0x168] sm:$0xff]  }
 0x504   :  { %17847 = vmatprep.subr.bf16.mxu1 %v18885_v52  ;;  %v10959_v36 = vshll.u32 %v24547_v21, 16  ;;  %v15999_v41 = vcombine.low %v10920_v42, %v10934_v25  ;;  %v16012_v10 = vrot.slane %v11230_v11, 9  ;;  %v16011_v25 = vrot.slane %v11229_v45, 9 }
 0x505   :  { %v10976_v29 = vsel %vm20245_vm5, %v10971_v55, %v10975_v62  ;;  %v11004_v24 = vsel %vm20245_vm5, %v10999_v5, %v11003_v51  ;;  %v11238_v55 = vld [vmem:[#allocation3 + $0x60] sm:$0xe]  ;;  %v11307_v62 = vrot.slane %v24530_v43, 5  ;;  %v11303_v11 = vrot.slane %v24522_v39, 5 }
 0x506   :  { %17832 = vmatmul.mubr.bf16.vlgmr.msra.gmra.mrb[64].mxu1 %v15996_v58  ;;  %v11009_v58 = vshll.u32 %v10793_v26, 16  ;;  %v16022_v5 = vrot.slane %v11240_v28, 9  ;;  %v11801_v28 = vld [vmem:[#allocation3 + $0x30] sm:$0xf] }
 0x507   :  { %17835 = vmatprep.mubr.bf16.mxu1 %v15997_v46  ;;  %17848 = vmatpush3.bf16.msra.mxu1 %v18885_v52  ;;  %v10945_v52 = vshll.u32 %v24545_v33, 16  ;;  %v10989_v46 = vrot.slane %v10987_v44, 5  ;;  %v16014_v44 = vrot.slane %v11232_v22, 9 }
 0x508   :  { %17849 = vmatprep.subr.bf16.mxu1 %v18886_v27  ;;  %v11011_v18 = vrot.slane %v11009_v58, 5 }
 0x509   :  { %v10947_v13 = vrot.slane %v10945_v52, 5  ;;  %v10990_v0 = vsel %vm20245_vm5, %v10985_v4, %v10989_v46  ;;  %v11279_v52 = vrot.slane %v24501_v34, 5  ;;  %v11231_v34 = vld [vmem:[#allocation3 + $0x18] sm:$0xe]  ;;  %v11287_v4 = vrot.slane %v24505_v40, 5 }
 0x50a   :  { %v11012_v12 = vor.u32 %v11011_v18, %v11008_v31  ;;  %v16001_v30 = vcombine.low %v10976_v29, %v10990_v0  ;;  %v16016_v31 = vrot.slane %v11234_v3, 9  ;;  %v11299_v18 = vrot.slane %v24520_v32, 5  ;;  %v11237_v0 = vld [vmem:[#allocation3 + $0x58] sm:$0xe] }
 0x50b   :  { %17850 = vmatpush3.bf16.msra.mxu1 %v18886_v27  ;;  %v10961_v27 = vrot.slane %v10959_v36, 5  ;;  %v10948_v26 = vsel %vm20245_vm5, %v10943_v63, %v10947_v13  ;;  %v11284_v36 = vsel %vm19458_vm2, %v16012_v10, %v11283_v59  ;;  %v11280_v42 = vsel %vm19458_vm2, %v16011_v25, %v11279_v52  ;;  %v18893_v63 = vld [vmem:[#allocation9 + $0x180] sm:$0xff]   ;;  %v18894_v13 = vld [vmem:[#allocation9 + $0x188] sm:$0xff]   ;;  %v18896_v10 = vld [vmem:[#allocation9 + $0x198] sm:$0xff]  }
 0x50c   :  { %17851 = vmatprep.subr.bf16.mxu1 %v18887_v9  ;;  %v11013_v23 = vrot.slane %v11012_v12, 4  ;;  %v16027_v50 = vcombine.low %v11280_v42, %v11284_v36  ;;  %v16013_v49 = vrot.slane %v11231_v34, 9  ;;  %v16019_v29 = vrot.slane %v11237_v0, 9  ;;  %v11239_v59 = vld [vmem:[#allocation3 + $0x68] sm:$0xe]  ;;  %v18897_v36 = vld [vmem:[#allocation9 + $0x1a0] sm:$0xff]  }
 0x50d   :  { %v10962_v19 = vsel %vm20245_vm5, %v10957_v17, %v10961_v27  ;;  %v11233_v17 = vld [vmem:[#allocation3 + $0x28] sm:$0xe]  ;;  %v11331_v52 = vrot.slane %v24551_v38, 5  ;;  %v16021_v51 = vrot.slane %v11239_v59, 9 }
 0x50e   :  { %17836 = vmatmul.mubr.bf16.gmra.mrb[68].mxu1 %v15998_v1  ;;  %v16000_v7 = vcombine.low %v10948_v26, %v10962_v19  ;;  %v16015_v27 = vrot.slane %v11233_v17, 9  ;;  %v11288_v32 = vsel %vm19458_vm2, %v16013_v49, %v11287_v4  ;;  %v11235_v19 = vld [vmem:[#allocation3 + $0x38] sm:$0xe]  ;;  %v16020_v26 = vrot.slane %v11238_v55, 9  ;;  %v11243_v34 = vld [vmem:[#allocation3 + $0x88] sm:$0xe] }
 0x50f   :  { %17839 = vmatprep.mubr.bf16.mxu1 %v15999_v41  ;;  %17852 = vmatpush3.bf16.msra.mxu1 %v18887_v9  ;;  %v11015_v9 = vshll.u32 %v24566_v57, 16  ;;  %v11291_v41 = vrot.slane %v24509_v8, 5  ;;  %v11300_v8 = vsel %vm19458_vm2, %v16016_v31, %v11299_v18  ;;  %v11335_v17 = vrot.slane %v24572_v16, 5  ;;  %v18899_v31 = vld [vmem:[#allocation9 + $0x1b0] sm:$0xff]  }
 0x510   :  { %17853 = vmatprep.subr.bf16.mxu1 %v18888_v54  ;;  %v11296_v40 = vsel %vm19458_vm2, %v16015_v27, %v11295_v20  ;;  %v11316_v43 = vsel %vm19458_vm2, %v16020_v26, %v11315_v47  ;;  %v18900_v27 = vld [vmem:[#allocation3 + $0x10] ss:$8 sps:$4 sm:$0xff]   ;;  %v18902_v16 = vld [vmem:[#allocation3 + $0x20] ss:$8 sps:$4 sm:$0xff]  }
 0x511   :  { %v11017_v58 = vrot.slane %v11015_v9, 5  ;;  %v11292_v61 = vsel %vm19458_vm2, %v16014_v44, %v11291_v41  ;;  %v16029_v48 = vcombine.low %v11296_v40, %v11300_v8  ;;  %v16017_v9 = vrot.slane %v11235_v19, 9  ;;  %v18905_v20 = vld [vmem:[#allocation9 + $0x1c8] sm:$0xff]   ;;  %v18907_v19 = vld [vmem:[#allocation9 + $0x1d0] sm:$0xff]  }
 0x512   :  { %v16028_v46 = vcombine.low %v11288_v32, %v11292_v61  ;;  %v11339_v44 = vrot.slane %v24566_v57, 5  ;;  %v16025_v41 = vrot.slane %v11243_v34, 9  ;;  %v18903_v57 = vld [vmem:[#allocation9 + $0x1c0] sm:$0xff]   ;;  %v11795_v8 = vld [vmem:[#allocation3 + $0x18] sm:$0xf] }
 0x513   :  { %17854 = vmatpush3.bf16.msra.mxu1 %v18888_v54  ;;  %v11018_v37 = vsel %vm20245_vm5, %v11013_v23, %v11017_v58  ;;  %v18892_v54 = vld [vmem:[#allocation9 + $0x178] sm:$0xff]   ;;  %v11304_v35 = vsel %vm19458_vm2, %v16017_v9, %v11303_v11  ;;  %v11242_v23 = vld [vmem:[#allocation3 + $0x80] sm:$0xe]  ;;  %v11323_v58 = vrot.slane %v24547_v21, 5  ;;  %v11793_v61 = vld [vmem:[#allocation3 + $0x10] sm:$0xf] }
 0x514   :  { %17855 = vmatprep.subr.bf16.mxu1 %v18889_v60  ;;  %v16002_v1 = vcombine.low %v11004_v24, %v11018_v37  ;;  %v16024_v25 = vrot.slane %v11242_v23, 9  ;;  %v11319_v37 = vrot.slane %v24545_v33, 5  ;;  %v11327_v24 = vrot.slane %v24560_v14, 5  ;;  %v18906_v0 = vld [vmem:[#allocation3 + $0x40] ss:$8 sps:$4 sm:$0xff]  }
 0x515   :  { %v11324_v3 = vsel %vm19458_vm2, %v16022_v5, %v11323_v58  ;;  %v11336_v49 = vsel %vm19458_vm2, %v16025_v41, %v11335_v17  ;;  %v11826_v32 = vshrl.u32 %v11793_v61, 16  ;;  %v11829_v55 = vshll.u32 %v11793_v61, 16  ;;  %v24637_v5 = vld [vmem:[#allocation3 + $0x24] sm:$0x1]  ;;  %v24639_v58 = vld [vmem:[#allocation3 + $0x2c] sm:$0x1] }
 0x516   :  { %17840 = vmatmul.mubr.bf16.gmra.mrb[72].mxu1 %v16000_v7  ;;  %v18895_v7 = vld [vmem:[#allocation9 + $0x190] sm:$0xff]   ;;  %v11332_v21 = vsel %vm19458_vm2, %v16024_v25, %v11331_v52  ;;  %v11320_v38 = vsel %vm19458_vm2, %v16021_v51, %v11319_v37  ;;  %v11843_v40 = vshll.u32 %v11795_v8, 16  ;;  %v11882_v51 = vshrl.u32 %v11801_v28, 16  ;;  %v24644_v34 = vld [vmem:[#allocation3 + $0x34] sm:$0x1] }
 0x517   :  { %17843 = vmatprep.mubr.bf16.mxu1 %v16001_v30  ;;  %17856 = vmatpush3.bf16.msra.mxu1 %v18889_v60  ;;  %v11236_v60 = vld [vmem:[#allocation3 + $0x40] sm:$0xe]  ;;  %v16032_v42 = vcombine.low %v11320_v38, %v11324_v3  ;;  %v11828_v26 = vrot.slane %v11826_v32, 4  ;;  %v11831_v47 = vrot.slane %v11829_v55, 5  ;;  %v11885_v37 = vshll.u32 %v11801_v28, 16 }
 0x518   :  { %17857 = vmatprep.subr.bf16.mxu1 %v18890_v6  ;;  %v16018_v12 = vrot.slane %v11236_v60, 9  ;;  %v18904_v60 = vld [vmem:[#allocation3 + $0x30] ss:$8 sps:$4 sm:$0xff]   ;;  %v11845_v11 = vrot.slane %v11843_v40, 5  ;;  %v11884_v17 = vrot.slane %v11882_v51, 4 }
 0x519   :  { %v24648_v55 = vld [vmem:[#allocation3 + $0x3c] sm:$0x1] }
 0x51a   :  { %v11308_v30 = vsel %vm19458_vm2, %v16018_v12, %v11307_v62 }
 0x51b   :  { %17858 = vmatpush3.bf16.msra.mxu1 %v18890_v6  ;;  %v11311_v6 = vrot.slane %v24532_v15, 5  ;;  %v16030_v45 = vcombine.low %v11304_v35, %v11308_v30  ;;  %v24634_v35 = vld [vmem:[#allocation3 + $0x1c] sm:$0x1] }
 0x51c   :  { %17859 = vmatprep.subr.bf16.mxu1 %v18891_v53  ;;  %v11849_v3 = vshll.u32 %v24634_v35, 16 }
 0x51d   :  { %v11312_v39 = vsel %vm19458_vm2, %v16019_v29, %v11311_v6  ;;  %v24632_v29 = vld [vmem:[#allocation3 + $0x14] sm:$0x1] }
 0x51e   :  { %17844 = vmatmul.mubr.bf16.gmra.mrb[76].mxu1 %v16002_v1  ;;  %v16031_v15 = vcombine.low %v11312_v39, %v11316_v43  ;;  %v11244_v1 = vld [vmem:[#allocation3 + $0x90] sm:$0xe]  ;;  %v18908_v43 = vld [vmem:[#allocation3 + $0x60] ss:$8 sps:$4 sm:$0xff]   ;;  %v11803_v39 = vld [vmem:[#allocation3 + $0x38] sm:$0xf] }
 0x51f   :  { %17860 = vmatpush3.bf16.msra.mxu1 %v18891_v53  ;;  %17863 = vmatprep.mubr.bf16.mxu1 %v16027_v50  ;;  %v11241_v53 = vld [vmem:[#allocation3 + $0x78] sm:$0xe]  ;;  %v16026_v14 = vrot.slane %v11244_v1, 9  ;;  %v11835_v59 = vshll.u32 %v24632_v29, 16  ;;  %v11805_v1 = vld [vmem:[#allocation3 + $0x40] sm:$0xf] }
 0x520   :  { %17861 = vmatprep.subr.bf16.mxu1 %v18892_v54  ;;  %v16023_v22 = vrot.slane %v11241_v53, 9  ;;  %v18911_v53 = vld [vmem:[#allocation9 + $0x1e0] sm:$0xff]  }
 0x521   :  { %v11340_v18 = vsel %vm19458_vm2, %v16026_v14, %v11339_v44  ;;  %v18913_v14 = vld [vmem:[#allocation9 + $0x1e8] sm:$0xff]  }
 0x522   :  { %v11328_v33 = vsel %vm19458_vm2, %v16023_v22, %v11327_v24  ;;  %v16034_v4 = vcombine.low %v11336_v49, %v11340_v18  ;;  %v11899_v22 = vshll.u32 %v11803_v39, 16  ;;  %v18910_v24 = vld [vmem:[#allocation3 + $0x70] ss:$8 sps:$4 sm:$0xff]   ;;  %v11811_v18 = vld [vmem:[#allocation3 + $0x68] sm:$0xf] }
 0x523   :  { %17862 = vmatpush3.bf16.msra.mxu1 %v18892_v54  ;;  %v18898_v54 = vld [vmem:[#allocation9 + $0x1a8] sm:$0xff]   ;;  %v16033_v50 = vcombine.low %v11328_v33, %v11332_v21  ;;  %v11863_v33 = vshll.u32 %v24637_v5, 16  ;;  %v18912_v49 = vld [vmem:[#allocation3 + $0x80] ss:$8 sps:$4 sm:$0xff]   ;;  %v11955_v40 = vshll.u32 %v11811_v18, 16 }
 0x524   :  { %17879 = vmatprep.subr.bf16.mxu1 %v18893_v63 }
 0x525   :  { %v11865_v32 = vrot.slane %v11863_v33, 5  ;;  %v24666_v33 = vld [vmem:[#allocation3 + $0x6c] sm:$0x1] }
 0x526   :  { %17864 = vmatmul.mubr.bf16.vlgmr.msra.gmra.mrb[64].mxu1 %v16028_v46  ;;  %v11840_v46 = vshrl.u32 %v11795_v8, 16 }
 0x527   :  { %17867 = vmatprep.mubr.bf16.mxu1 %v16029_v48  ;;  %17880 = vmatpush3.bf16.msra.mxu1 %v18893_v63  ;;  %v18901_v63 = vld [vmem:[#allocation9 + $0x1b8] sm:$0xff]   ;;  %v11797_v48 = vld [vmem:[#allocation3 + $0x20] sm:$0xf] }
 0x528   :  { %17881 = vmatprep.subr.bf16.mxu1 %v18894_v13  ;;  %v11842_v9 = vrot.slane %v11840_v46, 4  ;;  %v11854_v6 = vshrl.u32 %v11797_v48, 16  ;;  %v11857_v30 = vshll.u32 %v11797_v48, 16  ;;  %v11952_v46 = vshrl.u32 %v11811_v18, 16 }
 0x52a   :  { %v11856_v25 = vrot.slane %v11854_v6, 4  ;;  %v11859_v52 = vrot.slane %v11857_v30, 5  ;;  %v11905_v30 = vshll.u32 %v24648_v55, 16 }
 0x52b   :  { %17882 = vmatpush3.bf16.msra.mxu1 %v18894_v13  ;;  %v11799_v13 = vld [vmem:[#allocation3 + $0x28] sm:$0xf] }
 0x52c   :  { %17883 = vmatprep.subr.bf16.mxu1 %v18895_v7  ;;  %v11868_v12 = vshrl.u32 %v11799_v13, 16  ;;  %v11871_v62 = vshll.u32 %v11799_v13, 16  ;;  %v11860_v41 = vor.u32 %v11859_v52, %v11856_v25  ;;  %v18915_v13 = vld [vmem:[#allocation9 + $0x1f0] sm:$0xff]   ;;  %v18916_v25 = vld [vmem:[#allocation9 + $0x1f8] sm:$0xff]  }
 0x52e   :  { %17868 = vmatmul.mubr.bf16.gmra.mrb[68].mxu1 %v16030_v45  ;;  %v11870_v23 = vrot.slane %v11868_v12, 4  ;;  %v11873_v45 = vrot.slane %v11871_v62, 5  ;;  %v11891_v62 = vshll.u32 %v24644_v34, 16 }
 0x52f   :  { %17871 = vmatprep.mubr.bf16.mxu1 %v16031_v15  ;;  %17884 = vmatpush3.bf16.msra.mxu1 %v18895_v7  ;;  %v18909_v7 = vld [vmem:[#allocation9 + $0x1d8] sm:$0xff]   ;;  %v11846_v15 = vor.u32 %v11845_v11, %v11842_v9  ;;  %v24653_v9 = vld [vmem:[#allocation3 + $0x44] sm:$0x1] }
 0x530   :  { %17885 = vmatprep.subr.bf16.mxu1 %v18896_v10  ;;  %v11874_v21 = vor.u32 %v11873_v45, %v11870_v23  ;;  %v24658_v23 = vld [vmem:[#allocation3 + $0x4c] sm:$0x1]  ;;  %v11919_v51 = vshll.u32 %v24653_v9, 16 }
 0x531   :  { %v11847_v44 = vrot.slane %v11846_v15, 4  ;;  %v18914_v15 = vld [vmem:[#allocation3 + $0x90] ss:$8 sps:$4 sm:$0xff]  }
 0x532   :  { %v11921_v18 = vrot.slane %v11919_v51, 5 }
 0x533   :  { %17886 = vmatpush3.bf16.msra.mxu1 %v18896_v10  ;;  %v11832_v10 = vor.u32 %v11831_v47, %v11828_v26  ;;  %v11861_v26 = vrot.slane %v11860_v41, 4  ;;  %v11819_v41 = vld [vmem:[#allocation3 + $0x88] sm:$0xf] }
 0x534   :  { %17887 = vmatprep.subr.bf16.mxu1 %v18897_v36 }
 0x535   :  { %v11833_v38 = vrot.slane %v11832_v10, 4  ;;  %v11954_v10 = vrot.slane %v11952_v46, 4  ;;  %v12011_v46 = vshll.u32 %v11819_v41, 16 }
 0x536   :  { %17872 = vmatmul.mubr.bf16.gmra.mrb[72].mxu1 %v16032_v42  ;;  %v11837_v42 = vrot.slane %v11835_v59, 5  ;;  %v11957_v59 = vrot.slane %v11955_v40, 5 }
 0x537   :  { %17875 = vmatprep.mubr.bf16.mxu1 %v16033_v50  ;;  %17888 = vmatpush3.bf16.msra.mxu1 %v18897_v36  ;;  %v11896_v36 = vshrl.u32 %v11803_v39, 16  ;;  %v11807_v50 = vld [vmem:[#allocation3 + $0x48] sm:$0xf] }
 0x538   :  { %17889 = vmatprep.subr.bf16.mxu1 %v18898_v54  ;;  %v11924_v61 = vshrl.u32 %v11807_v50, 16  ;;  %v11927_v8 = vshll.u32 %v11807_v50, 16 }
 0x53a   :  { %v11929_v28 = vrot.slane %v11927_v8, 5 }
 0x53b   :  { %17890 = vmatpush3.bf16.msra.mxu1 %v18898_v54  ;;  %v11877_v54 = vshll.u32 %v24639_v58, 16 }
 0x53c   :  { %17891 = vmatprep.subr.bf16.mxu1 %v18899_v31 }
 0x53d   :  { %v11879_v48 = vrot.slane %v11877_v54, 5  ;;  %v11907_v54 = vrot.slane %v11905_v30, 5 }
 0x53e   :  { %17876 = vmatmul.mubr.bf16.gmra.mrb[76].mxu1 %v16034_v4  ;;  %v11898_v4 = vrot.slane %v11896_v36, 4 }
 0x53f   :  { %17892 = vmatpush3.bf16.msra.mxu1 %v18899_v31  ;;  %17895 = vmatprep.mubr.bf16.mxu1 %v18900_v27  ;;  %v11887_v31 = vrot.slane %v11885_v37, 5  ;;  %v11910_v27 = vshrl.u32 %v11805_v1, 16  ;;  %v11866_v37 = vsel %vm20245_vm5, %v11861_v26, %v11865_v32  ;;  %v12008_v32 = vshrl.u32 %v11819_v41, 16 }
 0x540   :  { %17893 = vmatprep.subr.bf16.mxu1 %v18901_v63 }
 0x541   :  { %v11888_v12 = vor.u32 %v11887_v31, %v11884_v17  ;;  %v11912_v11 = vrot.slane %v11910_v27, 4  ;;  %v18917_v17 = vld [vmem:[#allocation9 + $0x200] sm:$0xff]  }
 0x543   :  { %17894 = vmatpush3.bf16.msra.mxu1 %v18901_v63  ;;  %v11901_v63 = vrot.slane %v11899_v22, 5  ;;  %v11889_v52 = vrot.slane %v11888_v12, 4  ;;  %v18918_v12 = vld [vmem:[#allocation9 + $0x208] sm:$0xff]  }
 0x544   :  { %17911 = vmatprep.subr.bf16.mxu1 %v18903_v57 }
 0x545   :  { %v11902_v47 = vor.u32 %v11901_v63, %v11898_v4 }
 0x546   :  { %17896 = vmatmul.mubr.bf16.vlgmr.msra.gmra.mrb[64].mxu1 %v18902_v16  ;;  %v11851_v16 = vrot.slane %v11849_v3, 5  ;;  %v11815_v3 = vld [vmem:[#allocation3 + $0x78] sm:$0xf] }
 0x547   :  { %17899 = vmatprep.mubr.bf16.mxu1 %v18904_v60  ;;  %17912 = vmatpush3.bf16.msra.mxu1 %v18903_v57  ;;  %v11913_v57 = vshll.u32 %v11805_v1, 16  ;;  %v11838_v60 = vsel %vm20245_vm5, %v11833_v38, %v11837_v42  ;;  %v11903_v36 = vrot.slane %v11902_v47, 4  ;;  %v11893_v1 = vrot.slane %v11891_v62, 5  ;;  %v24664_v42 = vld [vmem:[#allocation3 + $0x64] sm:$0x1] }
 0x548   :  { %17913 = vmatprep.subr.bf16.mxu1 %v18905_v20  ;;  %v11980_v4 = vshrl.u32 %v11815_v3, 16  ;;  %v11983_v63 = vshll.u32 %v11815_v3, 16  ;;  %v24684_v3 = vld [vmem:[#allocation3 + $0x8c] sm:$0x1] }
 0x549   :  { %v11894_v31 = vsel %vm20245_vm5, %v11889_v52, %v11893_v1  ;;  %v11908_v27 = vsel %vm20245_vm5, %v11903_v36, %v11907_v54  ;;  %v18919_v52 = vld [vmem:[#allocation9 + $0x210] sm:$0xff]  }
 0x54a   :  { %v11982_v62 = vrot.slane %v11980_v4, 4  ;;  %v18920_v4 = vld [vmem:[#allocation9 + $0x218] sm:$0xff]  }
 0x54b   :  { %17914 = vmatpush3.bf16.msra.mxu1 %v18905_v20  ;;  %v11875_v20 = vrot.slane %v11874_v21, 4 }
 0x54c   :  { %17915 = vmatprep.subr.bf16.mxu1 %v18907_v19 }
 0x54d   :  { %v11880_v6 = vsel %vm20245_vm5, %v11875_v20, %v11879_v48  ;;  %v11947_v20 = vshll.u32 %v24664_v42, 16 }
 0x54e   :  { %17900 = vmatmul.mubr.bf16.gmra.mrb[68].mxu1 %v18906_v0  ;;  %v11809_v0 = vld [vmem:[#allocation3 + $0x60] sm:$0xf]  ;;  %v16060_v21 = vcombine.low %v11866_v37, %v11880_v6  ;;  %v11821_v6 = vld [vmem:[#allocation3 + $0x90] sm:$0xf]  ;;  %v24682_v37 = vld [vmem:[#allocation3 + $0x7c] sm:$0x1] }
 0x54f   :  { %17903 = vmatprep.mubr.bf16.mxu1 %v18908_v43  ;;  %17916 = vmatpush3.bf16.msra.mxu1 %v18907_v19  ;;  %v11852_v19 = vsel %vm20245_vm5, %v11847_v44, %v11851_v16  ;;  %v11926_v43 = vrot.slane %v11924_v61, 4  ;;  %v11938_v45 = vshrl.u32 %v11809_v0, 16  ;;  %v11941_v39 = vshll.u32 %v11809_v0, 16  ;;  %v11817_v61 = vld [vmem:[#allocation3 + $0x80] sm:$0xf] }
 0x550   :  { %17917 = vmatprep.subr.bf16.mxu1 %v18909_v7  ;;  %v11958_v44 = vor.u32 %v11957_v59, %v11954_v10  ;;  %v11985_v0 = vrot.slane %v11983_v63, 5  ;;  %v11994_v26 = vshrl.u32 %v11817_v61, 16  ;;  %v11997_v47 = vshll.u32 %v11817_v61, 16 }
 0x551   :  { %v11930_v38 = vor.u32 %v11929_v28, %v11926_v43  ;;  %v11940_v50 = vrot.slane %v11938_v45, 4  ;;  %v11949_v30 = vrot.slane %v11947_v20, 5  ;;  %v12010_v28 = vrot.slane %v12008_v32, 4 }
 0x552   :  { %v12013_v45 = vrot.slane %v12011_v46, 5  ;;  %v11986_v36 = vor.u32 %v11985_v0, %v11982_v62  ;;  %v12025_v1 = vshll.u32 %v11821_v6, 16  ;;  %v24696_v0 = vld [vmem:[#allocation3 + $0x94] sm:$0x1] }
 0x553   :  { %17918 = vmatpush3.bf16.msra.mxu1 %v18909_v7  ;;  %v11915_v7 = vrot.slane %v11913_v57, 5  ;;  %v11931_v8 = vrot.slane %v11930_v38, 4 }
 0x554   :  { %17919 = vmatprep.subr.bf16.mxu1 %v18911_v53  ;;  %v11987_v63 = vrot.slane %v11986_v36, 4  ;;  %v12027_v20 = vrot.slane %v12025_v1, 5  ;;  %v12259_v36 = vld [vmem:[#allocation3 + $0x10] sm:$0xe]  ;;  %v18923_v1 = vld [vmem:[#allocation9 + $0x230] sm:$0xff]  }
 0x555   :  { %v11916_v22 = vor.u32 %v11915_v7, %v11912_v11  ;;  %v16061_v11 = vcombine.low %v11894_v31, %v11908_v27  ;;  %v11989_v31 = vshll.u32 %v24682_v37, 16 }
 0x556   :  { %17904 = vmatmul.mubr.bf16.gmra.mrb[72].mxu1 %v18910_v24  ;;  %v11933_v24 = vshll.u32 %v24658_v23, 16 }
 0x557   :  { %17907 = vmatprep.mubr.bf16.mxu1 %v18912_v49  ;;  %17920 = vmatpush3.bf16.msra.mxu1 %v18911_v53  ;;  %v16059_v53 = vcombine.low %v11838_v60, %v11852_v19  ;;  %v11813_v49 = vld [vmem:[#allocation3 + $0x70] sm:$0xf]  ;;  %v11917_v57 = vrot.slane %v11916_v22, 4  ;;  %v11961_v60 = vshll.u32 %v24666_v33, 16  ;;  %v11996_v22 = vrot.slane %v11994_v26, 4 }
 0x558   :  { %17921 = vmatprep.subr.bf16.mxu1 %v18913_v14  ;;  %v11935_v16 = vrot.slane %v11933_v24, 5  ;;  %v11966_v19 = vshrl.u32 %v11813_v49, 16  ;;  %v11969_v48 = vshll.u32 %v11813_v49, 16  ;;  %v11999_v24 = vrot.slane %v11997_v47, 5 }
 0x559   :  { %v11922_v7 = vsel %vm20245_vm5, %v11917_v57, %v11921_v18  ;;  %v11963_v43 = vrot.slane %v11961_v60, 5  ;;  %v24690_v18 = vld [vmem:[#allocation3 + $0x84] sm:$0x1]  ;;  %v12017_v57 = vshll.u32 %v24684_v3, 16 }
 0x55a   :  { %v11936_v10 = vsel %vm20245_vm5, %v11931_v8, %v11935_v16  ;;  %v12000_v27 = vor.u32 %v11999_v24, %v11996_v22  ;;  %v12003_v60 = vshll.u32 %v24690_v18, 16  ;;  %v12313_v24 = vrot.slane %v24634_v35, 5  ;;  %v12264_v35 = vld [vmem:[#allocation3 + $0x38] sm:$0xe] }
 0x55b   :  { %17922 = vmatpush3.bf16.msra.mxu1 %v18913_v14  ;;  %v11943_v14 = vrot.slane %v11941_v39, 5  ;;  %v11823_v39 = vld [vmem:[#allocation3 + $0x98] sm:$0xf]  ;;  %v12019_v62 = vrot.slane %v12017_v57, 5  ;;  %v12263_v57 = vld [vmem:[#allocation3 + $0x30] sm:$0xe] }
 0x55c   :  { %17923 = vmatprep.subr.bf16.mxu1 %v18915_v13  ;;  %v12036_v38 = vshrl.u32 %v11823_v39, 16  ;;  %v12039_v54 = vshll.u32 %v11823_v39, 16  ;;  %v16080_v2 = vrot.slane %v12264_v35, 9  ;;  %v12365_v35 = vrot.slane %v24696_v0, 5 }
 0x55d   :  { %v11944_v40 = vor.u32 %v11943_v14, %v11940_v50  ;;  %v12014_v14 = vor.u32 %v12013_v45, %v12010_v28  ;;  %v12031_v28 = vshll.u32 %v24696_v0, 16  ;;  %v12260_v45 = vld [vmem:[#allocation3 + $0x18] sm:$0xe]  ;;  %v18926_v0 = vld [vmem:[%s25370_s5] sm:$0xff]  }
 0x55e   :  { %17908 = vmatmul.mubr.bf16.gmra.mrb[76].mxu1 %v18914_v15  ;;  %v24678_v15 = vld [vmem:[#allocation3 + $0x74] sm:$0x1]  ;;  %v12038_v61 = vrot.slane %v12036_v38, 4  ;;  %v12041_v8 = vrot.slane %v12039_v54, 5  ;;  %v16076_v22 = vrot.slane %v12260_v45, 9  ;;  %v16075_v38 = vrot.slane %v12259_v36, 9 }
 0x55f   :  { %17924 = vmatpush3.bf16.msra.mxu1 %v18915_v13  ;;  %17927 = vmatprep.mubr.bf16.mxu1 %v16059_v53  ;;  %v11959_v13 = vrot.slane %v11958_v44, 4  ;;  %v11945_v59 = vrot.slane %v11944_v40, 4  ;;  %v11968_v53 = vrot.slane %v11966_v19, 4  ;;  %v11975_v50 = vshll.u32 %v24678_v15, 16 }
 0x560   :  { %17925 = vmatprep.subr.bf16.mxu1 %v18916_v25  ;;  %v16062_v44 = vcombine.low %v11922_v7, %v11936_v10  ;;  %v12015_v32 = vrot.slane %v12014_v14, 4  ;;  %v11991_v40 = vrot.slane %v11989_v31, 5  ;;  %v12309_v54 = vrot.slane %v24632_v29, 5 }
 0x561   :  { %v11964_v51 = vsel %vm20245_vm5, %v11959_v13, %v11963_v43  ;;  %v11950_v41 = vsel %vm20245_vm5, %v11945_v59, %v11949_v30  ;;  %v24694_v13 = vld [vmem:[#allocation3 + $0x9c] sm:$0x1]  ;;  %v11977_v19 = vrot.slane %v11975_v50, 5  ;;  %v12361_v36 = vrot.slane %v24684_v3, 5 }
 0x562   :  { %v16063_v49 = vcombine.low %v11950_v41, %v11964_v51  ;;  %v11992_v26 = vsel %vm20245_vm5, %v11987_v63, %v11991_v40  ;;  %v12045_v7 = vshll.u32 %v24694_v13, 16  ;;  %v12020_v30 = vsel %vm20245_vm5, %v12015_v32, %v12019_v62  ;;  %v18922_v59 = vld [vmem:[#allocation9 + $0x228] sm:$0xff]   ;;  %v12262_v41 = vld [vmem:[#allocation3 + $0x28] sm:$0xe] }
 0x563   :  { %17926 = vmatpush3.bf16.msra.mxu1 %v18916_v25  ;;  %v11971_v25 = vrot.slane %v11969_v48, 5  ;;  %v18921_v48 = vld [vmem:[#allocation9 + $0x220] sm:$0xff]   ;;  %v12310_v31 = vsel %vm19458_vm2, %v16075_v38, %v12309_v54  ;;  %v16078_v63 = vrot.slane %v12262_v41, 9  ;;  %v12266_v40 = vld [vmem:[#allocation3 + $0x48] sm:$0xe] }
 0x564   :  { %17943 = vmatprep.subr.bf16.mxu1 %v18917_v17  ;;  %v12047_v51 = vrot.slane %v12045_v7, 5  ;;  %v12273_v54 = vld [vmem:[#allocation3 + $0x90] sm:$0xe] }
 0x565   :  { %v16089_v41 = vrot.slane %v12273_v54, 9 }
 0x566   :  { %17928 = vmatmul.mubr.bf16.vlgmr.msra.gmra.mrb[64].mxu1 %v16060_v21  ;;  %v12022_v21 = vshrl.u32 %v11821_v6, 16  ;;  %v12005_v6 = vrot.slane %v12003_v60, 5  ;;  %v12325_v60 = vrot.slane %v24644_v34, 5  ;;  %v12333_v34 = vrot.slane %v24653_v9, 5 }
 0x567   :  { %17931 = vmatprep.mubr.bf16.mxu1 %v16061_v11  ;;  %17944 = vmatpush3.bf16.msra.mxu1 %v18917_v17  ;;  %v11972_v17 = vor.u32 %v11971_v25, %v11968_v53  ;;  %v12042_v11 = vor.u32 %v12041_v8, %v12038_v61  ;;  %v12317_v61 = vrot.slane %v24637_v5, 5  ;;  %v16079_v8 = vrot.slane %v12263_v57, 9  ;;  %v18931_v57 = vld [vmem:[%s25370_s5 + $0x58] sm:$0xff]  }
 0x568   :  { %17945 = vmatprep.subr.bf16.mxu1 %v18918_v12  ;;  %v12024_v16 = vrot.slane %v12022_v21, 4  ;;  %v12033_v21 = vrot.slane %v12031_v28, 5 }
 0x569   :  { %v11973_v46 = vrot.slane %v11972_v17, 4  ;;  %v12326_v5 = vsel %vm19458_vm2, %v16079_v8, %v12325_v60  ;;  %v18936_v8 = vld [vmem:[%s25370_s5 + $0x28] sm:$0xff]   ;;  %v18937_v60 = vld [vmem:[%s25370_s5 + $0x70] sm:$0xff]  }
 0x56a   :  { %v12028_v47 = vor.u32 %v12027_v20, %v12024_v16  ;;  %v12329_v16 = vrot.slane %v24648_v55, 5 }
 0x56b   :  { %17946 = vmatpush3.bf16.msra.mxu1 %v18918_v12  ;;  %v12001_v12 = vrot.slane %v12000_v27, 4  ;;  %v11978_v43 = vsel %vm20245_vm5, %v11973_v46, %v11977_v19  ;;  %v12321_v27 = vrot.slane %v24639_v58, 5  ;;  %v12265_v46 = vld [vmem:[#allocation3 + $0x40] sm:$0xe]  ;;  %v12268_v19 = vld [vmem:[#allocation3 + $0x68] sm:$0xe] }
 0x56c   :  { %17947 = vmatprep.subr.bf16.mxu1 %v18919_v52  ;;  %v16064_v39 = vcombine.low %v11978_v43, %v11992_v26  ;;  %v12029_v25 = vrot.slane %v12028_v47, 4  ;;  %v12330_v58 = vsel %vm19458_vm2, %v16080_v2, %v12329_v16  ;;  %v16082_v26 = vrot.slane %v12266_v40, 9  ;;  %v18932_v2 = vld [vmem:[%s25370_s5 + $0x18] sm:$0xff]   ;;  %v18933_v16 = vld [vmem:[%s25370_s5 + $0x60] sm:$0xff]  }
 0x56d   :  { %v12006_v10 = vsel %vm20245_vm5, %v12001_v12, %v12005_v6  ;;  %v12322_v32 = vsel %vm19458_vm2, %v16078_v63, %v12321_v27  ;;  %v16081_v12 = vrot.slane %v12265_v46, 9  ;;  %v16093_v62 = vcombine.low %v12326_v5, %v12330_v58  ;;  %v18929_v63 = vld [vmem:[%s25370_s5 + $0x50] sm:$0xff]   ;;  %v18939_v46 = vld [vmem:[%s25370_s5 + $0x78] sm:$0xff]   ;;  %v18941_v40 = vld [vmem:[%s25370_s5 + $0xc0] sm:$0xff]  }
 0x56e   :  { %17932 = vmatmul.mubr.bf16.gmra.mrb[68].mxu1 %v16062_v44  ;;  %v16065_v53 = vcombine.low %v12006_v10, %v12020_v30  ;;  %v12034_v50 = vsel %vm20245_vm5, %v12029_v25, %v12033_v21  ;;  %v12314_v44 = vsel %vm19458_vm2, %v16076_v22, %v12313_v24  ;;  %v12337_v47 = vrot.slane %v24658_v23, 5  ;;  %v12272_v23 = vld [vmem:[#allocation3 + $0x88] sm:$0xe]  ;;  %v18930_v27 = vld [vmem:[%s25370_s5 + $0x10] sm:$0xff]   ;;  %v18940_v58 = vld [vmem:[%s25370_s5 + $0x38] sm:$0xff]  }
 0x56f   :  { %17935 = vmatprep.mubr.bf16.mxu1 %v16063_v49  ;;  %17948 = vmatpush3.bf16.msra.mxu1 %v18919_v52  ;;  %v12043_v52 = vrot.slane %v12042_v11, 4  ;;  %v18924_v49 = vld [vmem:[#allocation9 + $0x238] sm:$0xff]   ;;  %v16091_v29 = vcombine.low %v12310_v31, %v12314_v44  ;;  %v12267_v11 = vld [vmem:[#allocation3 + $0x60] sm:$0xe]  ;;  %v16084_v7 = vrot.slane %v12268_v19, 9  ;;  %v12345_v6 = vrot.slane %v24666_v33, 5 }
 0x570   :  { %17949 = vmatprep.subr.bf16.mxu1 %v18920_v4  ;;  %v16083_v30 = vrot.slane %v12267_v11, 9  ;;  %v12341_v43 = vrot.slane %v24664_v42, 5  ;;  %v12334_v28 = vsel %vm19458_vm2, %v16081_v12, %v12333_v34  ;;  %v12338_v45 = vsel %vm19458_vm2, %v16082_v26, %v12337_v47  ;;  %v12269_v33 = vld [vmem:[#allocation3 + $0x70] sm:$0xe] }
 0x571   :  { %v12048_v14 = vsel %vm20245_vm5, %v12043_v52, %v12047_v51  ;;  %v12346_v9 = vsel %vm19458_vm2, %v16084_v7, %v12345_v6  ;;  %v16094_v10 = vcombine.low %v12334_v28, %v12338_v45  ;;  %v12353_v42 = vrot.slane %v24682_v37, 5  ;;  %v12271_v52 = vld [vmem:[#allocation3 + $0x80] sm:$0xe]  ;;  %v12274_v37 = vld [vmem:[#allocation3 + $0x98] sm:$0xe] }
 0x572   :  { %v16066_v17 = vcombine.low %v12034_v50, %v12048_v14  ;;  %v16088_v51 = vrot.slane %v12272_v23, 9  ;;  %v16085_v22 = vrot.slane %v12269_v33, 9  ;;  %v12349_v24 = vrot.slane %v24678_v15, 5 }
 0x573   :  { %17950 = vmatpush3.bf16.msra.mxu1 %v18920_v4  ;;  %v12261_v4 = vld [vmem:[#allocation3 + $0x20] sm:$0xe]  ;;  %v16087_v21 = vrot.slane %v12271_v52, 9  ;;  %v12366_v31 = vsel %vm19458_vm2, %v16089_v41, %v12365_v35  ;;  %v19379_v45 = vmov 1966171168  }
 0x574   :  { %17951 = vmatprep.subr.bf16.mxu1 %v18921_v48  ;;  %v16077_v20 = vrot.slane %v12261_v4, 9  ;;  %v12362_v50 = vsel %vm19458_vm2, %v16088_v51, %v12361_v36  ;;  %v12350_v14 = vsel %vm19458_vm2, %v16085_v22, %v12349_v24 }
 0x576   :  { %17936 = vmatmul.mubr.bf16.gmra.mrb[72].mxu1 %v16064_v39  ;;  %v12318_v55 = vsel %vm19458_vm2, %v16077_v20, %v12317_v61  ;;  %v12270_v39 = vld [vmem:[#allocation3 + $0x78] sm:$0xe]  ;;  %v18934_v20 = vld [vmem:[%s25370_s5 + $0x20] sm:$0xff]   ;;  %v18935_v61 = vld [vmem:[%s25370_s5 + $0x68] sm:$0xff]  }
 0x577   :  { %17939 = vmatprep.mubr.bf16.mxu1 %v16065_v53  ;;  %17952 = vmatpush3.bf16.msra.mxu1 %v18921_v48  ;;  %v16092_v48 = vcombine.low %v12318_v55, %v12322_v32  ;;  %v16086_v25 = vrot.slane %v12270_v39, 9  ;;  %v18938_v32 = vld [vmem:[%s25370_s5 + $0x30] sm:$0xff]   ;;  %v24814_v55 = vld [vmem:[%s25369_s4] ss:$0 sm:$0xff] }
 0x578   :  { %17953 = vmatprep.subr.bf16.mxu1 %v18922_v59 }
 0x579   :  { %v12354_v38 = vsel %vm19458_vm2, %v16086_v25, %v12353_v42 }
 0x57a   :  { %v16096_v44 = vcombine.low %v12350_v14, %v12354_v38 }
 0x57b   :  { %17954 = vmatpush3.bf16.msra.mxu1 %v18922_v59  ;;  %v12342_v59 = vsel %vm19458_vm2, %v16083_v30, %v12341_v43  ;;  %v12663_v43 = vlaneseq }
 0x57c   :  { %17955 = vmatprep.subr.bf16.mxu1 %v18923_v1  ;;  %v16095_v53 = vcombine.low %v12342_v59, %v12346_v9  ;;  %v12661_v9 = vunpack.c.l.s4 %v19379_v45 }
 0x57d   :  { %v12664_v59 = vshrl.u32 %v12663_v43, 7 }
 0x57e   :  { %17940 = vmatmul.mubr.bf16.gmra.mrb[76].mxu1 %v16066_v17  ;;  %v12369_v17 = vrot.slane %v24694_v13, 5  ;;  %v18927_v13 = vld [vmem:[%s25370_s5 + $0x48] sm:$0xff]  }
 0x57f   :  { %17956 = vmatpush3.bf16.msra.mxu1 %v18923_v1  ;;  %17959 = vmatprep.mubr.bf16.mxu1 %v16091_v29  ;;  %v12357_v1 = vrot.slane %v24690_v18, 5  ;;  %v16090_v18 = vrot.slane %v12274_v37, 9  ;;  %v18925_v29 = vld [vmem:[%s25370_s5 + $0x40] sm:$0xff]  }
 0x580   :  { %17957 = vmatprep.subr.bf16.mxu1 %v18924_v49 }
 0x581   :  { %v12358_v3 = vsel %vm19458_vm2, %v16087_v21, %v12357_v1  ;;  %v12662_v21 = vunpack.c.0.s8 %v12661_v9  ;;  %v19380_v1 = vmov 1935823168  }
 0x582   :  { %v16097_v15 = vcombine.low %v12358_v3, %v12362_v50  ;;  %v12689_v38 = vunpack.c.l.s4 %v19380_v1 }
 0x583   :  { %17958 = vmatpush3.bf16.msra.mxu1 %v18924_v49  ;;  %v12370_v49 = vsel %vm19458_vm2, %v16090_v18, %v12369_v17 }
 0x584   :  { %v16098_v4 = vcombine.low %v12366_v31, %v12370_v49  ;;  %16782 = vmatprep.subr.bf16.mxu1 %v18925_v29  ;;  %v24824_v49 = vsub.s32 %v12662_v21, %v12664_v59 }
 0x586   :  { %17960 = vmatmul.mubr.bf16.vlgmr.msra.gmra.mrb[64].mxu1 %v16092_v48 }
 0x587   :  { %17963 = vmatprep.mubr.bf16.mxu1 %v16093_v62  ;;  %16783 = vmatpush3.bf16.msra.mxu1 %v18926_v0 }
 0x588   :  { %16784 = vmatprep.subr.bf16.mxu1 %v18927_v13 }
 0x58b   :  { %16785 = vmatpush3.bf16.msra.mxu1 %v18928_v56 }
 0x58c   :  { %16786 = vmatprep.subr.bf16.mxu1 %v18929_v63 }
 0x58e   :  { %17964 = vmatmul.mubr.bf16.gmra.mrb[68].mxu1 %v16094_v10 }
 0x58f   :  { %17967 = vmatprep.mubr.bf16.mxu1 %v16095_v53  ;;  %16787 = vmatpush3.bf16.msra.mxu1 %v18930_v27 }
 0x590   :  { %16788 = vmatprep.subr.bf16.mxu1 %v18931_v57 }
 0x593   :  { %16789 = vmatpush3.bf16.msra.mxu1 %v18932_v2 }
 0x594   :  { %16790 = vmatprep.subr.bf16.mxu1 %v18933_v16 }
 0x596   :  { %17968 = vmatmul.mubr.bf16.gmra.mrb[72].mxu1 %v16096_v44 }
 0x597   :  { %17971 = vmatprep.mubr.bf16.mxu1 %v16097_v15  ;;  %16791 = vmatpush3.bf16.msra.mxu1 %v18934_v20 }
 0x598   :  { %16792 = vmatprep.subr.bf16.mxu1 %v18935_v61 }
 0x59b   :  { %16793 = vmatpush3.bf16.msra.mxu1 %v18936_v8 }
 0x59c   :  { %16794 = vmatprep.subr.bf16.mxu1 %v18937_v60 }
 0x59e   :  { %17972 = vmatmul.mubr.bf16.gmra.mrb[76].mxu1 %v16098_v4  ;;  %v12690_v4 = vunpack.c.0.s8 %v12689_v38 }
 0x59f   :  { %16795 = vmatpush3.bf16.msra.mxu1 %v18938_v32 }
 0x5a0   :  { %16796 = vmatprep.subr.bf16.mxu1 %v18939_v46  ;;  %v24830_v60 = vsub.s32 %v12690_v4, %v12664_v59 }
 0x5a3   :  { %16797 = vmatpush3.bf16.msra.mxu1 %v18940_v58 }
 0x5a4   :  { %16804 = vmatprep.subr.bf16.mxu1 %v18941_v40 }
 0x659   :  { %v17961_v19 = vpop.f32.mrb[64].mxu1 }
 0x65a   :  { %v12589_v48 = vadd.f32 %v17961_v19, %v24814_v55  ;;  %v12502_v5 = vpop.f32.mrb[65].mxu1 }
 0x65b   :  { %v12587_v12 = vadd.f32 %v24814_v55, %v12502_v5  ;;  %v17962_v62 = vpop.f32.mrb[66].mxu1 }
 0x65c   :  { %v12605_v34 = vmax.f32 %v12589_v48, 0.0  ;;  %v12590_v26 = vadd.f32 %v17962_v62, %v24814_v55  ;;  %v12505_v47 = vpop.f32.mrb[67].mxu1 }
 0x65d   :  { %v12603_v11 = vmax.f32 %v12587_v12, 0.0  ;;  %v12588_v7 = vadd.f32 %v24814_v55, %v12505_v47 }
 0x65e   :  { %12621 = vst [vmem:[#allocation4 + $0x10] sm:$0xff] %v12605_v34  ;;  %v12606_v6 = vmax.f32 %v12590_v26, 0.0 }
 0x65f   :  { %12619 = vst [vmem:[#allocation4] sm:$0xff] %v12603_v11  ;;  %v12604_v30 = vmax.f32 %v12588_v7, 0.0 }
 0x660   :  { %12622 = vst [vmem:[#allocation4 + $0x18] sm:$0xff] %v12606_v6 }
 0x661   :  { %12620 = vst [vmem:[#allocation4 + $0x8] sm:$0xff] %v12604_v30  ;;  %v17965_v28 = vpop.f32.mrb[68].mxu1 }
 0x662   :  { %v12593_v39 = vadd.f32 %v17965_v28, %v24814_v55  ;;  %v12518_v23 = vpop.f32.mrb[69].mxu1 }
 0x663   :  { %v17966_v10 = vpop.f32.mrb[70].mxu1  ;;  %v12591_v52 = vadd.f32 %v24814_v55, %v12518_v23 }
 0x664   :  { %v12609_v33 = vmax.f32 %v12593_v39, 0.0  ;;  %v12521_v53 = vpop.f32.mrb[71].mxu1  ;;  %v12594_v51 = vadd.f32 %v17966_v10, %v24814_v55 }
 0x665   :  { %v12842_v25 = vld [vmem:[#allocation4 + $0x10] ss:$2 sm:$0xf]  ;;  %v12846_v42 = vld [vmem:[#allocation4 + $0x11] ss:$2 sm:$0xf]  ;;  %v12592_v36 = vadd.f32 %v24814_v55, %v12521_v53 }
 0x666   :  { %v12635_v22 = vld [vmem:[#allocation4] ss:$2 sm:$0xf]  ;;  %v12639_v24 = vld [vmem:[#allocation4 + $0x1] ss:$2 sm:$0xf]  ;;  %v12857_v37 = vmax.f32 %v12842_v25, %v12846_v42 }
 0x667   :  { %12625 = vst [vmem:[#allocation4 + $0x30] sm:$0xff] %v12609_v33  ;;  %v12850_v54 = vld [vmem:[#allocation4 + $0x18] ss:$2 sm:$0xf]  ;;  %v12650_v14 = vmax.f32 %v12635_v22, %v12639_v24  ;;  %v12607_v35 = vmax.f32 %v12591_v52, 0.0  ;;  %v12610_v18 = vmax.f32 %v12594_v51, 0.0 }
 0x668   :  { %v12854_v50 = vld [vmem:[#allocation4 + $0x19] ss:$2 sm:$0xf]  ;;  %v12643_v3 = vld [vmem:[#allocation4 + $0x8] ss:$2 sm:$0xf] }
 0x669   :  { %v12859_v44 = vmax.f32 %v12850_v54, %v12854_v50  ;;  %v12647_v41 = vld [vmem:[#allocation4 + $0x9] ss:$2 sm:$0xf]  ;;  %v12608_v17 = vmax.f32 %v12592_v36, 0.0  ;;  %v17969_v31 = vpop.f32.mrb[72].mxu1  ;;  %12623 = vst [vmem:[#allocation4 + $0x20] sm:$0xff] %v12607_v35 }
 0x66a   :  { %v12652_v15 = vmax.f32 %v12643_v3, %v12647_v41  ;;  %v12597_v0 = vadd.f32 %v17969_v31, %v24814_v55  ;;  %v12534_v13 = vpop.f32.mrb[73].mxu1  ;;  %12626 = vst [vmem:[#allocation4 + $0x38] sm:$0xff] %v12610_v18 }
 0x66b   :  { %v12861_v29 = vmax.f32 %v12857_v37, %v12859_v44  ;;  %12624 = vst [vmem:[#allocation4 + $0x28] sm:$0xff] %v12608_v17  ;;  %v12595_v63 = vadd.f32 %v24814_v55, %v12534_v13  ;;  %v17970_v27 = vpop.f32.mrb[74].mxu1 }
 0x66c   :  { %v12654_v56 = vmax.f32 %v12650_v14, %v12652_v15  ;;  %v12613_v2 = vmax.f32 %v12597_v0, 0.0  ;;  %v12598_v16 = vadd.f32 %v17970_v27, %v24814_v55  ;;  %v12537_v20 = vpop.f32.mrb[75].mxu1 }
 0x66d   :  { %v12863_v57 = vpack.c.bf16 %v12861_v29, %v12861_v29  ;;  %v12596_v8 = vadd.f32 %v24814_v55, %v12537_v20  ;;  %v12611_v46 = vmax.f32 %v12595_v63, 0.0 }
 0x66e   :  { %v12656_v61 = vpack.c.bf16 %v12654_v56, %v12654_v56  ;;  %12629 = vst [vmem:[#allocation4 + $0x50] sm:$0xff] %v12613_v2  ;;  %v12614_v58 = vmax.f32 %v12598_v16, 0.0  ;;  %v13254_v12 = vld [vmem:[#allocation4 + $0x30] ss:$2 sm:$0xf] }
 0x66f   :  { %v12873_v32 = vrot.slane %v12863_v57, %v24824_v49  ;;  %v12612_v19 = vmax.f32 %v12596_v8, 0.0  ;;  %v13258_v62 = vld [vmem:[#allocation4 + $0x31] ss:$2 sm:$0xf]  ;;  %12627 = vst [vmem:[#allocation4 + $0x40] sm:$0xff] %v12611_v46 }
 0x670   :  { %v12666_v40 = vrot.slane %v12656_v61, %v24824_v49  ;;  %12630 = vst [vmem:[#allocation4 + $0x58] sm:$0xff] %v12614_v58  ;;  %v13048_v6 = vld [vmem:[#allocation4 + $0x20] ss:$2 sm:$0xf]  ;;  %v13269_v28 = vmax.f32 %v13254_v12, %v13258_v62 }
 0x671   :  { %v12880_v48 = vrot.slane %v12873_v32, %v24824_v49  ;;  %v12963_v5 = vcombine.high %v12873_v32, %v12873_v32  ;;  %12628 = vst [vmem:[#allocation4 + $0x48] sm:$0xff] %v12612_v19  ;;  %v17973_v47 = vpop.f32.mrb[76].mxu1  ;;  %v13052_v30 = vld [vmem:[#allocation4 + $0x21] ss:$2 sm:$0xf] }
 0x672   :  { %v12673_v34 = vrot.slane %v12666_v40, %v24824_v49  ;;  %v12757_v26 = vcombine.high %v12666_v40, %v12666_v40  ;;  %v13262_v45 = vld [vmem:[#allocation4 + $0x38] ss:$2 sm:$0xf]  ;;  %v13266_v9 = vld [vmem:[#allocation4 + $0x39] ss:$2 sm:$0xf]  ;;  %v13063_v42 = vmax.f32 %v13048_v6, %v13052_v30  ;;  %v12601_v36 = vadd.f32 %v17973_v47, %v24814_v55 }
 0x673   :  { %v12901_v11 = vrot.slane %v12880_v48, %v24830_v60  ;;  %v12970_v7 = vrot.slane %v12963_v5, %v24824_v49  ;;  %v13271_v59 = vmax.f32 %v13262_v45, %v13266_v9  ;;  %v13056_v33 = vld [vmem:[#allocation4 + $0x28] ss:$2 sm:$0xf]  ;;  %v13060_v53 = vld [vmem:[#allocation4 + $0x29] ss:$2 sm:$0xf] }
 0x674   :  { %v12764_v43 = vrot.slane %v12757_v26, %v24824_v49  ;;  %v12694_v10 = vrot.slane %v12673_v34, %v24830_v60  ;;  %v13065_v52 = vmax.f32 %v13056_v33, %v13060_v53  ;;  %v12550_v21 = vpop.f32.mrb[77].mxu1  ;;  %v12617_v4 = vmax.f32 %v12601_v36, 0.0 }
 0x675   :  { %v12908_v39 = vrot.slane %v12901_v11, %v24830_v60  ;;  %v12985_v23 = vrot.slane %v12970_v7, %v24830_v60  ;;  %v12844_v51 = vld [vmem:[#allocation4 + $0x50] ss:$2 sm:$0xf]  ;;  %v13273_v22 = vmax.f32 %v13269_v28, %v13271_v59  ;;  %v12848_v24 = vld [vmem:[#allocation4 + $0x51] ss:$2 sm:$0xf]  ;;  %v12599_v50 = vadd.f32 %v24814_v55, %v12550_v21 }
 0x676   :  { %v12779_v25 = vrot.slane %v12764_v43, %v24830_v60  ;;  %v13067_v1 = vmax.f32 %v13063_v42, %v13065_v52  ;;  %v12637_v38 = vld [vmem:[#allocation4 + $0x40] ss:$2 sm:$0xf]  ;;  %v12641_v54 = vld [vmem:[#allocation4 + $0x41] ss:$2 sm:$0xf]  ;;  %v12701_v44 = vrot.slane %v12694_v10, %v24830_v60  ;;  %v12858_v17 = vmax.f32 %v12844_v51, %v12848_v24 }
 0x677   :  { %v24845_v37 = vunpack.c.l.b16 %v12908_v39  ;;  %v24848_v14 = vrot.slane %v12985_v23, %v24830_v60  ;;  %v13275_v3 = vpack.c.bf16 %v13273_v22, %v13273_v22  ;;  %v12852_v41 = vld [vmem:[#allocation4 + $0x58] ss:$2 sm:$0xf]  ;;  %v17974_v15 = vpop.f32.mrb[78].mxu1  ;;  %v12651_v16 = vmax.f32 %v12637_v38, %v12641_v54  ;;  %12633 = vst [vmem:[#allocation4 + $0x70] sm:$0xff] %v12617_v4 }
 0x678   :  { %v24852_v35 = vrot.slane %v12779_v25, %v24830_v60  ;;  %v13069_v18 = vpack.c.bf16 %v13067_v1, %v13067_v1  ;;  %v12856_v31 = vld [vmem:[#allocation4 + $0x59] ss:$2 sm:$0xf]  ;;  %v12553_v29 = vpop.f32.mrb[79].mxu1  ;;  %v12602_v27 = vadd.f32 %v17974_v15, %v24814_v55  ;;  %v12615_v61 = vmax.f32 %v12599_v50, 0.0 }
 0x679   :  { %v13285_v0 = vrot.slane %v13275_v3, %v24824_v49  ;;  %v12860_v13 = vmax.f32 %v12852_v41, %v12856_v31  ;;  %v12645_v56 = vld [vmem:[#allocation4 + $0x48] ss:$2 sm:$0xf]  ;;  %v12649_v63 = vld [vmem:[#allocation4 + $0x49] ss:$2 sm:$0xf]  ;;  %v12600_v57 = vadd.f32 %v24814_v55, %v12553_v29  ;;  %v24860_v12 = vunpack.c.l.b16 %v12701_v44 }
 0x67a   :  { %v13079_v2 = vrot.slane %v13069_v18, %v24824_v49  ;;  %v12653_v20 = vmax.f32 %v12645_v56, %v12649_v63  ;;  %v12618_v58 = vmax.f32 %v12602_v27, 0.0  ;;  %12631 = vst [vmem:[#allocation4 + $0x60] sm:$0xff] %v12615_v61  ;;  %v12801_v26 = vunpack.c.l.b16 %v24852_v35 }
 0x67b   :  { %v13292_v8 = vrot.slane %v13285_v0, %v24824_v49  ;;  %v13375_v32 = vcombine.high %v13285_v0, %v13285_v0  ;;  %v12862_v46 = vmax.f32 %v12858_v17, %v12860_v13  ;;  %v12616_v5 = vmax.f32 %v12600_v57, 0.0 }
 0x67c   :  { %v13086_v40 = vrot.slane %v13079_v2, %v24824_v49  ;;  %v13169_v19 = vcombine.high %v13079_v2, %v13079_v2  ;;  %v12655_v48 = vmax.f32 %v12651_v16, %v12653_v20  ;;  %12634 = vst [vmem:[#allocation4 + $0x78] sm:$0xff] %v12618_v58  ;;  %v13007_v6 = vunpack.c.l.b16 %v24848_v14 }
 0x67d   :  { %v13313_v55 = vrot.slane %v13292_v8, %v24830_v60  ;;  %v13382_v62 = vrot.slane %v13375_v32, %v24824_v49  ;;  %v12864_v34 = vpack.c.bf16 %v12862_v46, %v12862_v46  ;;  %12632 = vst [vmem:[#allocation4 + $0x68] sm:$0xff] %v12616_v5  ;;  %v12944_v45 = vrot.slane %v24845_v37, 1 }
 0x67e   :  { %v13107_v47 = vrot.slane %v13086_v40, %v24830_v60  ;;  %v13176_v11 = vrot.slane %v13169_v19, %v24824_v49  ;;  %v12657_v7 = vpack.c.bf16 %v12655_v48, %v12655_v48  ;;  %v12738_v25 = vrot.slane %v24860_v12, 1  ;;  %v13256_v51 = vld [vmem:[#allocation4 + $0x70] ss:$2 sm:$0xf] }
 0x67f   :  { %v13320_v30 = vrot.slane %v13313_v55, %v24830_v60  ;;  %v13397_v43 = vrot.slane %v13382_v62, %v24830_v60  ;;  %v12887_v28 = vrot.slane %v12864_v34, %v24824_v49  ;;  %v12822_v36 = vrot.slane %v12801_v26, 1  ;;  %v13260_v1 = vld [vmem:[#allocation4 + $0x71] ss:$2 sm:$0xf] }
 0x680   :  { %v13114_v9 = vrot.slane %v13107_v47, %v24830_v60  ;;  %v13191_v39 = vrot.slane %v13176_v11, %v24830_v60  ;;  %v12680_v23 = vrot.slane %v12657_v7, %v24824_v49  ;;  %v24890_v38 = vrot.slane %v13007_v6, 1 }
 0x681   :  { %v24875_v10 = vunpack.c.l.b16 %v13320_v30  ;;  %v24878_v59 = vrot.slane %v13397_v43, %v24830_v60  ;;  %v12894_v33 = vrot.slane %v12887_v28, %v24824_v49  ;;  %v12971_v53 = vcombine.high %v12887_v28, %v12887_v28  ;;  %v13050_v3 = vld [vmem:[#allocation4 + $0x60] ss:$2 sm:$0xf]  ;;  %v13054_v41 = vld [vmem:[#allocation4 + $0x61] ss:$2 sm:$0xf] }
 0x682   :  { %v12687_v42 = vrot.slane %v12680_v23, %v24824_v49  ;;  %v12765_v52 = vcombine.high %v12680_v23, %v12680_v23  ;;  %v24893_v54 = vrot.slane %v13191_v39, %v24830_v60  ;;  %v24898_v18 = vunpack.c.l.b16 %v13114_v9 }
 0x683   :  { %v13356_v22 = vrot.slane %v24875_v10, 1  ;;  %v12915_v24 = vrot.slane %v12894_v33, %v24830_v60  ;;  %v12978_v21 = vrot.slane %v12971_v53, %v24824_v49  ;;  %v13419_v15 = vunpack.c.l.b16 %v24878_v59  ;;  %v13264_v4 = vld [vmem:[#allocation4 + $0x78] ss:$2 sm:$0xf] }
 0x684   :  { %v12708_v50 = vrot.slane %v12687_v42, %v24830_v60  ;;  %v12772_v44 = vrot.slane %v12765_v52, %v24824_v49  ;;  %v13268_v29 = vld [vmem:[#allocation4 + $0x79] ss:$2 sm:$0xf]  ;;  %v13270_v56 = vmax.f32 %v13256_v51, %v13260_v1  ;;  %v13058_v27 = vld [vmem:[#allocation4 + $0x68] ss:$2 sm:$0xf]  ;;  %v13064_v20 = vmax.f32 %v13050_v3, %v13054_v41 }
 0x685   :  { %v12922_v17 = vrot.slane %v12915_v24, %v24830_v60  ;;  %v12999_v31 = vrot.slane %v12978_v21, %v24830_v60  ;;  %v13272_v63 = vmax.f32 %v13264_v4, %v13268_v29  ;;  %v13062_v57 = vld [vmem:[#allocation4 + $0x69] ss:$2 sm:$0xf]  ;;  %v13213_v8 = vunpack.c.l.b16 %v24893_v54 }
 0x686   :  { %v12715_v0 = vrot.slane %v12708_v50, %v24830_v60  ;;  %v12793_v13 = vrot.slane %v12772_v44, %v24830_v60  ;;  %v13066_v61 = vmax.f32 %v13058_v27, %v13062_v57  ;;  %v13440_v14 = vrot.slane %v13419_v15, 1 }
 0x687   :  { %v12924_v2 = vunpack.c.l.b16 %v12922_v17  ;;  %v13006_v16 = vrot.slane %v12999_v31, %v24830_v60  ;;  %v13274_v58 = vmax.f32 %v13270_v56, %v13272_v63 }
 0x688   :  { %v12717_v32 = vunpack.c.l.b16 %v12715_v0  ;;  %v12800_v46 = vrot.slane %v12793_v13, %v24830_v60  ;;  %v13068_v48 = vmax.f32 %v13064_v20, %v13066_v61  ;;  %v13150_v13 = vrot.slane %v24898_v18, 1 }
 0x689   :  { %v12925_v40 = vrot.slane %v12924_v2, 7  ;;  %v13008_v19 = vunpack.c.l.b16 %v13006_v16  ;;  %v12945_v5 = vsel %vm12719_vm12, %v12924_v2, %v12944_v45  ;;  %v13276_v34 = vpack.c.bf16 %v13274_v58, %v13274_v58 }
 0x68a   :  { %v12718_v55 = vrot.slane %v12717_v32, 7  ;;  %v12802_v62 = vunpack.c.l.b16 %v12800_v46  ;;  %v12739_v47 = vsel %vm12719_vm12, %v12717_v32, %v12738_v25  ;;  %v13070_v11 = vpack.c.bf16 %v13068_v48, %v13068_v48 }
 0x68b   :  { %v12740_v7 = vpack.c.b16 %v12739_v47, %v12739_v47  ;;  %v12926_v30 = vsel %vm12719_vm12, %v12925_v40, %v24845_v37  ;;  %v12946_v43 = vpack.c.b16 %v12945_v5, %v12945_v5  ;;  %v13299_v28 = vrot.slane %v13276_v34, %v24824_v49 }
 0x68c   :  { %v12720_v9 = vsel %vm12719_vm12, %v12718_v55, %v24860_v12  ;;  %v12803_v39 = vrot.slane %v12802_v62, 7  ;;  %v12823_v23 = vsel %vm12719_vm12, %v12802_v62, %v12822_v36  ;;  %v13093_v45 = vrot.slane %v13070_v11, %v24824_v49 }
 0x68d   :  { %v12721_v33 = vpack.c.b16 %v12720_v9, %v12720_v9  ;;  %v12747_v53 = vrot.slane %v12740_v7, %v24824_v49  ;;  %v12824_v25 = vpack.c.b16 %v12823_v23, %v12823_v23  ;;  %v13306_v42 = vrot.slane %v13299_v28, %v24824_v49 }
 0x68e   :  { %v13383_v52 = vcombine.high %v13299_v28, %v13299_v28  ;;  %v12804_v37 = vsel %vm12719_vm12, %v12803_v39, %v12801_v26  ;;  %v12927_v51 = vpack.c.b16 %v12926_v30, %v12926_v30  ;;  %v13100_v24 = vrot.slane %v13093_v45, %v24824_v49 }
 0x68f   :  { %v13177_v12 = vcombine.high %v13093_v45, %v13093_v45  ;;  %v12728_v21 = vrot.slane %v12721_v33, %v24824_v49  ;;  %16109 = vst.sshfl [vmem:[#allocation5 + $0x1] sm:$0x1 pattern:$0x73625140] %v12747_v53  ;;  %v12805_v36 = vpack.c.b16 %v12804_v37, %v12804_v37  ;;  %v13327_v1 = vrot.slane %v13306_v42, %v24830_v60 }
 0x690   :  { %v13390_v50 = vrot.slane %v13383_v52, %v24824_v49  ;;  %v12831_v44 = vrot.slane %v12824_v25, %v24824_v49  ;;  %v12934_v3 = vrot.slane %v12927_v51, %v24824_v49  ;;  %v13121_v35 = vrot.slane %v13100_v24, %v24830_v60 }
 0x691   :  { %v13184_v26 = vrot.slane %v13177_v12, %v24824_v49  ;;  %16108 = vst.sshfl [vmem:[#allocation5] sm:$0x1 pattern:$0x73625140] %v12728_v21  ;;  %v12812_v41 = vrot.slane %v12805_v36, %v24824_v49  ;;  %v12953_v17 = vrot.slane %v12946_v43, %v24824_v49  ;;  %v13334_v31 = vrot.slane %v13327_v1, %v24830_v60  ;;  %v18942_v12 = vld [vmem:[%s25370_s5 + $0x80] sm:$0xff]   ;;  %v18943_v36 = vld [vmem:[%s25370_s5 + $0xc8] sm:$0xff]  }
 0x692   :  { %v13411_v4 = vrot.slane %v13390_v50, %v24830_v60  ;;  %16111 = vst.sshfl [vmem:[#allocation5 + $0x3] sm:$0x1 pattern:$0x73625140] %v12831_v44  ;;  %v13009_v29 = vrot.slane %v13008_v19, 7  ;;  %v13029_v0 = vsel %vm12719_vm12, %v13008_v19, %v24890_v38  ;;  %v13128_v56 = vrot.slane %v13121_v35, %v24830_v60  ;;  %v18944_v50 = vld [vmem:[%s25370_s5 + $0x88] sm:$0xff]  }
 0x693   :  { %16112 = vst.sshfl [vmem:[#allocation5 + $0x4] sm:$0x1 pattern:$0x73625140] %v12934_v3  ;;  %v13205_v63 = vrot.slane %v13184_v26, %v24830_v60  ;;  %v13030_v27 = vpack.c.b16 %v13029_v0, %v13029_v0  ;;  %v13336_v57 = vunpack.c.l.b16 %v13334_v31  ;;  %v13234_v20 = vrot.slane %v13213_v8, 1  ;;  %v18945_v44 = vld [vmem:[%s25370_s5 + $0xd0] sm:$0xff]  }
 0x694   :  { %16110 = vst.sshfl [vmem:[#allocation5 + $0x2] sm:$0x1 pattern:$0x73625140] %v12812_v41  ;;  %v13418_v2 = vrot.slane %v13411_v4, %v24830_v60  ;;  %v13010_v16 = vsel %vm12719_vm12, %v13009_v29, %v13007_v6  ;;  %v13130_v38 = vunpack.c.l.b16 %v13128_v56  ;;  %v18946_v3 = vld [vmem:[%s25370_s5 + $0x90] sm:$0xff]   ;;  %v18947_v35 = vld [vmem:[%s25370_s5 + $0xd8] sm:$0xff]  }
 0x695   :  { %16113 = vst.sshfl [vmem:[#allocation5 + $0x5] sm:$0x1 pattern:$0x73625140] %v12953_v17  ;;  %v13212_v61 = vrot.slane %v13205_v63, %v24830_v60  ;;  %v13011_v32 = vpack.c.b16 %v13010_v16, %v13010_v16  ;;  %v13037_v46 = vrot.slane %v13030_v27, %v24824_v49  ;;  %v13337_v58 = vrot.slane %v13336_v57, 7  ;;  %v18948_v26 = vld [vmem:[%s25370_s5 + $0x98] sm:$0xff]  }
 0x696   :  { %v13420_v40 = vunpack.c.l.b16 %v13418_v2  ;;  %v13357_v19 = vsel %vm12719_vm12, %v13336_v57, %v13356_v22  ;;  %v13131_v48 = vrot.slane %v13130_v38, 7  ;;  %v13151_v55 = vsel %vm12719_vm12, %v13130_v38, %v13150_v13  ;;  %v18949_v41 = vld [vmem:[%s25370_s5 + $0xe0] sm:$0xff]   ;;  %v18951_v31 = vld [vmem:[%s25370_s5 + $0xe8] sm:$0xff]   ;;  %v18953_v29 = vld [vmem:[%s25370_s5 + $0xf0] sm:$0xff]  }
 0x697   :  { %v13214_v6 = vunpack.c.l.b16 %v13212_v61  ;;  %v13018_v5 = vrot.slane %v13011_v32, %v24824_v49  ;;  %16115 = vst.sshfl [vmem:[#allocation5 + $0x7] sm:$0x1 pattern:$0x73625140] %v13037_v46  ;;  %v13152_v60 = vpack.c.b16 %v13151_v55, %v13151_v55  ;;  %v13338_v62 = vsel %vm12719_vm12, %v13337_v58, %v24875_v10  ;;  %v18950_v17 = vld [vmem:[%s25370_s5 + $0xa0] sm:$0xff]   ;;  %v18952_v4 = vld [vmem:[%s25370_s5 + $0xa8] sm:$0xff]  }
 0x698   :  { %v13358_v34 = vpack.c.b16 %v13357_v19, %v13357_v19  ;;  %v13421_v47 = vrot.slane %v13420_v40, 7  ;;  %v13132_v22 = vsel %vm12719_vm12, %v13131_v48, %v24898_v18  ;;  %v13339_v30 = vpack.c.b16 %v13338_v62, %v13338_v62  ;;  %v18954_v13 = vld [vmem:[%s25370_s5 + $0xb0] sm:$0xff]   ;;  %v18955_v56 = vld [vmem:[%s25370_s5 + $0xf8] sm:$0xff]   ;;  %v18957_v57 = vld [vmem:[%s25370_s5 + $0x140] sm:$0xff]  }
 0x699   :  { %16114 = vst.sshfl [vmem:[#allocation5 + $0x6] sm:$0x1 pattern:$0x73625140] %v13018_v5  ;;  %v13215_v11 = vrot.slane %v13214_v6, 7  ;;  %v13235_v7 = vsel %vm12719_vm12, %v13214_v6, %v13234_v20  ;;  %v13133_v43 = vpack.c.b16 %v13132_v22, %v13132_v22  ;;  %v13159_v28 = vrot.slane %v13152_v60, %v24824_v49  ;;  %v18956_v27 = vld [vmem:[%s25370_s5 + $0xb8] sm:$0xff]  }
 0x69a   :  { %v13236_v9 = vpack.c.b16 %v13235_v7, %v13235_v7  ;;  %v13365_v39 = vrot.slane %v13358_v34, %v24824_v49  ;;  %v13346_v23 = vrot.slane %v13339_v30, %v24824_v49  ;;  %v13422_v18 = vsel %vm12719_vm12, %v13421_v47, %v13419_v15  ;;  %v18958_v16 = vld [vmem:[%s25370_s5 + $0x100] sm:$0xff]   ;;  %v18960_v38 = vld [vmem:[%s25370_s5 + $0x148] sm:$0xff]   ;;  %v18962_v46 = vld [vmem:[%s25370_s5 + $0x150] sm:$0xff]  }
 0x69b   :  { %v13216_v10 = vsel %vm12719_vm12, %v13215_v11, %v13213_v8  ;;  %v13441_v45 = vsel %vm12719_vm12, %v13420_v40, %v13440_v14  ;;  %v13140_v33 = vrot.slane %v13133_v43, %v24824_v49  ;;  %16117 = vst.sshfl [vmem:[#allocation5 + $0x9] sm:$0x1 pattern:$0x73625140] %v13159_v28  ;;  %v13423_v42 = vpack.c.b16 %v13422_v18, %v13422_v18  ;;  %v18961_v32 = vld [vmem:[%s25370_s5 + $0x108] sm:$0xff]   ;;  %v18963_v58 = vld [vmem:[%s25370_s5 + $0x110] sm:$0xff]  }
 0x69c   :  { %v13217_v53 = vpack.c.b16 %v13216_v10, %v13216_v10  ;;  %v13243_v25 = vrot.slane %v13236_v9, %v24824_v49  ;;  %16121 = vst.sshfl [vmem:[#allocation5 + $0xd] sm:$0x1 pattern:$0x73625140] %v13365_v39  ;;  %v13442_v54 = vpack.c.b16 %v13441_v45, %v13441_v45  ;;  %v18964_v40 = vld [vmem:[%s25370_s5 + $0x158] sm:$0xff]   ;;  %v18966_v14 = vld [vmem:[%s25370_s5 + $0x160] sm:$0xff]  }
 0x69d   :  { %16120 = vst.sshfl [vmem:[#allocation5 + $0xc] sm:$0x1 pattern:$0x73625140] %v13346_v23  ;;  %v13430_v59 = vrot.slane %v13423_v42, %v24824_v49  ;;  %v18965_v19 = vld [vmem:[%s25370_s5 + $0x118] sm:$0xff]   ;;  %v18967_v48 = vld [vmem:[%s25370_s5 + $0x120] sm:$0xff]  }
 0x69e   :  { %16116 = vst.sshfl [vmem:[#allocation5 + $0x8] sm:$0x1 pattern:$0x73625140] %v13140_v33  ;;  %v13224_v8 = vrot.slane %v13217_v53, %v24824_v49  ;;  %v13449_v15 = vrot.slane %v13442_v54, %v24824_v49  ;;  %v18968_v6 = vld [vmem:[%s25370_s5 + $0x168] sm:$0xff]   ;;  %v18970_v55 = vld [vmem:[%s25370_s5 + $0x170] sm:$0xff]  }
 0x69f   :  { %16119 = vst.sshfl [vmem:[#allocation5 + $0xb] sm:$0x1 pattern:$0x73625140] %v13243_v25  ;;  %v18969_v5 = vld [vmem:[%s25370_s5 + $0x128] sm:$0xff]   ;;  %v18971_v60 = vld [vmem:[%s25370_s5 + $0x130] sm:$0xff]  }
 0x6a0   :  { %v13459_v52 = vld [vmem:[#allocation5] sm:$0xff]  ;;  %16118 = vst.sshfl [vmem:[#allocation5 + $0xa] sm:$0x1 pattern:$0x73625140] %v13224_v8  ;;  %v18972_v62 = vld [vmem:[%s25370_s5 + $0x178] sm:$0xff]  }
 0x6a1   :  { %16122 = vst.sshfl [vmem:[#allocation5 + $0xe] sm:$0x1 pattern:$0x73625140] %v13430_v59  ;;  %v13733_v37 = vrot.slane %v13459_v52, %v24824_v49  ;;  %v13726_v0 = vcombine.high %v13459_v52, %v13459_v52  ;;  %v18973_v34 = vld [vmem:[%s25370_s5 + $0x138] sm:$0xff]   ;;  %v18974_v47 = vld [vmem:[%s25370_s5 + $0x1c0] sm:$0xff]  }
 0x6a2   :  { %16123 = vst.sshfl [vmem:[#allocation5 + $0xf] sm:$0x1 pattern:$0x73625140] %v13449_v15  ;;  %v18975_v22 = vld [vmem:[%s25370_s5 + $0x180] sm:$0xff]   ;;  %v18976_v7 = vld [vmem:[%s25370_s5 + $0x1c8] sm:$0xff]  }
 0x6a3   :  { %v13741_v51 = vcombine.high %v13733_v37, %v13733_v37  ;;  %v13749_v21 = vrot.slane %v13733_v37, %v24824_v49  ;;  %v13740_v63 = vrot.slane %v13726_v0, %v24824_v49  ;;  %v18977_v43 = vld [vmem:[%s25370_s5 + $0x188] sm:$0xff]   ;;  %v18978_v28 = vld [vmem:[%s25370_s5 + $0x1d0] sm:$0xff]   ;;  %v18980_v39 = vld [vmem:[%s25370_s5 + $0x1d8] sm:$0xff]  }
 0x6a4   :  { %v18979_v9 = vld [vmem:[%s25370_s5 + $0x190] sm:$0xff]   ;;  %v18981_v10 = vld [vmem:[%s25370_s5 + $0x198] sm:$0xff]   ;;  %v18982_v23 = vld [vmem:[%s25370_s5 + $0x1e0] sm:$0xff]  }
 0x6a5   :  { %v13763_v24 = vrot.slane %v13741_v51, %v24824_v49  ;;  %v13742_v2 = vcombine.high %v13740_v63, %v13740_v63  ;;  %v13771_v20 = vcombine.high %v13749_v21, %v13749_v21  ;;  %v13756_v11 = vrot.slane %v13740_v63, %v24824_v49  ;;  %v18983_v18 = vld [vmem:[%s25370_s5 + $0x1a0] sm:$0xff]   ;;  %v18984_v45 = vld [vmem:[%s25370_s5 + $0x1e8] sm:$0xff]   ;;  %v18986_v53 = vld [vmem:[%s25370_s5 + $0x1f0] sm:$0xff]  }
 0x6a6   :  { %v18985_v33 = vld [vmem:[%s25370_s5 + $0x1a8] sm:$0xff]   ;;  %v18987_v42 = vld [vmem:[%s25370_s5 + $0x1b0] sm:$0xff]   ;;  %v18988_v54 = vld [vmem:[%s25370_s5 + $0x1f8] sm:$0xff]  }
 0x6a7   :  { %14640 = vmatprep.mubr.bf16.mxu1 %v13763_v24  ;;  %v13773_v1 = vcombine.high %v13763_v24, %v13763_v24  ;;  %v13770_v61 = vrot.slane %v13742_v2, %v24824_v49  ;;  %v18989_v59 = vld [vmem:[%s25370_s5 + $0x1b8] sm:$0xff]   ;;  %v18990_v15 = vld [vmem:[%s25370_s5 + $0x240] sm:$0xff]   ;;  %v13772_v51 = vcombine.high %v13756_v11, %v13756_v11  ;;  %v18992_v24 = vld [vmem:[%s25370_s5 + $0x248] sm:$0xff]  }
 0x6a8   :  { %14641 = vmatmul.mubr.bf16.vlgmr.msra.gmra.mrb[80].mxu1 %v13749_v21  ;;  %v18991_v37 = vld [vmem:[%s25370_s5 + $0x200] sm:$0xff]   ;;  %v18993_v21 = vld [vmem:[%s25370_s5 + $0x208] sm:$0xff]   ;;  %v19010_v2 = vld [vmem:[%s25370_s5 + $0x2d0] sm:$0xff]  }
 0x6a9   :  { %16805 = vmatpush3.bf16.msra.mxu1 %v18942_v12  ;;  %14680 = vmatprep.mubr.bf16.mxu1 %v13773_v1  ;;  %v13774_v30 = vcombine.high %v13770_v61, %v13770_v61  ;;  %v25111_v25 = vld [vmem:[#allocation5 + $0x8] sm:$0xff]  ;;  %v18995_v1 = vld [vmem:[%s25370_s5 + $0x210] sm:$0xff]   ;;  %v19006_v0 = vld [vmem:[%s25370_s5 + $0x2c0] sm:$0xff]  }
 0x6aa   :  { %16806 = vmatprep.subr.bf16.mxu1 %v18943_v36  ;;  %v13782_v8 = vrot.slane %v25111_v25, %v24824_v49  ;;  %v18994_v36 = vld [vmem:[%s25370_s5 + $0x250] sm:$0xff]   ;;  %v19008_v63 = vld [vmem:[%s25370_s5 + $0x2c8] sm:$0xff]  }
 0x6ac   :  { %v13790_v52 = vcombine.high %v13782_v8, %v13782_v8 }
 0x6ad   :  { %16807 = vmatpush3.bf16.msra.mxu1 %v18944_v50  ;;  %v18996_v50 = vld [vmem:[%s25370_s5 + $0x258] sm:$0xff]  }
 0x6ae   :  { %16808 = vmatprep.subr.bf16.mxu1 %v18945_v44  ;;  %v13812_v12 = vrot.slane %v13790_v52, %v24824_v49  ;;  %v18997_v44 = vld [vmem:[%s25370_s5 + $0x218] sm:$0xff]   ;;  %v19043_v52 = vld [vmem:[%s25370_s5 + $0x3d0] sm:$0xff]  }
 0x6b1   :  { %16809 = vmatpush3.bf16.msra.mxu1 %v18946_v3  ;;  %v18998_v3 = vld [vmem:[%s25370_s5 + $0x260] sm:$0xff]  }
 0x6b2   :  { %16810 = vmatprep.subr.bf16.mxu1 %v18947_v35  ;;  %v18999_v35 = vld [vmem:[%s25370_s5 + $0x220] sm:$0xff]  }
 0x6b5   :  { %16811 = vmatpush3.bf16.msra.mxu1 %v18948_v26  ;;  %v19000_v26 = vld [vmem:[%s25370_s5 + $0x268] sm:$0xff]  }
 0x6b6   :  { %16812 = vmatprep.subr.bf16.mxu1 %v18949_v41  ;;  %v19001_v41 = vld [vmem:[%s25370_s5 + $0x228] sm:$0xff]  }
 0x6b9   :  { %16813 = vmatpush3.bf16.msra.mxu1 %v18950_v17  ;;  %v19002_v17 = vld [vmem:[%s25370_s5 + $0x270] sm:$0xff]  }
 0x6ba   :  { %16814 = vmatprep.subr.bf16.mxu1 %v18951_v31  ;;  %v19003_v31 = vld [vmem:[%s25370_s5 + $0x230] sm:$0xff]  }
 0x6bd   :  { %16815 = vmatpush3.bf16.msra.mxu1 %v18952_v4  ;;  %v19004_v4 = vld [vmem:[%s25370_s5 + $0x278] sm:$0xff]  }
 0x6be   :  { %16816 = vmatprep.subr.bf16.mxu1 %v18953_v29  ;;  %v19005_v29 = vld [vmem:[%s25370_s5 + $0x238] sm:$0xff]  }
 0x6c1   :  { %16817 = vmatpush3.bf16.msra.mxu1 %v18954_v13  ;;  %v19007_v13 = vld [vmem:[%s25370_s5 + $0x280] sm:$0xff]  }
 0x6c2   :  { %16818 = vmatprep.subr.bf16.mxu1 %v18955_v56  ;;  %v13798_v56 = vrot.slane %v13782_v8, %v24824_v49  ;;  %v19041_v8 = vld [vmem:[%s25370_s5 + $0x3c8] sm:$0xff]  }
 0x6c5   :  { %16819 = vmatpush3.bf16.msra.mxu1 %v18956_v27  ;;  %v13822_v27 = vcombine.high %v13812_v12, %v13812_v12 }
 0x6c6   :  { %16826 = vmatprep.subr.bf16.mxu1 %v18957_v57  ;;  %v19009_v57 = vld [vmem:[%s25370_s5 + $0x288] sm:$0xff]  }
 0x6c8   :  { %14681 = vmatmul.mubr.bf16.vlgmr.msra.gmra.mrb[84].mxu1 %v13771_v20  ;;  %v19012_v20 = vld [vmem:[%s25370_s5 + $0x2d8] sm:$0xff]  }
 0x6c9   :  { %16827 = vmatpush3.bf16.msra.mxu1 %v18958_v16  ;;  %14720 = vmatprep.mubr.bf16.mxu1 %v13770_v61  ;;  %v19011_v16 = vld [vmem:[%s25370_s5 + $0x290] sm:$0xff]   ;;  %v19014_v61 = vld [vmem:[%s25370_s5 + $0x2e0] sm:$0xff]  }
 0x6ca   :  { %16828 = vmatprep.subr.bf16.mxu1 %v18960_v38  ;;  %v19013_v38 = vld [vmem:[%s25370_s5 + $0x298] sm:$0xff]  }
 0x6cd   :  { %16829 = vmatpush3.bf16.msra.mxu1 %v18961_v32  ;;  %v19015_v32 = vld [vmem:[%s25370_s5 + $0x2a0] sm:$0xff]  }
 0x6ce   :  { %16830 = vmatprep.subr.bf16.mxu1 %v18962_v46  ;;  %v19016_v46 = vld [vmem:[%s25370_s5 + $0x2e8] sm:$0xff]  }
 0x6d1   :  { %16831 = vmatpush3.bf16.msra.mxu1 %v18963_v58  ;;  %v19017_v58 = vld [vmem:[%s25370_s5 + $0x2a8] sm:$0xff]  }
 0x6d2   :  { %16832 = vmatprep.subr.bf16.mxu1 %v18964_v40  ;;  %v19018_v40 = vld [vmem:[%s25370_s5 + $0x2f0] sm:$0xff]  }
 0x6d5   :  { %16833 = vmatpush3.bf16.msra.mxu1 %v18965_v19  ;;  %v13775_v19 = vcombine.high %v25111_v25, %v25111_v25  ;;  %v19039_v25 = vld [vmem:[%s25370_s5 + $0x3c0] sm:$0xff]  }
 0x6d6   :  { %16834 = vmatprep.subr.bf16.mxu1 %v18966_v14  ;;  %v19019_v14 = vld [vmem:[%s25370_s5 + $0x2b0] sm:$0xff]  }
 0x6d9   :  { %16835 = vmatpush3.bf16.msra.mxu1 %v18967_v48  ;;  %v19020_v48 = vld [vmem:[%s25370_s5 + $0x2f8] sm:$0xff]  }
 0x6da   :  { %16836 = vmatprep.subr.bf16.mxu1 %v18968_v6  ;;  %v13789_v6 = vrot.slane %v13775_v19, %v24824_v49  ;;  %v19056_v19 = vld [vmem:[%s25372_s7 + $0x8] sm:$0xff]  }
 0x6dd   :  { %16837 = vmatpush3.bf16.msra.mxu1 %v18969_v5  ;;  %v19021_v5 = vld [vmem:[%s25370_s5 + $0x2b8] sm:$0xff]  }
 0x6de   :  { %16838 = vmatprep.subr.bf16.mxu1 %v18970_v55  ;;  %v19022_v55 = vld [vmem:[%s25370_s5 + $0x340] sm:$0xff]  }
 0x6e1   :  { %16839 = vmatpush3.bf16.msra.mxu1 %v18971_v60  ;;  %v13791_v60 = vcombine.high %v13789_v6, %v13789_v6 }
 0x6e2   :  { %16840 = vmatprep.subr.bf16.mxu1 %v18972_v62  ;;  %v19023_v62 = vld [vmem:[%s25370_s5 + $0x300] sm:$0xff]  }
 0x6e5   :  { %16841 = vmatpush3.bf16.msra.mxu1 %v18973_v34  ;;  %v13820_v34 = vcombine.high %v13798_v56, %v13798_v56 }
 0x6e6   :  { %16848 = vmatprep.subr.bf16.mxu1 %v18974_v47  ;;  %v19025_v47 = vld [vmem:[%s25370_s5 + $0x348] sm:$0xff]  }
 0x6e8   :  { %14721 = vmatmul.mubr.bf16.vlgmr.msra.gmra.mrb[88].mxu1 %v13756_v11  ;;  %v19026_v11 = vld [vmem:[%s25370_s5 + $0x308] sm:$0xff]  }
 0x6e9   :  { %16849 = vmatpush3.bf16.msra.mxu1 %v18975_v22  ;;  %14760 = vmatprep.mubr.bf16.mxu1 %v13774_v30  ;;  %v13819_v22 = vrot.slane %v13791_v60, %v24824_v49  ;;  %v19028_v30 = vld [vmem:[%s25370_s5 + $0x310] sm:$0xff]  }
 0x6ea   :  { %16850 = vmatprep.subr.bf16.mxu1 %v18976_v7  ;;  %v19027_v7 = vld [vmem:[%s25370_s5 + $0x350] sm:$0xff]  }
 0x6ed   :  { %16851 = vmatpush3.bf16.msra.mxu1 %v18977_v43  ;;  %v19029_v43 = vld [vmem:[%s25370_s5 + $0x358] sm:$0xff]  }
 0x6ee   :  { %16852 = vmatprep.subr.bf16.mxu1 %v18978_v28  ;;  %v19030_v28 = vld [vmem:[%s25370_s5 + $0x318] sm:$0xff]  }
 0x6f1   :  { %16853 = vmatpush3.bf16.msra.mxu1 %v18979_v9  ;;  %v19031_v9 = vld [vmem:[%s25370_s5 + $0x360] sm:$0xff]  }
 0x6f2   :  { %16854 = vmatprep.subr.bf16.mxu1 %v18980_v39  ;;  %v19032_v39 = vld [vmem:[%s25370_s5 + $0x320] sm:$0xff]  }
 0x6f5   :  { %16855 = vmatpush3.bf16.msra.mxu1 %v18981_v10  ;;  %v19033_v10 = vld [vmem:[%s25370_s5 + $0x368] sm:$0xff]  }
 0x6f6   :  { %16856 = vmatprep.subr.bf16.mxu1 %v18982_v23  ;;  %v19034_v23 = vld [vmem:[%s25370_s5 + $0x328] sm:$0xff]  }
 0x6f9   :  { %16857 = vmatpush3.bf16.msra.mxu1 %v18983_v18  ;;  %v19035_v18 = vld [vmem:[%s25370_s5 + $0x370] sm:$0xff]  }
 0x6fa   :  { %16858 = vmatprep.subr.bf16.mxu1 %v18984_v45  ;;  %v19036_v45 = vld [vmem:[%s25370_s5 + $0x330] sm:$0xff]  }
 0x6fd   :  { %16859 = vmatpush3.bf16.msra.mxu1 %v18985_v33  ;;  %v19037_v33 = vld [vmem:[%s25370_s5 + $0x378] sm:$0xff]  }
 0x6fe   :  { %16860 = vmatprep.subr.bf16.mxu1 %v18986_v53  ;;  %v19038_v53 = vld [vmem:[%s25370_s5 + $0x338] sm:$0xff]  }
 0x701   :  { %16861 = vmatpush3.bf16.msra.mxu1 %v18987_v42  ;;  %v19040_v42 = vld [vmem:[%s25370_s5 + $0x380] sm:$0xff]  }
 0x702   :  { %16862 = vmatprep.subr.bf16.mxu1 %v18988_v54  ;;  %v13805_v54 = vrot.slane %v13789_v6, %v24824_v49  ;;  %v19044_v49 = vld [vmem:[%s25370_s5 + $0x390] sm:$0xff]   ;;  %v19059_v6 = vld [vmem:[%s25372_s7 + $0x20] sm:$0xff]  }
 0x705   :  { %16863 = vmatpush3.bf16.msra.mxu1 %v18989_v59  ;;  %v13823_v59 = vcombine.high %v13819_v22, %v13819_v22 }
 0x706   :  { %16870 = vmatprep.subr.bf16.mxu1 %v18990_v15  ;;  %v19042_v15 = vld [vmem:[%s25370_s5 + $0x388] sm:$0xff]  }
 0x708   :  { %14761 = vmatmul.mubr.bf16.vlgmr.msra.gmra.mrb[92].mxu1 %v13772_v51  ;;  %v19046_v51 = vld [vmem:[%s25370_s5 + $0x398] sm:$0xff]  }
 0x709   :  { %16871 = vmatpush3.bf16.msra.mxu1 %v18991_v37  ;;  %14800 = vmatprep.mubr.bf16.mxu1 %v13812_v12  ;;  %v19045_v37 = vld [vmem:[%s25370_s5 + $0x3d8] sm:$0xff]   ;;  %v19048_v12 = vld [vmem:[%s25370_s5 + $0x3a0] sm:$0xff]  }
 0x70a   :  { %16872 = vmatprep.subr.bf16.mxu1 %v18992_v24  ;;  %v19047_v24 = vld [vmem:[%s25370_s5 + $0x3e0] sm:$0xff]  }
 0x70d   :  { %16873 = vmatpush3.bf16.msra.mxu1 %v18993_v21  ;;  %v19049_v21 = vld [vmem:[%s25370_s5 + $0x3e8] sm:$0xff]  }
 0x70e   :  { %16874 = vmatprep.subr.bf16.mxu1 %v18994_v36  ;;  %v19050_v36 = vld [vmem:[%s25370_s5 + $0x3a8] sm:$0xff]  }
 0x711   :  { %16875 = vmatpush3.bf16.msra.mxu1 %v18995_v1  ;;  %v19051_v1 = vld [vmem:[%s25370_s5 + $0x3f0] sm:$0xff]  }
 0x712   :  { %16876 = vmatprep.subr.bf16.mxu1 %v18996_v50 }
 0x715   :  { %16877 = vmatpush3.bf16.msra.mxu1 %v18997_v44 }
 0x716   :  { %16878 = vmatprep.subr.bf16.mxu1 %v18998_v3 }
 0x719   :  { %16879 = vmatpush3.bf16.msra.mxu1 %v18999_v35 }
 0x71a   :  { %16880 = vmatprep.subr.bf16.mxu1 %v19000_v26  ;;  %v19052_v26 = vld [vmem:[%s25370_s5 + $0x3b0] sm:$0xff]  }
 0x71d   :  { %16881 = vmatpush3.bf16.msra.mxu1 %v19001_v41 }
 0x71e   :  { %16882 = vmatprep.subr.bf16.mxu1 %v19002_v17  ;;  %v19053_v17 = vld [vmem:[%s25370_s5 + $0x3f8] sm:$0xff]  }
 0x721   :  { %16883 = vmatpush3.bf16.msra.mxu1 %v19003_v31  ;;  %v19054_v31 = vld [vmem:[%s25370_s5 + $0x3b8] sm:$0xff]  }
 0x722   :  { %16884 = vmatprep.subr.bf16.mxu1 %v19004_v4  ;;  %v13821_v4 = vcombine.high %v13805_v54, %v13805_v54 }
 0x725   :  { %16885 = vmatpush3.bf16.msra.mxu1 %v19005_v29  ;;  %v16124_v29 = vld [vmem:[%s25371_s6] ss:$0 sm:$0xff] }
 0x726   :  { %16892 = vmatprep.subr.bf16.mxu1 %v19006_v0 }
 0x728   :  { %14801 = vmatmul.mubr.bf16.vlgmr.msra.gmra.mrb[96].mxu1 %v13798_v56 }
 0x729   :  { %16893 = vmatpush3.bf16.msra.mxu1 %v19007_v13  ;;  %14840 = vmatprep.mubr.bf16.mxu1 %v13822_v27 }
 0x72a   :  { %16894 = vmatprep.subr.bf16.mxu1 %v19008_v63 }
 0x72d   :  { %16895 = vmatpush3.bf16.msra.mxu1 %v19009_v57 }
 0x72e   :  { %16896 = vmatprep.subr.bf16.mxu1 %v19010_v2 }
 0x731   :  { %16897 = vmatpush3.bf16.msra.mxu1 %v19011_v16 }
 0x732   :  { %16898 = vmatprep.subr.bf16.mxu1 %v19012_v20 }
 0x735   :  { %16899 = vmatpush3.bf16.msra.mxu1 %v19013_v38 }
 0x736   :  { %16900 = vmatprep.subr.bf16.mxu1 %v19014_v61 }
 0x739   :  { %16901 = vmatpush3.bf16.msra.mxu1 %v19015_v32 }
 0x73a   :  { %16902 = vmatprep.subr.bf16.mxu1 %v19016_v46 }
 0x73d   :  { %16903 = vmatpush3.bf16.msra.mxu1 %v19017_v58  ;;  %v19055_v58 = vld [vmem:[%s25372_s7] sm:$0xff]  }
 0x73e   :  { %16904 = vmatprep.subr.bf16.mxu1 %v19018_v40  ;;  %v19381_v40 = vmov 0.0  }
 0x741   :  { %16905 = vmatpush3.bf16.msra.mxu1 %v19019_v14  ;;  %v19057_v14 = vld [vmem:[%s25372_s7 + $0x10] sm:$0xff]  }
 0x742   :  { %16906 = vmatprep.subr.bf16.mxu1 %v19020_v48  ;;  %v19058_v48 = vld [vmem:[%s25372_s7 + $0x18] sm:$0xff]  }
 0x745   :  { %16907 = vmatpush3.bf16.msra.mxu1 %v19021_v5  ;;  %v19060_v5 = vld [vmem:[%s25372_s7 + $0x28] sm:$0xff]  }
 0x746   :  { %16914 = vmatprep.subr.bf16.mxu1 %v19022_v55 }
 0x748   :  { %14841 = vmatmul.mubr.bf16.vlgmr.msra.gmra.mrb[100].mxu1 %v13820_v34 }
 0x749   :  { %16915 = vmatpush3.bf16.msra.mxu1 %v19023_v62  ;;  %14880 = vmatprep.mubr.bf16.mxu1 %v13819_v22 }
 0x74a   :  { %16916 = vmatprep.subr.bf16.mxu1 %v19025_v47 }
 0x74d   :  { %16917 = vmatpush3.bf16.msra.mxu1 %v19026_v11  ;;  %v19061_v11 = vld [vmem:[%s25372_s7 + $0x30] sm:$0xff]  }
 0x74e   :  { %16918 = vmatprep.subr.bf16.mxu1 %v19027_v7  ;;  %v19062_v7 = vld [vmem:[%s25372_s7 + $0x38] sm:$0xff]  }
 0x751   :  { %16919 = vmatpush3.bf16.msra.mxu1 %v19028_v30 }
 0x752   :  { %16920 = vmatprep.subr.bf16.mxu1 %v19029_v43 }
 0x755   :  { %16921 = vmatpush3.bf16.msra.mxu1 %v19030_v28 }
 0x756   :  { %16922 = vmatprep.subr.bf16.mxu1 %v19031_v9 }
 0x759   :  { %16923 = vmatpush3.bf16.msra.mxu1 %v19032_v39 }
 0x75a   :  { %16924 = vmatprep.subr.bf16.mxu1 %v19033_v10 }
 0x75d   :  { %16925 = vmatpush3.bf16.msra.mxu1 %v19034_v23 }
 0x75e   :  { %16926 = vmatprep.subr.bf16.mxu1 %v19035_v18 }
 0x761   :  { %16927 = vmatpush3.bf16.msra.mxu1 %v19036_v45 }
 0x762   :  { %16928 = vmatprep.subr.bf16.mxu1 %v19037_v33 }
 0x765   :  { %16929 = vmatpush3.bf16.msra.mxu1 %v19038_v53 }
 0x766   :  { %16936 = vmatprep.subr.bf16.mxu1 %v19039_v25 }
 0x768   :  { %14881 = vmatmul.mubr.bf16.vlgmr.msra.gmra.mrb[104].mxu1 %v13805_v54 }
 0x769   :  { %16937 = vmatpush3.bf16.msra.mxu1 %v19040_v42  ;;  %14920 = vmatprep.mubr.bf16.mxu1 %v13823_v59 }
 0x76a   :  { %16938 = vmatprep.subr.bf16.mxu1 %v19041_v8 }
 0x76d   :  { %16939 = vmatpush3.bf16.msra.mxu1 %v19042_v15 }
 0x76e   :  { %16940 = vmatprep.subr.bf16.mxu1 %v19043_v52 }
 0x771   :  { %16941 = vmatpush3.bf16.msra.mxu1 %v19044_v49 }
 0x772   :  { %16942 = vmatprep.subr.bf16.mxu1 %v19045_v37 }
 0x775   :  { %16943 = vmatpush3.bf16.msra.mxu1 %v19046_v51 }
 0x776   :  { %16944 = vmatprep.subr.bf16.mxu1 %v19047_v24 }
 0x779   :  { %16945 = vmatpush3.bf16.msra.mxu1 %v19048_v12 }
 0x77a   :  { %16946 = vmatprep.subr.bf16.mxu1 %v19049_v21 }
 0x77b   :  { %v16798_v50 = vpop.f32.mrb[80].mxu1 }
 0x77c   :  { %v16799_v44 = vpop.f32.mrb[81].mxu1 }
 0x77d   :  { %v16800_v3 = vadd.f32 %v16799_v44, %v16798_v50  ;;  %16947 = vmatpush3.bf16.msra.mxu1 %v19050_v36  ;;  %v16801_v35 = vpop.f32.mrb[82].mxu1  ;;  %v16253_v50 = vld [vmem:[%s25373_s8] ss:$0 sm:$0xff] }
 0x77e   :  { %v16802_v41 = vpop.f32.mrb[83].mxu1  ;;  %16948 = vmatprep.subr.bf16.mxu1 %v19051_v1 }
 0x77f   :  { %v14643_v56 = vadd.f32 %v16800_v3, %v16124_v29 }
 0x781   :  { %16949 = vmatpush3.bf16.msra.mxu1 %v19052_v26 }
 0x782   :  { %16950 = vmatprep.subr.bf16.mxu1 %v19053_v17 }
 0x785   :  { %16951 = vmatpush3.bf16.msra.mxu1 %v19054_v31 }
 0x786   :  { %17975 = vmatprep.subr.bf16.mxu1 %v19381_v40 }
 0x788   :  { %14921 = vmatmul.mubr.bf16.vlgmr.msra.gmra.mrb[108].mxu1 %v13821_v4 }
 0x789   :  { %17976 = vmatpush3.bf16.msra.mxu1 %v19055_v58  ;;  %17991 = vmatprep.mubr.msk.bf16.mxu1 %vm19382_vm13, %v19381_v40 }
 0x78a   :  { %17977 = vmatprep.subr.bf16.mxu1 %v19381_v40 }
 0x78d   :  { %17978 = vmatpush3.bf16.msra.mxu1 %v19056_v19 }
 0x78e   :  { %17979 = vmatprep.subr.bf16.mxu1 %v19381_v40 }
 0x791   :  { %17980 = vmatpush3.bf16.msra.mxu1 %v19057_v14 }
 0x792   :  { %17981 = vmatprep.subr.bf16.mxu1 %v19381_v40 }
 0x795   :  { %17982 = vmatpush3.bf16.msra.mxu1 %v19058_v48 }
 0x796   :  { %17983 = vmatprep.subr.bf16.mxu1 %v19381_v40 }
 0x799   :  { %17984 = vmatpush3.bf16.msra.mxu1 %v19059_v6 }
 0x79a   :  { %17985 = vmatprep.subr.bf16.mxu1 %v19381_v40 }
 0x79b   :  { %v16820_v0 = vpop.f32.mrb[84].mxu1 }
 0x79c   :  { %v16821_v13 = vpop.f32.mrb[85].mxu1 }
 0x79d   :  { %v16822_v63 = vadd.f32 %v16821_v13, %v16820_v0  ;;  %v16823_v27 = vpop.f32.mrb[86].mxu1  ;;  %17986 = vmatpush3.bf16.msra.mxu1 %v19060_v5 }
 0x79e   :  { %v16824_v57 = vpop.f32.mrb[87].mxu1  ;;  %17987 = vmatprep.subr.bf16.mxu1 %v19381_v40 }
 0x79f   :  { %v14683_v2 = vadd.f32 %v16822_v63, %v14643_v56 }
 0x7a1   :  { %17988 = vmatpush3.bf16.msra.mxu1 %v19061_v11 }
 0x7a2   :  { %17989 = vmatprep.subr.bf16.mxu1 %v19381_v40 }
 0x7a5   :  { %17990 = vmatpush3.bf16.msra.mxu1 %v19062_v7 }
 0x7bb   :  { %v16842_v16 = vpop.f32.mrb[88].mxu1 }
 0x7bc   :  { %v16843_v20 = vpop.f32.mrb[89].mxu1 }
 0x7bd   :  { %v16844_v38 = vadd.f32 %v16843_v20, %v16842_v16  ;;  %v16845_v61 = vpop.f32.mrb[90].mxu1 }
 0x7be   :  { %v16846_v32 = vpop.f32.mrb[91].mxu1 }
 0x7bf   :  { %v14723_v46 = vadd.f32 %v16844_v38, %v14683_v2 }
 0x7db   :  { %v16864_v55 = vpop.f32.mrb[92].mxu1 }
 0x7dc   :  { %v16865_v60 = vpop.f32.mrb[93].mxu1 }
 0x7dd   :  { %v16866_v62 = vadd.f32 %v16865_v60, %v16864_v55  ;;  %v16867_v34 = vpop.f32.mrb[94].mxu1 }
 0x7de   :  { %v16868_v47 = vpop.f32.mrb[95].mxu1 }
 0x7df   :  { %v14763_v22 = vadd.f32 %v16866_v62, %v14723_v46 }
 0x7fb   :  { %v16886_v30 = vpop.f32.mrb[96].mxu1 }
 0x7fc   :  { %v16887_v43 = vpop.f32.mrb[97].mxu1 }
 0x7fd   :  { %v16888_v28 = vadd.f32 %v16887_v43, %v16886_v30  ;;  %v16889_v9 = vpop.f32.mrb[98].mxu1 }
 0x7fe   :  { %v16890_v39 = vpop.f32.mrb[99].mxu1 }
 0x7ff   :  { %v14803_v10 = vadd.f32 %v16888_v28, %v14763_v22 }
 0x81b   :  { %v16908_v23 = vpop.f32.mrb[100].mxu1 }
 0x81c   :  { %v16909_v18 = vpop.f32.mrb[101].mxu1 }
 0x81d   :  { %v16910_v45 = vadd.f32 %v16909_v18, %v16908_v23  ;;  %v16911_v33 = vpop.f32.mrb[102].mxu1 }
 0x81e   :  { %v16912_v53 = vpop.f32.mrb[103].mxu1 }
 0x81f   :  { %v14843_v25 = vadd.f32 %v16910_v45, %v14803_v10 }
 0x83b   :  { %v16930_v42 = vpop.f32.mrb[104].mxu1 }
 0x83c   :  { %v16931_v54 = vpop.f32.mrb[105].mxu1 }
 0x83d   :  { %v16932_v8 = vadd.f32 %v16931_v54, %v16930_v42  ;;  %v16933_v59 = vpop.f32.mrb[106].mxu1 }
 0x83e   :  { %v16934_v15 = vpop.f32.mrb[107].mxu1 }
 0x83f   :  { %v14883_v52 = vadd.f32 %v16932_v8, %v14843_v25 }
 0x85b   :  { %v16952_v49 = vpop.f32.mrb[108].mxu1 }
 0x85c   :  { %v16953_v37 = vpop.f32.mrb[109].mxu1 }
 0x85d   :  { %v16954_v51 = vadd.f32 %v16953_v37, %v16952_v49  ;;  %v16955_v24 = vpop.f32.mrb[110].mxu1 }
 0x85e   :  { %v16956_v12 = vpop.f32.mrb[111].mxu1 }
 0x85f   :  { %v14923_v21 = vadd.f32 %v16954_v51, %v14883_v52 }
 0x861   :  { %v14928_v36 = vmax.f32 %v14923_v21, 0.0 }
 0x863   :  { %v14929_v1 = vpack.c.bf16 %v14928_v36, %v14928_v36 }
 0x865   :  { %17992 = vmatmul.mubr.bf16.vlgmr.msra.gmra.mrb[112].mxu1 %v14929_v1 }
 0x938   :  { %v15035_v44 = vpop.f32.mrb[112].mxu1 }
 0x939   :  { %v15036_v3 = vadd.f32 %v16253_v50, %v15035_v44  ;;  %v17993_v35 = vpop.f32.mrb[113].mxu1 }
 0x93a   :  { %v15038_v26 = vpop.f32.mrb[114].mxu1 }
 0x93b   :  { %15041 = vst [vmem:[#allocation11] sm:$0x3] %v15036_v3  ;;  %v17994_v41 = vpop.f32.mrb[115].mxu1 }
 0x93c   :  { %19357 = shalt.err (!%p19354_p6)
}
 0x93d   :  { %s19358_s8 = scalar_lea.hbm %s25374_s9, 32 }
 0x93e   :  { %p19359_p7 = scmp.ne.s32.totalorder %s25374_s9, %s19358_s8  ;;  %p19362_p8 = scmp.lt.u32.totalorder %s19358_s8, %s25374_s9 }
 0x940   :  { %p19364_p9 = pnand %p19362_p8, %p19359_p7 }
 0x942   :  { %19367 = shalt.err (!%p19364_p9)
}
 0x943   :  { %15051 = dma.vmem_to_hbm [thread:$0]  %s15049_s26, 32, %s25374_s9, [#allocation8]  }
 0x944   :  { %19372 = dma.done.wait [#allocation8], 32  }
 0x945   :  { %19373 = vsyncadd [#allocation8], 4294967264 }
 0x946   :  { %15055 = vsyncpa [#allocation7], 1 }
 0x947   :  { %15056 = vsyncpa [#allocation10], 1 }
 0x948   :  { %15057 = vsyncpa [#allocation8], 1 }

</bundles_post_ra>
